<compile_context>
chip_gen: v7x
topology: tpu7x:2x2x1
jax: 0.10.0
libtpu: 0.0.40
codegen_flags: <defaults>
</compile_context>

<pallas_src>
import functools

import numpy as np
import jax
import jax.numpy as jnp
from jax import lax
from jax.experimental import pallas as pl
from jax.experimental.pallas import tpu as pltpu

_VMEM_LIMIT = 48 * 1024 * 1024   # <= v7x's 64 MiB with headroom, fine on v5e/v6e


# ----------------------------------------------------------------------------
# tiling helpers
# ----------------------------------------------------------------------------
def _round_up(x, m):
    return (x + m - 1) // m * m


def _pick_row_tile(M, max_tile=512):
    """Row tile for (M, Cin)@(Cin, Cout) kernels (cdiv grid, masked tail)."""
    if M >= max_tile:
        return max_tile
    return M if M % 8 == 0 else _round_up(M, 8)


def _pick_strip(H, target, min_rows=1):
    """Largest divisor of H that is <= target and >= min_rows (else whole H)."""
    if H <= target:
        return H
    for d in range(min(target, H), 0, -1):
        if d >= min_rows and H % d == 0:
            return d
    return H


def _silu(y):
    # y * sigmoid(y); exp + approximate reciprocal both run on the EUP slot so
    # the epilogue stays off the VALU and hidden under the MXU.
    return y * pl.reciprocal(1.0 + jnp.exp(-y), approx=True)


# ----------------------------------------------------------------------------
# Pallas kernels
# ----------------------------------------------------------------------------
def _mm_fused_kernel(*refs, n_in, in_ch, out_ch, act):
    # refs = (x_0..x_{n_in-1}, w, b, o_0..o_{n_out-1})
    # w rows are partitioned by in_ch (virtual concat of the inputs, never
    # materialized), w/bias cols by out_ch (fused sibling convs).
    x_refs = refs[:n_in]
    w_ref = refs[n_in]
    b_ref = refs[n_in + 1]
    o_refs = refs[n_in + 2:]

    wv = w_ref[...]                                     # bf16
    acc = None
    off = 0
    for xr, ci in zip(x_refs, in_ch):
        part = jnp.dot(xr[...].astype(jnp.bfloat16), wv[off:off + ci, :],
                       preferred_element_type=jnp.float32)
        acc = part if acc is None else acc + part
        off += ci

    y = acc + b_ref[...]                                # f32 epilogue
    if act:
        y = _silu(y)

    coff = 0
    for orf, co in zip(o_refs, out_ch):
        orf[...] = y[:, coff:coff + co].astype(orf.dtype)
        coff += co


def _conv3x3_kernel(x_ref, w_ref, b_ref, o_ref, *, H, W, th, act):
    # x: (1, H, W, Cin) full image resident in VMEM, o: (1, th, W, Cout) strip.
    # In-kernel zero halo; kh shift = leading-dim slice, kw shift = XLU roll.
    Cin = x_ref.shape[-1]
    Cout = o_ref.shape[-1]
    h0 = pl.multiple_of(pl.program_id(1) * th, th)

    core = x_ref[0, pl.ds(h0, th), :, :]                             # (th, W, Cin)
    top = x_ref[0, pl.ds(jnp.maximum(h0 - 1, 0), 1), :, :]
    top = jnp.where(h0 >= 1, top, 0.0)
    bot = x_ref[0, pl.ds(jnp.minimum(h0 + th, H - 1), 1), :, :]
    bot = jnp.where(h0 + th < H, bot, 0.0)
    xs = jnp.concatenate([top, core, bot], axis=0)                   # (th+2, W, Cin)
    xsf = xs.reshape((th + 2) * W, Cin)

    wv = w_ref[...]                                                  # (3,3,Cin,Cout) bf16
    wpos = lax.broadcasted_iota(jnp.int32, ((th + 2) * W, 1), 0) % W
    acc = jnp.zeros((th * W, Cout), jnp.float32)
    for kw, dw in enumerate((-1, 0, 1)):
        if dw == 0:
            vf = xsf
        else:
            rolled = pltpu.roll(xsf, (-dw) % xsf.shape[0], axis=0)
            valid = jnp.logical_and(wpos + dw >= 0, wpos + dw < W)
            vf = jnp.where(valid, rolled, 0.0)
        for kh in range(3):
            patch = vf[kh * W:kh * W + th * W]                       # cheap row shift
            acc = acc + jnp.dot(patch.astype(jnp.bfloat16), wv[kh, kw],
                                preferred_element_type=jnp.float32)

    y = acc + b_ref[...]
    if act:
        y = _silu(y)
    o_ref[0] = y.reshape(th, W, Cout).astype(o_ref.dtype)


def _spp_cv5_kernel(x_ref, w_ref, b_ref, o_ref, *, H, W, th, act):
    # Identity + stride-1 maxpools k=5,9,13 (exact SPPF cascade of k=5 pools)
    # fused with cv5's 4-way split-weight matmul + bias + SiLU.  Pooled tensors,
    # halos and the 4x channel concat never touch HBM.
    C = x_ref.shape[-1]
    Cout = o_ref.shape[-1]
    h0 = pl.multiple_of(pl.program_id(1) * th, th)
    neg = -jnp.inf                               # MaxPool2d pads with -inf

    core = x_ref[0, pl.ds(h0, th), :, :]                              # (th, W, C)
    if H >= 6:
        top = x_ref[0, pl.ds(jnp.maximum(h0 - 6, 0), 6), :, :]
        top = jnp.where(h0 >= 6, top, neg)
        bot = x_ref[0, pl.ds(jnp.clip(h0 + th, 0, H - 6), 6), :, :]
        bot = jnp.where(h0 + th + 6 <= H, bot, neg)
    else:
        top = jnp.full((6, W, C), neg, core.dtype)
        bot = jnp.full((6, W, C), neg, core.dtype)
    xs = jnp.concatenate([top, core, bot], axis=0)                    # (th+12, W, C)
    n0 = th + 12
    xsf = xs.reshape(n0 * W, C)

    wpos = lax.broadcasted_iota(jnp.int32, (n0 * W, 1), 0) % W
    wv = w_ref[...]                                                   # (4C, Cout) bf16

    def pool5(vf, n_in):
        """Separable k=5 stride-1 max pool on a (n_in*W, C) row-halo'd slab."""
        n_out = n_in - 4
        L = n_out * W
        rm = vf[0:L]
        for dh in range(1, 5):                     # row max: aligned slices
            rm = jnp.maximum(rm, vf[dh * W:dh * W + L])
        cm = rm
        for dw in (-2, -1, 1, 2):                  # col max: XLU roll + -inf mask
            rolled = pltpu.roll(rm, (-dw) % L, axis=0)
            valid = jnp.logical_and(wpos[:L] + dw >= 0, wpos[:L] + dw < W)
            cm = jnp.maximum(cm, jnp.where(valid, rolled, neg))
        return cm, n_out

    def dot_branch(vf, col):
        return jnp.dot(vf.astype(jnp.bfloat16), wv[col * C:(col + 1) * C, :],
                       preferred_element_type=jnp.float32)

    # Stream each branch into the accumulator as soon as it is available so the
    # pooled slabs don't all stay live simultaneously.
    acc = dot_branch(xsf[6 * W:6 * W + th * W], 0)        # identity
    p5, n5 = pool5(xsf, n0)                               # k=5
    acc = acc + dot_branch(p5[4 * W:4 * W + th * W], 1)
    p9, n9 = pool5(p5, n5)                                # k=9  == mp5(mp5)
    acc = acc + dot_branch(p9[2 * W:2 * W + th * W], 2)
    p13, _ = pool5(p9, n9)                                # k=13 == mp5(mp5(mp5))
    acc = acc + dot_branch(p13, 3)

    y = acc + b_ref[...]
    if act:
        y = _silu(y)
    o_ref[0] = y.reshape(th, W, Cout).astype(o_ref.dtype)


# ----------------------------------------------------------------------------
# Pallas-backed layer wrappers (NHWC)
# ----------------------------------------------------------------------------
def conv1x1_fused_pallas(xs, w, b, out_ch, act=True):
    """Fused multi-in / multi-out 1x1 conv (+folded BN bias, +SiLU)."""
    B, H, W = xs[0].shape[:3]
    in_ch = tuple(x.shape[-1] for x in xs)
    out_ch = tuple(out_ch)
    M = B * H * W
    x2ds = [x.reshape(M, c) for x, c in zip(xs, in_ch)]
    tm = _pick_row_tile(M)
    nM = pl.cdiv(M, tm)
    total = sum(out_ch)

    # Narrow per-output splits (<128 lanes) would force masked vst.msk stores;
    # write one lane-dense concatenated output and split outside the kernel.
    fuse_out = len(out_ch) > 1 and min(out_ch) < 128
    kern_out_ch = (total,) if fuse_out else out_ch

    kern = functools.partial(_mm_fused_kernel, n_in=len(xs), in_ch=in_ch,
                             out_ch=kern_out_ch, act=act)
    in_specs = ([pl.BlockSpec((tm, c), lambda i: (i, 0)) for c in in_ch]
                + [pl.BlockSpec(w.shape, lambda i: (0, 0)),
                   pl.BlockSpec((1, total), lambda i: (0, 0))])
    out_specs = [pl.BlockSpec((tm, co), lambda i: (i, 0)) for co in kern_out_ch]
    out_shape = [jax.ShapeDtypeStruct((M, co), xs[0].dtype) for co in kern_out_ch]
    single = len(kern_out_ch) == 1

    outs = pl.pallas_call(
        kern,
        grid=(nM,),
        in_specs=in_specs,
        out_specs=out_specs[0] if single else out_specs,
        out_shape=out_shape[0] if single else out_shape,
        compiler_params=pltpu.CompilerParams(
            dimension_semantics=("parallel",),
            vmem_limit_bytes=_VMEM_LIMIT),
    )(*x2ds, w, b)

    outs2d = [outs] if single else list(outs)
    if fuse_out:
        cat = outs2d[0]
        outs2d, off = [], 0
        for co in out_ch:
            outs2d.append(cat[:, off:off + co])
            off += co
    res = [o.reshape(B, H, W, co) for o, co in zip(outs2d, out_ch)]
    return res[0] if len(out_ch) == 1 else res


def conv3x3_pallas(x, p, act=True, max_strip_rows=8):
    B, H, W, Cin = x.shape
    Cout = p["w"].shape[-1]
    th = _pick_strip(H, max_strip_rows)
    kern = functools.partial(_conv3x3_kernel, H=H, W=W, th=th, act=act)
    return pl.pallas_call(
        kern,
        out_shape=jax.ShapeDtypeStruct((B, H, W, Cout), x.dtype),
        grid=(B, H // th),
        in_specs=[
            pl.BlockSpec((1, H, W, Cin), lambda b, i: (b, 0, 0, 0)),
            pl.BlockSpec((3, 3, Cin, Cout), lambda b, i: (0, 0, 0, 0)),
            pl.BlockSpec((1, Cout), lambda b, i: (0, 0)),
        ],
        out_specs=pl.BlockSpec((1, th, W, Cout), lambda b, i: (b, i, 0, 0)),
        compiler_params=pltpu.CompilerParams(
            dimension_semantics=("parallel", "parallel"),
            vmem_limit_bytes=_VMEM_LIMIT),
    )(x, p["w"], p["bias"])


def spp_cv5_pallas(x, p, act=True, max_strip_rows=8):
    B, H, W, C = x.shape
    Cout = p["w"].shape[1]
    th = _pick_strip(H, max_strip_rows, min_rows=min(6, H))
    kern = functools.partial(_spp_cv5_kernel, H=H, W=W, th=th, act=act)
    return pl.pallas_call(
        kern,
        out_shape=jax.ShapeDtypeStruct((B, H, W, Cout), x.dtype),
        grid=(B, H // th),
        in_specs=[
            pl.BlockSpec((1, H, W, C), lambda b, i: (b, 0, 0, 0)),
            pl.BlockSpec(p["w"].shape, lambda b, i: (0, 0)),
            pl.BlockSpec((1, Cout), lambda b, i: (0, 0)),
        ],
        out_specs=pl.BlockSpec((1, th, W, Cout), lambda b, i: (b, i, 0, 0)),
        compiler_params=pltpu.CompilerParams(
            dimension_semantics=("parallel", "parallel"),
            vmem_limit_bytes=_VMEM_LIMIT),
    )(x, p["w"], p["bias"])


# ----------------------------------------------------------------------------
# SPPCSPC forward (Pallas path) -- mirrors the PyTorch forward()
# ----------------------------------------------------------------------------
def prepare_kernel_params(p):
    """bf16 weights for the MXU, f32 biases; pre-build the fused cv1||cv2 weight."""
    kp = {name: dict(w=pp["w"].astype(jnp.bfloat16), bias=pp["bias"])
          for name, pp in p.items()}
    kp["cv12_w"] = jnp.concatenate([p["cv1"]["w"], p["cv2"]["w"]],
                                   axis=1).astype(jnp.bfloat16)
    kp["cv12_b"] = jnp.concatenate([p["cv1"]["bias"], p["cv2"]["bias"]], axis=1)
    return kp


def sppcspc_pallas(x, kp):
    c_ = kp["cv1"]["w"].shape[1]
    c2 = kp["cv7"]["w"].shape[1]

    # cv1 & cv2 share x -> one lane-dense matmul with a fused output.
    t1, y2 = conv1x1_fused_pallas([x], kp["cv12_w"], kp["cv12_b"], [c_, c_])

    # x1 = cv4(cv3(cv1(x)))
    x1 = conv1x1_fused_pallas([conv3x3_pallas(t1, kp["cv3"])],
                              kp["cv4"]["w"], kp["cv4"]["bias"], [c_])

    # y1 = cv6(cv5(cat([x1, mp5(x1), mp9(x1), mp13(x1)])))  -- pools + cv5 fused
    y1 = conv3x3_pallas(spp_cv5_pallas(x1, kp["cv5"]), kp["cv6"])

    # cv7(cat(y1, y2)) without materializing the concat (split-weight matmul)
    return conv1x1_fused_pallas([y1, y2], kp["cv7"]["w"], kp["cv7"]["bias"], [c2])


# ----------------------------------------------------------------------------
# Pure-JAX f32 reference (for correctness check)
# ----------------------------------------------------------------------------
def _conv1x1_ref(x, pp):
    y = jnp.einsum("bhwi,io->bhwo", x, pp["w"]) + pp["bias"].reshape(1, 1, 1, -1)
    return y * jax.nn.sigmoid(y)


def _conv3x3_ref(x, pp):
    y = lax.conv_general_dilated(
        x, pp["w"], (1, 1), [(1, 1), (1, 1)],
        dimension_numbers=("NHWC", "HWIO", "NHWC")) + pp["bias"].reshape(1, 1, 1, -1)
    return y * jax.nn.sigmoid(y)


def _maxpool_ref(x, k):
    pd = k // 2
    return lax.reduce_window(x, -jnp.inf, lax.max, (1, k, k, 1), (1, 1, 1, 1),
                             [(0, 0), (pd, pd), (pd, pd), (0, 0)])


def sppcspc_ref(x, p):
    x1 = _conv1x1_ref(_conv3x3_ref(_conv1x1_ref(x, p["cv1"]), p["cv3"]), p["cv4"])
    cat = jnp.concatenate(
        [x1, _maxpool_ref(x1, 5), _maxpool_ref(x1, 9), _maxpool_ref(x1, 13)], axis=-1)
    y1 = _conv3x3_ref(_conv1x1_ref(cat, p["cv5"]), p["cv6"])
    y2 = _conv1x1_ref(x, p["cv2"])
    return _conv1x1_ref(jnp.concatenate([y1, y2], axis=-1), p["cv7"])


# ----------------------------------------------------------------------------
# Deterministic parameter init (BatchNorm eval mode, scale folded into weights)
# ----------------------------------------------------------------------------
def _init_bn_folded(key, c):
    k1, k2, k3, k4 = jax.random.split(key, 4)
    gamma = 1.0 + 0.1 * jax.random.normal(k1, (c,), jnp.float32)
    beta = 0.05 * jax.random.normal(k2, (c,), jnp.float32)
    mean = 0.1 * jax.random.normal(k3, (c,), jnp.float32)
    var = jax.random.uniform(k4, (c,), jnp.float32, minval=0.5, maxval=1.5)
    scale = gamma / jnp.sqrt(var + 1e-5)
    bias = beta - mean * scale
    return scale, bias


def _init_1x1(key, cin, cout):
    kw, kb = jax.random.split(key)
    w = 0.2 * jax.random.normal(kw, (cin, cout), jnp.float32)
    scale, bias = _init_bn_folded(kb, cout)
    return dict(w=w * scale[None, :], bias=bias.reshape(1, cout))


def _init_3x3(key, cin, cout):
    kw, kb = jax.random.split(key)
    w = 0.2 * jax.random.normal(kw, (3, 3, cin, cout), jnp.float32)   # HWIO
    scale, bias = _init_bn_folded(kb, cout)
    return dict(w=w * scale.reshape(1, 1, 1, cout), bias=bias.reshape(1, cout))


def init_params(key, c1, c2, e=0.5):
    c_ = int(2 * c2 * e)
    ks = jax.random.split(key, 7)
    return {
        "cv1": _init_1x1(ks[0], c1, c_),
        "cv2": _init_1x1(ks[1], c1, c_),
        "cv3": _init_3x3(ks[2], c_, c_),
        "cv4": _init_1x1(ks[3], c_, c_),
        "cv5": _init_1x1(ks[4], 4 * c_, c_),
        "cv6": _init_3x3(ks[5], c_, c_),
        "cv7": _init_1x1(ks[6], 2 * c_, c2),
    }


# ----------------------------------------------------------------------------
if __name__ == "__main__":
    B, C1, C2, H, W = 2, 8, 8, 16, 16
    key = jax.random.PRNGKey(0)
    kx, kp = jax.random.split(key)

    # PyTorch-style NCHW input -> NHWC for the kernels.
    x_nchw = jax.random.normal(kx, (B, C1, H, W), jnp.float32)
    x_nhwc = jnp.transpose(x_nchw, (0, 2, 3, 1))

    params = init_params(kp, C1, C2, e=0.5)
    kparams = prepare_kernel_params(params)

    fwd = jax.jit(lambda x: sppcspc_pallas(x, kparams))
    out = jax.block_until_ready(fwd(x_nhwc))

    # f32 reference; tolerance sized for bf16 matmul operands (f32 accumulate).
    ref = sppcspc_ref(x_nhwc, params)
    np.testing.assert_allclose(np.asarray(out), np.asarray(ref), rtol=2e-2, atol=2e-2)
    assert out.shape == (B, H, W, C2)

    print("KERNEL_OK")
</pallas_src>

<mosaic_0001>
module attributes {stable_mosaic.version = 11 : i64} {
  func.func @_conv3x3_kernel(%arg0: i32, %arg1: i32, %arg2: memref<1x16x16x8xf32, #tpu.memory_space<vmem>>, %arg3: memref<3x3x8x8xbf16, #tpu.memory_space<vmem>>, %arg4: memref<1x8xf32, #tpu.memory_space<vmem>>, %arg5: memref<1x8x16x8xf32, #tpu.memory_space<vmem>>) attributes {dimension_semantics = [#tpu.dimension_semantics<parallel>, #tpu.dimension_semantics<parallel>], iteration_bounds = array<i64: 2, 2>, scalar_prefetch = 0 : i64, scratch_operands = 0 : i64, tpu.core_type = #tpu.core_type<tc>, window_params = [{transform_indices = @transform_0, window_bounds = array<i64: 1, 16, 16, 8>}, {pipeline_mode = #tpu.pipeline_mode<synchronous>, transform_indices = @transform_1, window_bounds = array<i64: 3, 3, 8, 8>}, {pipeline_mode = #tpu.pipeline_mode<synchronous>, transform_indices = @transform_2, window_bounds = array<i64: 1, 8>}, {transform_indices = @transform_3, window_bounds = array<i64: 1, 8, 16, 8>}]} {
    %c8_i32 = arith.constant 8 : i32
    %0 = arith.muli %arg1, %c8_i32 : i32
    %1 = tpu.assume_multiple %0, 8 : i32
    %c0 = arith.constant 0 : index
    %2 = arith.index_cast %1 : i32 to index
    %c0_0 = arith.constant 0 : index
    %c0_1 = arith.constant 0 : index
    %3 = vector.load %arg2[%c0, %2, %c0_0, %c0_1] : memref<1x16x16x8xf32, #tpu.memory_space<vmem>>, vector<1x8x16x8xf32>
    %4 = vector.shape_cast %3 : vector<1x8x16x8xf32> to vector<8x16x8xf32>
    %c1_i32 = arith.constant 1 : i32
    %5 = arith.subi %1, %c1_i32 : i32
    %c0_i32 = arith.constant 0 : i32
    %6 = arith.maxsi %5, %c0_i32 : i32
    %c0_2 = arith.constant 0 : index
    %7 = arith.index_cast %6 : i32 to index
    %c0_3 = arith.constant 0 : index
    %c0_4 = arith.constant 0 : index
    %8 = vector.load %arg2[%c0_2, %7, %c0_3, %c0_4] : memref<1x16x16x8xf32, #tpu.memory_space<vmem>>, vector<1x1x16x8xf32>
    %9 = vector.shape_cast %8 : vector<1x1x16x8xf32> to vector<1x16x8xf32>
    %c1_i32_5 = arith.constant 1 : i32
    %10 = arith.cmpi sge, %1, %c1_i32_5 : i32
    %cst = arith.constant 0.000000e+00 : f32
    %11 = vector.broadcast %cst : f32 to vector<1x16x8xf32>
    %12 = arith.select %10, %9, %11 : vector<1x16x8xf32>
    %c8_i32_6 = arith.constant 8 : i32
    %13 = arith.addi %1, %c8_i32_6 : i32
    %c15_i32 = arith.constant 15 : i32
    %14 = arith.minsi %13, %c15_i32 : i32
    %c0_7 = arith.constant 0 : index
    %15 = arith.index_cast %14 : i32 to index
    %c0_8 = arith.constant 0 : index
    %c0_9 = arith.constant 0 : index
    %16 = vector.load %arg2[%c0_7, %15, %c0_8, %c0_9] : memref<1x16x16x8xf32, #tpu.memory_space<vmem>>, vector<1x1x16x8xf32>
    %17 = vector.shape_cast %16 : vector<1x1x16x8xf32> to vector<1x16x8xf32>
    %c8_i32_10 = arith.constant 8 : i32
    %18 = arith.addi %1, %c8_i32_10 : i32
    %c16_i32 = arith.constant 16 : i32
    %19 = arith.cmpi slt, %18, %c16_i32 : i32
    %cst_11 = arith.constant 0.000000e+00 : f32
    %20 = vector.broadcast %cst_11 : f32 to vector<1x16x8xf32>
    %21 = arith.select %19, %17, %20 : vector<1x16x8xf32>
    %22 = tpu.concatenate %12, %4, %21 in 0 : vector<1x16x8xf32>, vector<8x16x8xf32>, vector<1x16x8xf32> -> vector<10x16x8xf32>
    %23 = vector.shape_cast %22 : vector<10x16x8xf32> to vector<160x8xf32>
    %c0_12 = arith.constant 0 : index
    %c0_13 = arith.constant 0 : index
    %c0_14 = arith.constant 0 : index
    %c0_15 = arith.constant 0 : index
    %24 = vector.load %arg3[%c0_12, %c0_13, %c0_14, %c0_15] : memref<3x3x8x8xbf16, #tpu.memory_space<vmem>>, vector<3x3x8x8xbf16>
    %25 = tpu.iota {dimensions = array<i32: 0>} : vector<160x1xi32>
    %c16_i32_16 = arith.constant 16 : i32
    %c0_i32_17 = arith.constant 0 : i32
    %26 = arith.cmpi eq, %c16_i32_16, %c0_i32_17 : i32
    %c1_i32_18 = arith.constant 1 : i32
    %27 = arith.select %26, %c1_i32_18, %c16_i32_16 : i32
    %28 = vector.broadcast %27 : i32 to vector<160x1xi32>
    %29 = arith.remsi %25, %28 : vector<160x1xi32>
    %c0_i32_19 = arith.constant 0 : i32
    %30 = vector.broadcast %c0_i32_19 : i32 to vector<160x1xi32>
    %31 = arith.cmpi ne, %29, %30 : vector<160x1xi32>
    %c0_i32_20 = arith.constant 0 : i32
    %32 = vector.broadcast %c0_i32_20 : i32 to vector<160x1xi32>
    %33 = arith.cmpi slt, %29, %32 : vector<160x1xi32>
    %c0_i32_21 = arith.constant 0 : i32
    %34 = arith.cmpi slt, %27, %c0_i32_21 : i32
    %35 = vector.broadcast %34 : i1 to vector<160x1xi1>
    %36 = vector.broadcast %35 : vector<160x1xi1> to vector<160x1xi1>
    %37 = arith.xori %33, %36 : vector<160x1xi1>
    %38 = arith.andi %37, %31 : vector<160x1xi1>
    %39 = vector.broadcast %27 : i32 to vector<160x1xi32>
    %40 = arith.addi %29, %39 : vector<160x1xi32>
    %41 = arith.select %38, %40, %29 : vector<160x1xi1>, vector<160x1xi32>
    %cst_22 = arith.constant 0.000000e+00 : f32
    %42 = vector.broadcast %cst_22 : f32 to vector<128x8xf32>
    %c1_i32_23 = arith.constant 1 : i32
    %43 = tpu.dynamic_rotate %23 by %c1_i32_23 dim 0 : vector<160x8xf32>, i32 -> vector<160x8xf32>
    %c-1_i32 = arith.constant -1 : i32
    %44 = vector.broadcast %c-1_i32 : i32 to vector<160x1xi32>
    %45 = arith.addi %41, %44 : vector<160x1xi32>
    %c0_i32_24 = arith.constant 0 : i32
    %46 = vector.broadcast %c0_i32_24 : i32 to vector<160x1xi32>
    %47 = arith.cmpi sge, %45, %46 : vector<160x1xi32>
    %c-1_i32_25 = arith.constant -1 : i32
    %48 = vector.broadcast %c-1_i32_25 : i32 to vector<160x1xi32>
    %49 = arith.addi %41, %48 : vector<160x1xi32>
    %c16_i32_26 = arith.constant 16 : i32
    %50 = vector.broadcast %c16_i32_26 : i32 to vector<160x1xi32>
    %51 = arith.cmpi slt, %49, %50 : vector<160x1xi32>
    %52 = arith.andi %47, %51 : vector<160x1xi1>
    %cst_27 = arith.constant 0.000000e+00 : f32
    %53 = vector.shape_cast %52 : vector<160x1xi1> to vector<160x1xi1>
    %54 = vector.broadcast %53 : vector<160x1xi1> to vector<160x8xi1>
    %55 = vector.broadcast %cst_27 : f32 to vector<160x8xf32>
    %56 = arith.select %54, %43, %55 : vector<160x8xi1>, vector<160x8xf32>
    %57 = vector.extract_strided_slice %56 {offsets = [0, 0], sizes = [128, 8], strides = [1, 1]} : vector<160x8xf32> to vector<128x8xf32>
    %58 = arith.truncf %57 : vector<128x8xf32> to vector<128x8xbf16>
    %59 = vector.extract_strided_slice %24 {offsets = [0, 0, 0, 0], sizes = [1, 1, 8, 8], strides = [1, 1, 1, 1]} : vector<3x3x8x8xbf16> to vector<1x1x8x8xbf16>
    %60 = vector.shape_cast %59 : vector<1x1x8x8xbf16> to vector<8x8xbf16>
    %cst_28 = arith.constant dense<0.000000e+00> : vector<128x8xf32>
    %61 = tpu.matmul %58, %60, %cst_28 {dimension_numbers = #tpu.dot_dimension_numbers<[1], [0], [0], [1], [0, 0, 1, 1], [], []>} : vector<128x8xbf16>, vector<8x8xbf16>, vector<128x8xf32> -> vector<128x8xf32>
    %62 = arith.addf %42, %61 : vector<128x8xf32>
    %63 = vector.extract_strided_slice %56 {offsets = [16, 0], sizes = [128, 8], strides = [1, 1]} : vector<160x8xf32> to vector<128x8xf32>
    %64 = arith.truncf %63 : vector<128x8xf32> to vector<128x8xbf16>
    %65 = vector.extract_strided_slice %24 {offsets = [1, 0, 0, 0], sizes = [1, 1, 8, 8], strides = [1, 1, 1, 1]} : vector<3x3x8x8xbf16> to vector<1x1x8x8xbf16>
    %66 = vector.shape_cast %65 : vector<1x1x8x8xbf16> to vector<8x8xbf16>
    %cst_29 = arith.constant dense<0.000000e+00> : vector<128x8xf32>
    %67 = tpu.matmul %64, %66, %cst_29 {dimension_numbers = #tpu.dot_dimension_numbers<[1], [0], [0], [1], [0, 0, 1, 1], [], []>} : vector<128x8xbf16>, vector<8x8xbf16>, vector<128x8xf32> -> vector<128x8xf32>
    %68 = arith.addf %62, %67 : vector<128x8xf32>
    %69 = vector.extract_strided_slice %56 {offsets = [32, 0], sizes = [128, 8], strides = [1, 1]} : vector<160x8xf32> to vector<128x8xf32>
    %70 = arith.truncf %69 : vector<128x8xf32> to vector<128x8xbf16>
    %71 = vector.extract_strided_slice %24 {offsets = [2, 0, 0, 0], sizes = [1, 1, 8, 8], strides = [1, 1, 1, 1]} : vector<3x3x8x8xbf16> to vector<1x1x8x8xbf16>
    %72 = vector.shape_cast %71 : vector<1x1x8x8xbf16> to vector<8x8xbf16>
    %cst_30 = arith.constant dense<0.000000e+00> : vector<128x8xf32>
    %73 = tpu.matmul %70, %72, %cst_30 {dimension_numbers = #tpu.dot_dimension_numbers<[1], [0], [0], [1], [0, 0, 1, 1], [], []>} : vector<128x8xbf16>, vector<8x8xbf16>, vector<128x8xf32> -> vector<128x8xf32>
    %74 = arith.addf %68, %73 : vector<128x8xf32>
    %75 = vector.extract_strided_slice %23 {offsets = [0, 0], sizes = [128, 8], strides = [1, 1]} : vector<160x8xf32> to vector<128x8xf32>
    %76 = arith.truncf %75 : vector<128x8xf32> to vector<128x8xbf16>
    %77 = vector.extract_strided_slice %24 {offsets = [0, 1, 0, 0], sizes = [1, 1, 8, 8], strides = [1, 1, 1, 1]} : vector<3x3x8x8xbf16> to vector<1x1x8x8xbf16>
    %78 = vector.shape_cast %77 : vector<1x1x8x8xbf16> to vector<8x8xbf16>
    %cst_31 = arith.constant dense<0.000000e+00> : vector<128x8xf32>
    %79 = tpu.matmul %76, %78, %cst_31 {dimension_numbers = #tpu.dot_dimension_numbers<[1], [0], [0], [1], [0, 0, 1, 1], [], []>} : vector<128x8xbf16>, vector<8x8xbf16>, vector<128x8xf32> -> vector<128x8xf32>
    %80 = arith.addf %74, %79 : vector<128x8xf32>
    %81 = vector.extract_strided_slice %23 {offsets = [16, 0], sizes = [128, 8], strides = [1, 1]} : vector<160x8xf32> to vector<128x8xf32>
    %82 = arith.truncf %81 : vector<128x8xf32> to vector<128x8xbf16>
    %83 = vector.extract_strided_slice %24 {offsets = [1, 1, 0, 0], sizes = [1, 1, 8, 8], strides = [1, 1, 1, 1]} : vector<3x3x8x8xbf16> to vector<1x1x8x8xbf16>
    %84 = vector.shape_cast %83 : vector<1x1x8x8xbf16> to vector<8x8xbf16>
    %cst_32 = arith.constant dense<0.000000e+00> : vector<128x8xf32>
    %85 = tpu.matmul %82, %84, %cst_32 {dimension_numbers = #tpu.dot_dimension_numbers<[1], [0], [0], [1], [0, 0, 1, 1], [], []>} : vector<128x8xbf16>, vector<8x8xbf16>, vector<128x8xf32> -> vector<128x8xf32>
    %86 = arith.addf %80, %85 : vector<128x8xf32>
    %87 = vector.extract_strided_slice %23 {offsets = [32, 0], sizes = [128, 8], strides = [1, 1]} : vector<160x8xf32> to vector<128x8xf32>
    %88 = arith.truncf %87 : vector<128x8xf32> to vector<128x8xbf16>
    %89 = vector.extract_strided_slice %24 {offsets = [2, 1, 0, 0], sizes = [1, 1, 8, 8], strides = [1, 1, 1, 1]} : vector<3x3x8x8xbf16> to vector<1x1x8x8xbf16>
    %90 = vector.shape_cast %89 : vector<1x1x8x8xbf16> to vector<8x8xbf16>
    %cst_33 = arith.constant dense<0.000000e+00> : vector<128x8xf32>
    %91 = tpu.matmul %88, %90, %cst_33 {dimension_numbers = #tpu.dot_dimension_numbers<[1], [0], [0], [1], [0, 0, 1, 1], [], []>} : vector<128x8xbf16>, vector<8x8xbf16>, vector<128x8xf32> -> vector<128x8xf32>
    %92 = arith.addf %86, %91 : vector<128x8xf32>
    %c159_i32 = arith.constant 159 : i32
    %93 = tpu.dynamic_rotate %23 by %c159_i32 dim 0 : vector<160x8xf32>, i32 -> vector<160x8xf32>
    %c1_i32_34 = arith.constant 1 : i32
    %94 = vector.broadcast %c1_i32_34 : i32 to vector<160x1xi32>
    %95 = arith.addi %41, %94 : vector<160x1xi32>
    %c0_i32_35 = arith.constant 0 : i32
    %96 = vector.broadcast %c0_i32_35 : i32 to vector<160x1xi32>
    %97 = arith.cmpi sge, %95, %96 : vector<160x1xi32>
    %c1_i32_36 = arith.constant 1 : i32
    %98 = vector.broadcast %c1_i32_36 : i32 to vector<160x1xi32>
    %99 = arith.addi %41, %98 : vector<160x1xi32>
    %c16_i32_37 = arith.constant 16 : i32
    %100 = vector.broadcast %c16_i32_37 : i32 to vector<160x1xi32>
    %101 = arith.cmpi slt, %99, %100 : vector<160x1xi32>
    %102 = arith.andi %97, %101 : vector<160x1xi1>
    %cst_38 = arith.constant 0.000000e+00 : f32
    %103 = vector.shape_cast %102 : vector<160x1xi1> to vector<160x1xi1>
    %104 = vector.broadcast %103 : vector<160x1xi1> to vector<160x8xi1>
    %105 = vector.broadcast %cst_38 : f32 to vector<160x8xf32>
    %106 = arith.select %104, %93, %105 : vector<160x8xi1>, vector<160x8xf32>
    %107 = vector.extract_strided_slice %106 {offsets = [0, 0], sizes = [128, 8], strides = [1, 1]} : vector<160x8xf32> to vector<128x8xf32>
    %108 = arith.truncf %107 : vector<128x8xf32> to vector<128x8xbf16>
    %109 = vector.extract_strided_slice %24 {offsets = [0, 2, 0, 0], sizes = [1, 1, 8, 8], strides = [1, 1, 1, 1]} : vector<3x3x8x8xbf16> to vector<1x1x8x8xbf16>
    %110 = vector.shape_cast %109 : vector<1x1x8x8xbf16> to vector<8x8xbf16>
    %cst_39 = arith.constant dense<0.000000e+00> : vector<128x8xf32>
    %111 = tpu.matmul %108, %110, %cst_39 {dimension_numbers = #tpu.dot_dimension_numbers<[1], [0], [0], [1], [0, 0, 1, 1], [], []>} : vector<128x8xbf16>, vector<8x8xbf16>, vector<128x8xf32> -> vector<128x8xf32>
    %112 = arith.addf %92, %111 : vector<128x8xf32>
    %113 = vector.extract_strided_slice %106 {offsets = [16, 0], sizes = [128, 8], strides = [1, 1]} : vector<160x8xf32> to vector<128x8xf32>
    %114 = arith.truncf %113 : vector<128x8xf32> to vector<128x8xbf16>
    %115 = vector.extract_strided_slice %24 {offsets = [1, 2, 0, 0], sizes = [1, 1, 8, 8], strides = [1, 1, 1, 1]} : vector<3x3x8x8xbf16> to vector<1x1x8x8xbf16>
    %116 = vector.shape_cast %115 : vector<1x1x8x8xbf16> to vector<8x8xbf16>
    %cst_40 = arith.constant dense<0.000000e+00> : vector<128x8xf32>
    %117 = tpu.matmul %114, %116, %cst_40 {dimension_numbers = #tpu.dot_dimension_numbers<[1], [0], [0], [1], [0, 0, 1, 1], [], []>} : vector<128x8xbf16>, vector<8x8xbf16>, vector<128x8xf32> -> vector<128x8xf32>
    %118 = arith.addf %112, %117 : vector<128x8xf32>
    %119 = vector.extract_strided_slice %106 {offsets = [32, 0], sizes = [128, 8], strides = [1, 1]} : vector<160x8xf32> to vector<128x8xf32>
    %120 = arith.truncf %119 : vector<128x8xf32> to vector<128x8xbf16>
    %121 = vector.extract_strided_slice %24 {offsets = [2, 2, 0, 0], sizes = [1, 1, 8, 8], strides = [1, 1, 1, 1]} : vector<3x3x8x8xbf16> to vector<1x1x8x8xbf16>
    %122 = vector.shape_cast %121 : vector<1x1x8x8xbf16> to vector<8x8xbf16>
    %cst_41 = arith.constant dense<0.000000e+00> : vector<128x8xf32>
    %123 = tpu.matmul %120, %122, %cst_41 {dimension_numbers = #tpu.dot_dimension_numbers<[1], [0], [0], [1], [0, 0, 1, 1], [], []>} : vector<128x8xbf16>, vector<8x8xbf16>, vector<128x8xf32> -> vector<128x8xf32>
    %124 = arith.addf %118, %123 : vector<128x8xf32>
    %c0_42 = arith.constant 0 : index
    %c0_43 = arith.constant 0 : index
    %125 = vector.load %arg4[%c0_42, %c0_43] : memref<1x8xf32, #tpu.memory_space<vmem>>, vector<1x8xf32>
    %126 = vector.broadcast %125 : vector<1x8xf32> to vector<128x8xf32>
    %127 = arith.addf %124, %126 : vector<128x8xf32>
    %cst_44 = arith.constant 0.000000e+00 : f32
    %128 = vector.broadcast %cst_44 : f32 to vector<128x8xf32>
    %129 = arith.subf %128, %127 : vector<128x8xf32>
    %130 = math.exp %129 : vector<128x8xf32>
    %cst_45 = arith.constant 1.000000e+00 : f32
    %131 = vector.broadcast %cst_45 : f32 to vector<128x8xf32>
    %132 = arith.addf %131, %130 : vector<128x8xf32>
    %133 = tpu.reciprocal %132 {approx = true} : vector<128x8xf32> -> vector<128x8xf32>
    %134 = arith.mulf %127, %133 : vector<128x8xf32>
    %135 = vector.shape_cast %134 : vector<128x8xf32> to vector<8x16x8xf32>
    %c0_46 = arith.constant 0 : index
    %c0_47 = arith.constant 0 : index
    %c0_48 = arith.constant 0 : index
    %c0_49 = arith.constant 0 : index
    %136 = vector.load %arg5[%c0_46, %c0_47, %c0_48, %c0_49] : memref<1x8x16x8xf32, #tpu.memory_space<vmem>>, vector<1x8x16x8xf32>
    %137 = vector.shape_cast %136 : vector<1x8x16x8xf32> to vector<8x16x8xf32>
    %138 = vector.shape_cast %135 : vector<8x16x8xf32> to vector<1x8x16x8xf32>
    tpu.vector_store %arg5[%c0_46, %c0_47, %c0_48, %c0_49], %138 {strides = array<i32>} : memref<1x8x16x8xf32, #tpu.memory_space<vmem>>, vector<1x8x16x8xf32>,
    return
  }
  func.func @transform_0(%arg0: i32, %arg1: i32) -> (i32, i32, i32, i32) {
    %c0_i32 = arith.constant 0 : i32
    %c0_i32_0 = arith.constant 0 : i32
    %c0_i32_1 = arith.constant 0 : i32
    %c0_i32_2 = arith.constant 0 : i32
    return %arg0, %c0_i32, %c0_i32_0, %c0_i32_1 : i32, i32, i32, i32
  }
  func.func @transform_1(%arg0: i32, %arg1: i32) -> (i32, i32, i32, i32) {
    %c0_i32 = arith.constant 0 : i32
    %c0_i32_0 = arith.constant 0 : i32
    %c0_i32_1 = arith.constant 0 : i32
    %c0_i32_2 = arith.constant 0 : i32
    %c0_i32_3 = arith.constant 0 : i32
    return %c0_i32, %c0_i32_0, %c0_i32_1, %c0_i32_2 : i32, i32, i32, i32
  }
  func.func @transform_2(%arg0: i32, %arg1: i32) -> (i32, i32) {
    %c0_i32 = arith.constant 0 : i32
    %c0_i32_0 = arith.constant 0 : i32
    %c0_i32_1 = arith.constant 0 : i32
    return %c0_i32, %c0_i32_0 : i32, i32
  }
  func.func @transform_3(%arg0: i32, %arg1: i32) -> (i32, i32, i32, i32) {
    %c0_i32 = arith.constant 0 : i32
    %c0_i32_0 = arith.constant 0 : i32
    %c0_i32_1 = arith.constant 0 : i32
    return %arg0, %arg1, %c0_i32, %c0_i32_0 : i32, i32, i32, i32
  }
}

module attributes {stable_mosaic.version = 11 : i64} {
  func.func @_mm_fused_kernel(%arg0: i32, %arg1: memref<512x8xf32, #tpu.memory_space<vmem>>, %arg2: memref<8x16xbf16, #tpu.memory_space<vmem>>, %arg3: memref<1x16xf32, #tpu.memory_space<vmem>>, %arg4: memref<512x16xf32, #tpu.memory_space<vmem>>) attributes {dimension_semantics = [#tpu.dimension_semantics<parallel>], iteration_bounds = array<i64: 1>, scalar_prefetch = 0 : i64, scratch_operands = 0 : i64, tpu.core_type = #tpu.core_type<tc>, window_params = [{transform_indices = @transform_0, window_bounds = array<i64: 512, 8>}, {pipeline_mode = #tpu.pipeline_mode<synchronous>, transform_indices = @transform_1, window_bounds = array<i64: 8, 16>}, {pipeline_mode = #tpu.pipeline_mode<synchronous>, transform_indices = @transform_2, window_bounds = array<i64: 1, 16>}, {transform_indices = @transform_3, window_bounds = array<i64: 512, 16>}]} {
    %c0 = arith.constant 0 : index
    %c0_0 = arith.constant 0 : index
    %0 = vector.load %arg2[%c0, %c0_0] : memref<8x16xbf16, #tpu.memory_space<vmem>>, vector<8x16xbf16>
    %c0_1 = arith.constant 0 : index
    %c0_2 = arith.constant 0 : index
    %1 = vector.load %arg1[%c0_1, %c0_2] : memref<512x8xf32, #tpu.memory_space<vmem>>, vector<512x8xf32>
    %2 = arith.truncf %1 : vector<512x8xf32> to vector<512x8xbf16>
    %cst = arith.constant dense<0.000000e+00> : vector<512x16xf32>
    %3 = tpu.matmul %2, %0, %cst {dimension_numbers = #tpu.dot_dimension_numbers<[1], [0], [0], [1], [0, 0, 1, 1], [], []>} : vector<512x8xbf16>, vector<8x16xbf16>, vector<512x16xf32> -> vector<512x16xf32>
    %c0_3 = arith.constant 0 : index
    %c0_4 = arith.constant 0 : index
    %4 = vector.load %arg3[%c0_3, %c0_4] : memref<1x16xf32, #tpu.memory_space<vmem>>, vector<1x16xf32>
    %5 = vector.broadcast %4 : vector<1x16xf32> to vector<512x16xf32>
    %6 = arith.addf %3, %5 : vector<512x16xf32>
    %cst_5 = arith.constant 0.000000e+00 : f32
    %7 = vector.broadcast %cst_5 : f32 to vector<512x16xf32>
    %8 = arith.subf %7, %6 : vector<512x16xf32>
    %9 = math.exp %8 : vector<512x16xf32>
    %cst_6 = arith.constant 1.000000e+00 : f32
    %10 = vector.broadcast %cst_6 : f32 to vector<512x16xf32>
    %11 = arith.addf %10, %9 : vector<512x16xf32>
    %12 = tpu.reciprocal %11 {approx = true} : vector<512x16xf32> -> vector<512x16xf32>
    %13 = arith.mulf %6, %12 : vector<512x16xf32>
    %c0_7 = arith.constant 0 : index
    %c0_8 = arith.constant 0 : index
    %14 = vector.load %arg4[%c0_7, %c0_8] : memref<512x16xf32, #tpu.memory_space<vmem>>, vector<512x16xf32>
    tpu.vector_store %arg4[%c0_7, %c0_8], %13 {strides = array<i32>} : memref<512x16xf32, #tpu.memory_space<vmem>>, vector<512x16xf32>,
    return
  }
  func.func @transform_0(%arg0: i32) -> (i32, i32) {
    %c0_i32 = arith.constant 0 : i32
    %c0_i32_0 = arith.constant 0 : i32
    return %arg0, %c0_i32 : i32, i32
  }
  func.func @transform_1(%arg0: i32) -> (i32, i32) {
    %c0_i32 = arith.constant 0 : i32
    %c0_i32_0 = arith.constant 0 : i32
    %c0_i32_1 = arith.constant 0 : i32
    return %c0_i32, %c0_i32_0 : i32, i32
  }
  func.func @transform_2(%arg0: i32) -> (i32, i32) {
    %c0_i32 = arith.constant 0 : i32
    %c0_i32_0 = arith.constant 0 : i32
    %c0_i32_1 = arith.constant 0 : i32
    return %c0_i32, %c0_i32_0 : i32, i32
  }
  func.func @transform_3(%arg0: i32) -> (i32, i32) {
    %c0_i32 = arith.constant 0 : i32
    %c0_i32_0 = arith.constant 0 : i32
    return %arg0, %c0_i32 : i32, i32
  }
}

module attributes {stable_mosaic.version = 11 : i64} {
  func.func @_mm_fused_kernel(%arg0: i32, %arg1: memref<512x8xf32, #tpu.memory_space<vmem>>, %arg2: memref<8x8xbf16, #tpu.memory_space<vmem>>, %arg3: memref<1x8xf32, #tpu.memory_space<vmem>>, %arg4: memref<512x8xf32, #tpu.memory_space<vmem>>) attributes {dimension_semantics = [#tpu.dimension_semantics<parallel>], iteration_bounds = array<i64: 1>, scalar_prefetch = 0 : i64, scratch_operands = 0 : i64, tpu.core_type = #tpu.core_type<tc>, window_params = [{transform_indices = @transform_0, window_bounds = array<i64: 512, 8>}, {pipeline_mode = #tpu.pipeline_mode<synchronous>, transform_indices = @transform_1, window_bounds = array<i64: 8, 8>}, {pipeline_mode = #tpu.pipeline_mode<synchronous>, transform_indices = @transform_2, window_bounds = array<i64: 1, 8>}, {transform_indices = @transform_3, window_bounds = array<i64: 512, 8>}]} {
    %c0 = arith.constant 0 : index
    %c0_0 = arith.constant 0 : index
    %0 = vector.load %arg2[%c0, %c0_0] : memref<8x8xbf16, #tpu.memory_space<vmem>>, vector<8x8xbf16>
    %c0_1 = arith.constant 0 : index
    %c0_2 = arith.constant 0 : index
    %1 = vector.load %arg1[%c0_1, %c0_2] : memref<512x8xf32, #tpu.memory_space<vmem>>, vector<512x8xf32>
    %2 = arith.truncf %1 : vector<512x8xf32> to vector<512x8xbf16>
    %cst = arith.constant dense<0.000000e+00> : vector<512x8xf32>
    %3 = tpu.matmul %2, %0, %cst {dimension_numbers = #tpu.dot_dimension_numbers<[1], [0], [0], [1], [0, 0, 1, 1], [], []>} : vector<512x8xbf16>, vector<8x8xbf16>, vector<512x8xf32> -> vector<512x8xf32>
    %c0_3 = arith.constant 0 : index
    %c0_4 = arith.constant 0 : index
    %4 = vector.load %arg3[%c0_3, %c0_4] : memref<1x8xf32, #tpu.memory_space<vmem>>, vector<1x8xf32>
    %5 = vector.broadcast %4 : vector<1x8xf32> to vector<512x8xf32>
    %6 = arith.addf %3, %5 : vector<512x8xf32>
    %cst_5 = arith.constant 0.000000e+00 : f32
    %7 = vector.broadcast %cst_5 : f32 to vector<512x8xf32>
    %8 = arith.subf %7, %6 : vector<512x8xf32>
    %9 = math.exp %8 : vector<512x8xf32>
    %cst_6 = arith.constant 1.000000e+00 : f32
    %10 = vector.broadcast %cst_6 : f32 to vector<512x8xf32>
    %11 = arith.addf %10, %9 : vector<512x8xf32>
    %12 = tpu.reciprocal %11 {approx = true} : vector<512x8xf32> -> vector<512x8xf32>
    %13 = arith.mulf %6, %12 : vector<512x8xf32>
    %c0_7 = arith.constant 0 : index
    %c0_8 = arith.constant 0 : index
    %14 = vector.load %arg4[%c0_7, %c0_8] : memref<512x8xf32, #tpu.memory_space<vmem>>, vector<512x8xf32>
    tpu.vector_store %arg4[%c0_7, %c0_8], %13 {strides = array<i32>} : memref<512x8xf32, #tpu.memory_space<vmem>>, vector<512x8xf32>,
    return
  }
  func.func @transform_0(%arg0: i32) -> (i32, i32) {
    %c0_i32 = arith.constant 0 : i32
    %c0_i32_0 = arith.constant 0 : i32
    return %arg0, %c0_i32 : i32, i32
  }
  func.func @transform_1(%arg0: i32) -> (i32, i32) {
    %c0_i32 = arith.constant 0 : i32
    %c0_i32_0 = arith.constant 0 : i32
    %c0_i32_1 = arith.constant 0 : i32
    return %c0_i32, %c0_i32_0 : i32, i32
  }
  func.func @transform_2(%arg0: i32) -> (i32, i32) {
    %c0_i32 = arith.constant 0 : i32
    %c0_i32_0 = arith.constant 0 : i32
    %c0_i32_1 = arith.constant 0 : i32
    return %c0_i32, %c0_i32_0 : i32, i32
  }
  func.func @transform_3(%arg0: i32) -> (i32, i32) {
    %c0_i32 = arith.constant 0 : i32
    %c0_i32_0 = arith.constant 0 : i32
    return %arg0, %c0_i32 : i32, i32
  }
}

module attributes {stable_mosaic.version = 11 : i64} {
  func.func @_spp_cv5_kernel(%arg0: i32, %arg1: i32, %arg2: memref<1x16x16x8xf32, #tpu.memory_space<vmem>>, %arg3: memref<32x8xbf16, #tpu.memory_space<vmem>>, %arg4: memref<1x8xf32, #tpu.memory_space<vmem>>, %arg5: memref<1x8x16x8xf32, #tpu.memory_space<vmem>>) attributes {dimension_semantics = [#tpu.dimension_semantics<parallel>, #tpu.dimension_semantics<parallel>], iteration_bounds = array<i64: 2, 2>, scalar_prefetch = 0 : i64, scratch_operands = 0 : i64, tpu.core_type = #tpu.core_type<tc>, window_params = [{transform_indices = @transform_0, window_bounds = array<i64: 1, 16, 16, 8>}, {pipeline_mode = #tpu.pipeline_mode<synchronous>, transform_indices = @transform_1, window_bounds = array<i64: 32, 8>}, {pipeline_mode = #tpu.pipeline_mode<synchronous>, transform_indices = @transform_2, window_bounds = array<i64: 1, 8>}, {transform_indices = @transform_3, window_bounds = array<i64: 1, 8, 16, 8>}]} {
    %c8_i32 = arith.constant 8 : i32
    %0 = arith.muli %arg1, %c8_i32 : i32
    %1 = tpu.assume_multiple %0, 8 : i32
    %c0 = arith.constant 0 : index
    %2 = arith.index_cast %1 : i32 to index
    %c0_0 = arith.constant 0 : index
    %c0_1 = arith.constant 0 : index
    %3 = vector.load %arg2[%c0, %2, %c0_0, %c0_1] : memref<1x16x16x8xf32, #tpu.memory_space<vmem>>, vector<1x8x16x8xf32>
    %4 = vector.shape_cast %3 : vector<1x8x16x8xf32> to vector<8x16x8xf32>
    %c6_i32 = arith.constant 6 : i32
    %5 = arith.subi %1, %c6_i32 : i32
    %c0_i32 = arith.constant 0 : i32
    %6 = arith.maxsi %5, %c0_i32 : i32
    %c0_2 = arith.constant 0 : index
    %7 = arith.index_cast %6 : i32 to index
    %c0_3 = arith.constant 0 : index
    %c0_4 = arith.constant 0 : index
    %8 = vector.load %arg2[%c0_2, %7, %c0_3, %c0_4] : memref<1x16x16x8xf32, #tpu.memory_space<vmem>>, vector<1x6x16x8xf32>
    %9 = vector.shape_cast %8 : vector<1x6x16x8xf32> to vector<6x16x8xf32>
    %c6_i32_5 = arith.constant 6 : i32
    %10 = arith.cmpi sge, %1, %c6_i32_5 : i32
    %cst = arith.constant 0xFF800000 : f32
    %11 = vector.broadcast %cst : f32 to vector<6x16x8xf32>
    %12 = arith.select %10, %9, %11 : vector<6x16x8xf32>
    %c8_i32_6 = arith.constant 8 : i32
    %13 = arith.addi %1, %c8_i32_6 : i32
    %c0_i32_7 = arith.constant 0 : i32
    %c10_i32 = arith.constant 10 : i32
    %14 = arith.maxsi %c0_i32_7, %13 : i32
    %15 = arith.minsi %c10_i32, %14 : i32
    %c0_8 = arith.constant 0 : index
    %16 = arith.index_cast %15 : i32 to index
    %c0_9 = arith.constant 0 : index
    %c0_10 = arith.constant 0 : index
    %17 = vector.load %arg2[%c0_8, %16, %c0_9, %c0_10] : memref<1x16x16x8xf32, #tpu.memory_space<vmem>>, vector<1x6x16x8xf32>
    %18 = vector.shape_cast %17 : vector<1x6x16x8xf32> to vector<6x16x8xf32>
    %c8_i32_11 = arith.constant 8 : i32
    %19 = arith.addi %1, %c8_i32_11 : i32
    %c6_i32_12 = arith.constant 6 : i32
    %20 = arith.addi %19, %c6_i32_12 : i32
    %c16_i32 = arith.constant 16 : i32
    %21 = arith.cmpi sle, %20, %c16_i32 : i32
    %cst_13 = arith.constant 0xFF800000 : f32
    %22 = vector.broadcast %cst_13 : f32 to vector<6x16x8xf32>
    %23 = arith.select %21, %18, %22 : vector<6x16x8xf32>
    %24 = tpu.concatenate %12, %4, %23 in 0 : vector<6x16x8xf32>, vector<8x16x8xf32>, vector<6x16x8xf32> -> vector<20x16x8xf32>
    %25 = vector.shape_cast %24 : vector<20x16x8xf32> to vector<320x8xf32>
    %26 = tpu.iota {dimensions = array<i32: 0>} : vector<320x1xi32>
    %c16_i32_14 = arith.constant 16 : i32
    %c0_i32_15 = arith.constant 0 : i32
    %27 = arith.cmpi eq, %c16_i32_14, %c0_i32_15 : i32
    %c1_i32 = arith.constant 1 : i32
    %28 = arith.select %27, %c1_i32, %c16_i32_14 : i32
    %29 = vector.broadcast %28 : i32 to vector<320x1xi32>
    %30 = arith.remsi %26, %29 : vector<320x1xi32>
    %c0_i32_16 = arith.constant 0 : i32
    %31 = vector.broadcast %c0_i32_16 : i32 to vector<320x1xi32>
    %32 = arith.cmpi ne, %30, %31 : vector<320x1xi32>
    %c0_i32_17 = arith.constant 0 : i32
    %33 = vector.broadcast %c0_i32_17 : i32 to vector<320x1xi32>
    %34 = arith.cmpi slt, %30, %33 : vector<320x1xi32>
    %c0_i32_18 = arith.constant 0 : i32
    %35 = arith.cmpi slt, %28, %c0_i32_18 : i32
    %36 = vector.broadcast %35 : i1 to vector<320x1xi1>
    %37 = vector.broadcast %36 : vector<320x1xi1> to vector<320x1xi1>
    %38 = arith.xori %34, %37 : vector<320x1xi1>
    %39 = arith.andi %38, %32 : vector<320x1xi1>
    %40 = vector.broadcast %28 : i32 to vector<320x1xi32>
    %41 = arith.addi %30, %40 : vector<320x1xi32>
    %42 = arith.select %39, %41, %30 : vector<320x1xi1>, vector<320x1xi32>
    %c0_19 = arith.constant 0 : index
    %c0_20 = arith.constant 0 : index
    %43 = vector.load %arg3[%c0_19, %c0_20] : memref<32x8xbf16, #tpu.memory_space<vmem>>, vector<32x8xbf16>
    %44 = vector.extract_strided_slice %25 {offsets = [96, 0], sizes = [128, 8], strides = [1, 1]} : vector<320x8xf32> to vector<128x8xf32>
    %45 = arith.truncf %44 : vector<128x8xf32> to vector<128x8xbf16>
    %46 = vector.extract_strided_slice %43 {offsets = [0, 0], sizes = [8, 8], strides = [1, 1]} : vector<32x8xbf16> to vector<8x8xbf16>
    %cst_21 = arith.constant dense<0.000000e+00> : vector<128x8xf32>
    %47 = tpu.matmul %45, %46, %cst_21 {dimension_numbers = #tpu.dot_dimension_numbers<[1], [0], [0], [1], [0, 0, 1, 1], [], []>} : vector<128x8xbf16>, vector<8x8xbf16>, vector<128x8xf32> -> vector<128x8xf32>
    %48 = vector.extract_strided_slice %25 {offsets = [0, 0], sizes = [256, 8], strides = [1, 1]} : vector<320x8xf32> to vector<256x8xf32>
    %49 = vector.extract_strided_slice %25 {offsets = [16, 0], sizes = [256, 8], strides = [1, 1]} : vector<320x8xf32> to vector<256x8xf32>
    %50 = arith.maximumf %48, %49 : vector<256x8xf32>
    %51 = vector.extract_strided_slice %25 {offsets = [32, 0], sizes = [256, 8], strides = [1, 1]} : vector<320x8xf32> to vector<256x8xf32>
    %52 = arith.maximumf %50, %51 : vector<256x8xf32>
    %53 = vector.extract_strided_slice %25 {offsets = [48, 0], sizes = [256, 8], strides = [1, 1]} : vector<320x8xf32> to vector<256x8xf32>
    %54 = arith.maximumf %52, %53 : vector<256x8xf32>
    %55 = vector.extract_strided_slice %25 {offsets = [64, 0], sizes = [256, 8], strides = [1, 1]} : vector<320x8xf32> to vector<256x8xf32>
    %56 = arith.maximumf %54, %55 : vector<256x8xf32>
    %c2_i32 = arith.constant 2 : i32
    %57 = tpu.dynamic_rotate %56 by %c2_i32 dim 0 : vector<256x8xf32>, i32 -> vector<256x8xf32>
    %58 = vector.extract_strided_slice %42 {offsets = [0, 0], sizes = [256, 1], strides = [1, 1]} : vector<320x1xi32> to vector<256x1xi32>
    %c-2_i32 = arith.constant -2 : i32
    %59 = vector.broadcast %c-2_i32 : i32 to vector<256x1xi32>
    %60 = arith.addi %58, %59 : vector<256x1xi32>
    %c0_i32_22 = arith.constant 0 : i32
    %61 = vector.broadcast %c0_i32_22 : i32 to vector<256x1xi32>
    %62 = arith.cmpi sge, %60, %61 : vector<256x1xi32>
    %63 = vector.extract_strided_slice %42 {offsets = [0, 0], sizes = [256, 1], strides = [1, 1]} : vector<320x1xi32> to vector<256x1xi32>
    %c-2_i32_23 = arith.constant -2 : i32
    %64 = vector.broadcast %c-2_i32_23 : i32 to vector<256x1xi32>
    %65 = arith.addi %63, %64 : vector<256x1xi32>
    %c16_i32_24 = arith.constant 16 : i32
    %66 = vector.broadcast %c16_i32_24 : i32 to vector<256x1xi32>
    %67 = arith.cmpi slt, %65, %66 : vector<256x1xi32>
    %68 = arith.andi %62, %67 : vector<256x1xi1>
    %cst_25 = arith.constant 0xFF800000 : f32
    %69 = vector.shape_cast %68 : vector<256x1xi1> to vector<256x1xi1>
    %70 = vector.broadcast %69 : vector<256x1xi1> to vector<256x8xi1>
    %71 = vector.broadcast %cst_25 : f32 to vector<256x8xf32>
    %72 = arith.select %70, %57, %71 : vector<256x8xi1>, vector<256x8xf32>
    %73 = arith.maximumf %56, %72 : vector<256x8xf32>
    %c1_i32_26 = arith.constant 1 : i32
    %74 = tpu.dynamic_rotate %56 by %c1_i32_26 dim 0 : vector<256x8xf32>, i32 -> vector<256x8xf32>
    %75 = vector.extract_strided_slice %42 {offsets = [0, 0], sizes = [256, 1], strides = [1, 1]} : vector<320x1xi32> to vector<256x1xi32>
    %c-1_i32 = arith.constant -1 : i32
    %76 = vector.broadcast %c-1_i32 : i32 to vector<256x1xi32>
    %77 = arith.addi %75, %76 : vector<256x1xi32>
    %c0_i32_27 = arith.constant 0 : i32
    %78 = vector.broadcast %c0_i32_27 : i32 to vector<256x1xi32>
    %79 = arith.cmpi sge, %77, %78 : vector<256x1xi32>
    %80 = vector.extract_strided_slice %42 {offsets = [0, 0], sizes = [256, 1], strides = [1, 1]} : vector<320x1xi32> to vector<256x1xi32>
    %c-1_i32_28 = arith.constant -1 : i32
    %81 = vector.broadcast %c-1_i32_28 : i32 to vector<256x1xi32>
    %82 = arith.addi %80, %81 : vector<256x1xi32>
    %c16_i32_29 = arith.constant 16 : i32
    %83 = vector.broadcast %c16_i32_29 : i32 to vector<256x1xi32>
    %84 = arith.cmpi slt, %82, %83 : vector<256x1xi32>
    %85 = arith.andi %79, %84 : vector<256x1xi1>
    %cst_30 = arith.constant 0xFF800000 : f32
    %86 = vector.shape_cast %85 : vector<256x1xi1> to vector<256x1xi1>
    %87 = vector.broadcast %86 : vector<256x1xi1> to vector<256x8xi1>
    %88 = vector.broadcast %cst_30 : f32 to vector<256x8xf32>
    %89 = arith.select %87, %74, %88 : vector<256x8xi1>, vector<256x8xf32>
    %90 = arith.maximumf %73, %89 : vector<256x8xf32>
    %c255_i32 = arith.constant 255 : i32
    %91 = tpu.dynamic_rotate %56 by %c255_i32 dim 0 : vector<256x8xf32>, i32 -> vector<256x8xf32>
    %92 = vector.extract_strided_slice %42 {offsets = [0, 0], sizes = [256, 1], strides = [1, 1]} : vector<320x1xi32> to vector<256x1xi32>
    %c1_i32_31 = arith.constant 1 : i32
    %93 = vector.broadcast %c1_i32_31 : i32 to vector<256x1xi32>
    %94 = arith.addi %92, %93 : vector<256x1xi32>
    %c0_i32_32 = arith.constant 0 : i32
    %95 = vector.broadcast %c0_i32_32 : i32 to vector<256x1xi32>
    %96 = arith.cmpi sge, %94, %95 : vector<256x1xi32>
    %97 = vector.extract_strided_slice %42 {offsets = [0, 0], sizes = [256, 1], strides = [1, 1]} : vector<320x1xi32> to vector<256x1xi32>
    %c1_i32_33 = arith.constant 1 : i32
    %98 = vector.broadcast %c1_i32_33 : i32 to vector<256x1xi32>
    %99 = arith.addi %97, %98 : vector<256x1xi32>
    %c16_i32_34 = arith.constant 16 : i32
    %100 = vector.broadcast %c16_i32_34 : i32 to vector<256x1xi32>
    %101 = arith.cmpi slt, %99, %100 : vector<256x1xi32>
    %102 = arith.andi %96, %101 : vector<256x1xi1>
    %cst_35 = arith.constant 0xFF800000 : f32
    %103 = vector.shape_cast %102 : vector<256x1xi1> to vector<256x1xi1>
    %104 = vector.broadcast %103 : vector<256x1xi1> to vector<256x8xi1>
    %105 = vector.broadcast %cst_35 : f32 to vector<256x8xf32>
    %106 = arith.select %104, %91, %105 : vector<256x8xi1>, vector<256x8xf32>
    %107 = arith.maximumf %90, %106 : vector<256x8xf32>
    %c254_i32 = arith.constant 254 : i32
    %108 = tpu.dynamic_rotate %56 by %c254_i32 dim 0 : vector<256x8xf32>, i32 -> vector<256x8xf32>
    %109 = vector.extract_strided_slice %42 {offsets = [0, 0], sizes = [256, 1], strides = [1, 1]} : vector<320x1xi32> to vector<256x1xi32>
    %c2_i32_36 = arith.constant 2 : i32
    %110 = vector.broadcast %c2_i32_36 : i32 to vector<256x1xi32>
    %111 = arith.addi %109, %110 : vector<256x1xi32>
    %c0_i32_37 = arith.constant 0 : i32
    %112 = vector.broadcast %c0_i32_37 : i32 to vector<256x1xi32>
    %113 = arith.cmpi sge, %111, %112 : vector<256x1xi32>
    %114 = vector.extract_strided_slice %42 {offsets = [0, 0], sizes = [256, 1], strides = [1, 1]} : vector<320x1xi32> to vector<256x1xi32>
    %c2_i32_38 = arith.constant 2 : i32
    %115 = vector.broadcast %c2_i32_38 : i32 to vector<256x1xi32>
    %116 = arith.addi %114, %115 : vector<256x1xi32>
    %c16_i32_39 = arith.constant 16 : i32
    %117 = vector.broadcast %c16_i32_39 : i32 to vector<256x1xi32>
    %118 = arith.cmpi slt, %116, %117 : vector<256x1xi32>
    %119 = arith.andi %113, %118 : vector<256x1xi1>
    %cst_40 = arith.constant 0xFF800000 : f32
    %120 = vector.shape_cast %119 : vector<256x1xi1> to vector<256x1xi1>
    %121 = vector.broadcast %120 : vector<256x1xi1> to vector<256x8xi1>
    %122 = vector.broadcast %cst_40 : f32 to vector<256x8xf32>
    %123 = arith.select %121, %108, %122 : vector<256x8xi1>, vector<256x8xf32>
    %124 = arith.maximumf %107, %123 : vector<256x8xf32>
    %125 = vector.extract_strided_slice %124 {offsets = [64, 0], sizes = [128, 8], strides = [1, 1]} : vector<256x8xf32> to vector<128x8xf32>
    %126 = arith.truncf %125 : vector<128x8xf32> to vector<128x8xbf16>
    %127 = vector.extract_strided_slice %43 {offsets = [8, 0], sizes = [8, 8], strides = [1, 1]} : vector<32x8xbf16> to vector<8x8xbf16>
    %cst_41 = arith.constant dense<0.000000e+00> : vector<128x8xf32>
    %128 = tpu.matmul %126, %127, %cst_41 {dimension_numbers = #tpu.dot_dimension_numbers<[1], [0], [0], [1], [0, 0, 1, 1], [], []>} : vector<128x8xbf16>, vector<8x8xbf16>, vector<128x8xf32> -> vector<128x8xf32>
    %129 = arith.addf %47, %128 : vector<128x8xf32>
    %130 = vector.extract_strided_slice %124 {offsets = [0, 0], sizes = [192, 8], strides = [1, 1]} : vector<256x8xf32> to vector<192x8xf32>
    %131 = vector.extract_strided_slice %124 {offsets = [16, 0], sizes = [192, 8], strides = [1, 1]} : vector<256x8xf32> to vector<192x8xf32>
    %132 = arith.maximumf %130, %131 : vector<192x8xf32>
    %133 = vector.extract_strided_slice %124 {offsets = [32, 0], sizes = [192, 8], strides = [1, 1]} : vector<256x8xf32> to vector<192x8xf32>
    %134 = arith.maximumf %132, %133 : vector<192x8xf32>
    %135 = vector.extract_strided_slice %124 {offsets = [48, 0], sizes = [192, 8], strides = [1, 1]} : vector<256x8xf32> to vector<192x8xf32>
    %136 = arith.maximumf %134, %135 : vector<192x8xf32>
    %137 = vector.extract_strided_slice %124 {offsets = [64, 0], sizes = [192, 8], strides = [1, 1]} : vector<256x8xf32> to vector<192x8xf32>
    %138 = arith.maximumf %136, %137 : vector<192x8xf32>
    %c2_i32_42 = arith.constant 2 : i32
    %139 = tpu.dynamic_rotate %138 by %c2_i32_42 dim 0 : vector<192x8xf32>, i32 -> vector<192x8xf32>
    %140 = vector.extract_strided_slice %42 {offsets = [0, 0], sizes = [192, 1], strides = [1, 1]} : vector<320x1xi32> to vector<192x1xi32>
    %c-2_i32_43 = arith.constant -2 : i32
    %141 = vector.broadcast %c-2_i32_43 : i32 to vector<192x1xi32>
    %142 = arith.addi %140, %141 : vector<192x1xi32>
    %c0_i32_44 = arith.constant 0 : i32
    %143 = vector.broadcast %c0_i32_44 : i32 to vector<192x1xi32>
    %144 = arith.cmpi sge, %142, %143 : vector<192x1xi32>
    %145 = vector.extract_strided_slice %42 {offsets = [0, 0], sizes = [192, 1], strides = [1, 1]} : vector<320x1xi32> to vector<192x1xi32>
    %c-2_i32_45 = arith.constant -2 : i32
    %146 = vector.broadcast %c-2_i32_45 : i32 to vector<192x1xi32>
    %147 = arith.addi %145, %146 : vector<192x1xi32>
    %c16_i32_46 = arith.constant 16 : i32
    %148 = vector.broadcast %c16_i32_46 : i32 to vector<192x1xi32>
    %149 = arith.cmpi slt, %147, %148 : vector<192x1xi32>
    %150 = arith.andi %144, %149 : vector<192x1xi1>
    %cst_47 = arith.constant 0xFF800000 : f32
    %151 = vector.shape_cast %150 : vector<192x1xi1> to vector<192x1xi1>
    %152 = vector.broadcast %151 : vector<192x1xi1> to vector<192x8xi1>
    %153 = vector.broadcast %cst_47 : f32 to vector<192x8xf32>
    %154 = arith.select %152, %139, %153 : vector<192x8xi1>, vector<192x8xf32>
    %155 = arith.maximumf %138, %154 : vector<192x8xf32>
    %c1_i32_48 = arith.constant 1 : i32
    %156 = tpu.dynamic_rotate %138 by %c1_i32_48 dim 0 : vector<192x8xf32>, i32 -> vector<192x8xf32>
    %157 = vector.extract_strided_slice %42 {offsets = [0, 0], sizes = [192, 1], strides = [1, 1]} : vector<320x1xi32> to vector<192x1xi32>
    %c-1_i32_49 = arith.constant -1 : i32
    %158 = vector.broadcast %c-1_i32_49 : i32 to vector<192x1xi32>
    %159 = arith.addi %157, %158 : vector<192x1xi32>
    %c0_i32_50 = arith.constant 0 : i32
    %160 = vector.broadcast %c0_i32_50 : i32 to vector<192x1xi32>
    %161 = arith.cmpi sge, %159, %160 : vector<192x1xi32>
    %162 = vector.extract_strided_slice %42 {offsets = [0, 0], sizes = [192, 1], strides = [1, 1]} : vector<320x1xi32> to vector<192x1xi32>
    %c-1_i32_51 = arith.constant -1 : i32
    %163 = vector.broadcast %c-1_i32_51 : i32 to vector<192x1xi32>
    %164 = arith.addi %162, %163 : vector<192x1xi32>
    %c16_i32_52 = arith.constant 16 : i32
    %165 = vector.broadcast %c16_i32_52 : i32 to vector<192x1xi32>
    %166 = arith.cmpi slt, %164, %165 : vector<192x1xi32>
    %167 = arith.andi %161, %166 : vector<192x1xi1>
    %cst_53 = arith.constant 0xFF800000 : f32
    %168 = vector.shape_cast %167 : vector<192x1xi1> to vector<192x1xi1>
    %169 = vector.broadcast %168 : vector<192x1xi1> to vector<192x8xi1>
    %170 = vector.broadcast %cst_53 : f32 to vector<192x8xf32>
    %171 = arith.select %169, %156, %170 : vector<192x8xi1>, vector<192x8xf32>
    %172 = arith.maximumf %155, %171 : vector<192x8xf32>
    %c191_i32 = arith.constant 191 : i32
    %173 = tpu.dynamic_rotate %138 by %c191_i32 dim 0 : vector<192x8xf32>, i32 -> vector<192x8xf32>
    %174 = vector.extract_strided_slice %42 {offsets = [0, 0], sizes = [192, 1], strides = [1, 1]} : vector<320x1xi32> to vector<192x1xi32>
    %c1_i32_54 = arith.constant 1 : i32
    %175 = vector.broadcast %c1_i32_54 : i32 to vector<192x1xi32>
    %176 = arith.addi %174, %175 : vector<192x1xi32>
    %c0_i32_55 = arith.constant 0 : i32
    %177 = vector.broadcast %c0_i32_55 : i32 to vector<192x1xi32>
    %178 = arith.cmpi sge, %176, %177 : vector<192x1xi32>
    %179 = vector.extract_strided_slice %42 {offsets = [0, 0], sizes = [192, 1], strides = [1, 1]} : vector<320x1xi32> to vector<192x1xi32>
    %c1_i32_56 = arith.constant 1 : i32
    %180 = vector.broadcast %c1_i32_56 : i32 to vector<192x1xi32>
    %181 = arith.addi %179, %180 : vector<192x1xi32>
    %c16_i32_57 = arith.constant 16 : i32
    %182 = vector.broadcast %c16_i32_57 : i32 to vector<192x1xi32>
    %183 = arith.cmpi slt, %181, %182 : vector<192x1xi32>
    %184 = arith.andi %178, %183 : vector<192x1xi1>
    %cst_58 = arith.constant 0xFF800000 : f32
    %185 = vector.shape_cast %184 : vector<192x1xi1> to vector<192x1xi1>
    %186 = vector.broadcast %185 : vector<192x1xi1> to vector<192x8xi1>
    %187 = vector.broadcast %cst_58 : f32 to vector<192x8xf32>
    %188 = arith.select %186, %173, %187 : vector<192x8xi1>, vector<192x8xf32>
    %189 = arith.maximumf %172, %188 : vector<192x8xf32>
    %c190_i32 = arith.constant 190 : i32
    %190 = tpu.dynamic_rotate %138 by %c190_i32 dim 0 : vector<192x8xf32>, i32 -> vector<192x8xf32>
    %191 = vector.extract_strided_slice %42 {offsets = [0, 0], sizes = [192, 1], strides = [1, 1]} : vector<320x1xi32> to vector<192x1xi32>
    %c2_i32_59 = arith.constant 2 : i32
    %192 = vector.broadcast %c2_i32_59 : i32 to vector<192x1xi32>
    %193 = arith.addi %191, %192 : vector<192x1xi32>
    %c0_i32_60 = arith.constant 0 : i32
    %194 = vector.broadcast %c0_i32_60 : i32 to vector<192x1xi32>
    %195 = arith.cmpi sge, %193, %194 : vector<192x1xi32>
    %196 = vector.extract_strided_slice %42 {offsets = [0, 0], sizes = [192, 1], strides = [1, 1]} : vector<320x1xi32> to vector<192x1xi32>
    %c2_i32_61 = arith.constant 2 : i32
    %197 = vector.broadcast %c2_i32_61 : i32 to vector<192x1xi32>
    %198 = arith.addi %196, %197 : vector<192x1xi32>
    %c16_i32_62 = arith.constant 16 : i32
    %199 = vector.broadcast %c16_i32_62 : i32 to vector<192x1xi32>
    %200 = arith.cmpi slt, %198, %199 : vector<192x1xi32>
    %201 = arith.andi %195, %200 : vector<192x1xi1>
    %cst_63 = arith.constant 0xFF800000 : f32
    %202 = vector.shape_cast %201 : vector<192x1xi1> to vector<192x1xi1>
    %203 = vector.broadcast %202 : vector<192x1xi1> to vector<192x8xi1>
    %204 = vector.broadcast %cst_63 : f32 to vector<192x8xf32>
    %205 = arith.select %203, %190, %204 : vector<192x8xi1>, vector<192x8xf32>
    %206 = arith.maximumf %189, %205 : vector<192x8xf32>
    %207 = vector.extract_strided_slice %206 {offsets = [32, 0], sizes = [128, 8], strides = [1, 1]} : vector<192x8xf32> to vector<128x8xf32>
    %208 = arith.truncf %207 : vector<128x8xf32> to vector<128x8xbf16>
    %209 = vector.extract_strided_slice %43 {offsets = [16, 0], sizes = [8, 8], strides = [1, 1]} : vector<32x8xbf16> to vector<8x8xbf16>
    %cst_64 = arith.constant dense<0.000000e+00> : vector<128x8xf32>
    %210 = tpu.matmul %208, %209, %cst_64 {dimension_numbers = #tpu.dot_dimension_numbers<[1], [0], [0], [1], [0, 0, 1, 1], [], []>} : vector<128x8xbf16>, vector<8x8xbf16>, vector<128x8xf32> -> vector<128x8xf32>
    %211 = arith.addf %129, %210 : vector<128x8xf32>
    %212 = vector.extract_strided_slice %206 {offsets = [0, 0], sizes = [128, 8], strides = [1, 1]} : vector<192x8xf32> to vector<128x8xf32>
    %213 = vector.extract_strided_slice %206 {offsets = [16, 0], sizes = [128, 8], strides = [1, 1]} : vector<192x8xf32> to vector<128x8xf32>
    %214 = arith.maximumf %212, %213 : vector<128x8xf32>
    %215 = vector.extract_strided_slice %206 {offsets = [32, 0], sizes = [128, 8], strides = [1, 1]} : vector<192x8xf32> to vector<128x8xf32>
    %216 = arith.maximumf %214, %215 : vector<128x8xf32>
    %217 = vector.extract_strided_slice %206 {offsets = [48, 0], sizes = [128, 8], strides = [1, 1]} : vector<192x8xf32> to vector<128x8xf32>
    %218 = arith.maximumf %216, %217 : vector<128x8xf32>
    %219 = vector.extract_strided_slice %206 {offsets = [64, 0], sizes = [128, 8], strides = [1, 1]} : vector<192x8xf32> to vector<128x8xf32>
    %220 = arith.maximumf %218, %219 : vector<128x8xf32>
    %c2_i32_65 = arith.constant 2 : i32
    %221 = tpu.dynamic_rotate %220 by %c2_i32_65 dim 0 : vector<128x8xf32>, i32 -> vector<128x8xf32>
    %222 = vector.extract_strided_slice %42 {offsets = [0, 0], sizes = [128, 1], strides = [1, 1]} : vector<320x1xi32> to vector<128x1xi32>
    %c-2_i32_66 = arith.constant -2 : i32
    %223 = vector.broadcast %c-2_i32_66 : i32 to vector<128x1xi32>
    %224 = arith.addi %222, %223 : vector<128x1xi32>
    %c0_i32_67 = arith.constant 0 : i32
    %225 = vector.broadcast %c0_i32_67 : i32 to vector<128x1xi32>
    %226 = arith.cmpi sge, %224, %225 : vector<128x1xi32>
    %227 = vector.extract_strided_slice %42 {offsets = [0, 0], sizes = [128, 1], strides = [1, 1]} : vector<320x1xi32> to vector<128x1xi32>
    %c-2_i32_68 = arith.constant -2 : i32
    %228 = vector.broadcast %c-2_i32_68 : i32 to vector<128x1xi32>
    %229 = arith.addi %227, %228 : vector<128x1xi32>
    %c16_i32_69 = arith.constant 16 : i32
    %230 = vector.broadcast %c16_i32_69 : i32 to vector<128x1xi32>
    %231 = arith.cmpi slt, %229, %230 : vector<128x1xi32>
    %232 = arith.andi %226, %231 : vector<128x1xi1>
    %cst_70 = arith.constant 0xFF800000 : f32
    %233 = vector.shape_cast %232 : vector<128x1xi1> to vector<128x1xi1>
    %234 = vector.broadcast %233 : vector<128x1xi1> to vector<128x8xi1>
    %235 = vector.broadcast %cst_70 : f32 to vector<128x8xf32>
    %236 = arith.select %234, %221, %235 : vector<128x8xi1>, vector<128x8xf32>
    %237 = arith.maximumf %220, %236 : vector<128x8xf32>
    %c1_i32_71 = arith.constant 1 : i32
    %238 = tpu.dynamic_rotate %220 by %c1_i32_71 dim 0 : vector<128x8xf32>, i32 -> vector<128x8xf32>
    %239 = vector.extract_strided_slice %42 {offsets = [0, 0], sizes = [128, 1], strides = [1, 1]} : vector<320x1xi32> to vector<128x1xi32>
    %c-1_i32_72 = arith.constant -1 : i32
    %240 = vector.broadcast %c-1_i32_72 : i32 to vector<128x1xi32>
    %241 = arith.addi %239, %240 : vector<128x1xi32>
    %c0_i32_73 = arith.constant 0 : i32
    %242 = vector.broadcast %c0_i32_73 : i32 to vector<128x1xi32>
    %243 = arith.cmpi sge, %241, %242 : vector<128x1xi32>
    %244 = vector.extract_strided_slice %42 {offsets = [0, 0], sizes = [128, 1], strides = [1, 1]} : vector<320x1xi32> to vector<128x1xi32>
    %c-1_i32_74 = arith.constant -1 : i32
    %245 = vector.broadcast %c-1_i32_74 : i32 to vector<128x1xi32>
    %246 = arith.addi %244, %245 : vector<128x1xi32>
    %c16_i32_75 = arith.constant 16 : i32
    %247 = vector.broadcast %c16_i32_75 : i32 to vector<128x1xi32>
    %248 = arith.cmpi slt, %246, %247 : vector<128x1xi32>
    %249 = arith.andi %243, %248 : vector<128x1xi1>
    %cst_76 = arith.constant 0xFF800000 : f32
    %250 = vector.shape_cast %249 : vector<128x1xi1> to vector<128x1xi1>
    %251 = vector.broadcast %250 : vector<128x1xi1> to vector<128x8xi1>
    %252 = vector.broadcast %cst_76 : f32 to vector<128x8xf32>
    %253 = arith.select %251, %238, %252 : vector<128x8xi1>, vector<128x8xf32>
    %254 = arith.maximumf %237, %253 : vector<128x8xf32>
    %c127_i32 = arith.constant 127 : i32
    %255 = tpu.dynamic_rotate %220 by %c127_i32 dim 0 : vector<128x8xf32>, i32 -> vector<128x8xf32>
    %256 = vector.extract_strided_slice %42 {offsets = [0, 0], sizes = [128, 1], strides = [1, 1]} : vector<320x1xi32> to vector<128x1xi32>
    %c1_i32_77 = arith.constant 1 : i32
    %257 = vector.broadcast %c1_i32_77 : i32 to vector<128x1xi32>
    %258 = arith.addi %256, %257 : vector<128x1xi32>
    %c0_i32_78 = arith.constant 0 : i32
    %259 = vector.broadcast %c0_i32_78 : i32 to vector<128x1xi32>
    %260 = arith.cmpi sge, %258, %259 : vector<128x1xi32>
    %261 = vector.extract_strided_slice %42 {offsets = [0, 0], sizes = [128, 1], strides = [1, 1]} : vector<320x1xi32> to vector<128x1xi32>
    %c1_i32_79 = arith.constant 1 : i32
    %262 = vector.broadcast %c1_i32_79 : i32 to vector<128x1xi32>
    %263 = arith.addi %261, %262 : vector<128x1xi32>
    %c16_i32_80 = arith.constant 16 : i32
    %264 = vector.broadcast %c16_i32_80 : i32 to vector<128x1xi32>
    %265 = arith.cmpi slt, %263, %264 : vector<128x1xi32>
    %266 = arith.andi %260, %265 : vector<128x1xi1>
    %cst_81 = arith.constant 0xFF800000 : f32
    %267 = vector.shape_cast %266 : vector<128x1xi1> to vector<128x1xi1>
    %268 = vector.broadcast %267 : vector<128x1xi1> to vector<128x8xi1>
    %269 = vector.broadcast %cst_81 : f32 to vector<128x8xf32>
    %270 = arith.select %268, %255, %269 : vector<128x8xi1>, vector<128x8xf32>
    %271 = arith.maximumf %254, %270 : vector<128x8xf32>
    %c126_i32 = arith.constant 126 : i32
    %272 = tpu.dynamic_rotate %220 by %c126_i32 dim 0 : vector<128x8xf32>, i32 -> vector<128x8xf32>
    %273 = vector.extract_strided_slice %42 {offsets = [0, 0], sizes = [128, 1], strides = [1, 1]} : vector<320x1xi32> to vector<128x1xi32>
    %c2_i32_82 = arith.constant 2 : i32
    %274 = vector.broadcast %c2_i32_82 : i32 to vector<128x1xi32>
    %275 = arith.addi %273, %274 : vector<128x1xi32>
    %c0_i32_83 = arith.constant 0 : i32
    %276 = vector.broadcast %c0_i32_83 : i32 to vector<128x1xi32>
    %277 = arith.cmpi sge, %275, %276 : vector<128x1xi32>
    %278 = vector.extract_strided_slice %42 {offsets = [0, 0], sizes = [128, 1], strides = [1, 1]} : vector<320x1xi32> to vector<128x1xi32>
    %c2_i32_84 = arith.constant 2 : i32
    %279 = vector.broadcast %c2_i32_84 : i32 to vector<128x1xi32>
    %280 = arith.addi %278, %279 : vector<128x1xi32>
    %c16_i32_85 = arith.constant 16 : i32
    %281 = vector.broadcast %c16_i32_85 : i32 to vector<128x1xi32>
    %282 = arith.cmpi slt, %280, %281 : vector<128x1xi32>
    %283 = arith.andi %277, %282 : vector<128x1xi1>
    %cst_86 = arith.constant 0xFF800000 : f32
    %284 = vector.shape_cast %283 : vector<128x1xi1> to vector<128x1xi1>
    %285 = vector.broadcast %284 : vector<128x1xi1> to vector<128x8xi1>
    %286 = vector.broadcast %cst_86 : f32 to vector<128x8xf32>
    %287 = arith.select %285, %272, %286 : vector<128x8xi1>, vector<128x8xf32>
    %288 = arith.maximumf %271, %287 : vector<128x8xf32>
    %289 = arith.truncf %288 : vector<128x8xf32> to vector<128x8xbf16>
    %290 = vector.extract_strided_slice %43 {offsets = [24, 0], sizes = [8, 8], strides = [1, 1]} : vector<32x8xbf16> to vector<8x8xbf16>
    %cst_87 = arith.constant dense<0.000000e+00> : vector<128x8xf32>
    %291 = tpu.matmul %289, %290, %cst_87 {dimension_numbers = #tpu.dot_dimension_numbers<[1], [0], [0], [1], [0, 0, 1, 1], [], []>} : vector<128x8xbf16>, vector<8x8xbf16>, vector<128x8xf32> -> vector<128x8xf32>
    %292 = arith.addf %211, %291 : vector<128x8xf32>
    %c0_88 = arith.constant 0 : index
    %c0_89 = arith.constant 0 : index
    %293 = vector.load %arg4[%c0_88, %c0_89] : memref<1x8xf32, #tpu.memory_space<vmem>>, vector<1x8xf32>
    %294 = vector.broadcast %293 : vector<1x8xf32> to vector<128x8xf32>
    %295 = arith.addf %292, %294 : vector<128x8xf32>
    %cst_90 = arith.constant 0.000000e+00 : f32
    %296 = vector.broadcast %cst_90 : f32 to vector<128x8xf32>
    %297 = arith.subf %296, %295 : vector<128x8xf32>
    %298 = math.exp %297 : vector<128x8xf32>
    %cst_91 = arith.constant 1.000000e+00 : f32
    %299 = vector.broadcast %cst_91 : f32 to vector<128x8xf32>
    %300 = arith.addf %299, %298 : vector<128x8xf32>
    %301 = tpu.reciprocal %300 {approx = true} : vector<128x8xf32> -> vector<128x8xf32>
    %302 = arith.mulf %295, %301 : vector<128x8xf32>
    %303 = vector.shape_cast %302 : vector<128x8xf32> to vector<8x16x8xf32>
    %c0_92 = arith.constant 0 : index
    %c0_93 = arith.constant 0 : index
    %c0_94 = arith.constant 0 : index
    %c0_95 = arith.constant 0 : index
    %304 = vector.load %arg5[%c0_92, %c0_93, %c0_94, %c0_95] : memref<1x8x16x8xf32, #tpu.memory_space<vmem>>, vector<1x8x16x8xf32>
    %305 = vector.shape_cast %304 : vector<1x8x16x8xf32> to vector<8x16x8xf32>
    %306 = vector.shape_cast %303 : vector<8x16x8xf32> to vector<1x8x16x8xf32>
    tpu.vector_store %arg5[%c0_92, %c0_93, %c0_94, %c0_95], %306 {strides = array<i32>} : memref<1x8x16x8xf32, #tpu.memory_space<vmem>>, vector<1x8x16x8xf32>,
    return
  }
  func.func @transform_0(%arg0: i32, %arg1: i32) -> (i32, i32, i32, i32) {
    %c0_i32 = arith.constant 0 : i32
    %c0_i32_0 = arith.constant 0 : i32
    %c0_i32_1 = arith.constant 0 : i32
    %c0_i32_2 = arith.constant 0 : i32
    return %arg0, %c0_i32, %c0_i32_0, %c0_i32_1 : i32, i32, i32, i32
  }
  func.func @transform_1(%arg0: i32, %arg1: i32) -> (i32, i32) {
    %c0_i32 = arith.constant 0 : i32
    %c0_i32_0 = arith.constant 0 : i32
    %c0_i32_1 = arith.constant 0 : i32
    return %c0_i32, %c0_i32_0 : i32, i32
  }
  func.func @transform_2(%arg0: i32, %arg1: i32) -> (i32, i32) {
    %c0_i32 = arith.constant 0 : i32
    %c0_i32_0 = arith.constant 0 : i32
    %c0_i32_1 = arith.constant 0 : i32
    return %c0_i32, %c0_i32_0 : i32, i32
  }
  func.func @transform_3(%arg0: i32, %arg1: i32) -> (i32, i32, i32, i32) {
    %c0_i32 = arith.constant 0 : i32
    %c0_i32_0 = arith.constant 0 : i32
    %c0_i32_1 = arith.constant 0 : i32
    return %arg0, %arg1, %c0_i32, %c0_i32_0 : i32, i32, i32, i32
  }
}

module attributes {stable_mosaic.version = 11 : i64} {
  func.func @_mm_fused_kernel(%arg0: i32, %arg1: memref<512x8xf32, #tpu.memory_space<vmem>>, %arg2: memref<512x8xf32, #tpu.memory_space<vmem>>, %arg3: memref<16x8xbf16, #tpu.memory_space<vmem>>, %arg4: memref<1x8xf32, #tpu.memory_space<vmem>>, %arg5: memref<512x8xf32, #tpu.memory_space<vmem>>) attributes {dimension_semantics = [#tpu.dimension_semantics<parallel>], iteration_bounds = array<i64: 1>, scalar_prefetch = 0 : i64, scratch_operands = 0 : i64, tpu.core_type = #tpu.core_type<tc>, window_params = [{transform_indices = @transform_0, window_bounds = array<i64: 512, 8>}, {transform_indices = @transform_1, window_bounds = array<i64: 512, 8>}, {pipeline_mode = #tpu.pipeline_mode<synchronous>, transform_indices = @transform_2, window_bounds = array<i64: 16, 8>}, {pipeline_mode = #tpu.pipeline_mode<synchronous>, transform_indices = @transform_3, window_bounds = array<i64: 1, 8>}, {transform_indices = @transform_4, window_bounds = array<i64: 512, 8>}]} {
    %c0 = arith.constant 0 : index
    %c0_0 = arith.constant 0 : index
    %0 = vector.load %arg3[%c0, %c0_0] : memref<16x8xbf16, #tpu.memory_space<vmem>>, vector<16x8xbf16>
    %c0_1 = arith.constant 0 : index
    %c0_2 = arith.constant 0 : index
    %1 = vector.load %arg1[%c0_1, %c0_2] : memref<512x8xf32, #tpu.memory_space<vmem>>, vector<512x8xf32>
    %2 = arith.truncf %1 : vector<512x8xf32> to vector<512x8xbf16>
    %3 = vector.extract_strided_slice %0 {offsets = [0, 0], sizes = [8, 8], strides = [1, 1]} : vector<16x8xbf16> to vector<8x8xbf16>
    %cst = arith.constant dense<0.000000e+00> : vector<512x8xf32>
    %4 = tpu.matmul %2, %3, %cst {dimension_numbers = #tpu.dot_dimension_numbers<[1], [0], [0], [1], [0, 0, 1, 1], [], []>} : vector<512x8xbf16>, vector<8x8xbf16>, vector<512x8xf32> -> vector<512x8xf32>
    %c0_3 = arith.constant 0 : index
    %c0_4 = arith.constant 0 : index
    %5 = vector.load %arg2[%c0_3, %c0_4] : memref<512x8xf32, #tpu.memory_space<vmem>>, vector<512x8xf32>
    %6 = arith.truncf %5 : vector<512x8xf32> to vector<512x8xbf16>
    %7 = vector.extract_strided_slice %0 {offsets = [8, 0], sizes = [8, 8], strides = [1, 1]} : vector<16x8xbf16> to vector<8x8xbf16>
    %cst_5 = arith.constant dense<0.000000e+00> : vector<512x8xf32>
    %8 = tpu.matmul %6, %7, %cst_5 {dimension_numbers = #tpu.dot_dimension_numbers<[1], [0], [0], [1], [0, 0, 1, 1], [], []>} : vector<512x8xbf16>, vector<8x8xbf16>, vector<512x8xf32> -> vector<512x8xf32>
    %9 = arith.addf %4, %8 : vector<512x8xf32>
    %c0_6 = arith.constant 0 : index
    %c0_7 = arith.constant 0 : index
    %10 = vector.load %arg4[%c0_6, %c0_7] : memref<1x8xf32, #tpu.memory_space<vmem>>, vector<1x8xf32>
    %11 = vector.broadcast %10 : vector<1x8xf32> to vector<512x8xf32>
    %12 = arith.addf %9, %11 : vector<512x8xf32>
    %cst_8 = arith.constant 0.000000e+00 : f32
    %13 = vector.broadcast %cst_8 : f32 to vector<512x8xf32>
    %14 = arith.subf %13, %12 : vector<512x8xf32>
    %15 = math.exp %14 : vector<512x8xf32>
    %cst_9 = arith.constant 1.000000e+00 : f32
    %16 = vector.broadcast %cst_9 : f32 to vector<512x8xf32>
    %17 = arith.addf %16, %15 : vector<512x8xf32>
    %18 = tpu.reciprocal %17 {approx = true} : vector<512x8xf32> -> vector<512x8xf32>
    %19 = arith.mulf %12, %18 : vector<512x8xf32>
    %c0_10 = arith.constant 0 : index
    %c0_11 = arith.constant 0 : index
    %20 = vector.load %arg5[%c0_10, %c0_11] : memref<512x8xf32, #tpu.memory_space<vmem>>, vector<512x8xf32>
    tpu.vector_store %arg5[%c0_10, %c0_11], %19 {strides = array<i32>} : memref<512x8xf32, #tpu.memory_space<vmem>>, vector<512x8xf32>,
    return
  }
  func.func @transform_0(%arg0: i32) -> (i32, i32) {
    %c0_i32 = arith.constant 0 : i32
    %c0_i32_0 = arith.constant 0 : i32
    return %arg0, %c0_i32 : i32, i32
  }
  func.func @transform_1(%arg0: i32) -> (i32, i32) {
    %c0_i32 = arith.constant 0 : i32
    %c0_i32_0 = arith.constant 0 : i32
    return %arg0, %c0_i32 : i32, i32
  }
  func.func @transform_2(%arg0: i32) -> (i32, i32) {
    %c0_i32 = arith.constant 0 : i32
    %c0_i32_0 = arith.constant 0 : i32
    %c0_i32_1 = arith.constant 0 : i32
    return %c0_i32, %c0_i32_0 : i32, i32
  }
  func.func @transform_3(%arg0: i32) -> (i32, i32) {
    %c0_i32 = arith.constant 0 : i32
    %c0_i32_0 = arith.constant 0 : i32
    %c0_i32_1 = arith.constant 0 : i32
    return %c0_i32, %c0_i32_0 : i32, i32
  }
  func.func @transform_4(%arg0: i32) -> (i32, i32) {
    %c0_i32 = arith.constant 0 : i32
    %c0_i32_0 = arith.constant 0 : i32
    return %arg0, %c0_i32 : i32, i32
  }
}

</mosaic_0001>

<bundles_post_ra>
// kernel: _lambda_.6
= control target key start
LH: loop header
LB: loop body
LE: loop exit
PB: predicated region body
PF: predicated region fallthrough
CT: control target
= control target key end

     0   :  { %vm216_vm0 = vcmask 1043456   ;;  %vm119_vm1 = vcmask 64512   ;;  %vm893_vm2 = vcmask 130048   ;;  %s2293_s1 = inlined_call_operand.vmem [shape: bf16[8,16], index: 1, kind: input, shape index: {}]   ;;  %s2294_s0 = inlined_call_operand.vmem [shape: f32[512,8], index: 0, kind: input, shape index: {}]   ;;  %s2295_s2 = inlined_call_operand.vmem [shape: f32[1,16], index: 2, kind: input, shape index: {}]   ;;  %s2296_s3 = inlined_call_operand.vmem [shape: f32[512,16], index: 3, kind: output, shape index: {}]  }
   0x1   :  { %v15_v0 = vld [vmem:[%s2293_s1] sm:$0xf]  ;;  %v17_v2 = vld [vmem:[%s2294_s0 + $0x8] sm:$0xff]  ;;  %v18_v7 = vld [vmem:[%s2294_s0 + $0x10] sm:$0xff] }
   0x2   :  { %v16_v1 = vld [vmem:[%s2294_s0] sm:$0xff]  ;;  %1096 = vmatprep.subr.msk.bf16.mxu0 %vm216_vm0, %v15_v0  ;;  %1097 = vmatprep.subr.msk.bf16.mxu1 %vm216_vm0, %v15_v0  ;;  %v218_v3 = vsel %vm216_vm0, %v15_v0, 0  ;;  %v49_v6 = vld [vmem:[%s2294_s0 + $0x108] sm:$0xff]  ;;  %v19_v9 = vld [vmem:[%s2294_s0 + $0x18] sm:$0xff] }
   0x3   :  { %v80_v4 = vpack.c.bf16 %v17_v2, %v16_v1  ;;  %v48_v5 = vld [vmem:[%s2294_s0 + $0x100] sm:$0xff]  ;;  %1029 = vmatpush3.bf16.msra.mxu0 %v218_v3  ;;  %1095 = vmatpush3.bf16.msra.mxu1 %v218_v3  ;;  %v50_v10 = vld [vmem:[%s2294_s0 + $0x110] sm:$0xff]  ;;  %v51_v11 = vld [vmem:[%s2294_s0 + $0x118] sm:$0xff]  ;;  %v81_v12 = vpack.c.bf16 %v19_v9, %v18_v7 }
   0x4   :  { %v96_v8 = vpack.c.bf16 %v49_v6, %v48_v5  ;;  %v97_v13 = vpack.c.bf16 %v51_v11, %v50_v10  ;;  %v20_v14 = vld [vmem:[%s2294_s0 + $0x20] sm:$0xff]  ;;  %v21_v15 = vld [vmem:[%s2294_s0 + $0x28] sm:$0xff]  ;;  %v22_v20 = vld [vmem:[%s2294_s0 + $0x30] sm:$0xff] }
   0x5   :  { %1030 = vmatprep.mubr.msk.bf16.mxu0 %vm119_vm1, %v80_v4  ;;  %v52_v16 = vld [vmem:[%s2294_s0 + $0x120] sm:$0xff]  ;;  %v82_v17 = vpack.c.bf16 %v21_v15, %v20_v14  ;;  %v53_v18 = vld [vmem:[%s2294_s0 + $0x128] sm:$0xff]  ;;  %v23_v21 = vld [vmem:[%s2294_s0 + $0x38] sm:$0xff] }
   0x6   :  { %1062 = vmatprep.mubr.msk.bf16.mxu1 %vm119_vm1, %v96_v8  ;;  %1031 = vmatmul.mubr.msk.bf16.vlgmr.msra.gmra.mrb[0].mxu0 %vm119_vm1, %v81_v12  ;;  %v98_v19 = vpack.c.bf16 %v53_v18, %v52_v16  ;;  %v54_v22 = vld [vmem:[%s2294_s0 + $0x130] sm:$0xff]  ;;  %v55_v23 = vld [vmem:[%s2294_s0 + $0x138] sm:$0xff]  ;;  %v24_v24 = vld [vmem:[%s2294_s0 + $0x40] sm:$0xff]  ;;  %v83_v28 = vpack.c.bf16 %v23_v21, %v22_v20 }
   0x7   :  { %1063 = vmatmul.mubr.msk.bf16.vlgmr.msra.gmra.mrb[0].mxu1 %vm119_vm1, %v97_v13  ;;  %1034 = vmatprep.mubr.msk.bf16.mxu0 %vm119_vm1, %v82_v17  ;;  %v25_v25 = vld [vmem:[%s2294_s0 + $0x48] sm:$0xff]  ;;  %v56_v26 = vld [vmem:[%s2294_s0 + $0x140] sm:$0xff]  ;;  %v99_v29 = vpack.c.bf16 %v55_v23, %v54_v22  ;;  %v26_v32 = vld [vmem:[%s2294_s0 + $0x50] sm:$0xff] }
   0x8   :  { %1066 = vmatprep.mubr.msk.bf16.mxu1 %vm119_vm1, %v98_v19  ;;  %v57_v27 = vld [vmem:[%s2294_s0 + $0x148] sm:$0xff]  ;;  %v84_v30 = vpack.c.bf16 %v25_v25, %v24_v24  ;;  %v27_v33 = vld [vmem:[%s2294_s0 + $0x58] sm:$0xff]  ;;  %v58_v34 = vld [vmem:[%s2294_s0 + $0x150] sm:$0xff] }
   0x9   :  { %v100_v31 = vpack.c.bf16 %v57_v27, %v56_v26  ;;  %v59_v35 = vld [vmem:[%s2294_s0 + $0x158] sm:$0xff]  ;;  %v28_v36 = vld [vmem:[%s2294_s0 + $0x60] sm:$0xff]  ;;  %v29_v37 = vld [vmem:[%s2294_s0 + $0x68] sm:$0xff]  ;;  %v85_v40 = vpack.c.bf16 %v27_v33, %v26_v32 }
   0xa   :  { %v60_v38 = vld [vmem:[%s2294_s0 + $0x160] sm:$0xff]  ;;  %v61_v39 = vld [vmem:[%s2294_s0 + $0x168] sm:$0xff]  ;;  %v101_v41 = vpack.c.bf16 %v59_v35, %v58_v34  ;;  %v86_v42 = vpack.c.bf16 %v29_v37, %v28_v36  ;;  %v30_v44 = vld [vmem:[%s2294_s0 + $0x70] sm:$0xff] }
   0xb   :  { %v102_v43 = vpack.c.bf16 %v61_v39, %v60_v38  ;;  %v31_v45 = vld [vmem:[%s2294_s0 + $0x78] sm:$0xff]  ;;  %v62_v46 = vld [vmem:[%s2294_s0 + $0x170] sm:$0xff]  ;;  %v32_v48 = vld [vmem:[%s2294_s0 + $0x80] sm:$0xff] }
   0xc   :  { %v63_v47 = vld [vmem:[%s2294_s0 + $0x178] sm:$0xff]  ;;  %v33_v49 = vld [vmem:[%s2294_s0 + $0x88] sm:$0xff]  ;;  %v64_v50 = vld [vmem:[%s2294_s0 + $0x180] sm:$0xff]  ;;  %v87_v52 = vpack.c.bf16 %v31_v45, %v30_v44 }
   0xd   :  { %v65_v51 = vld [vmem:[%s2294_s0 + $0x188] sm:$0xff]  ;;  %v103_v53 = vpack.c.bf16 %v63_v47, %v62_v46  ;;  %v88_v54 = vpack.c.bf16 %v33_v49, %v32_v48  ;;  %v34_v56 = vld [vmem:[%s2294_s0 + $0x90] sm:$0xff]  ;;  %v35_v57 = vld [vmem:[%s2294_s0 + $0x98] sm:$0xff] }
   0xe   :  { %1035 = vmatmul.mubr.msk.bf16.gmra.mrb[4].mxu0 %vm119_vm1, %v83_v28  ;;  %v104_v55 = vpack.c.bf16 %v65_v51, %v64_v50  ;;  %v66_v58 = vld [vmem:[%s2294_s0 + $0x190] sm:$0xff]  ;;  %v67_v59 = vld [vmem:[%s2294_s0 + $0x198] sm:$0xff]  ;;  %v36_v60 = vld [vmem:[%s2294_s0 + $0xa0] sm:$0xff]  ;;  %v89_v0 = vpack.c.bf16 %v35_v57, %v34_v56 }
   0xf   :  { %1067 = vmatmul.mubr.msk.bf16.gmra.mrb[4].mxu1 %vm119_vm1, %v99_v29  ;;  %1038 = vmatprep.mubr.msk.bf16.mxu0 %vm119_vm1, %v84_v30  ;;  %v37_v61 = vld [vmem:[%s2294_s0 + $0xa8] sm:$0xff]  ;;  %v68_v62 = vld [vmem:[%s2294_s0 + $0x1a0] sm:$0xff]  ;;  %v105_v1 = vpack.c.bf16 %v67_v59, %v66_v58  ;;  %v38_v4 = vld [vmem:[%s2294_s0 + $0xb0] sm:$0xff] }
  0x10   :  { %1070 = vmatprep.mubr.msk.bf16.mxu1 %vm119_vm1, %v100_v31  ;;  %v69_v63 = vld [vmem:[%s2294_s0 + $0x1a8] sm:$0xff]  ;;  %v90_v2 = vpack.c.bf16 %v37_v61, %v36_v60  ;;  %v39_v5 = vld [vmem:[%s2294_s0 + $0xb8] sm:$0xff]  ;;  %v70_v6 = vld [vmem:[%s2294_s0 + $0x1b0] sm:$0xff] }
  0x11   :  { %v106_v3 = vpack.c.bf16 %v69_v63, %v68_v62  ;;  %v71_v7 = vld [vmem:[%s2294_s0 + $0x1b8] sm:$0xff]  ;;  %v40_v8 = vld [vmem:[%s2294_s0 + $0xc0] sm:$0xff]  ;;  %v41_v9 = vld [vmem:[%s2294_s0 + $0xc8] sm:$0xff]  ;;  %v91_v12 = vpack.c.bf16 %v39_v5, %v38_v4 }
  0x12   :  { %v72_v10 = vld [vmem:[%s2294_s0 + $0x1c0] sm:$0xff]  ;;  %v73_v11 = vld [vmem:[%s2294_s0 + $0x1c8] sm:$0xff]  ;;  %v107_v13 = vpack.c.bf16 %v71_v7, %v70_v6  ;;  %v92_v14 = vpack.c.bf16 %v41_v9, %v40_v8  ;;  %v42_v16 = vld [vmem:[%s2294_s0 + $0xd0] sm:$0xff] }
  0x13   :  { %v108_v15 = vpack.c.bf16 %v73_v11, %v72_v10  ;;  %v43_v17 = vld [vmem:[%s2294_s0 + $0xd8] sm:$0xff]  ;;  %v74_v18 = vld [vmem:[%s2294_s0 + $0x1d0] sm:$0xff]  ;;  %v44_v20 = vld [vmem:[%s2294_s0 + $0xe0] sm:$0xff] }
  0x14   :  { %v75_v19 = vld [vmem:[%s2294_s0 + $0x1d8] sm:$0xff]  ;;  %v45_v21 = vld [vmem:[%s2294_s0 + $0xe8] sm:$0xff]  ;;  %v76_v22 = vld [vmem:[%s2294_s0 + $0x1e0] sm:$0xff]  ;;  %v93_v24 = vpack.c.bf16 %v43_v17, %v42_v16 }
  0x15   :  { %v77_v23 = vld [vmem:[%s2294_s0 + $0x1e8] sm:$0xff]  ;;  %v109_v25 = vpack.c.bf16 %v75_v19, %v74_v18  ;;  %v94_v26 = vpack.c.bf16 %v45_v21, %v44_v20  ;;  %v46_v28 = vld [vmem:[%s2294_s0 + $0xf0] sm:$0xff]  ;;  %v47_v29 = vld [vmem:[%s2294_s0 + $0xf8] sm:$0xff] }
  0x16   :  { %1039 = vmatmul.mubr.msk.bf16.gmra.mrb[8].mxu0 %vm119_vm1, %v85_v40  ;;  %v110_v27 = vpack.c.bf16 %v77_v23, %v76_v22  ;;  %v78_v30 = vld [vmem:[%s2294_s0 + $0x1f0] sm:$0xff]  ;;  %v79_v31 = vld [vmem:[%s2294_s0 + $0x1f8] sm:$0xff]  ;;  %v95_v32 = vpack.c.bf16 %v47_v29, %v46_v28  ;;  %v1605_v34 = vld [vmem:[%s2295_s2] ss:$0 sm:$0xff] }
  0x17   :  { %1071 = vmatmul.mubr.msk.bf16.gmra.mrb[8].mxu1 %vm119_vm1, %v101_v41  ;;  %1042 = vmatprep.mubr.msk.bf16.mxu0 %vm119_vm1, %v86_v42  ;;  %v111_v33 = vpack.c.bf16 %v79_v31, %v78_v30 }
  0x18   :  { %1074 = vmatprep.mubr.msk.bf16.mxu1 %vm119_vm1, %v102_v43 }
  0x1e   :  { %1043 = vmatmul.mubr.msk.bf16.gmra.mrb[12].mxu0 %vm119_vm1, %v87_v52 }
  0x1f   :  { %1075 = vmatmul.mubr.msk.bf16.gmra.mrb[12].mxu1 %vm119_vm1, %v103_v53  ;;  %1046 = vmatprep.mubr.msk.bf16.mxu0 %vm119_vm1, %v88_v54 }
  0x20   :  { %1078 = vmatprep.mubr.msk.bf16.mxu1 %vm119_vm1, %v104_v55 }
  0x26   :  { %1047 = vmatmul.mubr.msk.bf16.gmra.mrb[16].mxu0 %vm119_vm1, %v89_v0 }
  0x27   :  { %1079 = vmatmul.mubr.msk.bf16.gmra.mrb[16].mxu1 %vm119_vm1, %v105_v1  ;;  %1050 = vmatprep.mubr.msk.bf16.mxu0 %vm119_vm1, %v90_v2 }
  0x28   :  { %1082 = vmatprep.mubr.msk.bf16.mxu1 %vm119_vm1, %v106_v3 }
  0x2e   :  { %1051 = vmatmul.mubr.msk.bf16.gmra.mrb[20].mxu0 %vm119_vm1, %v91_v12 }
  0x2f   :  { %1083 = vmatmul.mubr.msk.bf16.gmra.mrb[20].mxu1 %vm119_vm1, %v107_v13  ;;  %1054 = vmatprep.mubr.msk.bf16.mxu0 %vm119_vm1, %v92_v14 }
  0x30   :  { %1086 = vmatprep.mubr.msk.bf16.mxu1 %vm119_vm1, %v108_v15 }
  0x36   :  { %1055 = vmatmul.mubr.msk.bf16.gmra.mrb[24].mxu0 %vm119_vm1, %v93_v24 }
  0x37   :  { %1087 = vmatmul.mubr.msk.bf16.gmra.mrb[24].mxu1 %vm119_vm1, %v109_v25  ;;  %1058 = vmatprep.mubr.msk.bf16.mxu0 %vm119_vm1, %v94_v26 }
  0x38   :  { %1090 = vmatprep.mubr.msk.bf16.mxu1 %vm119_vm1, %v110_v27 }
  0x3e   :  { %1059 = vmatmul.mubr.msk.bf16.gmra.mrb[28].mxu0 %vm119_vm1, %v95_v32 }
  0x3f   :  { %1091 = vmatmul.mubr.msk.bf16.gmra.mrb[28].mxu1 %vm119_vm1, %v111_v33 }
  0xd9   :  { %v1032_v35 = vpop.f32.mrb[0].mxu0 }
  0xda   :  { %v1064_v36 = vpop.f32.mrb[0].mxu1  ;;  %v1608_v37 = vadd.f32 %v1032_v35, %v1605_v34  ;;  %v254_v39 = vpop.f32.mrb[1].mxu0 }
  0xdb   :  { %v1611_v38 = vadd.f32 %v1064_v36, %v1605_v34  ;;  %v382_v40 = vpop.f32.mrb[1].mxu1  ;;  %v1614_v41 = vadd.f32 %v1605_v34, %v254_v39  ;;  %v1033_v43 = vpop.f32.mrb[2].mxu0 }
  0xdc   :  { %v1617_v42 = vadd.f32 %v1605_v34, %v382_v40  ;;  %v1065_v44 = vpop.f32.mrb[2].mxu1  ;;  %v511_v45 = vsub.f32 0.0, %v1608_v37  ;;  %v1622_v47 = vadd.f32 %v1033_v43, %v1605_v34  ;;  %v257_v49 = vpop.f32.mrb[3].mxu0 }
  0xdd   :  { %v543_v46 = vsub.f32 0.0, %v1611_v38  ;;  %v1625_v48 = vadd.f32 %v1065_v44, %v1605_v34  ;;  %v385_v50 = vpop.f32.mrb[3].mxu1  ;;  %v509_v51 = vsub.f32 0.0, %v1614_v41  ;;  %v1630_v53 = vadd.f32 %v1605_v34, %v257_v49 }
  0xde   :  { %v541_v52 = vsub.f32 0.0, %v1617_v42  ;;  %v1633_v54 = vadd.f32 %v1605_v34, %v385_v50  ;;  %v577_v55 = vmul.f32 1.442695, %v511_v45  ;;  %v512_v57 = vsub.f32 0.0, %v1622_v47 }
  0xdf   :  { %v641_v56 = vmul.f32 1.442695, %v543_v46  ;;  %v544_v58 = vsub.f32 0.0, %v1625_v48  ;;  %v573_v59 = vmul.f32 1.442695, %v509_v51  ;;  %v510_v61 = vsub.f32 0.0, %v1630_v53 }
  0xe0   :  { %v637_v60 = vmul.f32 1.442695, %v541_v52  ;;  %v542_v62 = vsub.f32 0.0, %v1633_v54  ;;  %1098 = vpow2.f32 %v577_v55  ;;  %v579_v63 = vmul.f32 1.442695, %v512_v57 }
  0xe1   :  { %1100 = vpow2.f32 %v641_v56  ;;  %v643_v0 = vmul.f32 1.442695, %v544_v58  ;;  %v1036_v1 = vpop.f32.mrb[4].mxu0  ;;  %v575_v3 = vmul.f32 1.442695, %v510_v61 }
  0xe2   :  { %v1068_v2 = vpop.f32.mrb[4].mxu1  ;;  %1102 = vpow2.f32 %v573_v59  ;;  %v1640_v4 = vadd.f32 %v1036_v1, %v1605_v34  ;;  %v270_v6 = vpop.f32.mrb[5].mxu0  ;;  %v639_v8 = vmul.f32 1.442695, %v542_v62 }
  0xe3   :  { %v1643_v5 = vadd.f32 %v1068_v2, %v1605_v34  ;;  %v398_v7 = vpop.f32.mrb[5].mxu1  ;;  %1104 = vpow2.f32 %v637_v60  ;;  %v1646_v9 = vadd.f32 %v1605_v34, %v270_v6  ;;  %v1037_v11 = vpop.f32.mrb[6].mxu0 }
  0xe4   :  { %v1649_v10 = vadd.f32 %v1605_v34, %v398_v7  ;;  %v1069_v12 = vpop.f32.mrb[6].mxu1  ;;  %1106 = vpow2.f32 %v579_v63  ;;  %v515_v13 = vsub.f32 0.0, %v1640_v4  ;;  %v1654_v15 = vadd.f32 %v1037_v11, %v1605_v34  ;;  %v273_v16 = vpop.f32.mrb[7].mxu0 }
  0xe5   :  { %v547_v14 = vsub.f32 0.0, %v1643_v5  ;;  %v401_v17 = vpop.f32.mrb[7].mxu1  ;;  %1108 = vpow2.f32 %v643_v0  ;;  %v513_v18 = vsub.f32 0.0, %v1646_v9  ;;  %v1660_v29 = vadd.f32 %v1069_v12, %v1605_v34 }
  0xe6   :  { %v545_v19 = vsub.f32 0.0, %v1649_v10  ;;  %1110 = vpow2.f32 %v575_v3  ;;  %v585_v20 = vmul.f32 1.442695, %v515_v13  ;;  %v516_v22 = vsub.f32 0.0, %v1654_v15 }
  0xe7   :  { %v649_v21 = vmul.f32 1.442695, %v547_v14  ;;  %1112 = vpow2.f32 %v639_v8  ;;  %v581_v23 = vmul.f32 1.442695, %v513_v18  ;;  %v1663_v35 = vadd.f32 %v1605_v34, %v273_v16 }
  0xe8   :  { %v645_v24 = vmul.f32 1.442695, %v545_v19  ;;  %1114 = vpow2.f32 %v585_v20  ;;  %v587_v25 = vmul.f32 1.442695, %v516_v22  ;;  %v1666_v44 = vadd.f32 %v1605_v34, %v401_v17 }
  0xe9   :  { %1116 = vpow2.f32 %v649_v21  ;;  %v1040_v26 = vpop.f32.mrb[8].mxu0  ;;  %v548_v55 = vsub.f32 0.0, %v1660_v29  ;;  %v514_v59 = vsub.f32 0.0, %v1663_v35 }
  0xea   :  { %v1072_v27 = vpop.f32.mrb[8].mxu1  ;;  %v1099_v28 = vpop.eup %1098  ;;  %1118 = vpow2.f32 %v581_v23  ;;  %v1672_v56 = vadd.f32 %v1040_v26, %v1605_v34  ;;  %v546_v63 = vsub.f32 0.0, %v1666_v44 }
  0xeb   :  { %v286_v30 = vpop.f32.mrb[9].mxu0  ;;  %v414_v31 = vpop.f32.mrb[9].mxu1  ;;  %v703_v33 = vadd.f32 1.0, %v1099_v28  ;;  %1120 = vpow2.f32 %v645_v24  ;;  %v1676_v60 = vadd.f32 %v1072_v27, %v1605_v34  ;;  %v651_v11 = vmul.f32 1.442695, %v548_v55 }
  0xec   :  { %v1101_v32 = vpop.eup %1100  ;;  %v1041_v36 = vpop.f32.mrb[10].mxu0  ;;  %1122 = vpow2.f32 %v587_v25  ;;  %v1680_v2 = vadd.f32 %v1605_v34, %v286_v30  ;;  %v519_v12 = vsub.f32 0.0, %v1672_v56  ;;  %v583_v18 = vmul.f32 1.442695, %v514_v59 }
  0xed   :  { %v1073_v39 = vpop.f32.mrb[10].mxu1  ;;  %v1103_v40 = vpop.eup %1102  ;;  %v735_v43 = vadd.f32 1.0, %v1101_v32  ;;  %1124 = vrcp.f32 %v703_v33  ;;  %v551_v19 = vsub.f32 0.0, %v1676_v60  ;;  %v647_v24 = vmul.f32 1.442695, %v546_v63 }
  0xee   :  { %v289_v45 = vpop.f32.mrb[11].mxu0  ;;  %v1105_v46 = vpop.eup %1104  ;;  %v701_v49 = vadd.f32 1.0, %v1103_v40  ;;  %v1693_v25 = vadd.f32 %v1605_v34, %v414_v31  ;;  %v517_v32 = vsub.f32 0.0, %v1680_v2  ;;  %v1701_v33 = vadd.f32 %v1041_v36, %v1605_v34 }
  0xef   :  { %v1668_v50 = vpop.f32.mrb[11].mxu1  ;;  %v1107_v51 = vpop.eup %1106  ;;  %1126 = vrcp.f32 %v735_v43  ;;  %v733_v52 = vadd.f32 1.0, %v1105_v46  ;;  %v593_v46 = vmul.f32 1.442695, %v519_v12  ;;  %v1707_v55 = vadd.f32 %v1605_v34, %v289_v45 }
  0xf0   :  { %v1109_v57 = vpop.eup %1108  ;;  %1128 = vrcp.f32 %v701_v49  ;;  %v704_v58 = vadd.f32 1.0, %v1107_v51  ;;  %v1704_v49 = vadd.f32 %v1073_v39, %v1605_v34  ;;  %v549_v36 = vsub.f32 0.0, %v1693_v25 }
  0xf1   :  { %v1111_v61 = vpop.eup %1110  ;;  %1130 = vrcp.f32 %v733_v52  ;;  %v736_v62 = vadd.f32 1.0, %v1109_v57  ;;  %v1044_v3 = vpop.f32.mrb[12].mxu0  ;;  %v657_v52 = vmul.f32 1.442695, %v551_v19  ;;  %v1713_v59 = vadd.f32 %v1605_v34, %v1668_v50 }
  0xf2   :  { %v1113_v0 = vpop.eup %1112  ;;  %1132 = vrcp.f32 %v704_v58  ;;  %v702_v1 = vadd.f32 1.0, %v1111_v61  ;;  %v1076_v6 = vpop.f32.mrb[12].mxu1  ;;  %v1718_v63 = vadd.f32 %v1044_v3, %v1605_v34 }
  0xf3   :  { %v1115_v7 = vpop.eup %1114  ;;  %1134 = vrcp.f32 %v736_v62  ;;  %v734_v8 = vadd.f32 1.0, %v1113_v0  ;;  %v1683_v13 = vpop.f32.mrb[13].mxu0  ;;  %v520_v62 = vsub.f32 0.0, %v1701_v33 }
  0xf4   :  { %v1685_v14 = vpop.f32.mrb[13].mxu1  ;;  %v1117_v16 = vpop.eup %1116  ;;  %1136 = vrcp.f32 %v702_v1  ;;  %v707_v17 = vadd.f32 1.0, %v1115_v7  ;;  %v1731_v1 = vadd.f32 %v1076_v6, %v1605_v34 }
  0xf5   :  { %v1688_v20 = vpop.f32.mrb[14].mxu0  ;;  %v1690_v21 = vpop.f32.mrb[14].mxu1  ;;  %1138 = vrcp.f32 %v734_v8  ;;  %v739_v23 = vadd.f32 1.0, %v1117_v16 }
  0xf6   :  { %v1119_v22 = vpop.eup %1118  ;;  %v1695_v26 = vpop.f32.mrb[15].mxu0  ;;  %1140 = vrcp.f32 %v707_v17 }
  0xf7   :  { %v1697_v27 = vpop.f32.mrb[15].mxu1  ;;  %v1121_v28 = vpop.eup %1120  ;;  %v705_v30 = vadd.f32 1.0, %v1119_v22  ;;  %1142 = vrcp.f32 %v739_v23  ;;  %v653_v22 = vmul.f32 1.442695, %v549_v36 }
  0xf8   :  { %v1123_v40 = vpop.eup %1122  ;;  %v737_v43 = vadd.f32 1.0, %v1121_v28 }
  0xf9   :  { %v1125_v31 = vpop.eup %1124  ;;  %1144 = vrcp.f32 %v705_v30  ;;  %v708_v51 = vadd.f32 1.0, %v1123_v40  ;;  %v1720_v45 = vpop.f32.mrb[16].mxu0 }
  0xfa   :  { %v1127_v57 = vpop.eup %1126  ;;  %v831_v58 = vmul.f32 %v1125_v31, %v1608_v37  ;;  %1146 = vrcp.f32 %v737_v43  ;;  %v1722_v0 = vpop.f32.mrb[16].mxu1  ;;  %v555_v31 = vsub.f32 0.0, %v1731_v1 }
  0xfb   :  { %v1129_v61 = vpop.eup %1128  ;;  %v863_v39 = vmul.f32 %v1127_v57, %v1611_v38  ;;  %1148 = vrcp.f32 %v708_v51  ;;  %v552_v38 = vsub.f32 0.0, %v1704_v49  ;;  %v1733_v3 = vpop.f32.mrb[17].mxu0 }
  0xfc   :  { %v1131_v37 = vpop.eup %1130  ;;  %896 = vst.msk [vmem:[%s2296_s3 + $0x10] sm:$0xff] %vm893_vm2, %v831_v58  ;;  %v829_v50 = vmul.f32 %v1129_v61, %v1614_v41  ;;  %1150 = vpow2.f32 %v651_v11  ;;  %v1735_v7 = vpop.f32.mrb[17].mxu1  ;;  %v589_v41 = vmul.f32 1.442695, %v517_v32  ;;  %v518_v11 = vsub.f32 0.0, %v1707_v55 }
  0xfd   :  { %v1133_v8 = vpop.eup %1132  ;;  %928 = vst.msk [vmem:[%s2296_s3 + $0x110] sm:$0xff] %vm893_vm2, %v863_v39  ;;  %v861_v12 = vmul.f32 %v1131_v37, %v1617_v42  ;;  %1152 = vpow2.f32 %v583_v18  ;;  %v1743_v16 = vpop.f32.mrb[18].mxu0  ;;  %v550_v42 = vsub.f32 0.0, %v1713_v59  ;;  %v595_v32 = vmul.f32 1.442695, %v520_v62 }
  0xfe   :  { %v1745_v6 = vpop.f32.mrb[18].mxu1  ;;  %v1135_v17 = vpop.eup %1134  ;;  %894 = vst.msk [vmem:[%s2296_s3] sm:$0xff] %vm893_vm2, %v829_v50  ;;  %v832_v19 = vmul.f32 %v1133_v8, %v1622_v47  ;;  %1154 = vpow2.f32 %v647_v24  ;;  %v523_v47 = vsub.f32 0.0, %v1718_v63  ;;  %v659_v43 = vmul.f32 1.442695, %v552_v38 }
  0xff   :  { %v1753_v18 = vpop.f32.mrb[19].mxu0  ;;  %v1755_v23 = vpop.f32.mrb[19].mxu1  ;;  %926 = vst.msk [vmem:[%s2296_s3 + $0x100] sm:$0xff] %vm893_vm2, %v861_v12  ;;  %v864_v30 = vmul.f32 %v1135_v17, %v1625_v48  ;;  %1156 = vpow2.f32 %v593_v46  ;;  %v591_v46 = vmul.f32 1.442695, %v518_v11  ;;  %v1813_v17 = vadd.f32 %v1605_v34, %v1683_v13 }
 0x100   :  { %v1137_v28 = vpop.eup %1136  ;;  %897 = vst.msk [vmem:[%s2296_s3 + $0x18] sm:$0xff] %vm893_vm2, %v832_v19  ;;  %1158 = vpow2.f32 %v657_v52  ;;  %v655_v52 = vmul.f32 1.442695, %v550_v42  ;;  %v601_v36 = vmul.f32 1.442695, %v523_v47 }
 0x101   :  { %v1139_v24 = vpop.eup %1138  ;;  %v830_v40 = vmul.f32 %v1137_v28, %v1630_v53  ;;  %929 = vst.msk [vmem:[%s2296_s3 + $0x118] sm:$0xff] %vm893_vm2, %v864_v30  ;;  %1160 = vpow2.f32 %v589_v41  ;;  %v1784_v61 = vpop.f32.mrb[20].mxu0  ;;  %v665_v37 = vmul.f32 1.442695, %v555_v31  ;;  %v1833_v30 = vadd.f32 %v1688_v20, %v1605_v34 }
 0x102   :  { %v1141_v51 = vpop.eup %1140  ;;  %v862_v48 = vmul.f32 %v1139_v24, %v1633_v54  ;;  %1162 = vpow2.f32 %v653_v22  ;;  %v1786_v39 = vpop.f32.mrb[20].mxu1  ;;  %v1837_v24 = vadd.f32 %v1690_v21, %v1605_v34  ;;  %v1842_v31 = vadd.f32 %v1605_v34, %v1695_v26 }
 0x103   :  { %v1143_v57 = vpop.eup %1142  ;;  %895 = vst.msk [vmem:[%s2296_s3 + $0x8] sm:$0xff] %vm893_vm2, %v830_v40  ;;  %v835_v53 = vmul.f32 %v1141_v51, %v1640_v4  ;;  %1164 = vpow2.f32 %v595_v32  ;;  %v1793_v50 = vpop.f32.mrb[21].mxu0 }
 0x104   :  { %v1145_v58 = vpop.eup %1144  ;;  %927 = vst.msk [vmem:[%s2296_s3 + $0x108] sm:$0xff] %vm893_vm2, %v862_v48  ;;  %v867_v54 = vmul.f32 %v1143_v57, %v1643_v5  ;;  %1166 = vpow2.f32 %v659_v43  ;;  %v1795_v38 = vpop.f32.mrb[21].mxu1  ;;  %v521_v43 = vsub.f32 0.0, %v1813_v17 }
 0x105   :  { %v1147_v62 = vpop.eup %1146  ;;  %900 = vst.msk [vmem:[%s2296_s3 + $0x30] sm:$0xff] %vm893_vm2, %v835_v53  ;;  %v833_v4 = vmul.f32 %v1145_v58, %v1646_v9  ;;  %1168 = vpow2.f32 %v591_v46  ;;  %v1802_v12 = vpop.f32.mrb[22].mxu0 }
 0x106   :  { %v1149_v5 = vpop.eup %1148  ;;  %932 = vst.msk [vmem:[%s2296_s3 + $0x130] sm:$0xff] %vm893_vm2, %v867_v54  ;;  %v865_v8 = vmul.f32 %v1147_v62, %v1649_v10  ;;  %v1804_v41 = vpop.f32.mrb[22].mxu1  ;;  %1170 = vpow2.f32 %v655_v52  ;;  %v524_v52 = vsub.f32 0.0, %v1833_v30  ;;  %v556_v62 = vsub.f32 0.0, %v1837_v24 }
 0x107   :  { %v1151_v9 = vpop.eup %1150  ;;  %898 = vst.msk [vmem:[%s2296_s3 + $0x20] sm:$0xff] %vm893_vm2, %v833_v4  ;;  %v836_v11 = vmul.f32 %v1149_v5, %v1654_v15  ;;  %v1815_v19 = vpop.f32.mrb[23].mxu0  ;;  %1172 = vpow2.f32 %v601_v36  ;;  %v1825_v15 = vadd.f32 %v1605_v34, %v1685_v14 }
 0x108   :  { %v1817_v10 = vpop.f32.mrb[23].mxu1  ;;  %v1153_v22 = vpop.eup %1152  ;;  %930 = vst.msk [vmem:[%s2296_s3 + $0x120] sm:$0xff] %vm893_vm2, %v865_v8  ;;  %v740_v42 = vadd.f32 1.0, %v1151_v9  ;;  %1174 = vpow2.f32 %v665_v37  ;;  %v597_v9 = vmul.f32 1.442695, %v521_v43  ;;  %v1870_v43 = vadd.f32 %v1720_v45, %v1605_v34 }
 0x109   :  { %v1155_v28 = vpop.eup %1154  ;;  %901 = vst.msk [vmem:[%s2296_s3 + $0x38] sm:$0xff] %vm893_vm2, %v836_v11  ;;  %v706_v13 = vadd.f32 1.0, %v1153_v22  ;;  %v553_v48 = vsub.f32 0.0, %v1825_v15  ;;  %v1845_v46 = vpop.f32.mrb[24].mxu0  ;;  %v522_v11 = vsub.f32 0.0, %v1842_v31 }
 0x10a   :  { %v1157_v32 = vpop.eup %1156  ;;  %1176 = vrcp.f32 %v740_v42  ;;  %v738_v47 = vadd.f32 1.0, %v1155_v28  ;;  %v1847_v57 = vpop.f32.mrb[24].mxu1 }
 0x10b   :  { %v1159_v14 = vpop.eup %1158  ;;  %1178 = vrcp.f32 %v706_v13  ;;  %v711_v40 = vadd.f32 1.0, %v1157_v32  ;;  %v1850_v58 = vpop.f32.mrb[25].mxu0  ;;  %v661_v32 = vmul.f32 1.442695, %v553_v48 }
 0x10c   :  { %v1161_v51 = vpop.eup %1160  ;;  %1180 = vrcp.f32 %v738_v47  ;;  %v743_v20 = vadd.f32 1.0, %v1159_v14  ;;  %v1852_v54 = vpop.f32.mrb[25].mxu1  ;;  %v1866_v47 = vadd.f32 %v1605_v34, %v1697_v27 }
 0x10d   :  { %v1163_v21 = vpop.eup %1162  ;;  %1182 = vrcp.f32 %v711_v40  ;;  %v709_v53 = vadd.f32 1.0, %v1161_v51  ;;  %v1855_v4 = vpop.f32.mrb[26].mxu0  ;;  %v603_v51 = vmul.f32 1.442695, %v524_v52 }
 0x10e   :  { %v1165_v26 = vpop.eup %1164  ;;  %1184 = vrcp.f32 %v743_v20  ;;  %v741_v36 = vadd.f32 1.0, %v1163_v21  ;;  %v1857_v37 = vpop.f32.mrb[26].mxu1 }
 0x10f   :  { %v1167_v5 = vpop.eup %1166  ;;  %1186 = vrcp.f32 %v709_v53  ;;  %v712_v8 = vadd.f32 1.0, %v1165_v26  ;;  %v1860_v22 = vpop.f32.mrb[27].mxu0  ;;  %v667_v53 = vmul.f32 1.442695, %v556_v62  ;;  %v1874_v26 = vadd.f32 %v1722_v0, %v1605_v34 }
 0x110   :  { %v1862_v42 = vpop.f32.mrb[27].mxu1  ;;  %v1169_v28 = vpop.eup %1168  ;;  %1188 = vrcp.f32 %v741_v36  ;;  %v744_v13 = vadd.f32 1.0, %v1167_v5  ;;  %v599_v36 = vmul.f32 1.442695, %v522_v11  ;;  %v1878_v5 = vadd.f32 %v1605_v34, %v1733_v3 }
 0x111   :  { %v1171_v14 = vpop.eup %1170  ;;  %1190 = vrcp.f32 %v712_v8  ;;  %v710_v40 = vadd.f32 1.0, %v1169_v28  ;;  %v554_v8 = vsub.f32 0.0, %v1866_v47  ;;  %v1883_v62 = vadd.f32 %v1605_v34, %v1735_v7  ;;  %v1885_v28 = vpop.f32.mrb[28].mxu0 }
 0x112   :  { %v1173_v20 = vpop.eup %1172  ;;  %1192 = vrcp.f32 %v744_v13  ;;  %v742_v21 = vadd.f32 1.0, %v1171_v14  ;;  %v1887_v0 = vpop.f32.mrb[28].mxu1  ;;  %v527_v3 = vsub.f32 0.0, %v1870_v43  ;;  %v1893_v14 = vadd.f32 %v1743_v16, %v1605_v34 }
 0x113   :  { %v1175_v48 = vpop.eup %1174  ;;  %1194 = vrcp.f32 %v710_v40  ;;  %v715_v27 = vadd.f32 1.0, %v1173_v20  ;;  %v1895_v40 = vpop.f32.mrb[29].mxu0 }
 0x114   :  { %v1177_v52 = vpop.eup %1176  ;;  %1196 = vrcp.f32 %v742_v21  ;;  %v747_v45 = vadd.f32 1.0, %v1175_v48  ;;  %v1897_v20 = vpop.f32.mrb[29].mxu1  ;;  %v559_v48 = vsub.f32 0.0, %v1874_v26 }
 0x115   :  { %v1179_v13 = vpop.eup %1178  ;;  %v868_v11 = vmul.f32 %v1177_v52, %v1660_v29  ;;  %1198 = vrcp.f32 %v715_v27  ;;  %2297 = vst [vmem:[#allocation2_spill] sm:$0xff] %v1897_v20  ;;  %v1903_v29 = vadd.f32 %v1745_v6, %v1605_v34  ;;  %v1905_v27 = vpop.f32.mrb[30].mxu0 }
 0x116   :  { %v1181_v7 = vpop.eup %1180  ;;  %v834_v21 = vmul.f32 %v1179_v13, %v1663_v35  ;;  %1200 = vrcp.f32 %v747_v45  ;;  %2298 = vst [vmem:[#allocation3_spill] sm:$0xff] %v1905_v27  ;;  %v1907_v52 = vpop.f32.mrb[30].mxu1  ;;  %v525_v35 = vsub.f32 0.0, %v1878_v5  ;;  %v1917_v45 = vadd.f32 %v1605_v34, %v1753_v18 }
 0x117   :  { %2299 = vst [vmem:[#allocation4_spill] sm:$0xff] %v1907_v52  ;;  %v1183_v16 = vpop.eup %1182  ;;  %933 = vst.msk [vmem:[%s2296_s3 + $0x138] sm:$0xff] %vm893_vm2, %v868_v11  ;;  %v866_v20 = vmul.f32 %v1181_v7, %v1666_v44  ;;  %1202 = vpow2.f32 %v597_v9  ;;  %v1919_v6 = vpop.f32.mrb[31].mxu0  ;;  %v663_v44 = vmul.f32 1.442695, %v554_v8  ;;  %v557_v9 = vsub.f32 0.0, %v1883_v62 }
 0x118   :  { %2300 = vst [vmem:[#allocation5_spill] sm:$0xff] %v1919_v6  ;;  %v1921_v13 = vpop.f32.mrb[31].mxu1  ;;  %v1185_v52 = vpop.eup %1184  ;;  %899 = vst.msk [vmem:[%s2296_s3 + $0x28] sm:$0xff] %vm893_vm2, %v834_v21  ;;  %v839_v11 = vmul.f32 %v1183_v16, %v1672_v56  ;;  %1204 = vpow2.f32 %v661_v32  ;;  %v528_v6 = vsub.f32 0.0, %v1893_v14  ;;  %v673_v32 = vmul.f32 1.442695, %v559_v48 }
 0x119   :  { %2301 = vst [vmem:[#allocation6_spill] sm:$0xff] %v1921_v13  ;;  %v1187_v7 = vpop.eup %1186  ;;  %931 = vst.msk [vmem:[%s2296_s3 + $0x128] sm:$0xff] %vm893_vm2, %v866_v20  ;;  %v871_v18 = vmul.f32 %v1185_v52, %v1676_v60  ;;  %1206 = vpow2.f32 %v603_v51  ;;  %v609_v13 = vmul.f32 1.442695, %v527_v3  ;;  %v560_v8 = vsub.f32 0.0, %v1903_v29 }
 0x11a   :  { %v1189_v27 = vpop.eup %1188  ;;  %904 = vst.msk [vmem:[%s2296_s3 + $0x50] sm:$0xff] %vm893_vm2, %v839_v11  ;;  %v837_v56 = vmul.f32 %v1187_v7, %v1680_v2  ;;  %1208 = vpow2.f32 %v667_v53  ;;  %v605_v51 = vmul.f32 1.442695, %v525_v35  ;;  %v526_v3 = vsub.f32 0.0, %v1917_v45 }
 0x11b   :  { %v1191_v21 = vpop.eup %1190  ;;  %936 = vst.msk [vmem:[%s2296_s3 + $0x150] sm:$0xff] %vm893_vm2, %v871_v18  ;;  %v869_v60 = vmul.f32 %v1189_v27, %v1693_v25  ;;  %1210 = vpow2.f32 %v599_v36  ;;  %v669_v53 = vmul.f32 1.442695, %v557_v9  ;;  %v611_v36 = vmul.f32 1.442695, %v528_v6 }
 0x11c   :  { %v1193_v20 = vpop.eup %1192  ;;  %902 = vst.msk [vmem:[%s2296_s3 + $0x40] sm:$0xff] %vm893_vm2, %v837_v56  ;;  %v840_v2 = vmul.f32 %v1191_v21, %v1701_v33  ;;  %1212 = vpow2.f32 %v663_v44  ;;  %v675_v52 = vmul.f32 1.442695, %v560_v8  ;;  %v607_v35 = vmul.f32 1.442695, %v526_v3 }
 0x11d   :  { %v1195_v48 = vpop.eup %1194  ;;  %934 = vst.msk [vmem:[%s2296_s3 + $0x140] sm:$0xff] %vm893_vm2, %v869_v60  ;;  %v872_v25 = vmul.f32 %v1193_v20, %v1704_v49  ;;  %1214 = vpow2.f32 %v609_v13  ;;  %v1987_v9 = vadd.f32 %v1784_v61, %v1605_v34  ;;  %v2004_v60 = vadd.f32 %v1605_v34, %v1795_v38 }
 0x11e   :  { %v1197_v27 = vpop.eup %1196  ;;  %905 = vst.msk [vmem:[%s2296_s3 + $0x58] sm:$0xff] %vm893_vm2, %v840_v2  ;;  %v838_v33 = vmul.f32 %v1195_v48, %v1707_v55  ;;  %1216 = vpow2.f32 %v673_v32  ;;  %v1999_v32 = vadd.f32 %v1605_v34, %v1793_v50 }
 0x11f   :  { %v1199_v16 = vpop.eup %1198  ;;  %937 = vst.msk [vmem:[%s2296_s3 + $0x158] sm:$0xff] %vm893_vm2, %v872_v25  ;;  %v870_v49 = vmul.f32 %v1197_v27, %v1713_v59  ;;  %1218 = vpow2.f32 %v605_v51  ;;  %v1979_v59 = vadd.f32 %v1605_v34, %v1755_v23  ;;  %v1995_v23 = vadd.f32 %v1786_v39, %v1605_v34 }
 0x120   :  { %v1201_v6 = vpop.eup %1200  ;;  %903 = vst.msk [vmem:[%s2296_s3 + $0x48] sm:$0xff] %vm893_vm2, %v838_v33  ;;  %v843_v55 = vmul.f32 %v1199_v16, %v1718_v63  ;;  %1220 = vpow2.f32 %v669_v53  ;;  %v531_v3 = vsub.f32 0.0, %v1987_v9  ;;  %v529_v25 = vsub.f32 0.0, %v1999_v32 }
 0x121   :  { %v1203_v13 = vpop.eup %1202  ;;  %935 = vst.msk [vmem:[%s2296_s3 + $0x148] sm:$0xff] %vm893_vm2, %v870_v49  ;;  %v875_v11 = vmul.f32 %v1201_v6, %v1731_v1  ;;  %1222 = vpow2.f32 %v611_v36  ;;  %v558_v21 = vsub.f32 0.0, %v1979_v59  ;;  %v563_v50 = vsub.f32 0.0, %v1995_v23 }
 0x122   :  { %v1205_v44 = vpop.eup %1204  ;;  %908 = vst.msk [vmem:[%s2296_s3 + $0x70] sm:$0xff] %vm893_vm2, %v843_v55  ;;  %v713_v63 = vadd.f32 1.0, %v1203_v13  ;;  %1224 = vpow2.f32 %v675_v52  ;;  %v561_v33 = vsub.f32 0.0, %v2004_v60  ;;  %v617_v49 = vmul.f32 1.442695, %v531_v3 }
 0x123   :  { %v1207_v7 = vpop.eup %1206  ;;  %940 = vst.msk [vmem:[%s2296_s3 + $0x170] sm:$0xff] %vm893_vm2, %v875_v11  ;;  %v745_v1 = vadd.f32 1.0, %v1205_v44  ;;  %1226 = vpow2.f32 %v607_v35  ;;  %v671_v38 = vmul.f32 1.442695, %v558_v21  ;;  %v2012_v35 = vadd.f32 %v1802_v12, %v1605_v34 }
 0x124   :  { %v1209_v18 = vpop.eup %1208  ;;  %1228 = vrcp.f32 %v713_v63  ;;  %v716_v56 = vadd.f32 1.0, %v1207_v7  ;;  %v681_v13 = vmul.f32 1.442695, %v563_v50  ;;  %v2016_v11 = vadd.f32 %v1804_v41, %v1605_v34 }
 0x125   :  { %v1211_v61 = vpop.eup %1210  ;;  %1230 = vrcp.f32 %v745_v1  ;;  %v748_v8 = vadd.f32 1.0, %v1209_v18  ;;  %v613_v7 = vmul.f32 1.442695, %v529_v25  ;;  %v2020_v1 = vadd.f32 %v1605_v34, %v1815_v19 }
 0x126   :  { %v1213_v51 = vpop.eup %1212  ;;  %1232 = vrcp.f32 %v716_v56  ;;  %v714_v39 = vadd.f32 1.0, %v1211_v61  ;;  %v677_v56 = vmul.f32 1.442695, %v561_v33  ;;  %v2024_v61 = vadd.f32 %v1605_v34, %v1817_v10 }
 0x127   :  { %v1215_v20 = vpop.eup %1214  ;;  %1234 = vrcp.f32 %v748_v8  ;;  %v746_v2 = vadd.f32 1.0, %v1213_v51  ;;  %v532_v21 = vsub.f32 0.0, %v2012_v35  ;;  %v2029_v51 = vadd.f32 %v1845_v46, %v1605_v34 }
 0x128   :  { %v1217_v53 = vpop.eup %1216  ;;  %1236 = vrcp.f32 %v714_v39  ;;  %v719_v48 = vadd.f32 1.0, %v1215_v20  ;;  %v564_v3 = vsub.f32 0.0, %v2016_v11  ;;  %v2035_v20 = vadd.f32 %v1847_v57, %v1605_v34 }
 0x129   :  { %v1219_v36 = vpop.eup %1218  ;;  %1238 = vrcp.f32 %v746_v2  ;;  %v751_v27 = vadd.f32 1.0, %v1217_v53  ;;  %v530_v50 = vsub.f32 0.0, %v2020_v1  ;;  %v2041_v46 = vadd.f32 %v1605_v34, %v1850_v58 }
 0x12a   :  { %v1221_v52 = vpop.eup %1220  ;;  %1240 = vrcp.f32 %v719_v48  ;;  %v717_v16 = vadd.f32 1.0, %v1219_v36  ;;  %v562_v57 = vsub.f32 0.0, %v2024_v61  ;;  %v619_v25 = vmul.f32 1.442695, %v532_v21 }
 0x12b   :  { %v1223_v6 = vpop.eup %1222  ;;  %1242 = vrcp.f32 %v751_v27  ;;  %v749_v55 = vadd.f32 1.0, %v1221_v52  ;;  %v535_v36 = vsub.f32 0.0, %v2029_v51  ;;  %v683_v27 = vmul.f32 1.442695, %v564_v3 }
 0x12c   :  { %v1225_v44 = vpop.eup %1224  ;;  %1244 = vrcp.f32 %v717_v16  ;;  %v720_v63 = vadd.f32 1.0, %v1223_v6  ;;  %v615_v52 = vmul.f32 1.442695, %v530_v50  ;;  %v533_v16 = vsub.f32 0.0, %v2041_v46 }
 0x12d   :  { %v1227_v18 = vpop.eup %1226  ;;  %1246 = vrcp.f32 %v749_v55  ;;  %v752_v12 = vadd.f32 1.0, %v1225_v44  ;;  %v679_v6 = vmul.f32 1.442695, %v562_v57  ;;  %v625_v44 = vmul.f32 1.442695, %v535_v36 }
 0x12e   :  { %v1229_v8 = vpop.eup %1228  ;;  %1248 = vrcp.f32 %v720_v63  ;;  %v718_v41 = vadd.f32 1.0, %v1227_v18  ;;  %v2117_v3 = vadd.f32 %v1857_v37, %v1605_v34 }
 0x12f   :  { %v1231_v39 = vpop.eup %1230  ;;  %v841_v19 = vmul.f32 %v1229_v8, %v1813_v17  ;;  %1250 = vrcp.f32 %v752_v12  ;;  %v621_v12 = vmul.f32 1.442695, %v533_v16 }
 0x130   :  { %v1233_v10 = vpop.eup %1232  ;;  %v873_v2 = vmul.f32 %v1231_v39, %v1825_v15  ;;  %1252 = vrcp.f32 %v718_v41  ;;  %v2051_v15 = vadd.f32 %v1605_v34, %v1852_v54 }
 0x131   :  { %v1235_v53 = vpop.eup %1234  ;;  %906 = vst.msk [vmem:[%s2296_s3 + $0x60] sm:$0xff] %vm893_vm2, %v841_v19  ;;  %v844_v17 = vmul.f32 %v1233_v10, %v1833_v30  ;;  %1254 = vpow2.f32 %v671_v38  ;;  %v567_v38 = vsub.f32 0.0, %v2035_v20 }
 0x132   :  { %v1237_v48 = vpop.eup %1236  ;;  %938 = vst.msk [vmem:[%s2296_s3 + $0x160] sm:$0xff] %vm893_vm2, %v873_v2  ;;  %v876_v58 = vmul.f32 %v1235_v53, %v1837_v24  ;;  %1256 = vpow2.f32 %v617_v49  ;;  %v565_v55 = vsub.f32 0.0, %v2051_v15 }
 0x133   :  { %v1239_v30 = vpop.eup %1238  ;;  %909 = vst.msk [vmem:[%s2296_s3 + $0x78] sm:$0xff] %vm893_vm2, %v844_v17  ;;  %v842_v54 = vmul.f32 %v1237_v48, %v1842_v31  ;;  %1258 = vpow2.f32 %v681_v13 }
 0x134   :  { %v1241_v33 = vpop.eup %1240  ;;  %941 = vst.msk [vmem:[%s2296_s3 + $0x178] sm:$0xff] %vm893_vm2, %v876_v58  ;;  %v874_v24 = vmul.f32 %v1239_v30, %v1866_v47  ;;  %1260 = vpow2.f32 %v613_v7  ;;  %v689_v7 = vmul.f32 1.442695, %v567_v38  ;;  %v685_v8 = vmul.f32 1.442695, %v565_v55 }
 0x135   :  { %v1243_v49 = vpop.eup %1242  ;;  %907 = vst.msk [vmem:[%s2296_s3 + $0x68] sm:$0xff] %vm893_vm2, %v842_v54  ;;  %v847_v31 = vmul.f32 %v1241_v33, %v1870_v43  ;;  %1262 = vpow2.f32 %v677_v56 }
 0x136   :  { %v1245_v13 = vpop.eup %1244  ;;  %939 = vst.msk [vmem:[%s2296_s3 + $0x168] sm:$0xff] %vm893_vm2, %v874_v24  ;;  %v879_v47 = vmul.f32 %v1243_v49, %v1874_v26  ;;  %1264 = vpow2.f32 %v619_v25  ;;  %v568_v25 = vsub.f32 0.0, %v2117_v3 }
 0x137   :  { %v1247_v63 = vpop.eup %1246  ;;  %912 = vst.msk [vmem:[%s2296_s3 + $0x90] sm:$0xff] %vm893_vm2, %v847_v31  ;;  %v845_v43 = vmul.f32 %v1245_v13, %v1878_v5  ;;  %1266 = vpow2.f32 %v683_v27 }
 0x138   :  { %v1249_v18 = vpop.eup %1248  ;;  %944 = vst.msk [vmem:[%s2296_s3 + $0x190] sm:$0xff] %vm893_vm2, %v879_v47  ;;  %v877_v26 = vmul.f32 %v1247_v63, %v1883_v62  ;;  %1268 = vpow2.f32 %v615_v52  ;;  %v691_v31 = vmul.f32 1.442695, %v568_v25 }
 0x139   :  { %v1251_v56 = vpop.eup %1250  ;;  %910 = vst.msk [vmem:[%s2296_s3 + $0x80] sm:$0xff] %vm893_vm2, %v845_v43  ;;  %v848_v5 = vmul.f32 %v1249_v18, %v1893_v14  ;;  %1270 = vpow2.f32 %v679_v6  ;;  %v2109_v14 = vadd.f32 %v1855_v4, %v1605_v34 }
 0x13a   :  { %v1253_v41 = vpop.eup %1252  ;;  %942 = vst.msk [vmem:[%s2296_s3 + $0x180] sm:$0xff] %vm893_vm2, %v877_v26  ;;  %v880_v62 = vmul.f32 %v1251_v56, %v1903_v29  ;;  %1272 = vpow2.f32 %v625_v44  ;;  %v2303_v56 = vld [vmem:[#allocation3_spill] sm:$0xff] }
 0x13b   :  { %v1255_v21 = vpop.eup %1254  ;;  %913 = vst.msk [vmem:[%s2296_s3 + $0x98] sm:$0xff] %vm893_vm2, %v848_v5  ;;  %v846_v39 = vmul.f32 %v1253_v41, %v1917_v45  ;;  %1274 = vpow2.f32 %v689_v7  ;;  %v1354_v45 = vld [vmem:[%s2295_s2] ss:$0 sm:$0xff]  ;;  %v536_v57 = vsub.f32 0.0, %v2109_v14 }
 0x13c   :  { %v1257_v19 = vpop.eup %1256  ;;  %945 = vst.msk [vmem:[%s2296_s3 + $0x198] sm:$0xff] %vm893_vm2, %v880_v62  ;;  %v750_v29 = vadd.f32 1.0, %v1255_v21  ;;  %1276 = vpow2.f32 %v621_v12  ;;  %v2127_v2 = vadd.f32 %v1354_v45, %v1860_v22  ;;  %v2130_v34 = vadd.f32 %v1354_v45, %v1862_v42  ;;  %v2304_v62 = vld [vmem:[#allocation4_spill] sm:$0xff] }
 0x13d   :  { %v1259_v10 = vpop.eup %1258  ;;  %911 = vst.msk [vmem:[%s2296_s3 + $0x88] sm:$0xff] %vm893_vm2, %v846_v39  ;;  %v723_v4 = vadd.f32 1.0, %v1257_v19  ;;  %1278 = vpow2.f32 %v685_v8  ;;  %v627_v24 = vmul.f32 1.442695, %v536_v57  ;;  %v2137_v52 = vadd.f32 %v1354_v45, %v1885_v28  ;;  %v2302_v28 = vld [vmem:[#allocation2_spill] sm:$0xff] }
 0x13e   :  { %v1261_v50 = vpop.eup %1260  ;;  %1280 = vrcp.f32 %v750_v29  ;;  %v755_v53 = vadd.f32 1.0, %v1259_v10  ;;  %v534_v30 = vsub.f32 0.0, %v2127_v2  ;;  %v566_v42 = vsub.f32 0.0, %v2130_v34  ;;  %v2305_v10 = vld [vmem:[#allocation5_spill] sm:$0xff] }
 0x13f   :  { %v1263_v37 = vpop.eup %1262  ;;  %1282 = vrcp.f32 %v723_v4  ;;  %v721_v17 = vadd.f32 1.0, %v1261_v50  ;;  %v2140_v6 = vadd.f32 %v1354_v45, %v1887_v0  ;;  %v2143_v44 = vadd.f32 %v1354_v45, %v1895_v40 }
 0x140   :  { %v1265_v48 = vpop.eup %1264  ;;  %1284 = vrcp.f32 %v755_v53  ;;  %v753_v58 = vadd.f32 1.0, %v1263_v37  ;;  %v623_v47 = vmul.f32 1.442695, %v534_v30  ;;  %v687_v7 = vmul.f32 1.442695, %v566_v42 }
 0x141   :  { %v1267_v36 = vpop.eup %1266  ;;  %1286 = vrcp.f32 %v721_v17  ;;  %v724_v22 = vadd.f32 1.0, %v1265_v48  ;;  %v2146_v18 = vadd.f32 %v1354_v45, %v2302_v28  ;;  %v539_v0 = vsub.f32 0.0, %v2137_v52  ;;  %v2306_v17 = vld [vmem:[#allocation6_spill] sm:$0xff] }
 0x142   :  { %v1269_v54 = vpop.eup %1268  ;;  %1288 = vrcp.f32 %v753_v58  ;;  %v756_v27 = vadd.f32 1.0, %v1267_v36  ;;  %v2150_v5 = vadd.f32 %v1354_v45, %v2303_v56  ;;  %v571_v40 = vsub.f32 0.0, %v2140_v6 }
 0x143   :  { %v1271_v38 = vpop.eup %1270  ;;  %1290 = vrcp.f32 %v724_v22  ;;  %v722_v33 = vadd.f32 1.0, %v1269_v54  ;;  %v2154_v21 = vadd.f32 %v1354_v45, %v2304_v62  ;;  %v537_v29 = vsub.f32 0.0, %v2143_v44 }
 0x144   :  { %v1273_v16 = vpop.eup %1272  ;;  %1292 = vrcp.f32 %v756_v27  ;;  %v754_v49 = vadd.f32 1.0, %v1271_v38  ;;  %v2159_v4 = vadd.f32 %v1354_v45, %v2305_v10  ;;  %v569_v37 = vsub.f32 0.0, %v2146_v18 }
 0x145   :  { %v1275_v55 = vpop.eup %1274  ;;  %1294 = vrcp.f32 %v722_v33  ;;  %v727_v13 = vadd.f32 1.0, %v1273_v16  ;;  %v2164_v57 = vadd.f32 %v1354_v45, %v2306_v17  ;;  %v633_v58 = vmul.f32 1.442695, %v539_v0 }
 0x146   :  { %v1277_v63 = vpop.eup %1276  ;;  %1296 = vrcp.f32 %v754_v49  ;;  %v759_v43 = vadd.f32 1.0, %v1275_v55  ;;  %v540_v25 = vsub.f32 0.0, %v2150_v5  ;;  %v697_v45 = vmul.f32 1.442695, %v571_v40 }
 0x147   :  { %v1279_v26 = vpop.eup %1278  ;;  %1298 = vrcp.f32 %v727_v13  ;;  %v725_v12 = vadd.f32 1.0, %v1277_v63  ;;  %v572_v22 = vsub.f32 0.0, %v2154_v21  ;;  %v629_v54 = vmul.f32 1.442695, %v537_v29 }
 0x148   :  { %v1281_v8 = vpop.eup %1280  ;;  %1300 = vrcp.f32 %v759_v43  ;;  %v757_v41 = vadd.f32 1.0, %v1279_v26  ;;  %v538_v27 = vsub.f32 0.0, %v2159_v4  ;;  %v693_v38 = vmul.f32 1.442695, %v569_v37 }
 0x149   :  { %v1283_v39 = vpop.eup %1282  ;;  %v878_v19 = vmul.f32 %v1281_v8, %v1979_v59  ;;  %1302 = vrcp.f32 %v725_v12  ;;  %v570_v33 = vsub.f32 0.0, %v2164_v57  ;;  %v635_v16 = vmul.f32 1.442695, %v540_v25 }
 0x14a   :  { %v1285_v50 = vpop.eup %1284  ;;  %v851_v53 = vmul.f32 %v1283_v39, %v1987_v9  ;;  %1304 = vrcp.f32 %v757_v41  ;;  %v631_v13 = vmul.f32 1.442695, %v538_v27 }
 0x14b   :  { %v1287_v48 = vpop.eup %1286  ;;  %943 = vst.msk [vmem:[%s2296_s3 + $0x188] sm:$0xff] %vm893_vm2, %v878_v19  ;;  %v883_v59 = vmul.f32 %v1285_v50, %v1995_v23  ;;  %1306 = vpow2.f32 %v627_v24  ;;  %v695_v63 = vmul.f32 1.442695, %v570_v33 }
 0x14c   :  { %v1289_v36 = vpop.eup %1288  ;;  %916 = vst.msk [vmem:[%s2296_s3 + $0xb0] sm:$0xff] %vm893_vm2, %v851_v53  ;;  %v849_v9 = vmul.f32 %v1287_v48, %v1999_v32  ;;  %1308 = vpow2.f32 %v691_v31  ;;  %v699_v31 = vmul.f32 1.442695, %v572_v22 }
 0x14d   :  { %v1291_v30 = vpop.eup %1290  ;;  %948 = vst.msk [vmem:[%s2296_s3 + $0x1b0] sm:$0xff] %vm893_vm2, %v883_v59  ;;  %v881_v23 = vmul.f32 %v1289_v36, %v2004_v60  ;;  %1310 = vpow2.f32 %v623_v47 }
 0x14e   :  { %v1293_v42 = vpop.eup %1292  ;;  %914 = vst.msk [vmem:[%s2296_s3 + $0xa0] sm:$0xff] %vm893_vm2, %v849_v9  ;;  %v852_v32 = vmul.f32 %v1291_v30, %v2012_v35  ;;  %1312 = vpow2.f32 %v687_v7 }
 0x14f   :  { %v1295_v24 = vpop.eup %1294  ;;  %946 = vst.msk [vmem:[%s2296_s3 + $0x1a0] sm:$0xff] %vm893_vm2, %v881_v23  ;;  %v884_v60 = vmul.f32 %v1293_v42, %v2016_v11  ;;  %1314 = vpow2.f32 %v633_v58 }
 0x150   :  { %v1297_v49 = vpop.eup %1296  ;;  %917 = vst.msk [vmem:[%s2296_s3 + $0xb8] sm:$0xff] %vm893_vm2, %v852_v32  ;;  %v850_v35 = vmul.f32 %v1295_v24, %v2020_v1  ;;  %1316 = vpow2.f32 %v697_v45 }
 0x151   :  { %v1299_v55 = vpop.eup %1298  ;;  %949 = vst.msk [vmem:[%s2296_s3 + $0x1b8] sm:$0xff] %vm893_vm2, %v884_v60  ;;  %v882_v11 = vmul.f32 %v1297_v49, %v2024_v61  ;;  %1318 = vpow2.f32 %v629_v54 }
 0x152   :  { %v1301_v47 = vpop.eup %1300  ;;  %915 = vst.msk [vmem:[%s2296_s3 + $0xa8] sm:$0xff] %vm893_vm2, %v850_v35  ;;  %v855_v1 = vmul.f32 %v1299_v55, %v2029_v51  ;;  %1320 = vpow2.f32 %v693_v38 }
 0x153   :  { %v1303_v43 = vpop.eup %1302  ;;  %947 = vst.msk [vmem:[%s2296_s3 + $0x1a8] sm:$0xff] %vm893_vm2, %v882_v11  ;;  %v887_v61 = vmul.f32 %v1301_v47, %v2035_v20  ;;  %1322 = vpow2.f32 %v635_v16 }
 0x154   :  { %v1305_v7 = vpop.eup %1304  ;;  %920 = vst.msk [vmem:[%s2296_s3 + $0xd0] sm:$0xff] %vm893_vm2, %v855_v1  ;;  %v853_v28 = vmul.f32 %v1303_v43, %v2041_v46  ;;  %1324 = vpow2.f32 %v699_v31 }
 0x155   :  { %v1307_v51 = vpop.eup %1306  ;;  %952 = vst.msk [vmem:[%s2296_s3 + $0x1d0] sm:$0xff] %vm893_vm2, %v887_v61  ;;  %v885_v26 = vmul.f32 %v1305_v7, %v2051_v15  ;;  %1326 = vpow2.f32 %v631_v13 }
 0x156   :  { %v1309_v20 = vpop.eup %1308  ;;  %918 = vst.msk [vmem:[%s2296_s3 + $0xc0] sm:$0xff] %vm893_vm2, %v853_v28  ;;  %v728_v12 = vadd.f32 1.0, %v1307_v51  ;;  %1328 = vpow2.f32 %v695_v63 }
 0x157   :  { %v1311_v0 = vpop.eup %1310  ;;  %950 = vst.msk [vmem:[%s2296_s3 + $0x1c0] sm:$0xff] %vm893_vm2, %v885_v26  ;;  %v760_v46 = vadd.f32 1.0, %v1309_v20 }
 0x158   :  { %v1313_v56 = vpop.eup %1312  ;;  %1330 = vrcp.f32 %v728_v12  ;;  %v726_v8 = vadd.f32 1.0, %v1311_v0 }
 0x159   :  { %v1315_v15 = vpop.eup %1314  ;;  %1332 = vrcp.f32 %v760_v46  ;;  %v758_v41 = vadd.f32 1.0, %v1313_v56 }
 0x15a   :  { %v1317_v40 = vpop.eup %1316  ;;  %1334 = vrcp.f32 %v726_v8  ;;  %v731_v62 = vadd.f32 1.0, %v1315_v15 }
 0x15b   :  { %v1319_v39 = vpop.eup %1318  ;;  %1336 = vrcp.f32 %v758_v41  ;;  %v763_v19 = vadd.f32 1.0, %v1317_v40 }
 0x15c   :  { %v1321_v29 = vpop.eup %1320  ;;  %1338 = vrcp.f32 %v731_v62  ;;  %v729_v10 = vadd.f32 1.0, %v1319_v39 }
 0x15d   :  { %v1323_v50 = vpop.eup %1322  ;;  %1340 = vrcp.f32 %v763_v19  ;;  %v761_v53 = vadd.f32 1.0, %v1321_v29 }
 0x15e   :  { %v1325_v37 = vpop.eup %1324  ;;  %1342 = vrcp.f32 %v729_v10  ;;  %v732_v17 = vadd.f32 1.0, %v1323_v50 }
 0x15f   :  { %v1327_v48 = vpop.eup %1326  ;;  %1344 = vrcp.f32 %v761_v53  ;;  %v764_v59 = vadd.f32 1.0, %v1325_v37 }
 0x160   :  { %v1329_v58 = vpop.eup %1328  ;;  %1346 = vrcp.f32 %v732_v17  ;;  %v730_v25 = vadd.f32 1.0, %v1327_v48 }
 0x161   :  { %1348 = vrcp.f32 %v764_v59  ;;  %v762_v36 = vadd.f32 1.0, %v1329_v58 }
 0x162   :  { %v1331_v9 = vpop.eup %1330  ;;  %1350 = vrcp.f32 %v730_v25 }
 0x163   :  { %v1333_v45 = vpop.eup %1332  ;;  %v856_v22 = vmul.f32 %v1331_v9, %v2109_v14  ;;  %1352 = vrcp.f32 %v762_v36 }
 0x164   :  { %v1335_v30 = vpop.eup %1334  ;;  %v888_v23 = vmul.f32 %v1333_v45, %v2117_v3 }
 0x165   :  { %v1337_v54 = vpop.eup %1336  ;;  %921 = vst.msk [vmem:[%s2296_s3 + $0xd8] sm:$0xff] %vm893_vm2, %v856_v22  ;;  %v854_v27 = vmul.f32 %v1335_v30, %v2127_v2 }
 0x166   :  { %v1339_v42 = vpop.eup %1338  ;;  %953 = vst.msk [vmem:[%s2296_s3 + $0x1d8] sm:$0xff] %vm893_vm2, %v888_v23  ;;  %v886_v14 = vmul.f32 %v1337_v54, %v2130_v34 }
 0x167   :  { %v1341_v32 = vpop.eup %1340  ;;  %919 = vst.msk [vmem:[%s2296_s3 + $0xc8] sm:$0xff] %vm893_vm2, %v854_v27  ;;  %v859_v3 = vmul.f32 %v1339_v42, %v2137_v52 }
 0x168   :  { %v1343_v38 = vpop.eup %1342  ;;  %951 = vst.msk [vmem:[%s2296_s3 + $0x1c8] sm:$0xff] %vm893_vm2, %v886_v14  ;;  %v891_v2 = vmul.f32 %v1341_v32, %v2140_v6 }
 0x169   :  { %v1345_v33 = vpop.eup %1344  ;;  %924 = vst.msk [vmem:[%s2296_s3 + $0xf0] sm:$0xff] %vm893_vm2, %v859_v3  ;;  %v857_v34 = vmul.f32 %v1343_v38, %v2143_v44 }
 0x16a   :  { %v1347_v24 = vpop.eup %1346  ;;  %956 = vst.msk [vmem:[%s2296_s3 + $0x1f0] sm:$0xff] %vm893_vm2, %v891_v2  ;;  %v889_v52 = vmul.f32 %v1345_v33, %v2146_v18 }
 0x16b   :  { %v1349_v60 = vpop.eup %1348  ;;  %922 = vst.msk [vmem:[%s2296_s3 + $0xe0] sm:$0xff] %vm893_vm2, %v857_v34  ;;  %v860_v6 = vmul.f32 %v1347_v24, %v2150_v5 }
 0x16c   :  { %v1351_v16 = vpop.eup %1350  ;;  %954 = vst.msk [vmem:[%s2296_s3 + $0x1e0] sm:$0xff] %vm893_vm2, %v889_v52  ;;  %v892_v44 = vmul.f32 %v1349_v60, %v2154_v21 }
 0x16d   :  { %v1353_v49 = vpop.eup %1352  ;;  %925 = vst.msk [vmem:[%s2296_s3 + $0xf8] sm:$0xff] %vm893_vm2, %v860_v6  ;;  %v858_v18 = vmul.f32 %v1351_v16, %v2159_v4 }
 0x16e   :  { %957 = vst.msk [vmem:[%s2296_s3 + $0x1f8] sm:$0xff] %vm893_vm2, %v892_v44  ;;  %v890_v5 = vmul.f32 %v1353_v49, %v2164_v57 }
 0x16f   :  { %923 = vst.msk [vmem:[%s2296_s3 + $0xe8] sm:$0xff] %vm893_vm2, %v858_v18 }
 0x170   :  { %955 = vst.msk [vmem:[%s2296_s3 + $0x1e8] sm:$0xff] %vm893_vm2, %v890_v5 }

// kernel: _lambda_.8
= control target key start
LH: loop header
LB: loop body
LE: loop exit
PB: predicated region body
PF: predicated region fallthrough
CT: control target
= control target key end

     0   :  { %vm216_vm0 = vcmask 1043456   ;;  %vm119_vm1 = vcmask 64512   ;;  %s2289_s1 = inlined_call_operand.vmem [shape: bf16[8,8], index: 1, kind: input, shape index: {}]   ;;  %s2290_s0 = inlined_call_operand.vmem [shape: f32[512,8], index: 0, kind: input, shape index: {}]   ;;  %s2291_s2 = inlined_call_operand.vmem [shape: f32[1,8], index: 2, kind: input, shape index: {}]   ;;  %s2292_s3 = inlined_call_operand.vmem [shape: f32[512,8], index: 3, kind: output, shape index: {}]  }
   0x1   :  { %v15_v0 = vld [vmem:[%s2289_s1] sm:$0xf]  ;;  %v17_v2 = vld [vmem:[%s2290_s0 + $0x8] sm:$0xff]  ;;  %v18_v7 = vld [vmem:[%s2290_s0 + $0x10] sm:$0xff] }
   0x2   :  { %v16_v1 = vld [vmem:[%s2290_s0] sm:$0xff]  ;;  %1095 = vmatprep.subr.msk.bf16.mxu0 %vm216_vm0, %v15_v0  ;;  %1096 = vmatprep.subr.msk.bf16.mxu1 %vm216_vm0, %v15_v0  ;;  %v218_v3 = vsel %vm216_vm0, %v15_v0, 0  ;;  %v49_v6 = vld [vmem:[%s2290_s0 + $0x108] sm:$0xff]  ;;  %v19_v9 = vld [vmem:[%s2290_s0 + $0x18] sm:$0xff] }
   0x3   :  { %v80_v4 = vpack.c.bf16 %v17_v2, %v16_v1  ;;  %v48_v5 = vld [vmem:[%s2290_s0 + $0x100] sm:$0xff]  ;;  %1028 = vmatpush3.bf16.msra.mxu0 %v218_v3  ;;  %1094 = vmatpush3.bf16.msra.mxu1 %v218_v3  ;;  %v50_v10 = vld [vmem:[%s2290_s0 + $0x110] sm:$0xff]  ;;  %v51_v11 = vld [vmem:[%s2290_s0 + $0x118] sm:$0xff]  ;;  %v81_v12 = vpack.c.bf16 %v19_v9, %v18_v7 }
   0x4   :  { %v96_v8 = vpack.c.bf16 %v49_v6, %v48_v5  ;;  %v97_v13 = vpack.c.bf16 %v51_v11, %v50_v10  ;;  %v20_v14 = vld [vmem:[%s2290_s0 + $0x20] sm:$0xff]  ;;  %v21_v15 = vld [vmem:[%s2290_s0 + $0x28] sm:$0xff]  ;;  %v22_v20 = vld [vmem:[%s2290_s0 + $0x30] sm:$0xff] }
   0x5   :  { %1029 = vmatprep.mubr.msk.bf16.mxu0 %vm119_vm1, %v80_v4  ;;  %v52_v16 = vld [vmem:[%s2290_s0 + $0x120] sm:$0xff]  ;;  %v82_v17 = vpack.c.bf16 %v21_v15, %v20_v14  ;;  %v53_v18 = vld [vmem:[%s2290_s0 + $0x128] sm:$0xff]  ;;  %v23_v21 = vld [vmem:[%s2290_s0 + $0x38] sm:$0xff] }
   0x6   :  { %1061 = vmatprep.mubr.msk.bf16.mxu1 %vm119_vm1, %v96_v8  ;;  %1030 = vmatmul.mubr.msk.bf16.vlgmr.msra.gmra.mrb[0].mxu0 %vm119_vm1, %v81_v12  ;;  %v98_v19 = vpack.c.bf16 %v53_v18, %v52_v16  ;;  %v54_v22 = vld [vmem:[%s2290_s0 + $0x130] sm:$0xff]  ;;  %v55_v23 = vld [vmem:[%s2290_s0 + $0x138] sm:$0xff]  ;;  %v24_v24 = vld [vmem:[%s2290_s0 + $0x40] sm:$0xff]  ;;  %v83_v28 = vpack.c.bf16 %v23_v21, %v22_v20 }
   0x7   :  { %1062 = vmatmul.mubr.msk.bf16.vlgmr.msra.gmra.mrb[0].mxu1 %vm119_vm1, %v97_v13  ;;  %1033 = vmatprep.mubr.msk.bf16.mxu0 %vm119_vm1, %v82_v17  ;;  %v25_v25 = vld [vmem:[%s2290_s0 + $0x48] sm:$0xff]  ;;  %v56_v26 = vld [vmem:[%s2290_s0 + $0x140] sm:$0xff]  ;;  %v99_v29 = vpack.c.bf16 %v55_v23, %v54_v22  ;;  %v26_v32 = vld [vmem:[%s2290_s0 + $0x50] sm:$0xff] }
   0x8   :  { %1065 = vmatprep.mubr.msk.bf16.mxu1 %vm119_vm1, %v98_v19  ;;  %v57_v27 = vld [vmem:[%s2290_s0 + $0x148] sm:$0xff]  ;;  %v84_v30 = vpack.c.bf16 %v25_v25, %v24_v24  ;;  %v27_v33 = vld [vmem:[%s2290_s0 + $0x58] sm:$0xff]  ;;  %v58_v34 = vld [vmem:[%s2290_s0 + $0x150] sm:$0xff] }
   0x9   :  { %v100_v31 = vpack.c.bf16 %v57_v27, %v56_v26  ;;  %v59_v35 = vld [vmem:[%s2290_s0 + $0x158] sm:$0xff]  ;;  %v28_v36 = vld [vmem:[%s2290_s0 + $0x60] sm:$0xff]  ;;  %v29_v37 = vld [vmem:[%s2290_s0 + $0x68] sm:$0xff]  ;;  %v85_v40 = vpack.c.bf16 %v27_v33, %v26_v32 }
   0xa   :  { %v60_v38 = vld [vmem:[%s2290_s0 + $0x160] sm:$0xff]  ;;  %v61_v39 = vld [vmem:[%s2290_s0 + $0x168] sm:$0xff]  ;;  %v101_v41 = vpack.c.bf16 %v59_v35, %v58_v34  ;;  %v86_v42 = vpack.c.bf16 %v29_v37, %v28_v36  ;;  %v30_v44 = vld [vmem:[%s2290_s0 + $0x70] sm:$0xff] }
   0xb   :  { %v102_v43 = vpack.c.bf16 %v61_v39, %v60_v38  ;;  %v31_v45 = vld [vmem:[%s2290_s0 + $0x78] sm:$0xff]  ;;  %v62_v46 = vld [vmem:[%s2290_s0 + $0x170] sm:$0xff]  ;;  %v32_v48 = vld [vmem:[%s2290_s0 + $0x80] sm:$0xff] }
   0xc   :  { %v63_v47 = vld [vmem:[%s2290_s0 + $0x178] sm:$0xff]  ;;  %v33_v49 = vld [vmem:[%s2290_s0 + $0x88] sm:$0xff]  ;;  %v64_v50 = vld [vmem:[%s2290_s0 + $0x180] sm:$0xff]  ;;  %v87_v52 = vpack.c.bf16 %v31_v45, %v30_v44 }
   0xd   :  { %v65_v51 = vld [vmem:[%s2290_s0 + $0x188] sm:$0xff]  ;;  %v103_v53 = vpack.c.bf16 %v63_v47, %v62_v46  ;;  %v88_v54 = vpack.c.bf16 %v33_v49, %v32_v48  ;;  %v34_v56 = vld [vmem:[%s2290_s0 + $0x90] sm:$0xff]  ;;  %v35_v57 = vld [vmem:[%s2290_s0 + $0x98] sm:$0xff] }
   0xe   :  { %1034 = vmatmul.mubr.msk.bf16.gmra.mrb[4].mxu0 %vm119_vm1, %v83_v28  ;;  %v104_v55 = vpack.c.bf16 %v65_v51, %v64_v50  ;;  %v66_v58 = vld [vmem:[%s2290_s0 + $0x190] sm:$0xff]  ;;  %v67_v59 = vld [vmem:[%s2290_s0 + $0x198] sm:$0xff]  ;;  %v36_v60 = vld [vmem:[%s2290_s0 + $0xa0] sm:$0xff]  ;;  %v89_v0 = vpack.c.bf16 %v35_v57, %v34_v56 }
   0xf   :  { %1066 = vmatmul.mubr.msk.bf16.gmra.mrb[4].mxu1 %vm119_vm1, %v99_v29  ;;  %1037 = vmatprep.mubr.msk.bf16.mxu0 %vm119_vm1, %v84_v30  ;;  %v37_v61 = vld [vmem:[%s2290_s0 + $0xa8] sm:$0xff]  ;;  %v68_v62 = vld [vmem:[%s2290_s0 + $0x1a0] sm:$0xff]  ;;  %v105_v1 = vpack.c.bf16 %v67_v59, %v66_v58  ;;  %v38_v4 = vld [vmem:[%s2290_s0 + $0xb0] sm:$0xff] }
  0x10   :  { %1069 = vmatprep.mubr.msk.bf16.mxu1 %vm119_vm1, %v100_v31  ;;  %v69_v63 = vld [vmem:[%s2290_s0 + $0x1a8] sm:$0xff]  ;;  %v90_v2 = vpack.c.bf16 %v37_v61, %v36_v60  ;;  %v39_v5 = vld [vmem:[%s2290_s0 + $0xb8] sm:$0xff]  ;;  %v70_v6 = vld [vmem:[%s2290_s0 + $0x1b0] sm:$0xff] }
  0x11   :  { %v106_v3 = vpack.c.bf16 %v69_v63, %v68_v62  ;;  %v71_v7 = vld [vmem:[%s2290_s0 + $0x1b8] sm:$0xff]  ;;  %v40_v8 = vld [vmem:[%s2290_s0 + $0xc0] sm:$0xff]  ;;  %v41_v9 = vld [vmem:[%s2290_s0 + $0xc8] sm:$0xff]  ;;  %v91_v12 = vpack.c.bf16 %v39_v5, %v38_v4 }
  0x12   :  { %v72_v10 = vld [vmem:[%s2290_s0 + $0x1c0] sm:$0xff]  ;;  %v73_v11 = vld [vmem:[%s2290_s0 + $0x1c8] sm:$0xff]  ;;  %v107_v13 = vpack.c.bf16 %v71_v7, %v70_v6  ;;  %v92_v14 = vpack.c.bf16 %v41_v9, %v40_v8  ;;  %v42_v16 = vld [vmem:[%s2290_s0 + $0xd0] sm:$0xff] }
  0x13   :  { %v108_v15 = vpack.c.bf16 %v73_v11, %v72_v10  ;;  %v43_v17 = vld [vmem:[%s2290_s0 + $0xd8] sm:$0xff]  ;;  %v74_v18 = vld [vmem:[%s2290_s0 + $0x1d0] sm:$0xff]  ;;  %v44_v20 = vld [vmem:[%s2290_s0 + $0xe0] sm:$0xff] }
  0x14   :  { %v75_v19 = vld [vmem:[%s2290_s0 + $0x1d8] sm:$0xff]  ;;  %v45_v21 = vld [vmem:[%s2290_s0 + $0xe8] sm:$0xff]  ;;  %v76_v22 = vld [vmem:[%s2290_s0 + $0x1e0] sm:$0xff]  ;;  %v93_v24 = vpack.c.bf16 %v43_v17, %v42_v16 }
  0x15   :  { %v77_v23 = vld [vmem:[%s2290_s0 + $0x1e8] sm:$0xff]  ;;  %v109_v25 = vpack.c.bf16 %v75_v19, %v74_v18  ;;  %v94_v26 = vpack.c.bf16 %v45_v21, %v44_v20  ;;  %v46_v28 = vld [vmem:[%s2290_s0 + $0xf0] sm:$0xff]  ;;  %v47_v29 = vld [vmem:[%s2290_s0 + $0xf8] sm:$0xff] }
  0x16   :  { %1038 = vmatmul.mubr.msk.bf16.gmra.mrb[8].mxu0 %vm119_vm1, %v85_v40  ;;  %v110_v27 = vpack.c.bf16 %v77_v23, %v76_v22  ;;  %v78_v30 = vld [vmem:[%s2290_s0 + $0x1f0] sm:$0xff]  ;;  %v79_v31 = vld [vmem:[%s2290_s0 + $0x1f8] sm:$0xff]  ;;  %v95_v32 = vpack.c.bf16 %v47_v29, %v46_v28  ;;  %v1604_v34 = vld [vmem:[%s2291_s2] ss:$0 sm:$0xff] }
  0x17   :  { %1070 = vmatmul.mubr.msk.bf16.gmra.mrb[8].mxu1 %vm119_vm1, %v101_v41  ;;  %1041 = vmatprep.mubr.msk.bf16.mxu0 %vm119_vm1, %v86_v42  ;;  %v111_v33 = vpack.c.bf16 %v79_v31, %v78_v30 }
  0x18   :  { %1073 = vmatprep.mubr.msk.bf16.mxu1 %vm119_vm1, %v102_v43 }
  0x1e   :  { %1042 = vmatmul.mubr.msk.bf16.gmra.mrb[12].mxu0 %vm119_vm1, %v87_v52 }
  0x1f   :  { %1074 = vmatmul.mubr.msk.bf16.gmra.mrb[12].mxu1 %vm119_vm1, %v103_v53  ;;  %1045 = vmatprep.mubr.msk.bf16.mxu0 %vm119_vm1, %v88_v54 }
  0x20   :  { %1077 = vmatprep.mubr.msk.bf16.mxu1 %vm119_vm1, %v104_v55 }
  0x26   :  { %1046 = vmatmul.mubr.msk.bf16.gmra.mrb[16].mxu0 %vm119_vm1, %v89_v0 }
  0x27   :  { %1078 = vmatmul.mubr.msk.bf16.gmra.mrb[16].mxu1 %vm119_vm1, %v105_v1  ;;  %1049 = vmatprep.mubr.msk.bf16.mxu0 %vm119_vm1, %v90_v2 }
  0x28   :  { %1081 = vmatprep.mubr.msk.bf16.mxu1 %vm119_vm1, %v106_v3 }
  0x2e   :  { %1050 = vmatmul.mubr.msk.bf16.gmra.mrb[20].mxu0 %vm119_vm1, %v91_v12 }
  0x2f   :  { %1082 = vmatmul.mubr.msk.bf16.gmra.mrb[20].mxu1 %vm119_vm1, %v107_v13  ;;  %1053 = vmatprep.mubr.msk.bf16.mxu0 %vm119_vm1, %v92_v14 }
  0x30   :  { %1085 = vmatprep.mubr.msk.bf16.mxu1 %vm119_vm1, %v108_v15 }
  0x36   :  { %1054 = vmatmul.mubr.msk.bf16.gmra.mrb[24].mxu0 %vm119_vm1, %v93_v24 }
  0x37   :  { %1086 = vmatmul.mubr.msk.bf16.gmra.mrb[24].mxu1 %vm119_vm1, %v109_v25  ;;  %1057 = vmatprep.mubr.msk.bf16.mxu0 %vm119_vm1, %v94_v26 }
  0x38   :  { %1089 = vmatprep.mubr.msk.bf16.mxu1 %vm119_vm1, %v110_v27 }
  0x3e   :  { %1058 = vmatmul.mubr.msk.bf16.gmra.mrb[28].mxu0 %vm119_vm1, %v95_v32 }
  0x3f   :  { %1090 = vmatmul.mubr.msk.bf16.gmra.mrb[28].mxu1 %vm119_vm1, %v111_v33 }
  0xd9   :  { %v1031_v35 = vpop.f32.mrb[0].mxu0 }
  0xda   :  { %v1063_v36 = vpop.f32.mrb[0].mxu1  ;;  %v1607_v37 = vadd.f32 %v1031_v35, %v1604_v34  ;;  %v254_v39 = vpop.f32.mrb[1].mxu0 }
  0xdb   :  { %v1610_v38 = vadd.f32 %v1063_v36, %v1604_v34  ;;  %v382_v40 = vpop.f32.mrb[1].mxu1  ;;  %v1613_v41 = vadd.f32 %v1604_v34, %v254_v39  ;;  %v1032_v43 = vpop.f32.mrb[2].mxu0 }
  0xdc   :  { %v1616_v42 = vadd.f32 %v1604_v34, %v382_v40  ;;  %v1064_v44 = vpop.f32.mrb[2].mxu1  ;;  %v511_v45 = vsub.f32 0.0, %v1607_v37  ;;  %v1621_v47 = vadd.f32 %v1032_v43, %v1604_v34  ;;  %v257_v49 = vpop.f32.mrb[3].mxu0 }
  0xdd   :  { %v543_v46 = vsub.f32 0.0, %v1610_v38  ;;  %v1624_v48 = vadd.f32 %v1064_v44, %v1604_v34  ;;  %v385_v50 = vpop.f32.mrb[3].mxu1  ;;  %v509_v51 = vsub.f32 0.0, %v1613_v41  ;;  %v1629_v53 = vadd.f32 %v1604_v34, %v257_v49 }
  0xde   :  { %v541_v52 = vsub.f32 0.0, %v1616_v42  ;;  %v1632_v54 = vadd.f32 %v1604_v34, %v385_v50  ;;  %v577_v55 = vmul.f32 1.442695, %v511_v45  ;;  %v512_v57 = vsub.f32 0.0, %v1621_v47 }
  0xdf   :  { %v641_v56 = vmul.f32 1.442695, %v543_v46  ;;  %v544_v58 = vsub.f32 0.0, %v1624_v48  ;;  %v573_v59 = vmul.f32 1.442695, %v509_v51  ;;  %v510_v61 = vsub.f32 0.0, %v1629_v53 }
  0xe0   :  { %v637_v60 = vmul.f32 1.442695, %v541_v52  ;;  %v542_v62 = vsub.f32 0.0, %v1632_v54  ;;  %1097 = vpow2.f32 %v577_v55  ;;  %v579_v63 = vmul.f32 1.442695, %v512_v57 }
  0xe1   :  { %1099 = vpow2.f32 %v641_v56  ;;  %v643_v0 = vmul.f32 1.442695, %v544_v58  ;;  %v1035_v1 = vpop.f32.mrb[4].mxu0  ;;  %v575_v3 = vmul.f32 1.442695, %v510_v61 }
  0xe2   :  { %v1067_v2 = vpop.f32.mrb[4].mxu1  ;;  %1101 = vpow2.f32 %v573_v59  ;;  %v1639_v4 = vadd.f32 %v1035_v1, %v1604_v34  ;;  %v270_v6 = vpop.f32.mrb[5].mxu0  ;;  %v639_v8 = vmul.f32 1.442695, %v542_v62 }
  0xe3   :  { %v1642_v5 = vadd.f32 %v1067_v2, %v1604_v34  ;;  %v398_v7 = vpop.f32.mrb[5].mxu1  ;;  %1103 = vpow2.f32 %v637_v60  ;;  %v1645_v9 = vadd.f32 %v1604_v34, %v270_v6  ;;  %v1036_v11 = vpop.f32.mrb[6].mxu0 }
  0xe4   :  { %v1648_v10 = vadd.f32 %v1604_v34, %v398_v7  ;;  %v1068_v12 = vpop.f32.mrb[6].mxu1  ;;  %1105 = vpow2.f32 %v579_v63  ;;  %v515_v13 = vsub.f32 0.0, %v1639_v4  ;;  %v1653_v15 = vadd.f32 %v1036_v11, %v1604_v34  ;;  %v273_v16 = vpop.f32.mrb[7].mxu0 }
  0xe5   :  { %v547_v14 = vsub.f32 0.0, %v1642_v5  ;;  %v401_v17 = vpop.f32.mrb[7].mxu1  ;;  %1107 = vpow2.f32 %v643_v0  ;;  %v513_v18 = vsub.f32 0.0, %v1645_v9  ;;  %v1659_v29 = vadd.f32 %v1068_v12, %v1604_v34 }
  0xe6   :  { %v545_v19 = vsub.f32 0.0, %v1648_v10  ;;  %1109 = vpow2.f32 %v575_v3  ;;  %v585_v20 = vmul.f32 1.442695, %v515_v13  ;;  %v516_v22 = vsub.f32 0.0, %v1653_v15 }
  0xe7   :  { %v649_v21 = vmul.f32 1.442695, %v547_v14  ;;  %1111 = vpow2.f32 %v639_v8  ;;  %v581_v23 = vmul.f32 1.442695, %v513_v18  ;;  %v1662_v35 = vadd.f32 %v1604_v34, %v273_v16 }
  0xe8   :  { %v645_v24 = vmul.f32 1.442695, %v545_v19  ;;  %1113 = vpow2.f32 %v585_v20  ;;  %v587_v25 = vmul.f32 1.442695, %v516_v22  ;;  %v1665_v44 = vadd.f32 %v1604_v34, %v401_v17 }
  0xe9   :  { %1115 = vpow2.f32 %v649_v21  ;;  %v1039_v26 = vpop.f32.mrb[8].mxu0  ;;  %v548_v55 = vsub.f32 0.0, %v1659_v29  ;;  %v514_v59 = vsub.f32 0.0, %v1662_v35 }
  0xea   :  { %v1071_v27 = vpop.f32.mrb[8].mxu1  ;;  %v1098_v28 = vpop.eup %1097  ;;  %1117 = vpow2.f32 %v581_v23  ;;  %v1669_v56 = vadd.f32 %v1039_v26, %v1604_v34  ;;  %v546_v63 = vsub.f32 0.0, %v1665_v44 }
  0xeb   :  { %v286_v30 = vpop.f32.mrb[9].mxu0  ;;  %v414_v31 = vpop.f32.mrb[9].mxu1  ;;  %v703_v33 = vadd.f32 1.0, %v1098_v28  ;;  %1119 = vpow2.f32 %v645_v24  ;;  %v1673_v60 = vadd.f32 %v1071_v27, %v1604_v34  ;;  %v651_v11 = vmul.f32 1.442695, %v548_v55 }
  0xec   :  { %v1100_v32 = vpop.eup %1099  ;;  %v1040_v36 = vpop.f32.mrb[10].mxu0  ;;  %1121 = vpow2.f32 %v587_v25  ;;  %v1677_v2 = vadd.f32 %v1604_v34, %v286_v30  ;;  %v519_v12 = vsub.f32 0.0, %v1669_v56  ;;  %v583_v18 = vmul.f32 1.442695, %v514_v59 }
  0xed   :  { %v1072_v39 = vpop.f32.mrb[10].mxu1  ;;  %v1102_v40 = vpop.eup %1101  ;;  %v735_v43 = vadd.f32 1.0, %v1100_v32  ;;  %1123 = vrcp.f32 %v703_v33  ;;  %v551_v19 = vsub.f32 0.0, %v1673_v60  ;;  %v647_v24 = vmul.f32 1.442695, %v546_v63 }
  0xee   :  { %v289_v45 = vpop.f32.mrb[11].mxu0  ;;  %v1104_v46 = vpop.eup %1103  ;;  %v701_v49 = vadd.f32 1.0, %v1102_v40  ;;  %v1690_v25 = vadd.f32 %v1604_v34, %v414_v31  ;;  %v517_v32 = vsub.f32 0.0, %v1677_v2  ;;  %v1698_v33 = vadd.f32 %v1040_v36, %v1604_v34 }
  0xef   :  { %v417_v50 = vpop.f32.mrb[11].mxu1  ;;  %v1106_v51 = vpop.eup %1105  ;;  %1125 = vrcp.f32 %v735_v43  ;;  %v733_v52 = vadd.f32 1.0, %v1104_v46  ;;  %v593_v46 = vmul.f32 1.442695, %v519_v12  ;;  %v1704_v55 = vadd.f32 %v1604_v34, %v289_v45 }
  0xf0   :  { %v1108_v57 = vpop.eup %1107  ;;  %1127 = vrcp.f32 %v701_v49  ;;  %v704_v58 = vadd.f32 1.0, %v1106_v51  ;;  %v1701_v49 = vadd.f32 %v1072_v39, %v1604_v34  ;;  %v549_v36 = vsub.f32 0.0, %v1690_v25 }
  0xf1   :  { %v1110_v61 = vpop.eup %1109  ;;  %1129 = vrcp.f32 %v733_v52  ;;  %v736_v62 = vadd.f32 1.0, %v1108_v57  ;;  %v1043_v3 = vpop.f32.mrb[12].mxu0  ;;  %v657_v52 = vmul.f32 1.442695, %v551_v19  ;;  %v1709_v59 = vadd.f32 %v1604_v34, %v417_v50 }
  0xf2   :  { %v1112_v0 = vpop.eup %1111  ;;  %1131 = vrcp.f32 %v704_v58  ;;  %v702_v1 = vadd.f32 1.0, %v1110_v61  ;;  %v1075_v6 = vpop.f32.mrb[12].mxu1  ;;  %v1714_v63 = vadd.f32 %v1043_v3, %v1604_v34 }
  0xf3   :  { %v1114_v7 = vpop.eup %1113  ;;  %1133 = vrcp.f32 %v736_v62  ;;  %v734_v8 = vadd.f32 1.0, %v1112_v0  ;;  %v1680_v13 = vpop.f32.mrb[13].mxu0  ;;  %v520_v62 = vsub.f32 0.0, %v1698_v33 }
  0xf4   :  { %v1682_v14 = vpop.f32.mrb[13].mxu1  ;;  %v1116_v16 = vpop.eup %1115  ;;  %1135 = vrcp.f32 %v702_v1  ;;  %v707_v17 = vadd.f32 1.0, %v1114_v7  ;;  %v1727_v1 = vadd.f32 %v1075_v6, %v1604_v34 }
  0xf5   :  { %v1685_v20 = vpop.f32.mrb[14].mxu0  ;;  %v1687_v21 = vpop.f32.mrb[14].mxu1  ;;  %1137 = vrcp.f32 %v734_v8  ;;  %v739_v23 = vadd.f32 1.0, %v1116_v16 }
  0xf6   :  { %v1118_v22 = vpop.eup %1117  ;;  %v1692_v26 = vpop.f32.mrb[15].mxu0  ;;  %1139 = vrcp.f32 %v707_v17 }
  0xf7   :  { %v1694_v27 = vpop.f32.mrb[15].mxu1  ;;  %v1120_v28 = vpop.eup %1119  ;;  %v705_v30 = vadd.f32 1.0, %v1118_v22  ;;  %1141 = vrcp.f32 %v739_v23  ;;  %v653_v22 = vmul.f32 1.442695, %v549_v36 }
  0xf8   :  { %v1122_v40 = vpop.eup %1121  ;;  %v737_v43 = vadd.f32 1.0, %v1120_v28 }
  0xf9   :  { %v1124_v31 = vpop.eup %1123  ;;  %1143 = vrcp.f32 %v705_v30  ;;  %v708_v51 = vadd.f32 1.0, %v1122_v40  ;;  %v1716_v45 = vpop.f32.mrb[16].mxu0 }
  0xfa   :  { %v1126_v57 = vpop.eup %1125  ;;  %v831_v58 = vmul.f32 %v1124_v31, %v1607_v37  ;;  %1145 = vrcp.f32 %v737_v43  ;;  %v1718_v0 = vpop.f32.mrb[16].mxu1  ;;  %v555_v31 = vsub.f32 0.0, %v1727_v1 }
  0xfb   :  { %v1128_v61 = vpop.eup %1127  ;;  %v863_v39 = vmul.f32 %v1126_v57, %v1610_v38  ;;  %1147 = vrcp.f32 %v708_v51  ;;  %v552_v38 = vsub.f32 0.0, %v1701_v49  ;;  %v1729_v3 = vpop.f32.mrb[17].mxu0 }
  0xfc   :  { %v1130_v37 = vpop.eup %1129  ;;  %895 = vst.msk [vmem:[%s2292_s3 + $0x10] sm:$0xff] %vm119_vm1, %v831_v58  ;;  %v829_v50 = vmul.f32 %v1128_v61, %v1613_v41  ;;  %1149 = vpow2.f32 %v651_v11  ;;  %v1731_v7 = vpop.f32.mrb[17].mxu1  ;;  %v589_v41 = vmul.f32 1.442695, %v517_v32  ;;  %v518_v11 = vsub.f32 0.0, %v1704_v55 }
  0xfd   :  { %v1132_v8 = vpop.eup %1131  ;;  %927 = vst.msk [vmem:[%s2292_s3 + $0x110] sm:$0xff] %vm119_vm1, %v863_v39  ;;  %v861_v12 = vmul.f32 %v1130_v37, %v1616_v42  ;;  %1151 = vpow2.f32 %v583_v18  ;;  %v1739_v16 = vpop.f32.mrb[18].mxu0  ;;  %v550_v42 = vsub.f32 0.0, %v1709_v59  ;;  %v595_v32 = vmul.f32 1.442695, %v520_v62 }
  0xfe   :  { %v1741_v6 = vpop.f32.mrb[18].mxu1  ;;  %v1134_v17 = vpop.eup %1133  ;;  %893 = vst.msk [vmem:[%s2292_s3] sm:$0xff] %vm119_vm1, %v829_v50  ;;  %v832_v19 = vmul.f32 %v1132_v8, %v1621_v47  ;;  %1153 = vpow2.f32 %v647_v24  ;;  %v523_v47 = vsub.f32 0.0, %v1714_v63  ;;  %v659_v43 = vmul.f32 1.442695, %v552_v38 }
  0xff   :  { %v1749_v18 = vpop.f32.mrb[19].mxu0  ;;  %v1751_v23 = vpop.f32.mrb[19].mxu1  ;;  %925 = vst.msk [vmem:[%s2292_s3 + $0x100] sm:$0xff] %vm119_vm1, %v861_v12  ;;  %v864_v30 = vmul.f32 %v1134_v17, %v1624_v48  ;;  %1155 = vpow2.f32 %v593_v46  ;;  %v591_v46 = vmul.f32 1.442695, %v518_v11  ;;  %v1809_v17 = vadd.f32 %v1604_v34, %v1680_v13 }
 0x100   :  { %v1136_v28 = vpop.eup %1135  ;;  %896 = vst.msk [vmem:[%s2292_s3 + $0x18] sm:$0xff] %vm119_vm1, %v832_v19  ;;  %1157 = vpow2.f32 %v657_v52  ;;  %v655_v52 = vmul.f32 1.442695, %v550_v42  ;;  %v601_v36 = vmul.f32 1.442695, %v523_v47 }
 0x101   :  { %v1138_v24 = vpop.eup %1137  ;;  %v830_v40 = vmul.f32 %v1136_v28, %v1629_v53  ;;  %928 = vst.msk [vmem:[%s2292_s3 + $0x118] sm:$0xff] %vm119_vm1, %v864_v30  ;;  %1159 = vpow2.f32 %v589_v41  ;;  %v1780_v61 = vpop.f32.mrb[20].mxu0  ;;  %v665_v37 = vmul.f32 1.442695, %v555_v31  ;;  %v1829_v30 = vadd.f32 %v1685_v20, %v1604_v34 }
 0x102   :  { %v1140_v51 = vpop.eup %1139  ;;  %v862_v48 = vmul.f32 %v1138_v24, %v1632_v54  ;;  %1161 = vpow2.f32 %v653_v22  ;;  %v1782_v39 = vpop.f32.mrb[20].mxu1  ;;  %v1833_v24 = vadd.f32 %v1687_v21, %v1604_v34  ;;  %v1838_v31 = vadd.f32 %v1604_v34, %v1692_v26 }
 0x103   :  { %v1142_v57 = vpop.eup %1141  ;;  %894 = vst.msk [vmem:[%s2292_s3 + $0x8] sm:$0xff] %vm119_vm1, %v830_v40  ;;  %v835_v53 = vmul.f32 %v1140_v51, %v1639_v4  ;;  %1163 = vpow2.f32 %v595_v32  ;;  %v1789_v50 = vpop.f32.mrb[21].mxu0 }
 0x104   :  { %v1144_v58 = vpop.eup %1143  ;;  %926 = vst.msk [vmem:[%s2292_s3 + $0x108] sm:$0xff] %vm119_vm1, %v862_v48  ;;  %v867_v54 = vmul.f32 %v1142_v57, %v1642_v5  ;;  %1165 = vpow2.f32 %v659_v43  ;;  %v1791_v38 = vpop.f32.mrb[21].mxu1  ;;  %v521_v43 = vsub.f32 0.0, %v1809_v17 }
 0x105   :  { %v1146_v62 = vpop.eup %1145  ;;  %899 = vst.msk [vmem:[%s2292_s3 + $0x30] sm:$0xff] %vm119_vm1, %v835_v53  ;;  %v833_v4 = vmul.f32 %v1144_v58, %v1645_v9  ;;  %1167 = vpow2.f32 %v591_v46  ;;  %v1798_v12 = vpop.f32.mrb[22].mxu0 }
 0x106   :  { %v1148_v5 = vpop.eup %1147  ;;  %931 = vst.msk [vmem:[%s2292_s3 + $0x130] sm:$0xff] %vm119_vm1, %v867_v54  ;;  %v865_v8 = vmul.f32 %v1146_v62, %v1648_v10  ;;  %v1800_v41 = vpop.f32.mrb[22].mxu1  ;;  %1169 = vpow2.f32 %v655_v52  ;;  %v524_v52 = vsub.f32 0.0, %v1829_v30  ;;  %v556_v62 = vsub.f32 0.0, %v1833_v24 }
 0x107   :  { %v1150_v9 = vpop.eup %1149  ;;  %897 = vst.msk [vmem:[%s2292_s3 + $0x20] sm:$0xff] %vm119_vm1, %v833_v4  ;;  %v836_v11 = vmul.f32 %v1148_v5, %v1653_v15  ;;  %v1811_v19 = vpop.f32.mrb[23].mxu0  ;;  %1171 = vpow2.f32 %v601_v36  ;;  %v1821_v15 = vadd.f32 %v1604_v34, %v1682_v14 }
 0x108   :  { %v1813_v10 = vpop.f32.mrb[23].mxu1  ;;  %v1152_v22 = vpop.eup %1151  ;;  %929 = vst.msk [vmem:[%s2292_s3 + $0x120] sm:$0xff] %vm119_vm1, %v865_v8  ;;  %v740_v42 = vadd.f32 1.0, %v1150_v9  ;;  %1173 = vpow2.f32 %v665_v37  ;;  %v597_v9 = vmul.f32 1.442695, %v521_v43  ;;  %v1866_v43 = vadd.f32 %v1716_v45, %v1604_v34 }
 0x109   :  { %v1154_v28 = vpop.eup %1153  ;;  %900 = vst.msk [vmem:[%s2292_s3 + $0x38] sm:$0xff] %vm119_vm1, %v836_v11  ;;  %v706_v13 = vadd.f32 1.0, %v1152_v22  ;;  %v553_v48 = vsub.f32 0.0, %v1821_v15  ;;  %v1841_v46 = vpop.f32.mrb[24].mxu0  ;;  %v522_v11 = vsub.f32 0.0, %v1838_v31 }
 0x10a   :  { %v1156_v32 = vpop.eup %1155  ;;  %1175 = vrcp.f32 %v740_v42  ;;  %v738_v47 = vadd.f32 1.0, %v1154_v28  ;;  %v1843_v57 = vpop.f32.mrb[24].mxu1 }
 0x10b   :  { %v1158_v14 = vpop.eup %1157  ;;  %1177 = vrcp.f32 %v706_v13  ;;  %v711_v40 = vadd.f32 1.0, %v1156_v32  ;;  %v1846_v58 = vpop.f32.mrb[25].mxu0  ;;  %v661_v32 = vmul.f32 1.442695, %v553_v48 }
 0x10c   :  { %v1160_v51 = vpop.eup %1159  ;;  %1179 = vrcp.f32 %v738_v47  ;;  %v743_v20 = vadd.f32 1.0, %v1158_v14  ;;  %v1848_v54 = vpop.f32.mrb[25].mxu1  ;;  %v1862_v47 = vadd.f32 %v1604_v34, %v1694_v27 }
 0x10d   :  { %v1162_v21 = vpop.eup %1161  ;;  %1181 = vrcp.f32 %v711_v40  ;;  %v709_v53 = vadd.f32 1.0, %v1160_v51  ;;  %v1851_v4 = vpop.f32.mrb[26].mxu0  ;;  %v603_v51 = vmul.f32 1.442695, %v524_v52 }
 0x10e   :  { %v1164_v26 = vpop.eup %1163  ;;  %1183 = vrcp.f32 %v743_v20  ;;  %v741_v36 = vadd.f32 1.0, %v1162_v21  ;;  %v1853_v37 = vpop.f32.mrb[26].mxu1 }
 0x10f   :  { %v1166_v5 = vpop.eup %1165  ;;  %1185 = vrcp.f32 %v709_v53  ;;  %v712_v8 = vadd.f32 1.0, %v1164_v26  ;;  %v1856_v22 = vpop.f32.mrb[27].mxu0  ;;  %v667_v53 = vmul.f32 1.442695, %v556_v62  ;;  %v1870_v26 = vadd.f32 %v1718_v0, %v1604_v34 }
 0x110   :  { %v1858_v42 = vpop.f32.mrb[27].mxu1  ;;  %v1168_v28 = vpop.eup %1167  ;;  %1187 = vrcp.f32 %v741_v36  ;;  %v744_v13 = vadd.f32 1.0, %v1166_v5  ;;  %v599_v36 = vmul.f32 1.442695, %v522_v11  ;;  %v1874_v5 = vadd.f32 %v1604_v34, %v1729_v3 }
 0x111   :  { %v1170_v14 = vpop.eup %1169  ;;  %1189 = vrcp.f32 %v712_v8  ;;  %v710_v40 = vadd.f32 1.0, %v1168_v28  ;;  %v554_v8 = vsub.f32 0.0, %v1862_v47  ;;  %v1879_v62 = vadd.f32 %v1604_v34, %v1731_v7  ;;  %v1881_v28 = vpop.f32.mrb[28].mxu0 }
 0x112   :  { %v1172_v20 = vpop.eup %1171  ;;  %1191 = vrcp.f32 %v744_v13  ;;  %v742_v21 = vadd.f32 1.0, %v1170_v14  ;;  %v1883_v0 = vpop.f32.mrb[28].mxu1  ;;  %v527_v3 = vsub.f32 0.0, %v1866_v43  ;;  %v1889_v14 = vadd.f32 %v1739_v16, %v1604_v34 }
 0x113   :  { %v1174_v48 = vpop.eup %1173  ;;  %1193 = vrcp.f32 %v710_v40  ;;  %v715_v27 = vadd.f32 1.0, %v1172_v20  ;;  %v1891_v40 = vpop.f32.mrb[29].mxu0 }
 0x114   :  { %v1176_v52 = vpop.eup %1175  ;;  %1195 = vrcp.f32 %v742_v21  ;;  %v747_v45 = vadd.f32 1.0, %v1174_v48  ;;  %v1893_v20 = vpop.f32.mrb[29].mxu1  ;;  %v559_v48 = vsub.f32 0.0, %v1870_v26 }
 0x115   :  { %v1178_v13 = vpop.eup %1177  ;;  %v868_v11 = vmul.f32 %v1176_v52, %v1659_v29  ;;  %1197 = vrcp.f32 %v715_v27  ;;  %2293 = vst [vmem:[#allocation2_spill] sm:$0xff] %v1893_v20  ;;  %v1899_v29 = vadd.f32 %v1741_v6, %v1604_v34  ;;  %v1901_v27 = vpop.f32.mrb[30].mxu0 }
 0x116   :  { %v1180_v7 = vpop.eup %1179  ;;  %v834_v21 = vmul.f32 %v1178_v13, %v1662_v35  ;;  %1199 = vrcp.f32 %v747_v45  ;;  %2294 = vst [vmem:[#allocation3_spill] sm:$0xff] %v1901_v27  ;;  %v1903_v52 = vpop.f32.mrb[30].mxu1  ;;  %v525_v35 = vsub.f32 0.0, %v1874_v5  ;;  %v1913_v45 = vadd.f32 %v1604_v34, %v1749_v18 }
 0x117   :  { %2295 = vst [vmem:[#allocation4_spill] sm:$0xff] %v1903_v52  ;;  %v1182_v16 = vpop.eup %1181  ;;  %932 = vst.msk [vmem:[%s2292_s3 + $0x138] sm:$0xff] %vm119_vm1, %v868_v11  ;;  %v866_v20 = vmul.f32 %v1180_v7, %v1665_v44  ;;  %1201 = vpow2.f32 %v597_v9  ;;  %v1915_v6 = vpop.f32.mrb[31].mxu0  ;;  %v663_v44 = vmul.f32 1.442695, %v554_v8  ;;  %v557_v9 = vsub.f32 0.0, %v1879_v62 }
 0x118   :  { %2296 = vst [vmem:[#allocation5_spill] sm:$0xff] %v1915_v6  ;;  %v1917_v13 = vpop.f32.mrb[31].mxu1  ;;  %v1184_v52 = vpop.eup %1183  ;;  %898 = vst.msk [vmem:[%s2292_s3 + $0x28] sm:$0xff] %vm119_vm1, %v834_v21  ;;  %v839_v11 = vmul.f32 %v1182_v16, %v1669_v56  ;;  %1203 = vpow2.f32 %v661_v32  ;;  %v528_v6 = vsub.f32 0.0, %v1889_v14  ;;  %v673_v32 = vmul.f32 1.442695, %v559_v48 }
 0x119   :  { %2297 = vst [vmem:[#allocation6_spill] sm:$0xff] %v1917_v13  ;;  %v1186_v7 = vpop.eup %1185  ;;  %930 = vst.msk [vmem:[%s2292_s3 + $0x128] sm:$0xff] %vm119_vm1, %v866_v20  ;;  %v871_v18 = vmul.f32 %v1184_v52, %v1673_v60  ;;  %1205 = vpow2.f32 %v603_v51  ;;  %v609_v13 = vmul.f32 1.442695, %v527_v3  ;;  %v560_v8 = vsub.f32 0.0, %v1899_v29 }
 0x11a   :  { %v1188_v27 = vpop.eup %1187  ;;  %903 = vst.msk [vmem:[%s2292_s3 + $0x50] sm:$0xff] %vm119_vm1, %v839_v11  ;;  %v837_v56 = vmul.f32 %v1186_v7, %v1677_v2  ;;  %1207 = vpow2.f32 %v667_v53  ;;  %v605_v51 = vmul.f32 1.442695, %v525_v35  ;;  %v526_v3 = vsub.f32 0.0, %v1913_v45 }
 0x11b   :  { %v1190_v21 = vpop.eup %1189  ;;  %935 = vst.msk [vmem:[%s2292_s3 + $0x150] sm:$0xff] %vm119_vm1, %v871_v18  ;;  %v869_v60 = vmul.f32 %v1188_v27, %v1690_v25  ;;  %1209 = vpow2.f32 %v599_v36  ;;  %v669_v53 = vmul.f32 1.442695, %v557_v9  ;;  %v611_v36 = vmul.f32 1.442695, %v528_v6 }
 0x11c   :  { %v1192_v20 = vpop.eup %1191  ;;  %901 = vst.msk [vmem:[%s2292_s3 + $0x40] sm:$0xff] %vm119_vm1, %v837_v56  ;;  %v840_v2 = vmul.f32 %v1190_v21, %v1698_v33  ;;  %1211 = vpow2.f32 %v663_v44  ;;  %v675_v52 = vmul.f32 1.442695, %v560_v8  ;;  %v607_v35 = vmul.f32 1.442695, %v526_v3 }
 0x11d   :  { %v1194_v48 = vpop.eup %1193  ;;  %933 = vst.msk [vmem:[%s2292_s3 + $0x140] sm:$0xff] %vm119_vm1, %v869_v60  ;;  %v872_v25 = vmul.f32 %v1192_v20, %v1701_v49  ;;  %1213 = vpow2.f32 %v609_v13  ;;  %v1983_v9 = vadd.f32 %v1780_v61, %v1604_v34  ;;  %v2000_v60 = vadd.f32 %v1604_v34, %v1791_v38 }
 0x11e   :  { %v1196_v27 = vpop.eup %1195  ;;  %904 = vst.msk [vmem:[%s2292_s3 + $0x58] sm:$0xff] %vm119_vm1, %v840_v2  ;;  %v838_v33 = vmul.f32 %v1194_v48, %v1704_v55  ;;  %1215 = vpow2.f32 %v673_v32  ;;  %v1995_v32 = vadd.f32 %v1604_v34, %v1789_v50 }
 0x11f   :  { %v1198_v16 = vpop.eup %1197  ;;  %936 = vst.msk [vmem:[%s2292_s3 + $0x158] sm:$0xff] %vm119_vm1, %v872_v25  ;;  %v870_v49 = vmul.f32 %v1196_v27, %v1709_v59  ;;  %1217 = vpow2.f32 %v605_v51  ;;  %v1975_v59 = vadd.f32 %v1604_v34, %v1751_v23  ;;  %v1991_v23 = vadd.f32 %v1782_v39, %v1604_v34 }
 0x120   :  { %v1200_v6 = vpop.eup %1199  ;;  %902 = vst.msk [vmem:[%s2292_s3 + $0x48] sm:$0xff] %vm119_vm1, %v838_v33  ;;  %v843_v55 = vmul.f32 %v1198_v16, %v1714_v63  ;;  %1219 = vpow2.f32 %v669_v53  ;;  %v531_v3 = vsub.f32 0.0, %v1983_v9  ;;  %v529_v25 = vsub.f32 0.0, %v1995_v32 }
 0x121   :  { %v1202_v13 = vpop.eup %1201  ;;  %934 = vst.msk [vmem:[%s2292_s3 + $0x148] sm:$0xff] %vm119_vm1, %v870_v49  ;;  %v875_v11 = vmul.f32 %v1200_v6, %v1727_v1  ;;  %1221 = vpow2.f32 %v611_v36  ;;  %v558_v21 = vsub.f32 0.0, %v1975_v59  ;;  %v563_v50 = vsub.f32 0.0, %v1991_v23 }
 0x122   :  { %v1204_v44 = vpop.eup %1203  ;;  %907 = vst.msk [vmem:[%s2292_s3 + $0x70] sm:$0xff] %vm119_vm1, %v843_v55  ;;  %v713_v63 = vadd.f32 1.0, %v1202_v13  ;;  %1223 = vpow2.f32 %v675_v52  ;;  %v561_v33 = vsub.f32 0.0, %v2000_v60  ;;  %v617_v49 = vmul.f32 1.442695, %v531_v3 }
 0x123   :  { %v1206_v7 = vpop.eup %1205  ;;  %939 = vst.msk [vmem:[%s2292_s3 + $0x170] sm:$0xff] %vm119_vm1, %v875_v11  ;;  %v745_v1 = vadd.f32 1.0, %v1204_v44  ;;  %1225 = vpow2.f32 %v607_v35  ;;  %v671_v38 = vmul.f32 1.442695, %v558_v21  ;;  %v2008_v35 = vadd.f32 %v1798_v12, %v1604_v34 }
 0x124   :  { %v1208_v18 = vpop.eup %1207  ;;  %1227 = vrcp.f32 %v713_v63  ;;  %v716_v56 = vadd.f32 1.0, %v1206_v7  ;;  %v681_v13 = vmul.f32 1.442695, %v563_v50  ;;  %v2012_v11 = vadd.f32 %v1800_v41, %v1604_v34 }
 0x125   :  { %v1210_v61 = vpop.eup %1209  ;;  %1229 = vrcp.f32 %v745_v1  ;;  %v748_v8 = vadd.f32 1.0, %v1208_v18  ;;  %v613_v7 = vmul.f32 1.442695, %v529_v25  ;;  %v2016_v1 = vadd.f32 %v1604_v34, %v1811_v19 }
 0x126   :  { %v1212_v51 = vpop.eup %1211  ;;  %1231 = vrcp.f32 %v716_v56  ;;  %v714_v39 = vadd.f32 1.0, %v1210_v61  ;;  %v677_v56 = vmul.f32 1.442695, %v561_v33  ;;  %v2020_v61 = vadd.f32 %v1604_v34, %v1813_v10 }
 0x127   :  { %v1214_v20 = vpop.eup %1213  ;;  %1233 = vrcp.f32 %v748_v8  ;;  %v746_v2 = vadd.f32 1.0, %v1212_v51  ;;  %v532_v21 = vsub.f32 0.0, %v2008_v35  ;;  %v2025_v51 = vadd.f32 %v1841_v46, %v1604_v34 }
 0x128   :  { %v1216_v53 = vpop.eup %1215  ;;  %1235 = vrcp.f32 %v714_v39  ;;  %v719_v48 = vadd.f32 1.0, %v1214_v20  ;;  %v564_v3 = vsub.f32 0.0, %v2012_v11  ;;  %v2031_v20 = vadd.f32 %v1843_v57, %v1604_v34 }
 0x129   :  { %v1218_v36 = vpop.eup %1217  ;;  %1237 = vrcp.f32 %v746_v2  ;;  %v751_v27 = vadd.f32 1.0, %v1216_v53  ;;  %v530_v50 = vsub.f32 0.0, %v2016_v1  ;;  %v2037_v46 = vadd.f32 %v1604_v34, %v1846_v58 }
 0x12a   :  { %v1220_v52 = vpop.eup %1219  ;;  %1239 = vrcp.f32 %v719_v48  ;;  %v717_v16 = vadd.f32 1.0, %v1218_v36  ;;  %v562_v57 = vsub.f32 0.0, %v2020_v61  ;;  %v619_v25 = vmul.f32 1.442695, %v532_v21 }
 0x12b   :  { %v1222_v6 = vpop.eup %1221  ;;  %1241 = vrcp.f32 %v751_v27  ;;  %v749_v55 = vadd.f32 1.0, %v1220_v52  ;;  %v535_v36 = vsub.f32 0.0, %v2025_v51  ;;  %v683_v27 = vmul.f32 1.442695, %v564_v3 }
 0x12c   :  { %v1224_v44 = vpop.eup %1223  ;;  %1243 = vrcp.f32 %v717_v16  ;;  %v720_v63 = vadd.f32 1.0, %v1222_v6  ;;  %v615_v52 = vmul.f32 1.442695, %v530_v50  ;;  %v533_v16 = vsub.f32 0.0, %v2037_v46 }
 0x12d   :  { %v1226_v18 = vpop.eup %1225  ;;  %1245 = vrcp.f32 %v749_v55  ;;  %v752_v12 = vadd.f32 1.0, %v1224_v44  ;;  %v679_v6 = vmul.f32 1.442695, %v562_v57  ;;  %v625_v44 = vmul.f32 1.442695, %v535_v36 }
 0x12e   :  { %v1228_v8 = vpop.eup %1227  ;;  %1247 = vrcp.f32 %v720_v63  ;;  %v718_v41 = vadd.f32 1.0, %v1226_v18  ;;  %v2113_v3 = vadd.f32 %v1853_v37, %v1604_v34 }
 0x12f   :  { %v1230_v39 = vpop.eup %1229  ;;  %v841_v19 = vmul.f32 %v1228_v8, %v1809_v17  ;;  %1249 = vrcp.f32 %v752_v12  ;;  %v621_v12 = vmul.f32 1.442695, %v533_v16 }
 0x130   :  { %v1232_v10 = vpop.eup %1231  ;;  %v873_v2 = vmul.f32 %v1230_v39, %v1821_v15  ;;  %1251 = vrcp.f32 %v718_v41  ;;  %v2047_v15 = vadd.f32 %v1604_v34, %v1848_v54 }
 0x131   :  { %v1234_v53 = vpop.eup %1233  ;;  %905 = vst.msk [vmem:[%s2292_s3 + $0x60] sm:$0xff] %vm119_vm1, %v841_v19  ;;  %v844_v17 = vmul.f32 %v1232_v10, %v1829_v30  ;;  %1253 = vpow2.f32 %v671_v38  ;;  %v567_v38 = vsub.f32 0.0, %v2031_v20 }
 0x132   :  { %v1236_v48 = vpop.eup %1235  ;;  %937 = vst.msk [vmem:[%s2292_s3 + $0x160] sm:$0xff] %vm119_vm1, %v873_v2  ;;  %v876_v58 = vmul.f32 %v1234_v53, %v1833_v24  ;;  %1255 = vpow2.f32 %v617_v49  ;;  %v565_v55 = vsub.f32 0.0, %v2047_v15 }
 0x133   :  { %v1238_v30 = vpop.eup %1237  ;;  %908 = vst.msk [vmem:[%s2292_s3 + $0x78] sm:$0xff] %vm119_vm1, %v844_v17  ;;  %v842_v54 = vmul.f32 %v1236_v48, %v1838_v31  ;;  %1257 = vpow2.f32 %v681_v13 }
 0x134   :  { %v1240_v33 = vpop.eup %1239  ;;  %940 = vst.msk [vmem:[%s2292_s3 + $0x178] sm:$0xff] %vm119_vm1, %v876_v58  ;;  %v874_v24 = vmul.f32 %v1238_v30, %v1862_v47  ;;  %1259 = vpow2.f32 %v613_v7  ;;  %v689_v7 = vmul.f32 1.442695, %v567_v38  ;;  %v685_v8 = vmul.f32 1.442695, %v565_v55 }
 0x135   :  { %v1242_v49 = vpop.eup %1241  ;;  %906 = vst.msk [vmem:[%s2292_s3 + $0x68] sm:$0xff] %vm119_vm1, %v842_v54  ;;  %v847_v31 = vmul.f32 %v1240_v33, %v1866_v43  ;;  %1261 = vpow2.f32 %v677_v56 }
 0x136   :  { %v1244_v13 = vpop.eup %1243  ;;  %938 = vst.msk [vmem:[%s2292_s3 + $0x168] sm:$0xff] %vm119_vm1, %v874_v24  ;;  %v879_v47 = vmul.f32 %v1242_v49, %v1870_v26  ;;  %1263 = vpow2.f32 %v619_v25  ;;  %v568_v25 = vsub.f32 0.0, %v2113_v3 }
 0x137   :  { %v1246_v63 = vpop.eup %1245  ;;  %911 = vst.msk [vmem:[%s2292_s3 + $0x90] sm:$0xff] %vm119_vm1, %v847_v31  ;;  %v845_v43 = vmul.f32 %v1244_v13, %v1874_v5  ;;  %1265 = vpow2.f32 %v683_v27 }
 0x138   :  { %v1248_v18 = vpop.eup %1247  ;;  %943 = vst.msk [vmem:[%s2292_s3 + $0x190] sm:$0xff] %vm119_vm1, %v879_v47  ;;  %v877_v26 = vmul.f32 %v1246_v63, %v1879_v62  ;;  %1267 = vpow2.f32 %v615_v52  ;;  %v691_v31 = vmul.f32 1.442695, %v568_v25 }
 0x139   :  { %v1250_v56 = vpop.eup %1249  ;;  %909 = vst.msk [vmem:[%s2292_s3 + $0x80] sm:$0xff] %vm119_vm1, %v845_v43  ;;  %v848_v5 = vmul.f32 %v1248_v18, %v1889_v14  ;;  %1269 = vpow2.f32 %v679_v6  ;;  %v2105_v14 = vadd.f32 %v1851_v4, %v1604_v34 }
 0x13a   :  { %v1252_v41 = vpop.eup %1251  ;;  %941 = vst.msk [vmem:[%s2292_s3 + $0x180] sm:$0xff] %vm119_vm1, %v877_v26  ;;  %v880_v62 = vmul.f32 %v1250_v56, %v1899_v29  ;;  %1271 = vpow2.f32 %v625_v44  ;;  %v2299_v56 = vld [vmem:[#allocation3_spill] sm:$0xff] }
 0x13b   :  { %v1254_v21 = vpop.eup %1253  ;;  %912 = vst.msk [vmem:[%s2292_s3 + $0x98] sm:$0xff] %vm119_vm1, %v848_v5  ;;  %v846_v39 = vmul.f32 %v1252_v41, %v1913_v45  ;;  %1273 = vpow2.f32 %v689_v7  ;;  %v1353_v45 = vld [vmem:[%s2291_s2] ss:$0 sm:$0xff]  ;;  %v536_v57 = vsub.f32 0.0, %v2105_v14 }
 0x13c   :  { %v1256_v19 = vpop.eup %1255  ;;  %944 = vst.msk [vmem:[%s2292_s3 + $0x198] sm:$0xff] %vm119_vm1, %v880_v62  ;;  %v750_v29 = vadd.f32 1.0, %v1254_v21  ;;  %1275 = vpow2.f32 %v621_v12  ;;  %v2123_v2 = vadd.f32 %v1353_v45, %v1856_v22  ;;  %v2126_v34 = vadd.f32 %v1353_v45, %v1858_v42  ;;  %v2300_v62 = vld [vmem:[#allocation4_spill] sm:$0xff] }
 0x13d   :  { %v1258_v10 = vpop.eup %1257  ;;  %910 = vst.msk [vmem:[%s2292_s3 + $0x88] sm:$0xff] %vm119_vm1, %v846_v39  ;;  %v723_v4 = vadd.f32 1.0, %v1256_v19  ;;  %1277 = vpow2.f32 %v685_v8  ;;  %v627_v24 = vmul.f32 1.442695, %v536_v57  ;;  %v2133_v52 = vadd.f32 %v1353_v45, %v1881_v28  ;;  %v2298_v28 = vld [vmem:[#allocation2_spill] sm:$0xff] }
 0x13e   :  { %v1260_v50 = vpop.eup %1259  ;;  %1279 = vrcp.f32 %v750_v29  ;;  %v755_v53 = vadd.f32 1.0, %v1258_v10  ;;  %v534_v30 = vsub.f32 0.0, %v2123_v2  ;;  %v566_v42 = vsub.f32 0.0, %v2126_v34  ;;  %v2301_v10 = vld [vmem:[#allocation5_spill] sm:$0xff] }
 0x13f   :  { %v1262_v37 = vpop.eup %1261  ;;  %1281 = vrcp.f32 %v723_v4  ;;  %v721_v17 = vadd.f32 1.0, %v1260_v50  ;;  %v2136_v6 = vadd.f32 %v1353_v45, %v1883_v0  ;;  %v2139_v44 = vadd.f32 %v1353_v45, %v1891_v40 }
 0x140   :  { %v1264_v48 = vpop.eup %1263  ;;  %1283 = vrcp.f32 %v755_v53  ;;  %v753_v58 = vadd.f32 1.0, %v1262_v37  ;;  %v623_v47 = vmul.f32 1.442695, %v534_v30  ;;  %v687_v7 = vmul.f32 1.442695, %v566_v42 }
 0x141   :  { %v1266_v36 = vpop.eup %1265  ;;  %1285 = vrcp.f32 %v721_v17  ;;  %v724_v22 = vadd.f32 1.0, %v1264_v48  ;;  %v2142_v18 = vadd.f32 %v1353_v45, %v2298_v28  ;;  %v539_v0 = vsub.f32 0.0, %v2133_v52  ;;  %v2302_v17 = vld [vmem:[#allocation6_spill] sm:$0xff] }
 0x142   :  { %v1268_v54 = vpop.eup %1267  ;;  %1287 = vrcp.f32 %v753_v58  ;;  %v756_v27 = vadd.f32 1.0, %v1266_v36  ;;  %v2146_v5 = vadd.f32 %v1353_v45, %v2299_v56  ;;  %v571_v40 = vsub.f32 0.0, %v2136_v6 }
 0x143   :  { %v1270_v38 = vpop.eup %1269  ;;  %1289 = vrcp.f32 %v724_v22  ;;  %v722_v33 = vadd.f32 1.0, %v1268_v54  ;;  %v2150_v21 = vadd.f32 %v1353_v45, %v2300_v62  ;;  %v537_v29 = vsub.f32 0.0, %v2139_v44 }
 0x144   :  { %v1272_v16 = vpop.eup %1271  ;;  %1291 = vrcp.f32 %v756_v27  ;;  %v754_v49 = vadd.f32 1.0, %v1270_v38  ;;  %v2155_v4 = vadd.f32 %v1353_v45, %v2301_v10  ;;  %v569_v37 = vsub.f32 0.0, %v2142_v18 }
 0x145   :  { %v1274_v55 = vpop.eup %1273  ;;  %1293 = vrcp.f32 %v722_v33  ;;  %v727_v13 = vadd.f32 1.0, %v1272_v16  ;;  %v2160_v57 = vadd.f32 %v1353_v45, %v2302_v17  ;;  %v633_v58 = vmul.f32 1.442695, %v539_v0 }
 0x146   :  { %v1276_v63 = vpop.eup %1275  ;;  %1295 = vrcp.f32 %v754_v49  ;;  %v759_v43 = vadd.f32 1.0, %v1274_v55  ;;  %v540_v25 = vsub.f32 0.0, %v2146_v5  ;;  %v697_v45 = vmul.f32 1.442695, %v571_v40 }
 0x147   :  { %v1278_v26 = vpop.eup %1277  ;;  %1297 = vrcp.f32 %v727_v13  ;;  %v725_v12 = vadd.f32 1.0, %v1276_v63  ;;  %v572_v22 = vsub.f32 0.0, %v2150_v21  ;;  %v629_v54 = vmul.f32 1.442695, %v537_v29 }
 0x148   :  { %v1280_v8 = vpop.eup %1279  ;;  %1299 = vrcp.f32 %v759_v43  ;;  %v757_v41 = vadd.f32 1.0, %v1278_v26  ;;  %v538_v27 = vsub.f32 0.0, %v2155_v4  ;;  %v693_v38 = vmul.f32 1.442695, %v569_v37 }
 0x149   :  { %v1282_v39 = vpop.eup %1281  ;;  %v878_v19 = vmul.f32 %v1280_v8, %v1975_v59  ;;  %1301 = vrcp.f32 %v725_v12  ;;  %v570_v33 = vsub.f32 0.0, %v2160_v57  ;;  %v635_v16 = vmul.f32 1.442695, %v540_v25 }
 0x14a   :  { %v1284_v50 = vpop.eup %1283  ;;  %v851_v53 = vmul.f32 %v1282_v39, %v1983_v9  ;;  %1303 = vrcp.f32 %v757_v41  ;;  %v631_v13 = vmul.f32 1.442695, %v538_v27 }
 0x14b   :  { %v1286_v48 = vpop.eup %1285  ;;  %942 = vst.msk [vmem:[%s2292_s3 + $0x188] sm:$0xff] %vm119_vm1, %v878_v19  ;;  %v883_v59 = vmul.f32 %v1284_v50, %v1991_v23  ;;  %1305 = vpow2.f32 %v627_v24  ;;  %v695_v63 = vmul.f32 1.442695, %v570_v33 }
 0x14c   :  { %v1288_v36 = vpop.eup %1287  ;;  %915 = vst.msk [vmem:[%s2292_s3 + $0xb0] sm:$0xff] %vm119_vm1, %v851_v53  ;;  %v849_v9 = vmul.f32 %v1286_v48, %v1995_v32  ;;  %1307 = vpow2.f32 %v691_v31  ;;  %v699_v31 = vmul.f32 1.442695, %v572_v22 }
 0x14d   :  { %v1290_v30 = vpop.eup %1289  ;;  %947 = vst.msk [vmem:[%s2292_s3 + $0x1b0] sm:$0xff] %vm119_vm1, %v883_v59  ;;  %v881_v23 = vmul.f32 %v1288_v36, %v2000_v60  ;;  %1309 = vpow2.f32 %v623_v47 }
 0x14e   :  { %v1292_v42 = vpop.eup %1291  ;;  %913 = vst.msk [vmem:[%s2292_s3 + $0xa0] sm:$0xff] %vm119_vm1, %v849_v9  ;;  %v852_v32 = vmul.f32 %v1290_v30, %v2008_v35  ;;  %1311 = vpow2.f32 %v687_v7 }
 0x14f   :  { %v1294_v24 = vpop.eup %1293  ;;  %945 = vst.msk [vmem:[%s2292_s3 + $0x1a0] sm:$0xff] %vm119_vm1, %v881_v23  ;;  %v884_v60 = vmul.f32 %v1292_v42, %v2012_v11  ;;  %1313 = vpow2.f32 %v633_v58 }
 0x150   :  { %v1296_v49 = vpop.eup %1295  ;;  %916 = vst.msk [vmem:[%s2292_s3 + $0xb8] sm:$0xff] %vm119_vm1, %v852_v32  ;;  %v850_v35 = vmul.f32 %v1294_v24, %v2016_v1  ;;  %1315 = vpow2.f32 %v697_v45 }
 0x151   :  { %v1298_v55 = vpop.eup %1297  ;;  %948 = vst.msk [vmem:[%s2292_s3 + $0x1b8] sm:$0xff] %vm119_vm1, %v884_v60  ;;  %v882_v11 = vmul.f32 %v1296_v49, %v2020_v61  ;;  %1317 = vpow2.f32 %v629_v54 }
 0x152   :  { %v1300_v47 = vpop.eup %1299  ;;  %914 = vst.msk [vmem:[%s2292_s3 + $0xa8] sm:$0xff] %vm119_vm1, %v850_v35  ;;  %v855_v1 = vmul.f32 %v1298_v55, %v2025_v51  ;;  %1319 = vpow2.f32 %v693_v38 }
 0x153   :  { %v1302_v43 = vpop.eup %1301  ;;  %946 = vst.msk [vmem:[%s2292_s3 + $0x1a8] sm:$0xff] %vm119_vm1, %v882_v11  ;;  %v887_v61 = vmul.f32 %v1300_v47, %v2031_v20  ;;  %1321 = vpow2.f32 %v635_v16 }
 0x154   :  { %v1304_v7 = vpop.eup %1303  ;;  %919 = vst.msk [vmem:[%s2292_s3 + $0xd0] sm:$0xff] %vm119_vm1, %v855_v1  ;;  %v853_v28 = vmul.f32 %v1302_v43, %v2037_v46  ;;  %1323 = vpow2.f32 %v699_v31 }
 0x155   :  { %v1306_v51 = vpop.eup %1305  ;;  %951 = vst.msk [vmem:[%s2292_s3 + $0x1d0] sm:$0xff] %vm119_vm1, %v887_v61  ;;  %v885_v26 = vmul.f32 %v1304_v7, %v2047_v15  ;;  %1325 = vpow2.f32 %v631_v13 }
 0x156   :  { %v1308_v20 = vpop.eup %1307  ;;  %917 = vst.msk [vmem:[%s2292_s3 + $0xc0] sm:$0xff] %vm119_vm1, %v853_v28  ;;  %v728_v12 = vadd.f32 1.0, %v1306_v51  ;;  %1327 = vpow2.f32 %v695_v63 }
 0x157   :  { %v1310_v0 = vpop.eup %1309  ;;  %949 = vst.msk [vmem:[%s2292_s3 + $0x1c0] sm:$0xff] %vm119_vm1, %v885_v26  ;;  %v760_v46 = vadd.f32 1.0, %v1308_v20 }
 0x158   :  { %v1312_v56 = vpop.eup %1311  ;;  %1329 = vrcp.f32 %v728_v12  ;;  %v726_v8 = vadd.f32 1.0, %v1310_v0 }
 0x159   :  { %v1314_v15 = vpop.eup %1313  ;;  %1331 = vrcp.f32 %v760_v46  ;;  %v758_v41 = vadd.f32 1.0, %v1312_v56 }
 0x15a   :  { %v1316_v40 = vpop.eup %1315  ;;  %1333 = vrcp.f32 %v726_v8  ;;  %v731_v62 = vadd.f32 1.0, %v1314_v15 }
 0x15b   :  { %v1318_v39 = vpop.eup %1317  ;;  %1335 = vrcp.f32 %v758_v41  ;;  %v763_v19 = vadd.f32 1.0, %v1316_v40 }
 0x15c   :  { %v1320_v29 = vpop.eup %1319  ;;  %1337 = vrcp.f32 %v731_v62  ;;  %v729_v10 = vadd.f32 1.0, %v1318_v39 }
 0x15d   :  { %v1322_v50 = vpop.eup %1321  ;;  %1339 = vrcp.f32 %v763_v19  ;;  %v761_v53 = vadd.f32 1.0, %v1320_v29 }
 0x15e   :  { %v1324_v37 = vpop.eup %1323  ;;  %1341 = vrcp.f32 %v729_v10  ;;  %v732_v17 = vadd.f32 1.0, %v1322_v50 }
 0x15f   :  { %v1326_v48 = vpop.eup %1325  ;;  %1343 = vrcp.f32 %v761_v53  ;;  %v764_v59 = vadd.f32 1.0, %v1324_v37 }
 0x160   :  { %v1328_v58 = vpop.eup %1327  ;;  %1345 = vrcp.f32 %v732_v17  ;;  %v730_v25 = vadd.f32 1.0, %v1326_v48 }
 0x161   :  { %1347 = vrcp.f32 %v764_v59  ;;  %v762_v36 = vadd.f32 1.0, %v1328_v58 }
 0x162   :  { %v1330_v9 = vpop.eup %1329  ;;  %1349 = vrcp.f32 %v730_v25 }
 0x163   :  { %v1332_v45 = vpop.eup %1331  ;;  %v856_v22 = vmul.f32 %v1330_v9, %v2105_v14  ;;  %1351 = vrcp.f32 %v762_v36 }
 0x164   :  { %v1334_v30 = vpop.eup %1333  ;;  %v888_v23 = vmul.f32 %v1332_v45, %v2113_v3 }
 0x165   :  { %v1336_v54 = vpop.eup %1335  ;;  %920 = vst.msk [vmem:[%s2292_s3 + $0xd8] sm:$0xff] %vm119_vm1, %v856_v22  ;;  %v854_v27 = vmul.f32 %v1334_v30, %v2123_v2 }
 0x166   :  { %v1338_v42 = vpop.eup %1337  ;;  %952 = vst.msk [vmem:[%s2292_s3 + $0x1d8] sm:$0xff] %vm119_vm1, %v888_v23  ;;  %v886_v14 = vmul.f32 %v1336_v54, %v2126_v34 }
 0x167   :  { %v1340_v32 = vpop.eup %1339  ;;  %918 = vst.msk [vmem:[%s2292_s3 + $0xc8] sm:$0xff] %vm119_vm1, %v854_v27  ;;  %v859_v3 = vmul.f32 %v1338_v42, %v2133_v52 }
 0x168   :  { %v1342_v38 = vpop.eup %1341  ;;  %950 = vst.msk [vmem:[%s2292_s3 + $0x1c8] sm:$0xff] %vm119_vm1, %v886_v14  ;;  %v891_v2 = vmul.f32 %v1340_v32, %v2136_v6 }
 0x169   :  { %v1344_v33 = vpop.eup %1343  ;;  %923 = vst.msk [vmem:[%s2292_s3 + $0xf0] sm:$0xff] %vm119_vm1, %v859_v3  ;;  %v857_v34 = vmul.f32 %v1342_v38, %v2139_v44 }
 0x16a   :  { %v1346_v24 = vpop.eup %1345  ;;  %955 = vst.msk [vmem:[%s2292_s3 + $0x1f0] sm:$0xff] %vm119_vm1, %v891_v2  ;;  %v889_v52 = vmul.f32 %v1344_v33, %v2142_v18 }
 0x16b   :  { %v1348_v60 = vpop.eup %1347  ;;  %921 = vst.msk [vmem:[%s2292_s3 + $0xe0] sm:$0xff] %vm119_vm1, %v857_v34  ;;  %v860_v6 = vmul.f32 %v1346_v24, %v2146_v5 }
 0x16c   :  { %v1350_v16 = vpop.eup %1349  ;;  %953 = vst.msk [vmem:[%s2292_s3 + $0x1e0] sm:$0xff] %vm119_vm1, %v889_v52  ;;  %v892_v44 = vmul.f32 %v1348_v60, %v2150_v21 }
 0x16d   :  { %v1352_v49 = vpop.eup %1351  ;;  %924 = vst.msk [vmem:[%s2292_s3 + $0xf8] sm:$0xff] %vm119_vm1, %v860_v6  ;;  %v858_v18 = vmul.f32 %v1350_v16, %v2155_v4 }
 0x16e   :  { %956 = vst.msk [vmem:[%s2292_s3 + $0x1f8] sm:$0xff] %vm119_vm1, %v892_v44  ;;  %v890_v5 = vmul.f32 %v1352_v49, %v2160_v57 }
 0x16f   :  { %922 = vst.msk [vmem:[%s2292_s3 + $0xe8] sm:$0xff] %vm119_vm1, %v858_v18 }
 0x170   :  { %954 = vst.msk [vmem:[%s2292_s3 + $0x1e8] sm:$0xff] %vm119_vm1, %v890_v5 }

// kernel: _lambda_.7
= control target key start
LH: loop header
LB: loop body
LE: loop exit
PB: predicated region body
PF: predicated region fallthrough
CT: control target
= control target key end

     0   :  { %s2891_s12 = smov 0   ;;  %s2893_s13 = smov 0   ;;  %s3632_s0 = inlined_call_operand.vmem [shape: f32[2,16,16,8], index: 0, kind: input, shape index: {}]   ;;  %s3633_s1 = inlined_call_operand.vmem [shape: bf16[3,3,8,8], index: 1, kind: input, shape index: {}]   ;;  %s3634_s2 = inlined_call_operand.vmem [shape: f32[1,8], index: 2, kind: input, shape index: {}]   ;;  %s3635_s3 = inlined_call_operand.vmem [shape: f32[2,16,16,8], index: 3, kind: output, shape index: {}]  }
   0x1   :  { %s2895_s14 = smov 0   ;;  %s2897_s15 = smov 0  }
   0x2   :  { %s2899_s16 = smov 0  }
   0x3 LB: > { %s22_s17 = sadd.s32 1, %s2861_s14  ;;  %s25_s18 = sadd.s32 1, %s2865_s15  ;;  %s2869_s16 = sphi %s2899_s16, %s13_s16   ;;  %s2865_s15 = sphi %s2897_s15, %s3647_s15   ;;  %s2861_s14 = sphi %s2895_s14, %s3646_s14   ;;  %s2857_s13 = sphi %s2893_s13, %s3645_s13   ;;  %s2853_s12 = sphi %s2891_s12, %s3644_s12  }
   0x4   : > { %p23_p0 = scmp.ge.s32.totalorder %s22_s17, 2  ;;  %p2243_p1 = scmp.ge.s32.totalorder %s2869_s16, 1 }
   0x5   : > { %p151_p2 = scmp.lt.s32.totalorder %s2869_s16, 5 }
   0x6   : > { %s3649_s17 = smov (%p23_p0, %s22_s17), 0  ;;  %s3651_s18 = smov (!%p23_p0, %s25_s18), %s2865_s15 }
   0x7   : > { %p152_p3 = pnand %p2243_p1, %p151_p2  ;;  %p27_p4 = scmp.ge.s32.totalorder %s3651_s18, 2 }
   0x8   : > { %v2926_v0 = vld [vmem:[%s3633_s1 + $0x10] sm:$0xf] (!%p152_p3)  ;;  %vm727_vm0 = vcmask (!%p152_p3), 1043456   ;;  %p180_p5 = scmp.lt.s32.totalorder (!%p152_p3), %s2857_s13, 1  ;;  %s2331_s21 = sshll.u32 (!%p152_p3), %s2853_s12, 7  ;;  %v251_v1 = vlaneseq (!%p152_p3)  ;;  %vm702_vm1 = vcmask (!%p152_p3), 64512  }
   0x9   : > { %s3653_s18 = smov (%p27_p4, %s3651_s18), 0  ;;  %155 = sbr.rel (%p152_p3) target bundleno = 424 (0x1a8), region = 32 }
   0xa   : > { %2709 = vmatprep.subr.msk.bf16.mxu0 (!%p152_p3), %vm727_vm0, %v2926_v0  ;;  %v2933_v2 = vsel (!%p152_p3), %vm727_vm0, %v2926_v0, 0  ;;  %v245_v3 = vld [vmem:[%s3633_s1 + $0xc] sm:$0xf] (!%p152_p3)  ;;  %s2939_s24 = sshll.u32 (!%p152_p3), %s2853_s12, 3  ;;  %v2944_v4 = vld [vmem:[%s3633_s1] sm:$0xf] (!%p152_p3) }
   0xb   : > { %2486 = vmatpush3.bf16.msra.mxu0 (!%p152_p3), %v2933_v2  ;;  %v2949_v5 = vshrl.u32 (!%p152_p3), %v251_v1, 7  ;;  %2705 = vmatprep.subr.msk.bf16.mxu1 (!%p152_p3), %vm727_vm0, %v245_v3  ;;  %v729_v6 = vsel (!%p152_p3), %vm727_vm0, %v245_v3, 0  ;;  %v249_v7 = vld [vmem:[%s3633_s1 + $0x1c] sm:$0xf] (!%p152_p3)  ;;  %p188_p6 = scmp.lt.s32.totalorder (!%p152_p3), %s2939_s24, 15  ;;  %s2252_s29 = sadd.s32 (!%p152_p3), 4294967295, %s2939_s24 }
   0xc   : > { %2414 = vmatpush3.bf16.msra.mxu1 (!%p152_p3), %v729_v6  ;;  %2711 = vmatprep.subr.msk.bf16.mxu0 (!%p152_p3), %vm727_vm0, %v249_v7  ;;  %p217_p7 = scmp.gt.s32.totalorder (!%p152_p3), %s2252_s29, 0  ;;  %p223_p8 = scmp.ge.s32.totalorder (!%p152_p3), %s2939_s24, 1  ;;  %v1324_v16 = vsel (!%p152_p3), %vm727_vm0, %v249_v7, 0  ;;  %v244_v21 = vld [vmem:[%s3633_s1 + $0x8] sm:$0xf] (!%p152_p3)  ;;  %v832_v56 = vsel (!%p152_p3), %vm727_vm0, %v2944_v4, 0 }
   0xd   : > { %2706 = vmatprep.subr.msk.bf16.mxu1 (!%p152_p3), %vm727_vm0, %v2944_v4  ;;  %v256_v8 = vadd.s32 (!%p152_p3), 32, %v2949_v5  ;;  %v254_v15 = vadd.s32 (!%p152_p3), 16, %v2949_v5  ;;  %v258_v17 = vadd.s32 (!%p152_p3), 48, %v2949_v5  ;;  %vm532_vm2 = vcmp.lt.s32.totalorder (!%p152_p3), %v2949_v5, 1  ;;  %s3033_s20 = sadd.s32 (!%p152_p3), 8, %s2939_s24 }
   0xe   : > { %v260_v30 = vadd.s32 (!%p152_p3), 64, %v2949_v5  ;;  %v262_v33 = vadd.s32 (!%p152_p3), 80, %v2949_v5  ;;  %p236_p9 = scmp.lt.s32.totalorder (!%p152_p3), %s3033_s20, 16  ;;  %v3061_v43 = vadd.s32 (!%p152_p3), 24, %v2949_v5  ;;  %v264_v47 = vadd.s32 (!%p152_p3), 96, %v2949_v5  ;;  %p230_p10 = scmp.lt.s32.totalorder (!%p152_p3), %s3033_s20, 15 }
   0xf   : > { %v304_v18 = vand.u32 (!%p152_p3), 15, %v256_v8  ;;  %v290_v24 = vand.u32 (!%p152_p3), 15, %v254_v15  ;;  %v318_v26 = vand.u32 (!%p152_p3), 15, %v258_v17  ;;  %vm1459_vm6 = vcmp.lt.s32.totalorder (!%p152_p3), %v2949_v5, 7 }
  0x10   : > { %s3655_s13 = smov (!%p180_p5, %s2857_s13), 1  ;;  %s3657_s29 = smov (!%p217_p7, %s2252_s29), 0  ;;  %v332_v40 = vand.u32 15, %v260_v30  ;;  %v346_v42 = vand.u32 15, %v262_v33  ;;  %v1653_v63 = vsel %vm727_vm0, %v244_v21, 0  ;;  %v360_v4 = vand.u32 15, %v264_v47 }
  0x11   : > { %s2330_s30 = sshll.u32 %s3655_s13, 8  ;;  %s2248_s8 = sshll.u32 %s3655_s13, 5  ;;  %v557_v29 = vadd.s32 4294967295, %v304_v18  ;;  %v555_v36 = vadd.s32 4294967295, %v290_v24  ;;  %v559_v37 = vadd.s32 4294967295, %v318_v26  ;;  %v266_v6 = vadd.s32 112, %v2949_v5 }
  0x12   : > { %s2965_s6 = scalar_lea.vmem %s3632_s0, %s2330_s30  ;;  %s2253_s19 = sshll.u32 %s3657_s29, 4  ;;  %v561_v54 = vadd.s32 4294967295, %v332_v40  ;;  %v563_v59 = vadd.s32 4294967295, %v346_v42  ;;  %v297_v7 = vand.u32 15, %v3061_v43  ;;  %v3125_v24 = vld [vmem:[%s3633_s1 + $0x18] sm:$0xf] }
  0x13   : > { %s2968_s7 = scalar_lea.vmem %s2965_s6, %s2331_s21  ;;  %s3046_s21 = scalar_lea.vmem %s2965_s6, %s2253_s19  ;;  %vm577_vm3 = vcmp.ge.s32.totalorder %v557_v29, 0  ;;  %vm579_vm4 = vcmp.ge.s32.totalorder %v559_v37, 0  ;;  %vm575_vm5 = vcmp.ge.s32.totalorder %v555_v36, 0  ;;  %v3138_v29 = vld [vmem:[%s3633_s1 + $0x14] sm:$0xf] }
  0x14   : > { %v2973_v9 = vld [vmem:[%s2968_s7] sm:$0xff]  ;;  %v2976_v10 = vld [vmem:[%s2968_s7 + $0x8] sm:$0xff]  ;;  %v2979_v11 = vld [vmem:[%s2968_s7 + $0x10] sm:$0xff]  ;;  %s189_s9 = scalar_select %p188_p6, %s2939_s24, 15  ;;  %vm581_vm7 = vcmp.ge.s32.totalorder %v561_v54, 0  ;;  %vm583_vm8 = vcmp.ge.s32.totalorder %v563_v59, 0 }
  0x15   : > { %v2986_v12 = vpack.c.bf16 %v2976_v10, %v2973_v9  ;;  %v2989_v13 = vld [vmem:[%s2968_s7 + $0x18] sm:$0xff]  ;;  %v3006_v19 = vld [vmem:[%s2968_s7 + $0x20] sm:$0xff]  ;;  %v3009_v20 = vld [vmem:[%s2968_s7 + $0x28] sm:$0xff]  ;;  %v515_v27 = vrot.slane %v2976_v10, 7  ;;  %v516_v28 = vrot.slane %v2979_v11, 7  ;;  %v514_v34 = vrot.slane %v2973_v9, 7 }
  0x16   : > { %v2995_v14 = vpack.c.bf16 %v2989_v13, %v2979_v11  ;;  %s2247_s10 = sshll.u32 %s189_s9, 1  ;;  %v3017_v22 = vld [vmem:[%s2968_s7 + $0x30] sm:$0xff]  ;;  %v3020_v23 = vld [vmem:[%s2968_s7 + $0x38] sm:$0xff]  ;;  %v3025_v25 = vpack.c.bf16 %v3009_v20, %v3006_v19  ;;  %v518_v31 = vrot.slane %v3006_v19, 7  ;;  %v517_v35 = vrot.slane %v2989_v13, 7  ;;  %v3072_v46 = vld [vmem:[%s2968_s7 + $0x40] sm:$0xff] }
  0x17   : > { %2487 = vmatprep.mubr.msk.bf16.mxu0 %vm702_vm1, %v2986_v12  ;;  %s3003_s11 = sadd.s32 %s2248_s8, %s2247_s10  ;;  %v3040_v32 = vpack.c.bf16 %v3020_v23, %v3017_v22  ;;  %v548_v38 = vsel %vm532_vm2, %v515_v27, %v516_v28  ;;  %v519_v39 = vrot.slane %v3009_v20, 7  ;;  %v549_v45 = vsel %vm532_vm2, %v514_v34, %v515_v27  ;;  %v3090_v57 = vld [vmem:[%s2968_s7 + $0x48] sm:$0xff]  ;;  %v3131_v27 = vld [vmem:[%s2968_s7 + $0x60] sm:$0xff] }
  0x18   : > { %2488 = vmatmul.mubr.msk.bf16.vlgmr.msra.gmra.mrb[0].mxu0 %vm702_vm1, %v2995_v14  ;;  %s3051_s22 = scalar_select %p223_p8, 255, 0  ;;  %v546_v41 = vsel %vm532_vm2, %v517_v35, %v518_v31  ;;  %v547_v49 = vsel %vm532_vm2, %v516_v28, %v517_v35  ;;  %v677_v50 = vsel %vm577_vm3, %v548_v38, 0.0  ;;  %v520_v51 = vrot.slane %v3017_v22, 7 }
  0x19   : > { %2504 = vmatpush3.bf16.msra.mxu0 %v1324_v16  ;;  %2491 = vmatprep.mubr.msk.bf16.mxu0 %vm702_vm1, %v3025_v25  ;;  %v545_v52 = vsel %vm532_vm2, %v518_v31, %v519_v39  ;;  %v679_v53 = vsel %vm579_vm4, %v546_v41, 0.0  ;;  %v522_v58 = vrot.slane %v3072_v46, 7  ;;  %v3094_v61 = vpack.c.bf16 %v547_v49, %v677_v50  ;;  %s3101_s23 = scalar_select %p230_p10, %s3033_s20, 15  ;;  %v3113_v16 = vld [vmem:[%s2968_s7 + $0x50] sm:$0xff]  ;;  %v3146_v31 = vld [vmem:[%s2968_s7 + $0x58] sm:$0xff] }
  0x1a   : > { %2712 = vmatprep.subr.msk.bf16.mxu0 %vm727_vm0, %v244_v21  ;;  %v3065_v44 = vld [vmem:[%s3046_s21 + $0x8] sm:%s3051_s22]  ;;  %v521_v62 = vrot.slane %v3020_v23, 7  ;;  %v3105_v3 = vpack.c.bf16 %v545_v52, %v679_v53  ;;  %v544_v8 = vsel %vm532_vm2, %v519_v39, %v520_v51  ;;  %v523_v15 = vrot.slane %v3090_v57, 7  ;;  %s3157_s29 = scalar_select %p236_p9, 255, 0 }
  0x1b   : > { %v513_v48 = vrot.slane %v3065_v44, 7  ;;  %v1441_v17 = vrot.slane %v2973_v9, 1  ;;  %v374_v21 = vand.u32 15, %v266_v6  ;;  %v1442_v26 = vrot.slane %v2976_v10, 1  ;;  %s2254_s26 = sshll.u32 %s3101_s23, 4  ;;  %v3166_v39 = vld [vmem:[%s2968_s7 + $0x68] sm:$0xff] }
  0x1c   : > { %v542_v18 = vsel %vm532_vm2, %v521_v62, %v522_v58  ;;  %v268_v28 = vadd.s32 128, %v2949_v5  ;;  %v543_v10 = vsel %vm532_vm2, %v520_v51, %v521_v62  ;;  %v681_v30 = vsel %vm581_vm7, %v544_v8, 0.0  ;;  %s3170_s30 = scalar_lea.vmem %s2965_s6, %s2254_s26  ;;  %v3186_v51 = vld [vmem:[%s2968_s7 + $0x70] sm:$0xff]  ;;  %s2249_s10 = sshll.u32 %s3003_s11, 3 }
  0x1d   : > { %v550_v55 = vsel %vm532_vm2, %v513_v48, %v514_v34  ;;  %v524_v33 = vrot.slane %v3113_v16, 7  ;;  %v565_v34 = vadd.s32 4294967295, %v360_v4  ;;  %v3637_v35 = vrot.slane %v2979_v11, 1  ;;  %v3203_v59 = vld [vmem:[%s3170_s30 + $0x8] sm:%s3157_s29]  ;;  %s3549_s19 = scalar_lea.vmem %s3635_s3, %s2249_s10 }
  0x1e   : > { %v675_v60 = vsel %vm575_vm5, %v550_v55, 0.0  ;;  %v541_v36 = vsel %vm532_vm2, %v522_v58, %v523_v15  ;;  %v683_v37 = vsel %vm583_vm8, %v542_v18, 0.0  ;;  %v3163_v38 = vpack.c.bf16 %v3090_v57, %v3072_v46 }
  0x1f   : > { %v3103_v1 = vpack.c.bf16 %v549_v45, %v675_v60  ;;  %v526_v40 = vrot.slane %v3131_v27, 7  ;;  %v567_v41 = vadd.s32 4294967295, %v374_v21  ;;  %v3174_v42 = vpack.c.bf16 %v543_v10, %v681_v30 }
  0x20   : > { %2492 = vmatmul.mubr.msk.bf16.gmra.mrb[4].mxu0 %vm702_vm1, %v3040_v32  ;;  %v525_v43 = vrot.slane %v3146_v31, 7  ;;  %v388_v45 = vand.u32 15, %v268_v28  ;;  %v3179_v47 = vpack.c.bf16 %v3146_v31, %v3113_v16  ;;  %v3181_v49 = vpack.c.bf16 %v541_v36, %v683_v37 }
  0x21   : > { %2505 = vmatprep.mubr.msk.bf16.mxu0 %vm702_vm1, %v2995_v14  ;;  %2415 = vmatprep.mubr.msk.bf16.mxu1 %vm702_vm1, %v3103_v1  ;;  %v540_v50 = vsel %vm532_vm2, %v523_v15, %v524_v33  ;;  %vm585_vm9 = vcmp.ge.s32.totalorder %v565_v34, 0  ;;  %v276_v52 = vand.u32 15, %v2949_v5  ;;  %v3193_v53 = vsel %vm1459_vm6, %v1441_v17, %v1442_v26 }
  0x22   : > { %2416 = vmatmul.mubr.msk.bf16.vlgmr.msra.gmra.mrb[0].mxu1 %vm702_vm1, %v3094_v61  ;;  %v1483_v55 = vadd.s32 1, %v297_v7  ;;  %v527_v58 = vrot.slane %v3166_v39, 7  ;;  %v1475_v60 = vsel %vm1459_vm6, %v1442_v26, %v3637_v35  ;;  %v538_v62 = vsel %vm532_vm2, %v525_v43, %v526_v40  ;;  %v3220_v7 = vld [vmem:[%s2968_s7 + $0x78] sm:$0xff] }
  0x23   : > { %2432 = vmatpush3.bf16.msra.mxu1 %v832_v56  ;;  %2419 = vmatprep.mubr.msk.bf16.mxu1 %vm702_vm1, %v3105_v3  ;;  %v3198_v56 = vld [vmem:[%s3046_s21] sm:%s3051_s22]  ;;  %vm587_vm10 = vcmp.ge.s32.totalorder %v567_v41, 0  ;;  %v539_v4 = vsel %vm532_vm2, %v524_v33, %v525_v43  ;;  %v685_v6 = vsel %vm585_vm9, %v540_v50, 0.0  ;;  %v528_v8 = vrot.slane %v3186_v51, 7 }
  0x24   : > { %2707 = vmatprep.subr.msk.bf16.mxu1 %vm727_vm0, %v3125_v24  ;;  %v569_v15 = vadd.s32 4294967295, %v388_v45  ;;  %v512_v18 = vrot.slane %v3198_v56, 7  ;;  %v3636_v21 = vrot.slane %v3203_v59, 7  ;;  %v553_v26 = vadd.s32 4294967295, %v276_v52 }
  0x25   : > { %vm1523_vm11 = vcmp.lt.s32.totalorder %v1483_v55, 16  ;;  %v1440_v10 = vrot.slane %v3065_v44, 1  ;;  %v537_v30 = vsel %vm532_vm2, %v526_v40, %v527_v58  ;;  %v687_v33 = vsel %vm587_vm10, %v538_v62, 0.0 }
  0x26   : > { %v529_v34 = vrot.slane %v3220_v7, 7  ;;  %v3236_v36 = vpack.c.bf16 %v3166_v39, %v3131_v27  ;;  %v257_v43 = vadd.s32 40, %v2949_v5  ;;  %v3239_v45 = vpack.c.bf16 %v539_v4, %v685_v6 }
  0x27   : > { %v536_v50 = vsel %vm532_vm2, %v527_v58, %v528_v8  ;;  %vm589_vm12 = vcmp.ge.s32.totalorder %v569_v15, 0  ;;  %v3245_v40 = vpack.c.bf16 %v3220_v7, %v3186_v51  ;;  %v3247_v41 = vpack.c.bf16 %v537_v30, %v687_v33 }
  0x28   : > { %2506 = vmatmul.mubr.msk.bf16.vlgmr.msra.gmra.mrb[0].mxu0 %vm702_vm1, %v3025_v25  ;;  %v552_v52 = vsel %vm532_vm2, %v3636_v21, %v512_v18  ;;  %vm573_vm13 = vcmp.ge.s32.totalorder %v553_v26, 0  ;;  %v1439_v62 = vrot.slane %v3198_v56, 1  ;;  %v1477_v58 = vsel %vm1459_vm6, %v1440_v10, %v1441_v17 }
  0x29   : > { %2522 = vmatpush3.bf16.msra.mxu0 %v1653_v63  ;;  %2509 = vmatprep.mubr.msk.bf16.mxu0 %vm702_vm1, %v3040_v32  ;;  %v253_v63 = vadd.s32 8, %v2949_v5  ;;  %v259_v4 = vadd.s32 56, %v2949_v5  ;;  %v1445_v6 = vrot.slane %v3006_v19, 1  ;;  %v535_v15 = vsel %vm532_vm2, %v528_v8, %v529_v34  ;;  %v2766_v19 = vld [vmem:[%s3170_s30] sm:%s3157_s29] }
  0x2a   : > { %2713 = vmatprep.subr.msk.bf16.mxu0 %vm727_vm0, %v3138_v29  ;;  %2420 = vmatmul.mubr.msk.bf16.gmra.mrb[4].mxu1 %vm702_vm1, %v3174_v42  ;;  %v689_v26 = vsel %vm589_vm12, %v536_v50, 0.0  ;;  %v1446_v55 = vrot.slane %v3009_v20, 1  ;;  %v551_v9 = vsel %vm532_vm2, %v512_v18, %v513_v48  ;;  %v673_v17 = vsel %vm573_vm13, %v552_v52, 0.0 }
  0x2b   : > { %2423 = vmatprep.mubr.msk.bf16.mxu1 %vm702_vm1, %v3181_v49  ;;  %v283_v28 = vand.u32 15, %v253_v63  ;;  %v1603_v63 = vsel %vm1523_vm11, %v1475_v60, 0.0  ;;  %v261_v60 = vadd.s32 72, %v2949_v5  ;;  %v1448_v30 = vrot.slane %v3020_v23, 1 }
  0x2c   : > { %v1478_v20 = vsel %vm1459_vm6, %v1439_v62, %v1440_v10  ;;  %v3286_v18 = vpack.c.bf16 %v535_v15, %v689_v26  ;;  %v3290_v33 = vsel %vm727_vm0, %v3125_v24, 0  ;;  %v325_v50 = vand.u32 15, %v259_v4 }
  0x2d   : > { %v1481_v37 = vadd.s32 1, %v283_v28  ;;  %v311_v28 = vand.u32 15, %v257_v43  ;;  %v530_v43 = vrot.slane %v2766_v19, 7  ;;  %v693_v52 = vpack.c.bf16 %v551_v9, %v673_v17 }
  0x2e   : > { %v1319_v23 = vpack.c.bf16 %v3203_v59, %v2766_v19  ;;  %v1457_v21 = vrot.slane %v2766_v19, 1  ;;  %v3294_v54 = vpack.c.bf16 %v1603_v63, %v3193_v53  ;;  %v339_v10 = vand.u32 15, %v261_v60 }
  0x2f   : > { %vm1521_vm14 = vcmp.lt.s32.totalorder %v1481_v37, 16  ;;  %v1485_v8 = vadd.s32 1, %v311_v28  ;;  %v1449_v37 = vrot.slane %v3072_v46, 1  ;;  %v3638_v24 = vrot.slane %v2989_v13, 1 }
  0x30   : > { %2510 = vmatmul.mubr.msk.bf16.gmra.mrb[4].mxu0 %vm702_vm1, %v3163_v38  ;;  %v1601_v48 = vsel %vm1521_vm14, %v1477_v58, 0.0  ;;  %v1773_v58 = vsel %vm727_vm0, %v3138_v29, 0  ;;  %v3640_v26 = vrot.slane %v2979_v11, 1  ;;  %v3641_v53 = vrot.slane %v3017_v22, 1 }
  0x31   : > { %2513 = vmatprep.mubr.msk.bf16.mxu0 %vm702_vm1, %v3179_v47  ;;  %v1620_v35 = vpack.c.bf16 %v1601_v48, %v1478_v20  ;;  %v1473_v4 = vsel %vm1459_vm6, %v3638_v24, %v1445_v6  ;;  %v3639_v15 = vmov %v3638_v24  ;;  %v3315_v29 = vsel %vm1459_vm6, %v1445_v6, %v1446_v55 }
  0x32   : > { %2424 = vmatmul.mubr.msk.bf16.gmra.mrb[8].mxu1 %vm702_vm1, %v3239_v45  ;;  %v1474_v28 = vsel %vm1459_vm6, %v3640_v26, %v3639_v15  ;;  %v1471_v63 = vsel %vm1459_vm6, %v1446_v55, %v3641_v53  ;;  %v1487_v9 = vadd.s32 1, %v325_v50  ;;  %v263_v17 = vadd.s32 88, %v2949_v5 }
  0x33   : > { %2427 = vmatprep.mubr.msk.bf16.mxu1 %vm702_vm1, %v3247_v41  ;;  %v270_v19 = vadd.s32 144, %v2949_v5  ;;  %vm1525_vm15 = vcmp.lt.s32.totalorder %v1485_v8, 16  ;;  %v3642_v11 = vrot.slane %v3203_v59, 7  ;;  %v534_v60 = vsel %vm532_vm2, %v529_v34, %v530_v43 }
  0x34   : > { %v1051_v6 = vpack.c.bf16 %v3065_v44, %v3198_v56  ;;  %v1469_v55 = vsel %vm1459_vm6, %v1448_v30, %v1449_v37  ;;  %v1489_v8 = vadd.s32 1, %v339_v10  ;;  %v269_v48 = vadd.s32 136, %v2949_v5 }
  0x35   : > { %v3324_v13 = vsel %vm532_vm2, %v530_v43, %v3642_v11  ;;  %v402_v20 = vand.u32 15, %v270_v19  ;;  %v1455_v34 = vrot.slane %v3186_v51, 1  ;;  %v1456_v43 = vrot.slane %v3220_v7, 1 }
  0x36   : > { %v271_v50 = vadd.s32 152, %v2949_v5  ;;  %v265_v24 = vadd.s32 104, %v2949_v5  ;;  %v395_v26 = vand.u32 15, %v269_v48  ;;  %vm1527_vm2 = vcmp.lt.s32.totalorder %v1487_v9, 16 }
  0x37   : > { %v571_v15 = vadd.s32 4294967295, %v402_v20  ;;  %v353_v10 = vand.u32 15, %v263_v17  ;;  %v1461_v7 = vsel %vm1459_vm6, %v1456_v43, %v1457_v21  ;;  %vm1529_vm4 = vcmp.lt.s32.totalorder %v1489_v8, 16 }
  0x38   : > { %2514 = vmatmul.mubr.msk.bf16.gmra.mrb[8].mxu0 %vm702_vm1, %v3236_v36  ;;  %v409_v53 = vand.u32 15, %v271_v50  ;;  %v1497_v19 = vadd.s32 1, %v395_v26  ;;  %v367_v48 = vand.u32 15, %v265_v24  ;;  %v1452_v9 = vrot.slane %v3146_v31, 1 }
  0x39   : > { %2517 = vmatprep.mubr.msk.bf16.mxu0 %vm702_vm1, %v3245_v40  ;;  %vm591_vm3 = vcmp.ge.s32.totalorder %v571_v15, 0 }
  0x3a   : > { %2428 = vmatmul.mubr.msk.bf16.gmra.mrb[12].mxu1 %vm702_vm1, %v3286_v18  ;;  %v3356_v11 = vsel %vm591_vm3, %v534_v60, 0.0  ;;  %v1499_v20 = vadd.s32 1, %v409_v53  ;;  %vm1537_vm5 = vcmp.lt.s32.totalorder %v1497_v19, 16  ;;  %v1450_v60 = vrot.slane %v3090_v57, 1 }
  0x3b   : > { %2433 = vmatprep.mubr.msk.bf16.mxu1 %vm702_vm1, %v693_v52  ;;  %v1462_v52 = vsel %vm1459_vm6, %v1455_v34, %v1456_v43  ;;  %v931_v43 = vpack.c.bf16 %v3324_v13, %v3356_v11  ;;  %v1617_v50 = vsel %vm1537_vm5, %v1461_v7, 0.0  ;;  %v1493_v24 = vadd.s32 1, %v367_v48 }
  0x3c   : > { %vm1539_vm7 = vcmp.lt.s32.totalorder %v1499_v20, 16  ;;  %v1454_v53 = vrot.slane %v3166_v39, 1 }
  0x3d   : > { %vm1533_vm9 = vcmp.lt.s32.totalorder %v1493_v24, 16 }
  0x3e   : > { %v1463_v46 = vsel %vm1459_vm6, %v1454_v53, %v1455_v34 }
  0x40   : > { %2518 = vmatmul.mubr.msk.bf16.gmra.mrb[12].mxu0 %vm702_vm1, %v1319_v23  ;;  %v1458_v23 = vrot.slane %v3203_v59, 1 }
  0x41   : > { %2523 = vmatprep.mubr.msk.bf16.mxu0 %vm702_vm1, %v1620_v35  ;;  %v1605_v35 = vsel %vm1525_vm15, %v1473_v4, 0.0 }
  0x42   : > { %v3352_v59 = vsel %vm1459_vm6, %v1457_v21, %v1458_v23  ;;  %v3354_v4 = vpack.c.bf16 %v1605_v35, %v1474_v28  ;;  %v1479_v17 = vsel %vm1459_vm6, %v1458_v23, %v1439_v62  ;;  %v3643_v21 = vrot.slane %v3017_v22, 1  ;;  %v243_v62 = vld [vmem:[%s3633_s1 + $0x4] sm:$0xf]  ;;  %2434 = vmatmul.mubr.msk.bf16.vlgmr.msra.gmra.mrb[0].mxu1 %vm702_vm1, %v3103_v1  ;;  %v250_v22 = vld [vmem:[%s3633_s1 + $0x20] sm:$0xf] }
  0x43   : > { %v1607_v23 = vsel %vm1527_vm2, %v1471_v63, 0.0  ;;  %v1451_v35 = vrot.slane %v3113_v16, 1  ;;  %v3383_v57 = vsel %vm1539_vm7, %v1479_v17, 0.0  ;;  %2450 = vmatpush3.bf16.msra.mxu1 %v3290_v33  ;;  %2437 = vmatprep.mubr.msk.bf16.mxu1 %vm702_vm1, %v3094_v61  ;;  %v1609_v1 = vsel %vm1529_vm4, %v1469_v55, 0.0 }
  0x44   : > { %v1470_v28 = vsel %vm1459_vm6, %v3643_v21, %v1448_v30  ;;  %v3381_v30 = vpack.c.bf16 %v1617_v50, %v1462_v52  ;;  %v267_v63 = vadd.s32 120, %v2949_v5  ;;  %v1888_v16 = vpack.c.bf16 %v3383_v57, %v3352_v59  ;;  %2708 = vmatprep.subr.msk.bf16.mxu1 %vm727_vm0, %v243_v62 }
  0x45   : > { %v1453_v33 = vrot.slane %v3131_v27, 1  ;;  %v1623_v15 = vpack.c.bf16 %v1607_v23, %v3315_v29  ;;  %v1624_v55 = vpack.c.bf16 %v1609_v1, %v1470_v28  ;;  %v1467_v8 = vsel %vm1459_vm6, %v1450_v60, %v1451_v35 }
  0x46   : > { %v381_v26 = vand.u32 15, %v267_v63  ;;  %v1468_v27 = vsel %vm1459_vm6, %v1449_v37, %v1450_v60  ;;  %v1466_v29 = vsel %vm1459_vm6, %v1451_v35, %v1452_v9  ;;  %v1893_v51 = vsel %vm727_vm0, %v250_v22, 0 }
  0x47   : > { %v1464_v37 = vsel %vm1459_vm6, %v1453_v33, %v1454_v53  ;;  %v1084_v5 = vsel %vm727_vm0, %v243_v62, 0 }
  0x48   : > { %2524 = vmatmul.mubr.msk.bf16.vlgmr.msra.gmra.mrb[0].mxu0 %vm702_vm1, %v3294_v54  ;;  %v1495_v7 = vadd.s32 1, %v381_v26 }
  0x49   : > { %2540 = vmatpush3.bf16.msra.mxu0 %v1773_v58  ;;  %v1491_v58 = vadd.s32 1, %v353_v10  ;;  %2527 = vmatprep.mubr.msk.bf16.mxu0 %vm702_vm1, %v3354_v4  ;;  %v1465_v10 = vsel %vm1459_vm6, %v1452_v9, %v1453_v33 }
  0x4a   : > { %2714 = vmatprep.subr.msk.bf16.mxu0 %vm727_vm0, %v250_v22  ;;  %2438 = vmatmul.mubr.msk.bf16.gmra.mrb[4].mxu1 %vm702_vm1, %v3105_v3  ;;  %v1613_v52 = vsel %vm1533_vm9, %v1465_v10, 0.0  ;;  %vm1535_vm10 = vcmp.lt.s32.totalorder %v1495_v7, 16 }
  0x4b   : > { %vm1531_vm8 = vcmp.lt.s32.totalorder %v1491_v58, 16  ;;  %2441 = vmatprep.mubr.msk.bf16.mxu1 %vm702_vm1, %v3174_v42  ;;  %v1626_v17 = vpack.c.bf16 %v1613_v52, %v1466_v29  ;;  %v1615_v39 = vsel %vm1535_vm10, %v1463_v46, 0.0 }
  0x4c   : > { %v1611_v31 = vsel %vm1531_vm8, %v1467_v8, 0.0  ;;  %v1627_v20 = vpack.c.bf16 %v1615_v39, %v1464_v37 }
  0x4d   : > { %v1625_v19 = vpack.c.bf16 %v1611_v31, %v1468_v27 }
  0x50   : > { %2528 = vmatmul.mubr.msk.bf16.gmra.mrb[4].mxu0 %vm702_vm1, %v1623_v15 }
  0x51   : > { %2531 = vmatprep.mubr.msk.bf16.mxu0 %vm702_vm1, %v1624_v55 }
  0x52   : > { %2442 = vmatmul.mubr.msk.bf16.gmra.mrb[8].mxu1 %vm702_vm1, %v3181_v49 }
  0x53   : > { %2445 = vmatprep.mubr.msk.bf16.mxu1 %vm702_vm1, %v3239_v45 }
  0x58   : > { %2532 = vmatmul.mubr.msk.bf16.gmra.mrb[8].mxu0 %vm702_vm1, %v1625_v19 }
  0x59   : > { %2535 = vmatprep.mubr.msk.bf16.mxu0 %vm702_vm1, %v1626_v17 }
  0x5a   : > { %2446 = vmatmul.mubr.msk.bf16.gmra.mrb[12].mxu1 %vm702_vm1, %v3247_v41 }
  0x5b   : > { %2451 = vmatprep.mubr.msk.bf16.mxu1 %vm702_vm1, %v3094_v61 }
  0x60   : > { %2536 = vmatmul.mubr.msk.bf16.gmra.mrb[12].mxu0 %vm702_vm1, %v1627_v20 }
  0x61   : > { %2541 = vmatprep.mubr.msk.bf16.mxu0 %vm702_vm1, %v3294_v54 }
  0x62   : > { %2452 = vmatmul.mubr.msk.bf16.vlgmr.msra.gmra.mrb[0].mxu1 %vm702_vm1, %v3105_v3 }
  0x63   : > { %2468 = vmatpush3.bf16.msra.mxu1 %v1084_v5  ;;  %2455 = vmatprep.mubr.msk.bf16.mxu1 %vm702_vm1, %v3174_v42 }
  0x64   : > { %2710 = vmatprep.subr.msk.bf16.mxu1 %vm727_vm0, %v2926_v0 }
  0x68   : > { %2542 = vmatmul.mubr.msk.bf16.vlgmr.msra.gmra.mrb[0].mxu0 %vm702_vm1, %v3354_v4 }
  0x69   : > { %2558 = vmatpush3.bf16.msra.mxu0 %v1893_v51  ;;  %2545 = vmatprep.mubr.msk.bf16.mxu0 %vm702_vm1, %v1623_v15 }
  0x6a   : > { %2456 = vmatmul.mubr.msk.bf16.gmra.mrb[4].mxu1 %vm702_vm1, %v3181_v49 }
  0x6b   : > { %2459 = vmatprep.mubr.msk.bf16.mxu1 %vm702_vm1, %v3239_v45 }
  0x70   : > { %2546 = vmatmul.mubr.msk.bf16.gmra.mrb[4].mxu0 %vm702_vm1, %v1624_v55 }
  0x71   : > { %2549 = vmatprep.mubr.msk.bf16.mxu0 %vm702_vm1, %v1625_v19 }
  0x72   : > { %2460 = vmatmul.mubr.msk.bf16.gmra.mrb[8].mxu1 %vm702_vm1, %v3247_v41 }
  0x73   : > { %2463 = vmatprep.mubr.msk.bf16.mxu1 %vm702_vm1, %v3286_v18 }
  0x78   : > { %2550 = vmatmul.mubr.msk.bf16.gmra.mrb[8].mxu0 %vm702_vm1, %v1626_v17 }
  0x79   : > { %2553 = vmatprep.mubr.msk.bf16.mxu0 %vm702_vm1, %v1627_v20 }
  0x7a   : > { %2464 = vmatmul.mubr.msk.bf16.gmra.mrb[12].mxu1 %vm702_vm1, %v931_v43 }
  0x7b   : > { %2469 = vmatprep.mubr.msk.bf16.mxu1 %vm702_vm1, %v1051_v6 }
  0x80   : > { %2554 = vmatmul.mubr.msk.bf16.gmra.mrb[12].mxu0 %vm702_vm1, %v3381_v30 }
  0x81   : > { %2559 = vmatprep.mubr.msk.bf16.mxu0 %vm702_vm1, %v3354_v4 }
  0x82   : > { %2470 = vmatmul.mubr.msk.bf16.vlgmr.msra.gmra.mrb[0].mxu1 %vm702_vm1, %v2986_v12  ;;  %v3507_v12 = vld [vmem:[%s3634_s2] ss:$0 sm:$0xff] }
  0x83   : > { %2576 = vmatpush3.bf16.msra.mxu1 %v2933_v2  ;;  %2473 = vmatprep.mubr.msk.bf16.mxu1 %vm702_vm1, %v2995_v14 }
  0x88   : > { %2560 = vmatmul.mubr.msk.bf16.vlgmr.msra.gmra.mrb[0].mxu0 %vm702_vm1, %v1623_v15 }
  0x89   : > { %2563 = vmatprep.mubr.msk.bf16.mxu0 %vm702_vm1, %v1624_v55 }
  0x8a   : > { %2474 = vmatmul.mubr.msk.bf16.gmra.mrb[4].mxu1 %vm702_vm1, %v3025_v25 }
  0x8b   : > { %2477 = vmatprep.mubr.msk.bf16.mxu1 %vm702_vm1, %v3040_v32 }
  0x90   : > { %2564 = vmatmul.mubr.msk.bf16.gmra.mrb[4].mxu0 %vm702_vm1, %v1625_v19 }
  0x91   : > { %2567 = vmatprep.mubr.msk.bf16.mxu0 %vm702_vm1, %v1626_v17 }
  0x92   : > { %2478 = vmatmul.mubr.msk.bf16.gmra.mrb[8].mxu1 %vm702_vm1, %v3163_v38 }
  0x93   : > { %2481 = vmatprep.mubr.msk.bf16.mxu1 %vm702_vm1, %v3179_v47 }
  0x98   : > { %2568 = vmatmul.mubr.msk.bf16.gmra.mrb[8].mxu0 %vm702_vm1, %v1627_v20 }
  0x99   : > { %2571 = vmatprep.mubr.msk.bf16.mxu0 %vm702_vm1, %v3381_v30 }
  0x9a   : > { %2482 = vmatmul.mubr.msk.bf16.gmra.mrb[12].mxu1 %vm702_vm1, %v3236_v36 }
  0x9b   : > { %2495 = vmatprep.mubr.msk.bf16.mxu1 %vm702_vm1, %v3163_v38 }
  0xa0   : > { %2572 = vmatmul.mubr.msk.bf16.gmra.mrb[12].mxu0 %vm702_vm1, %v1888_v16 }
  0xa2   : > { %2496 = vmatmul.mubr.msk.bf16.vlgmr.msra.gmra.mrb[8].mxu1 %vm702_vm1, %v3179_v47 }
  0xa3   : > { %2499 = vmatprep.mubr.msk.bf16.mxu1 %vm702_vm1, %v3236_v36 }
  0xaa   : > { %2500 = vmatmul.mubr.msk.bf16.gmra.mrb[12].mxu1 %vm702_vm1, %v3245_v40 }
 0x155   : > { %v2471_v2 = vpop.f32.mrb[0].mxu1 }
 0x156   : > { %v1120_v25 = vpop.f32.mrb[1].mxu1 }
 0x157   : > { %v2472_v61 = vpop.f32.mrb[2].mxu1 }
 0x158   : > { %v1123_v42 = vpop.f32.mrb[3].mxu1 }
 0x15b   : > { %v2561_v0 = vpop.f32.mrb[0].mxu0 }
 0x15c   : > { %v1929_v14 = vpop.f32.mrb[1].mxu0  ;;  %v2577_v32 = vadd.f32 %v2561_v0, %v2471_v2 }
 0x15d   : > { %v2562_v44 = vpop.f32.mrb[2].mxu0  ;;  %v2578_v3 = vadd.f32 %v1929_v14, %v1120_v25  ;;  %v2475_v34 = vpop.f32.mrb[4].mxu1 }
 0x15e   : > { %v1932_v38 = vpop.f32.mrb[3].mxu0  ;;  %v3510_v47 = vadd.f32 %v2577_v32, %v3507_v12  ;;  %v2579_v49 = vadd.f32 %v2562_v44, %v2472_v61  ;;  %v1136_v48 = vpop.f32.mrb[5].mxu1 }
 0x15f   : > { %v3513_v54 = vadd.f32 %v2578_v3, %v3507_v12  ;;  %v2580_v56 = vadd.f32 %v1932_v38, %v1123_v42  ;;  %v2476_v60 = vpop.f32.mrb[6].mxu1 }
 0x160   : > { %v2033_v36 = vsub.f32 0.0, %v3510_v47  ;;  %v3517_v45 = vadd.f32 %v2579_v49, %v3507_v12  ;;  %v1139_v35 = vpop.f32.mrb[7].mxu1 }
 0x161   : > { %v2031_v40 = vsub.f32 0.0, %v3513_v54  ;;  %v3521_v41 = vadd.f32 %v2580_v56, %v3507_v12 }
 0x162   : > { %v2051_v18 = vmul.f32 1.442695, %v2033_v36  ;;  %v2034_v13 = vsub.f32 0.0, %v3517_v45 }
 0x163   : > { %v2565_v6 = vpop.f32.mrb[4].mxu0  ;;  %v2047_v59 = vmul.f32 1.442695, %v2031_v40  ;;  %v2032_v4 = vsub.f32 0.0, %v3521_v41 }
 0x164   : > { %v1945_v11 = vpop.f32.mrb[5].mxu0  ;;  %2767 = vpow2.f32 %v2051_v18  ;;  %v2053_v43 = vmul.f32 1.442695, %v2034_v13  ;;  %v2581_v21 = vadd.f32 %v2565_v6, %v2475_v34 }
 0x165   : > { %v2566_v28 = vpop.f32.mrb[6].mxu0  ;;  %2769 = vpow2.f32 %v2047_v59  ;;  %v2049_v62 = vmul.f32 1.442695, %v2032_v4  ;;  %v2582_v50 = vadd.f32 %v1945_v11, %v1136_v48 }
 0x166   : > { %v1948_v23 = vpop.f32.mrb[7].mxu0  ;;  %2771 = vpow2.f32 %v2053_v43  ;;  %v3526_v22 = vadd.f32 %v2581_v21, %v3507_v12  ;;  %v2583_v30 = vadd.f32 %v2566_v28, %v2476_v60 }
 0x167   : > { %2773 = vpow2.f32 %v2049_v62  ;;  %v3529_v57 = vadd.f32 %v2582_v50, %v3507_v12  ;;  %v2584_v1 = vadd.f32 %v1948_v23, %v1139_v35 }
 0x168   : > { %v2037_v58 = vsub.f32 0.0, %v3526_v22  ;;  %v3533_v63 = vadd.f32 %v2583_v30, %v3507_v12 }
 0x169   : > { %v2035_v16 = vsub.f32 0.0, %v3529_v57  ;;  %v3537_v9 = vadd.f32 %v2584_v1, %v3507_v12 }
 0x16a   : > { %v2059_v33 = vmul.f32 1.442695, %v2037_v58  ;;  %v2038_v24 = vsub.f32 0.0, %v3533_v63 }
 0x16b   : > { %v2569_v15 = vpop.f32.mrb[8].mxu0  ;;  %v2055_v55 = vmul.f32 1.442695, %v2035_v16  ;;  %v2036_v8 = vsub.f32 0.0, %v3537_v9 }
 0x16c   : > { %v1961_v26 = vpop.f32.mrb[9].mxu0  ;;  %2775 = vpow2.f32 %v2059_v33  ;;  %v2061_v10 = vmul.f32 1.442695, %v2038_v24 }
 0x16d   : > { %v2570_v27 = vpop.f32.mrb[10].mxu0  ;;  %2777 = vpow2.f32 %v2055_v55  ;;  %v2057_v31 = vmul.f32 1.442695, %v2036_v8 }
 0x16e   : > { %v1964_v29 = vpop.f32.mrb[11].mxu0  ;;  %v2768_v52 = vpop.eup %2767  ;;  %2779 = vpow2.f32 %v2061_v10 }
 0x16f   : > { %v2770_v53 = vpop.eup %2769  ;;  %v2081_v7 = vadd.f32 1.0, %v2768_v52  ;;  %2781 = vpow2.f32 %v2057_v31 }
 0x170   : > { %v2772_v19 = vpop.eup %2771  ;;  %v2079_v17 = vadd.f32 1.0, %v2770_v53 }
 0x171   : > { %v2774_v46 = vpop.eup %2773  ;;  %2783 = vrcp.f32 %v2081_v7  ;;  %v2082_v37 = vadd.f32 1.0, %v2772_v19 }
 0x172   : > { %2785 = vrcp.f32 %v2079_v17  ;;  %v2080_v39 = vadd.f32 1.0, %v2774_v46 }
 0x173   : > { %v2573_v20 = vpop.f32.mrb[12].mxu0  ;;  %2787 = vrcp.f32 %v2082_v37 }
 0x174   : > { %v1977_v51 = vpop.f32.mrb[13].mxu0  ;;  %2789 = vrcp.f32 %v2080_v39 }
 0x175   : > { %v3541_v5 = vpop.f32.mrb[14].mxu0  ;;  %v2497_v49 = vpop.f32.mrb[8].mxu1 }
 0x176   : > { %v3543_v0 = vpop.f32.mrb[15].mxu0  ;;  %v2776_v2 = vpop.eup %2775  ;;  %v2585_v40 = vadd.f32 %v2569_v15, %v2497_v49 }
 0x177   : > { %v2778_v14 = vpop.eup %2777  ;;  %v2085_v25 = vadd.f32 1.0, %v2776_v2  ;;  %v1272_v18 = vpop.f32.mrb[9].mxu1 }
 0x178   : > { %v2780_v32 = vpop.eup %2779  ;;  %v2083_v44 = vadd.f32 1.0, %v2778_v14  ;;  %v2586_v34 = vadd.f32 %v1961_v26, %v1272_v18  ;;  %v2498_v59 = vpop.f32.mrb[10].mxu1  ;;  %v3557_v48 = vadd.f32 %v2585_v40, %v3507_v12 }
 0x179   : > { %v2782_v61 = vpop.eup %2781  ;;  %2791 = vrcp.f32 %v2085_v25  ;;  %v2086_v3 = vadd.f32 1.0, %v2780_v32  ;;  %v2587_v43 = vadd.f32 %v2570_v27, %v2498_v59 }
 0x17a   : > { %2793 = vrcp.f32 %v2083_v44  ;;  %v2084_v38 = vadd.f32 1.0, %v2782_v61  ;;  %v3563_v28 = vadd.f32 %v2586_v34, %v3507_v12  ;;  %v2041_v60 = vsub.f32 0.0, %v3557_v48 }
 0x17b   : > { %v2784_v42 = vpop.eup %2783  ;;  %2795 = vrcp.f32 %v2086_v3  ;;  %v3569_v62 = vadd.f32 %v2587_v43, %v3507_v12 }
 0x17c   : > { %v2786_v56 = vpop.eup %2785  ;;  %v2113_v36 = vmul.f32 %v2784_v42, %v3510_v47  ;;  %2797 = vrcp.f32 %v2084_v38  ;;  %v1275_v47 = vpop.f32.mrb[11].mxu1  ;;  %v2067_v23 = vmul.f32 1.442695, %v2041_v60 }
 0x17d   : > { %v2788_v13 = vpop.eup %2787  ;;  %v2111_v6 = vmul.f32 %v2786_v56, %v3513_v54  ;;  %v2588_v54 = vadd.f32 %v1964_v29, %v1275_v47  ;;  %v2501_v58 = vpop.f32.mrb[12].mxu1 }
 0x17e   : > { %v2790_v4 = vpop.eup %2789  ;;  %2129 = vst.msk [vmem:[%s3549_s19 + $0x10] sm:$0xff] %vm702_vm1, %v2113_v36  ;;  %v2114_v11 = vmul.f32 %v2788_v13, %v3517_v45  ;;  %v2039_v45 = vsub.f32 0.0, %v3563_v28  ;;  %2799 = vpow2.f32 %v2067_v23  ;;  %v2589_v15 = vadd.f32 %v2573_v20, %v2501_v58  ;;  %v1288_v55 = vpop.f32.mrb[13].mxu1 }
 0x17f   : > { %2127 = vst.msk [vmem:[%s3549_s19] sm:$0xff] %vm702_vm1, %v2111_v6  ;;  %v2112_v21 = vmul.f32 %v2790_v4, %v3521_v41  ;;  %v3575_v50 = vadd.f32 %v2588_v54, %v3507_v12  ;;  %v2042_v41 = vsub.f32 0.0, %v3569_v62  ;;  %v2590_v27 = vadd.f32 %v1977_v51, %v1288_v55  ;;  %v2502_v31 = vpop.f32.mrb[14].mxu1 }
 0x180   : > { %2130 = vst.msk [vmem:[%s3549_s19 + $0x18] sm:$0xff] %vm702_vm1, %v2114_v11  ;;  %v2063_v30 = vmul.f32 1.442695, %v2039_v45  ;;  %v2591_v53 = vadd.f32 %v3541_v5, %v2502_v31  ;;  %v1291_v7 = vpop.f32.mrb[15].mxu1 }
 0x181   : > { %2128 = vst.msk [vmem:[%s3549_s19 + $0x8] sm:$0xff] %vm702_vm1, %v2112_v21  ;;  %v2040_v1 = vsub.f32 0.0, %v3575_v50  ;;  %v2069_v24 = vmul.f32 1.442695, %v2042_v41  ;;  %v2027_v19 = vadd.f32 %v2590_v27, %v3507_v12  ;;  %v2592_v17 = vadd.f32 %v3543_v0, %v1291_v7 }
 0x182   : > { %2801 = vpow2.f32 %v2063_v30 }
 0x183   : > { %v2792_v35 = vpop.eup %2791  ;;  %v2065_v10 = vmul.f32 1.442695, %v2040_v1  ;;  %2803 = vpow2.f32 %v2069_v24  ;;  %v2043_v37 = vsub.f32 0.0, %v2027_v19  ;;  %v2028_v39 = vadd.f32 %v2592_v17, %v3507_v12 }
 0x184   : > { %v2794_v16 = vpop.eup %2793  ;;  %v2117_v33 = vmul.f32 %v2792_v35, %v3526_v22  ;;  %v2029_v22 = vadd.f32 %v2589_v15, %v3507_v12 }
 0x185   : > { %v2796_v8 = vpop.eup %2795  ;;  %v2115_v26 = vmul.f32 %v2794_v16, %v3529_v57  ;;  %2805 = vpow2.f32 %v2065_v10  ;;  %v2071_v5 = vmul.f32 1.442695, %v2043_v37  ;;  %v2044_v2 = vsub.f32 0.0, %v2028_v39 }
 0x186   : > { %v2798_v29 = vpop.eup %2797  ;;  %2133 = vst.msk [vmem:[%s3549_s19 + $0x30] sm:$0xff] %vm702_vm1, %v2117_v33  ;;  %v2118_v52 = vmul.f32 %v2796_v8, %v3533_v63  ;;  %v2045_v46 = vsub.f32 0.0, %v2029_v22  ;;  %v2030_v63 = vadd.f32 %v2591_v53, %v3507_v12 }
 0x187   : > { %2131 = vst.msk [vmem:[%s3549_s19 + $0x20] sm:$0xff] %vm702_vm1, %v2115_v26  ;;  %v2116_v57 = vmul.f32 %v2798_v29, %v3537_v9  ;;  %v2073_v14 = vmul.f32 1.442695, %v2044_v2 }
 0x188   : > { %2134 = vst.msk [vmem:[%s3549_s19 + $0x38] sm:$0xff] %vm702_vm1, %v2118_v52  ;;  %v2075_v20 = vmul.f32 1.442695, %v2045_v46  ;;  %v2046_v51 = vsub.f32 0.0, %v2030_v63  ;;  %v2800_v25 = vpop.eup %2799 }
 0x189   : > { %2132 = vst.msk [vmem:[%s3549_s19 + $0x28] sm:$0xff] %vm702_vm1, %v2116_v57  ;;  %v2089_v32 = vadd.f32 1.0, %v2800_v25 }
 0x18a   : > { %2807 = vpow2.f32 %v2075_v20  ;;  %v2077_v9 = vmul.f32 1.442695, %v2046_v51 }
 0x18b   : > { %2809 = vpow2.f32 %v2071_v5 }
 0x18c   : > { %2811 = vpow2.f32 %v2077_v9  ;;  %v2802_v0 = vpop.eup %2801 }
 0x18d   : > { %2813 = vpow2.f32 %v2073_v14  ;;  %v2804_v44 = vpop.eup %2803  ;;  %v2087_v61 = vadd.f32 1.0, %v2802_v0 }
 0x18e   : > { %2815 = vrcp.f32 %v2089_v32  ;;  %v2090_v38 = vadd.f32 1.0, %v2804_v44 }
 0x18f   : > { %v2806_v3 = vpop.eup %2805  ;;  %2817 = vrcp.f32 %v2087_v61 }
 0x190   : > { %v2088_v12 = vadd.f32 1.0, %v2806_v3  ;;  %2819 = vrcp.f32 %v2090_v38 }
 0x192   : > { %2821 = vrcp.f32 %v2088_v12 }
 0x194   : > { %v2808_v42 = vpop.eup %2807 }
 0x195   : > { %v2810_v49 = vpop.eup %2809  ;;  %v2093_v56 = vadd.f32 1.0, %v2808_v42 }
 0x196   : > { %v2812_v36 = vpop.eup %2811  ;;  %v2091_v40 = vadd.f32 1.0, %v2810_v49 }
 0x197   : > { %v2814_v18 = vpop.eup %2813  ;;  %2823 = vrcp.f32 %v2093_v56  ;;  %v2094_v13 = vadd.f32 1.0, %v2812_v36 }
 0x198   : > { %2825 = vrcp.f32 %v2091_v40  ;;  %v2092_v6 = vadd.f32 1.0, %v2814_v18  ;;  %v2816_v34 = vpop.eup %2815 }
 0x199   : > { %2827 = vrcp.f32 %v2094_v13  ;;  %v2818_v59 = vpop.eup %2817  ;;  %v2121_v4 = vmul.f32 %v2816_v34, %v3557_v48 }
 0x19a   : > { %2829 = vrcp.f32 %v2092_v6  ;;  %v2820_v11 = vpop.eup %2819  ;;  %v2119_v43 = vmul.f32 %v2818_v59, %v3563_v28 }
 0x19b   : > { %2137 = vst.msk [vmem:[%s3549_s19 + $0x50] sm:$0xff] %vm702_vm1, %v2121_v4  ;;  %v2122_v21 = vmul.f32 %v2820_v11, %v3569_v62 }
 0x19c   : > { %v2822_v47 = vpop.eup %2821  ;;  %2135 = vst.msk [vmem:[%s3549_s19 + $0x40] sm:$0xff] %vm702_vm1, %v2119_v43 }
 0x19d   : > { %v2120_v54 = vmul.f32 %v2822_v47, %v3575_v50  ;;  %2138 = vst.msk [vmem:[%s3549_s19 + $0x58] sm:$0xff] %vm702_vm1, %v2122_v21 }
 0x19f   : > { %2136 = vst.msk [vmem:[%s3549_s19 + $0x48] sm:$0xff] %vm702_vm1, %v2120_v54 }
 0x1a1   : > { %v2824_v48 = vpop.eup %2823 }
 0x1a2   : > { %v2826_v60 = vpop.eup %2825  ;;  %v2125_v45 = vmul.f32 %v2824_v48, %v2029_v22 }
 0x1a3   : > { %v2828_v28 = vpop.eup %2827  ;;  %v2123_v23 = vmul.f32 %v2826_v60, %v2027_v19 }
 0x1a4   : > { %v2830_v41 = vpop.eup %2829  ;;  %2141 = vst.msk [vmem:[%s3549_s19 + $0x70] sm:$0xff] %vm702_vm1, %v2125_v45  ;;  %v2126_v35 = vmul.f32 %v2828_v28, %v2030_v63 }
 0x1a5   : > { %2139 = vst.msk [vmem:[%s3549_s19 + $0x60] sm:$0xff] %vm702_vm1, %v2123_v23  ;;  %v2124_v62 = vmul.f32 %v2830_v41, %v2028_v39 }
 0x1a6   : > { %2142 = vst.msk [vmem:[%s3549_s19 + $0x78] sm:$0xff] %vm702_vm1, %v2126_v35 }
 0x1a7   : > { %2140 = vst.msk [vmem:[%s3549_s19 + $0x68] sm:$0xff] %vm702_vm1, %v2124_v62 }
 0x1a8 PF: > { %s13_s16 = sadd.s32 1, %s2869_s16   ;;  %s3644_s12 = smov %s2861_s14 }
 0x1a9   : > { %p10_p11 = scmp.ge.s32.totalorder %s13_s16, 6   ;;  %s3645_s13 = smov %s2865_s15 }
 0x1aa   : > { %s3646_s14 = smov %s3649_s17  ;;  %s3647_s15 = smov %s3653_s18 }
 0x1ab   :  { %12 = sbr.rel (!%p10_p11) target bundleno = 3 (0x3), region = 65 }

// kernel: _lambda_.9
= control target key start
LH: loop header
LB: loop body
LE: loop exit
PB: predicated region body
PF: predicated region fallthrough
CT: control target
= control target key end

     0   :  { %s4113_s12 = smov 0   ;;  %s4115_s13 = smov 0   ;;  %s7237_s0 = inlined_call_operand.vmem [shape: f32[2,16,16,8], index: 0, kind: input, shape index: {}]   ;;  %s7238_s1 = inlined_call_operand.vmem [shape: bf16[32,8], index: 1, kind: input, shape index: {}]   ;;  %s7239_s2 = inlined_call_operand.vmem [shape: f32[1,8], index: 2, kind: input, shape index: {}]   ;;  %s7240_s3 = inlined_call_operand.vmem [shape: f32[2,16,16,8], index: 3, kind: output, shape index: {}]  }
   0x1   :  { %s4117_s14 = smov 0   ;;  %s4119_s15 = smov 0  }
   0x2   :  { %s4121_s16 = smov 0  }
   0x3 LB: > { %s22_s17 = sadd.s32 1, %s4083_s14  ;;  %s25_s18 = sadd.s32 1, %s4087_s15  ;;  %s4091_s16 = sphi %s4121_s16, %s13_s16   ;;  %s4087_s15 = sphi %s4119_s15, %s7926_s15   ;;  %s4083_s14 = sphi %s4117_s14, %s7925_s14   ;;  %s4079_s13 = sphi %s4115_s13, %s7924_s13   ;;  %s4075_s12 = sphi %s4113_s12, %s7923_s12  }
   0x4   : > { %p23_p0 = scmp.ge.s32.totalorder %s22_s17, 2  ;;  %p3715_p1 = scmp.ge.s32.totalorder %s4091_s16, 1 }
   0x5   : > { %p151_p2 = scmp.lt.s32.totalorder %s4091_s16, 5 }
   0x6   : > { %s7928_s17 = smov (%p23_p0, %s22_s17), 0  ;;  %s7930_s18 = smov (!%p23_p0, %s25_s18), %s4087_s15 }
   0x7   : > { %p152_p3 = pnand %p3715_p1, %p151_p2  ;;  %p27_p4 = scmp.ge.s32.totalorder %s7930_s18, 2 }
   0x9   : > { %s7932_s18 = smov (%p27_p4, %s7930_s18), 0  ;;  %155 = sbr.rel (%p152_p3) target bundleno = 707 (0x2c3), region = 32 }
  0x10   : > { %v703_v0 = vld [vmem:[%s7238_s1 + $0x4] sm:$0xf]  ;;  %vm7304_vm0 = vcmask 1043456   ;;  %p180_p5 = scmp.lt.s32.totalorder %s4079_s13, 1  ;;  %s4149_s21 = sshll.u32 %s4075_s12, 3  ;;  %v285_v1 = vlaneseq  ;;  %v7477_v40 = vmov 0 }
  0x11   : > { %3927 = vmatprep.subr.msk.bf16.mxu1 %vm7304_vm0, %v703_v0  ;;  %v2161_v2 = vsel %vm7304_vm0, %v703_v0, 0  ;;  %s3724_s22 = sadd.s32 4294967290, %s4149_s21  ;;  %v704_v3 = vld [vmem:[%s7238_s1 + $0x8] sm:$0xf]  ;;  %v702_v6 = vld [vmem:[%s7238_s1] sm:$0xf] }
  0x12   : > { %3808 = vmatpush3.bf16.msra.mxu1 %v2161_v2  ;;  %s7934_s13 = smov (!%p180_p5, %s4079_s13), 1  ;;  %v4159_v4 = vshrl.u32 %v285_v1, 7  ;;  %3929 = vmatprep.subr.msk.bf16.mxu0 %vm7304_vm0, %v704_v3  ;;  %v2897_v5 = vsel %vm7304_vm0, %v704_v3, 0  ;;  %s3768_s27 = sshll.u32 %s4075_s12, 7 }
  0x13   : > { %p4169_p6 = scmp.gt.s32.totalorder %s3724_s22, 0  ;;  %3844 = vmatpush3.bf16.msra.mxu0 %v2897_v5  ;;  %3928 = vmatprep.subr.msk.bf16.mxu1 %vm7304_vm0, %v702_v6  ;;  %s3767_s29 = sshll.u32 %s7934_s13, 8 }
  0x14   : > { %p233_p7 = scmp.ge.s32.totalorder %s4149_s21, 6  ;;  %v4177_v7 = vadd.s32 56, %v4159_v4  ;;  %v4180_v8 = vadd.s32 64, %v4159_v4  ;;  %v4183_v9 = vadd.s32 72, %v4159_v4  ;;  %s4188_s5 = scalar_lea.vmem %s7237_s0, %s3767_s29  ;;  %v4191_v10 = vadd.s32 80, %v4159_v4 }
  0x15   : > { %v4194_v11 = vadd.s32 88, %v4159_v4  ;;  %v4197_v12 = vadd.s32 96, %v4159_v4  ;;  %v4200_v13 = vadd.s32 104, %v4159_v4  ;;  %s4203_s6 = scalar_lea.vmem %s4188_s5, %s3768_s27  ;;  %v4206_v14 = vadd.s32 112, %v4159_v4  ;;  %s7936_s22 = smov (!%p4169_p6, %s3724_s22), 0 }
  0x16   : > { %v4209_v15 = vadd.s32 120, %v4159_v4  ;;  %v4212_v16 = vadd.s32 128, %v4159_v4  ;;  %v4215_v17 = vadd.s32 136, %v4159_v4  ;;  %v4218_v18 = vld [vmem:[%s4203_s6] sm:$0xff]  ;;  %v4221_v19 = vld [vmem:[%s4203_s6 + $0x8] sm:$0xff]  ;;  %v4224_v20 = vld [vmem:[%s4203_s6 + $0x10] sm:$0xff] }
  0x17   : > { %7474 = vst [vmem:[#allocation2_spill] sm:$0xff] %v4218_v18  ;;  %7475 = vst [vmem:[#allocation3_spill] sm:$0xff] %v4221_v19  ;;  %v4231_v21 = vadd.s32 144, %v4159_v4  ;;  %v4235_v23 = vld [vmem:[%s4203_s6 + $0x18] sm:$0xff]  ;;  %v4238_v24 = vld [vmem:[%s4203_s6 + $0x20] sm:$0xff]  ;;  %v7242_v25 = vand.u32 15, %v4180_v8  ;;  %v726_v27 = vmax.f32 %v4218_v18, %v4224_v20 }
  0x18   : > { %s234_s7 = scalar_select %p233_p7, 1, 0  ;;  %v7241_v28 = vand.u32 15, %v4191_v10  ;;  %v727_v30 = vmax.f32 %v4221_v19, %v4235_v23  ;;  %v728_v31 = vmax.f32 %v4224_v20, %v4238_v24  ;;  %v4253_v32 = vld [vmem:[%s4203_s6 + $0x28] sm:$0xff]  ;;  %v4265_v38 = vld [vmem:[%s4203_s6 + $0x30] sm:$0xff]  ;;  %v4268_v39 = vld [vmem:[%s4203_s6 + $0x38] sm:$0xff] }
  0x19   : > { %s3725_s8 = sshll.u32 %s7936_s22, 4  ;;  %v4256_v33 = vld [vmem:[%s4203_s6 + $0x48] sm:$0xff]  ;;  %v729_v43 = vmax.f32 %v4235_v23, %v4253_v32  ;;  %v4279_v44 = vld [vmem:[%s4203_s6 + $0x40] sm:$0xff]  ;;  %v730_v49 = vmax.f32 %v4238_v24, %v4265_v38  ;;  %v731_v50 = vmax.f32 %v4253_v32, %v4268_v39  ;;  %v758_v62 = vmax.f32 %v726_v27, %v4238_v24  ;;  %s4778_s10 = sadd.s32 8, %s4149_s21 }
  0x1a   : > { %7476 = vst [vmem:[#allocation4_spill] sm:$0xff] %v4256_v33  ;;  %s4259_s9 = scalar_lea.vmem %s4188_s5, %s3725_s8  ;;  %v235_v34 = vstv %s234_s7  ;;  %v732_v56 = vmax.f32 %v4265_v38, %v4279_v44  ;;  %v733_v57 = vmax.f32 %v4268_v39, %v4256_v33  ;;  %v759_v27 = vmax.f32 %v727_v30, %v4253_v32  ;;  %p250_p8 = scmp.gt.s32.totalorder %s4778_s10, 0 }
  0x1b   : > { %vm4270_vm1 = vcmp.eq.s32.totalorder %v235_v34, 1  ;;  %v227_v45 = vld [vmem:[%s4259_s9 + $0x30] sm:$0xff]  ;;  %v228_v46 = vld [vmem:[%s4259_s9 + $0x38] sm:$0xff]  ;;  %v229_v51 = vld [vmem:[%s4259_s9 + $0x40] sm:$0xff]  ;;  %vm874_vm2 = vcmp.lt.s32.totalorder %v4159_v4, 2  ;;  %v4437_v22 = vadd.s32 4294967294, %v7242_v25 }
  0x1c   : > { %v7478_v40 = vsel %vm4270_vm1, 4294967295, %v7477_v40  ;;  %v230_v52 = vld [vmem:[%s4259_s9 + $0x48] sm:$0xff]  ;;  %v231_v53 = vld [vmem:[%s4259_s9 + $0x50] sm:$0xff]  ;;  %v4294_v54 = vsel %vm4270_vm1, %v227_v45, -inf  ;;  %v4298_v55 = vsel %vm4270_vm1, %v228_v46, -inf  ;;  %v232_v58 = vld [vmem:[%s4259_s9 + $0x58] sm:$0xff] }
  0x1d   : > { %7479 = vst [vmem:[#allocation5_spill] sm:$0xff] %v7478_v40  ;;  %7480 = vst [vmem:[#allocation6_spill] sm:$0xff] %v4294_v54  ;;  %v4307_v59 = vsel %vm4270_vm1, %v229_v51, -inf  ;;  %v4311_v60 = vsel %vm4270_vm1, %v230_v52, -inf  ;;  %v4315_v61 = vsel %vm4270_vm1, %v231_v53, -inf  ;;  %v4320_v63 = vsel %vm4270_vm1, %v232_v58, -inf }
  0x1e   : > { %7481 = vst [vmem:[#allocation7_spill] sm:$0xff] %v4298_v55  ;;  %7482 = vst [vmem:[#allocation8_spill] sm:$0xff] %v4307_v59  ;;  %v720_v0 = vmax.f32 %v4294_v54, %v4307_v59  ;;  %v721_v1 = vmax.f32 %v4298_v55, %v4311_v60  ;;  %v722_v2 = vmax.f32 %v4307_v59, %v4315_v61  ;;  %v4340_v52 = vld [vmem:[%s4203_s6 + $0x50] sm:$0xff]  ;;  %v4343_v53 = vld [vmem:[%s4203_s6 + $0x58] sm:$0xff]  ;;  %v4441_v48 = vadd.s32 4294967294, %v7241_v28  ;;  %p3726_p9 = scmp.lt.s32.totalorder %s4778_s10, 10 }
  0x1f   : > { %7483 = vst [vmem:[#allocation9_spill] sm:$0xff] %v4311_v60  ;;  %7484 = vst [vmem:[#allocation10_spill] sm:$0xff] %v4315_v61  ;;  %v723_v3 = vmax.f32 %v4311_v60, %v4320_v63  ;;  %v724_v5 = vmax.f32 %v4315_v61, %v4218_v18  ;;  %v725_v6 = vmax.f32 %v4320_v63, %v4221_v19  ;;  %vm7353_vm3 = vcmp.ge.s32.totalorder %v4437_v22, 0  ;;  %s251_s11 = scalar_select %p250_p8, %s4778_s10, 0 }
  0x20   : > { %7485 = vst [vmem:[#allocation11_spill] sm:$0xff] %v4320_v63  ;;  %v752_v34 = vmax.f32 %v720_v0, %v4315_v61  ;;  %v753_v45 = vmax.f32 %v721_v1, %v4320_v63  ;;  %v754_v46 = vmax.f32 %v722_v2, %v4218_v18  ;;  %v760_v51 = vmax.f32 %v728_v31, %v4265_v38  ;;  %s268_s20 = sadd.s32 14, %s4149_s21  ;;  %p188_p11 = scmp.lt.s32.totalorder %s4149_s21, 15 }
  0x21   : > { %7486 = vst [vmem:[#allocation12_spill] sm:$0xff] %v4343_v53  ;;  %v755_v58 = vmax.f32 %v723_v3, %v4221_v19  ;;  %v756_v47 = vmax.f32 %v724_v5, %v4224_v20  ;;  %v757_v30 = vmax.f32 %v725_v6, %v4235_v23  ;;  %v761_v0 = vmax.f32 %v729_v43, %v4268_v39  ;;  %s7938_s11 = smov (!%p3726_p9, %s251_s11), 10  ;;  %p4892_p10 = scmp.le.s32.totalorder %s268_s20, 16 }
  0x22   : > { %v762_v1 = vmax.f32 %v730_v49, %v4279_v44  ;;  %v763_v2 = vmax.f32 %v731_v50, %v4256_v33  ;;  %v764_v31 = vmax.f32 %v732_v56, %v4340_v52  ;;  %v765_v41 = vmax.f32 %v733_v57, %v4343_v53  ;;  %v4362_v56 = vld [vmem:[%s4203_s6 + $0x60] sm:$0xff]  ;;  %v4365_v57 = vld [vmem:[%s4203_s6 + $0x68] sm:$0xff]  ;;  %7490 = vst [vmem:[#allocation16_spill] sm:$0xff] %v4437_v22  ;;  %s3731_s23 = sshll.u32 %s7938_s11, 4  ;;  %s7940_s21 = smov (!%p188_p11, %s4149_s21), 15 }
  0x23   : > { %v784_v36 = vmax.f32 %v752_v34, %v4218_v18  ;;  %v785_v3 = vmax.f32 %v753_v45, %v4221_v19  ;;  %v786_v29 = vmax.f32 %v754_v46, %v4224_v20  ;;  %v787_v5 = vmax.f32 %v755_v58, %v4235_v23  ;;  %7487 = vst [vmem:[#allocation13_spill] sm:$0xff] %v4365_v57  ;;  %s270_s24 = scalar_select %p4892_p10, 1, 0 }
  0x24   : > { %v788_v6 = vmax.f32 %v756_v47, %v4238_v24  ;;  %v789_v43 = vmax.f32 %v757_v30, %v4253_v32  ;;  %v790_v49 = vmax.f32 %v758_v62, %v4265_v38  ;;  %v791_v50 = vmax.f32 %v759_v27, %v4268_v39  ;;  %7491 = vst [vmem:[#allocation17_spill] sm:$0xff] %v4441_v48  ;;  %s4978_s25 = scalar_lea.vmem %s4188_s5, %s3731_s23  ;;  %s3719_s5 = sshll.u32 %s7940_s21, 1 }
  0x25   : > { %v792_v34 = vmax.f32 %v760_v51, %v4279_v44  ;;  %v793_v45 = vmax.f32 %v761_v0, %v4256_v33  ;;  %v794_v46 = vmax.f32 %v762_v1, %v4340_v52  ;;  %v795_v47 = vmax.f32 %v763_v2, %v4343_v53  ;;  %v4392_v2 = vld [vmem:[%s4203_s6 + $0x70] sm:$0xff] }
  0x26   : > { %v796_v58 = vmax.f32 %v764_v31, %v4362_v56  ;;  %v797_v62 = vmax.f32 %v765_v41, %v4365_v57  ;;  %v4374_v30 = vmax.f32 %v784_v36, %v4224_v20  ;;  %v4377_v27 = vmax.f32 %v785_v3, %v4235_v23  ;;  %7488 = vst [vmem:[#allocation14_spill] sm:$0xff] %v4392_v2  ;;  %v4395_v41 = vld [vmem:[%s4203_s6 + $0x78] sm:$0xff] }
  0x27   : > { %v4380_v26 = vmax.f32 %v786_v29, %v4238_v24  ;;  %v4383_v51 = vmax.f32 %v787_v5, %v4253_v32  ;;  %v4386_v0 = vmax.f32 %v788_v6, %v4265_v38  ;;  %v4389_v1 = vmax.f32 %v789_v43, %v4268_v39  ;;  %7489 = vst [vmem:[#allocation15_spill] sm:$0xff] %v4395_v41 }
  0x28   : > { %v4398_v20 = vmax.f32 %v790_v49, %v4279_v44  ;;  %v4401_v23 = vmax.f32 %v791_v50, %v4256_v33  ;;  %v4404_v24 = vmax.f32 %v792_v34, %v4340_v52  ;;  %v4407_v29 = vmax.f32 %v793_v45, %v4343_v53 }
  0x29   : > { %v4410_v32 = vmax.f32 %v794_v46, %v4362_v56  ;;  %v4413_v36 = vmax.f32 %v795_v47, %v4365_v57  ;;  %v4416_v38 = vmax.f32 %v796_v58, %v4392_v2  ;;  %v4419_v39 = vmax.f32 %v797_v62, %v4395_v41 }
  0x2a   : > { %v849_v3 = vrot.slane %v4377_v27, 6  ;;  %v850_v5 = vrot.slane %v4380_v26, 6  ;;  %v851_v6 = vrot.slane %v4383_v51, 6  ;;  %v852_v43 = vrot.slane %v4386_v0, 6 }
  0x2b   : > { %v853_v49 = vrot.slane %v4389_v1, 6  ;;  %v854_v50 = vrot.slane %v4398_v20, 6  ;;  %v855_v34 = vrot.slane %v4401_v23, 6  ;;  %v856_v45 = vrot.slane %v4404_v24, 6 }
  0x2c   : > { %v857_v46 = vrot.slane %v4407_v29, 6  ;;  %v858_v47 = vrot.slane %v4410_v32, 6  ;;  %v859_v58 = vrot.slane %v4413_v36, 6  ;;  %v7244_v62 = vrot.slane %v4416_v38, 6 }
  0x2d   : > { %v892_v31 = vsel %vm874_vm2, %v855_v34, %v856_v45  ;;  %v4461_v25 = vsel %vm874_vm2, %v854_v50, %v855_v34  ;;  %v894_v19 = vsel %vm874_vm2, %v853_v49, %v854_v50  ;;  %v7492_v34 = vrot.slane %v4374_v30, 6 }
  0x2e   : > { %v4445_v42 = vsel %vm874_vm2, %v858_v47, %v859_v58  ;;  %v890_v37 = vsel %vm874_vm2, %v857_v46, %v858_v47  ;;  %v4451_v35 = vsel %vm874_vm2, %v856_v45, %v857_v46  ;;  %v888_v28 = vsel %vm874_vm2, %v859_v58, %v7244_v62 }
  0x2f   : > { %v4467_v47 = vsel %vm874_vm2, %v852_v43, %v853_v49  ;;  %v896_v46 = vsel %vm874_vm2, %v851_v6, %v852_v43  ;;  %v4473_v45 = vsel %vm874_vm2, %v850_v5, %v851_v6  ;;  %v898_v58 = vsel %vm874_vm2, %v849_v3, %v850_v5 }
  0x30   : > { %v4481_v62 = vsel %vm874_vm2, %v7492_v34, %v849_v3  ;;  %v7493_v50 = vand.u32 15, %v4197_v12  ;;  %v7495_v18 = vand.u32 15, %v4206_v14  ;;  %v7497_v6 = vand.u32 15, %v4212_v16 }
  0x31   : > { %v7499_v5 = vand.u32 15, %v4231_v21  ;;  %vm7404_vm4 = vcmp.ge.s32.totalorder %v4441_v48, 0  ;;  %v1138_v3 = vmax.f32 %v4377_v27, %v4481_v62  ;;  %v1140_v34 = vmax.f32 %v4383_v51, %v4473_v45 }
  0x32   : > { %v4485_v49 = vadd.s32 4294967294, %v7493_v50  ;;  %v4489_v43 = vadd.s32 4294967294, %v7495_v18  ;;  %v4493_v63 = vadd.s32 4294967294, %v7497_v6  ;;  %v4511_v18 = vsel %vm7353_vm3, %v898_v58, -inf }
  0x33   : > { %v4497_v61 = vadd.s32 4294967294, %v7499_v5  ;;  %v4515_v50 = vsel %vm7404_vm4, %v896_v46, -inf  ;;  %v1139_v46 = vmax.f32 %v4380_v26, %v4511_v18  ;;  %v1180_v48 = vrot.slane %v4413_v36, 7 }
  0x34   : > { %7494 = vst [vmem:[#allocation18_spill] sm:$0xff] %v4485_v49  ;;  %7496 = vst [vmem:[#allocation19_spill] sm:$0xff] %v4489_v43  ;;  %vm7309_vm5 = vcmp.ge.s32.totalorder %v4485_v49, 0  ;;  %vm7287_vm6 = vcmp.ge.s32.totalorder %v4489_v43, 0  ;;  %vm7285_vm7 = vcmp.ge.s32.totalorder %v4493_v63, 0  ;;  %v1141_v5 = vmax.f32 %v4386_v0, %v4515_v50 }
  0x35   : > { %7498 = vst [vmem:[#allocation20_spill] sm:$0xff] %v4493_v63  ;;  %7500 = vst [vmem:[#allocation21_spill] sm:$0xff] %v4497_v61  ;;  %vm7283_vm8 = vcmp.ge.s32.totalorder %v4497_v61, 0  ;;  %v4519_v62 = vsel %vm7309_vm5, %v894_v19, -inf  ;;  %v4523_v45 = vsel %vm7287_vm6, %v892_v31, -inf  ;;  %v4527_v6 = vsel %vm7285_vm7, %v890_v37, -inf }
  0x36   : > { %v4531_v58 = vsel %vm7283_vm8, %v888_v28, -inf  ;;  %v1142_v19 = vmax.f32 %v4389_v1, %v4467_v47  ;;  %v1143_v31 = vmax.f32 %v4398_v20, %v4519_v62  ;;  %v1144_v37 = vmax.f32 %v4401_v23, %v4461_v25 }
  0x37   : > { %v1145_v61 = vmax.f32 %v4404_v24, %v4523_v45  ;;  %v1146_v28 = vmax.f32 %v4407_v29, %v4451_v35  ;;  %v1147_v18 = vmax.f32 %v4410_v32, %v4527_v6  ;;  %v1148_v50 = vmax.f32 %v4413_v36, %v4445_v42 }
  0x38   : > { %v1149_v47 = vmax.f32 %v4416_v38, %v4531_v58  ;;  %v1170_v63 = vrot.slane %v4377_v27, 7  ;;  %v1171_v25 = vrot.slane %v4380_v26, 7  ;;  %v1172_v45 = vrot.slane %v4383_v51, 7 }
  0x39   : > { %v1173_v43 = vrot.slane %v4386_v0, 7  ;;  %v1174_v35 = vrot.slane %v4389_v1, 7  ;;  %v1175_v6 = vrot.slane %v4398_v20, 7  ;;  %v1176_v49 = vrot.slane %v4401_v23, 7 }
  0x3a   : > { %v1177_v42 = vrot.slane %v4404_v24, 7  ;;  %v1178_v58 = vrot.slane %v4407_v29, 7  ;;  %v1179_v62 = vrot.slane %v4410_v32, 7  ;;  %vm1195_vm9 = vcmp.lt.s32.totalorder %v4159_v4, 1 }
  0x3b   : > { %v7501_v60 = vand.u32 15, %v4180_v8  ;;  %v7503_v57 = vand.u32 15, %v4191_v10  ;;  %v7505_v8 = vrot.slane %v4416_v38, 7  ;;  %v1214_v10 = vsel %vm1195_vm9, %v1175_v6, %v1176_v49 }
  0x3c   : > { %v1210_v53 = vsel %vm1195_vm9, %v1179_v62, %v1180_v48  ;;  %v1211_v55 = vsel %vm1195_vm9, %v1178_v58, %v1179_v62  ;;  %v1212_v54 = vsel %vm1195_vm9, %v1177_v42, %v1178_v58  ;;  %v1213_v41 = vsel %vm1195_vm9, %v1176_v49, %v1177_v42 }
  0x3d   : > { %v4569_v59 = vadd.s32 4294967295, %v7501_v60  ;;  %v4573_v33 = vadd.s32 4294967295, %v7503_v57  ;;  %v1209_v60 = vsel %vm1195_vm9, %v1180_v48, %v7505_v8  ;;  %v1215_v57 = vsel %vm1195_vm9, %v1174_v35, %v1175_v6 }
  0x3e   : > { %v1216_v62 = vsel %vm1195_vm9, %v1173_v43, %v1174_v35  ;;  %v1217_v58 = vsel %vm1195_vm9, %v1172_v45, %v1173_v43  ;;  %v1218_v42 = vsel %vm1195_vm9, %v1171_v25, %v1172_v45  ;;  %v1219_v40 = vsel %vm1195_vm9, %v1170_v63, %v1171_v25 }
  0x3f   : > { %7502 = vst [vmem:[#allocation22_spill] sm:$0xff] %v4569_v59  ;;  %7504 = vst [vmem:[#allocation23_spill] sm:$0xff] %v4573_v33  ;;  %v7506_v48 = vrot.slane %v4374_v30, 7  ;;  %v7507_v8 = vand.u32 15, %v4197_v12  ;;  %v7509_v35 = vand.u32 15, %v4206_v14  ;;  %v7511_v43 = vand.u32 15, %v4212_v16 }
  0x40   : > { %v7513_v45 = vand.u32 15, %v4231_v21  ;;  %vm7352_vm10 = vcmp.ge.s32.totalorder %v4569_v59, 0  ;;  %vm7308_vm11 = vcmp.ge.s32.totalorder %v4573_v33, 0  ;;  %v4623_v12 = vmax.f32 %v1140_v34, %v1218_v42  ;;  %v7582_v59 = vld [vmem:[#allocation13_spill] sm:$0xff] }
  0x41   : > { %v1220_v49 = vsel %vm1195_vm9, %v7506_v48, %v1170_v63  ;;  %v4605_v6 = vadd.s32 4294967295, %v7507_v8  ;;  %v4609_v22 = vadd.s32 4294967295, %v7509_v35  ;;  %v4613_v2 = vadd.s32 4294967295, %v7511_v43 }
  0x42   : > { %v4617_v25 = vadd.s32 4294967295, %v7513_v45  ;;  %v4621_v63 = vmax.f32 %v1138_v3, %v1220_v49  ;;  %v1428_v14 = vsel %vm7352_vm10, %v1219_v40, -inf  ;;  %v1430_v16 = vsel %vm7308_vm11, %v1217_v58, -inf }
  0x43   : > { %7508 = vst [vmem:[#allocation24_spill] sm:$0xff] %v4605_v6  ;;  %7510 = vst [vmem:[#allocation25_spill] sm:$0xff] %v4609_v22  ;;  %vm7288_vm12 = vcmp.ge.s32.totalorder %v4605_v6, 0  ;;  %vm7286_vm13 = vcmp.ge.s32.totalorder %v4609_v22, 0  ;;  %vm7284_vm14 = vcmp.ge.s32.totalorder %v4613_v2, 0  ;;  %v4641_v48 = vmax.f32 %v1139_v46, %v1428_v14 }
  0x44   : > { %7512 = vst [vmem:[#allocation26_spill] sm:$0xff] %v4613_v2  ;;  %7514 = vst [vmem:[#allocation27_spill] sm:$0xff] %v4617_v25  ;;  %vm7279_vm15 = vcmp.ge.s32.totalorder %v4617_v25, 0  ;;  %v1432_v21 = vsel %vm7288_vm12, %v1215_v57, -inf  ;;  %v1434_v3 = vsel %vm7286_vm13, %v1213_v41, -inf  ;;  %v1436_v34 = vsel %vm7284_vm14, %v1211_v55, -inf }
  0x45   : > { %v1438_v42 = vsel %vm7279_vm15, %v1209_v60, -inf  ;;  %v4643_v49 = vmax.f32 %v1141_v5, %v1430_v16  ;;  %v4645_v40 = vmax.f32 %v1142_v19, %v1216_v62  ;;  %v4647_v8 = vmax.f32 %v1143_v31, %v1432_v21 }
  0x46   : > { %v4649_v58 = vmax.f32 %v1144_v37, %v1214_v10  ;;  %v4651_v57 = vmax.f32 %v1145_v61, %v1434_v3  ;;  %v4653_v35 = vmax.f32 %v1146_v28, %v1212_v54  ;;  %v4655_v41 = vmax.f32 %v1147_v18, %v1436_v34 }
  0x47   : > { %v4657_v55 = vmax.f32 %v1148_v50, %v1210_v53  ;;  %v4659_v43 = vmax.f32 %v1149_v47, %v1438_v42  ;;  %v7289_v46 = vrot.slane %v4377_v27, 1  ;;  %v1492_v5 = vrot.slane %v4380_v26, 1 }
  0x48   : > { %v1493_v19 = vrot.slane %v4383_v51, 1  ;;  %v1494_v31 = vrot.slane %v4386_v0, 1  ;;  %v1495_v37 = vrot.slane %v4389_v1, 1  ;;  %v1496_v61 = vrot.slane %v4398_v20, 1 }
  0x49   : > { %v1497_v54 = vrot.slane %v4401_v23, 1  ;;  %v1498_v28 = vrot.slane %v4404_v24, 1  ;;  %v1499_v53 = vrot.slane %v4407_v29, 1  ;;  %v1500_v18 = vrot.slane %v4410_v32, 1 }
  0x4a   : > { %v1501_v50 = vrot.slane %v4413_v36, 1  ;;  %v1502_v47 = vrot.slane %v4416_v38, 1  ;;  %v7280_v60 = vrot.slane %v4419_v39, 1  ;;  %vm1516_vm15 = vcmp.lt.s32.totalorder %v4159_v4, 7 }
  0x4b   : > { %v7515_v10 = vand.u32 15, %v4177_v7  ;;  %v7517_v45 = vand.u32 15, %v4183_v9  ;;  %v1532_v3 = vsel %vm1516_vm15, %v1499_v53, %v1500_v18  ;;  %v4693_v34 = vsel %vm1516_vm15, %v1498_v28, %v1499_v53 }
  0x4c   : > { %v1530_v16 = vsel %vm1516_vm15, %v1501_v50, %v1502_v47  ;;  %v4687_v21 = vsel %vm1516_vm15, %v1500_v18, %v1501_v50  ;;  %v4699_v42 = vsel %vm1516_vm15, %v1502_v47, %v7280_v60  ;;  %v4705_v50 = vsel %vm1516_vm15, %v1496_v61, %v1497_v54 }
  0x4d   : > { %v4677_v62 = vadd.s32 1, %v7515_v10  ;;  %v4681_v14 = vadd.s32 1, %v7517_v45  ;;  %v1534_v10 = vsel %vm1516_vm15, %v1497_v54, %v1498_v28  ;;  %v1536_v18 = vsel %vm1516_vm15, %v1495_v37, %v1496_v61 }
  0x4e   : > { %v4711_v53 = vsel %vm1516_vm15, %v1494_v31, %v1495_v37  ;;  %v1538_v45 = vsel %vm1516_vm15, %v1493_v19, %v1494_v31  ;;  %v4717_v47 = vsel %vm1516_vm15, %v1492_v5, %v1493_v19  ;;  %v1540_v54 = vsel %vm1516_vm15, %v7289_v46, %v1492_v5 }
  0x4f   : > { %7516 = vst [vmem:[#allocation28_spill] sm:$0xff] %v4677_v62  ;;  %7518 = vst [vmem:[#allocation29_spill] sm:$0xff] %v4681_v14  ;;  %v7519_v28 = vand.u32 15, %v4194_v11  ;;  %v7521_v61 = vand.u32 15, %v4200_v13  ;;  %v7523_v25 = vand.u32 15, %v4209_v15  ;;  %v7525_v19 = vand.u32 15, %v4215_v17 }
  0x50   : > { %vm7307_vm8 = vcmp.lt.s32.totalorder %v4677_v62, 16  ;;  %vm7311_vm14 = vcmp.lt.s32.totalorder %v4681_v14, 16  ;;  %v1817_v5 = vrot.slane %v4398_v20, 2  ;;  %v1822_v22 = vrot.slane %v4413_v36, 2 }
  0x51   : > { %v4725_v60 = vadd.s32 1, %v7519_v28  ;;  %v4729_v37 = vadd.s32 1, %v7521_v61  ;;  %v4733_v31 = vadd.s32 1, %v7523_v25  ;;  %v4737_v2 = vadd.s32 1, %v7525_v19 }
  0x52   : > { %v4751_v25 = vsel %vm7307_vm8, %v1540_v54, -inf  ;;  %v4755_v61 = vsel %vm7311_vm14, %v1538_v45, -inf  ;;  %v1816_v45 = vrot.slane %v4389_v1, 2  ;;  %v7527_v1 = vand.u32 15, %v4177_v7 }
  0x53   : > { %7520 = vst [vmem:[#allocation30_spill] sm:$0xff] %v4725_v60  ;;  %7522 = vst [vmem:[#allocation31_spill] sm:$0xff] %v4729_v37  ;;  %vm7306_vm7 = vcmp.lt.s32.totalorder %v4725_v60, 16  ;;  %vm7305_vm13 = vcmp.lt.s32.totalorder %v4729_v37, 16  ;;  %vm7298_vm6 = vcmp.lt.s32.totalorder %v4733_v31, 16  ;;  %vm7295_vm12 = vcmp.lt.s32.totalorder %v4737_v2, 16 }
  0x54   : > { %7524 = vst [vmem:[#allocation32_spill] sm:$0xff] %v4733_v31  ;;  %7526 = vst [vmem:[#allocation33_spill] sm:$0xff] %v4737_v2  ;;  %v4759_v19 = vsel %vm7306_vm7, %v1536_v18, -inf  ;;  %v4763_v46 = vsel %vm7305_vm13, %v1534_v10, -inf  ;;  %v4767_v28 = vsel %vm7298_vm6, %v1532_v3, -inf  ;;  %v4771_v54 = vsel %vm7295_vm12, %v1530_v16, -inf }
  0x55   : > { %v1813_v31 = vrot.slane %v4380_v26, 2  ;;  %v1814_v18 = vrot.slane %v4383_v51, 2  ;;  %v1815_v16 = vrot.slane %v4386_v0, 2  ;;  %v1818_v2 = vrot.slane %v4401_v23, 2 }
  0x56   : > { %v1819_v10 = vrot.slane %v4404_v24, 2  ;;  %v1820_v3 = vrot.slane %v4407_v29, 2  ;;  %v1821_v26 = vrot.slane %v4410_v32, 2  ;;  %v1823_v51 = vrot.slane %v4416_v38, 2 }
  0x57   : > { %v7299_v0 = vrot.slane %v4419_v39, 2  ;;  %vm1837_vm12 = vcmp.lt.s32.totalorder %v4159_v4, 6  ;;  %v4813_v20 = vadd.s32 2, %v7527_v1  ;;  %v7529_v23 = vand.u32 15, %v4183_v9  ;;  %v705_v9 = vld [vmem:[%s7238_s1 + $0xc] sm:$0xf] }
  0x58   : > { %v1851_v24 = vsel %vm1837_vm12, %v1822_v22, %v1823_v51  ;;  %v1852_v29 = vsel %vm1837_vm12, %v1821_v26, %v1822_v22  ;;  %v1853_v32 = vsel %vm1837_vm12, %v1820_v3, %v1821_v26  ;;  %v1854_v7 = vsel %vm1837_vm12, %v1819_v10, %v1820_v3  ;;  %3930 = vmatprep.subr.msk.bf16.mxu0 %vm7304_vm0, %v705_v9 }
  0x59   : > { %7528 = vst [vmem:[#allocation34_spill] sm:$0xff] %v4813_v20  ;;  %v4817_v37 = vadd.s32 2, %v7529_v23  ;;  %v1850_v36 = vsel %vm1837_vm12, %v1823_v51, %v7299_v0  ;;  %v1855_v22 = vsel %vm1837_vm12, %v1818_v2, %v1819_v10  ;;  %v1856_v26 = vsel %vm1837_vm12, %v1817_v5, %v1818_v2 }
  0x5a   : > { %v1857_v3 = vsel %vm1837_vm12, %v1816_v45, %v1817_v5  ;;  %vm7382_vm6 = vcmask 64512   ;;  %v1858_v1 = vsel %vm1837_vm12, %v1815_v16, %v1816_v45  ;;  %v1859_v23 = vsel %vm1837_vm12, %v1814_v18, %v1815_v16 }
  0x5b   : > { %7530 = vst [vmem:[#allocation35_spill] sm:$0xff] %v4817_v37  ;;  %v1860_v51 = vsel %vm1837_vm12, %v1813_v31, %v1814_v18  ;;  %v7531_v10 = vrot.slane %v4377_v27, 2  ;;  %v7532_v5 = vand.u32 15, %v4194_v11  ;;  %v7534_v9 = vand.u32 15, %v4200_v13 }
  0x5c   : > { %v7536_v45 = vand.u32 15, %v4209_v15  ;;  %v7538_v18 = vand.u32 15, %v4215_v17  ;;  %vm7411_vm0 = vcmp.lt.s32.totalorder %v4813_v20, 16  ;;  %vm7313_vm13 = vcmp.lt.s32.totalorder %v4817_v37, 16 }
  0x5d   : > { %v1861_v2 = vsel %vm1837_vm12, %v7531_v10, %v1813_v31  ;;  %v4858_v0 = vadd.s32 2, %v7532_v5  ;;  %v4862_v60 = vadd.s32 2, %v7534_v9  ;;  %v7540_v11 = vmax.f32 %v4641_v48, %v4717_v47 }
  0x5e   : > { %v4866_v16 = vadd.s32 2, %v7536_v45  ;;  %v4870_v62 = vadd.s32 2, %v7538_v18  ;;  %v7542_v13 = vmax.f32 %v4643_v49, %v4711_v53  ;;  %v2069_v15 = vsel %vm7411_vm0, %v1861_v2, -inf }
  0x5f   : > { %7533 = vst [vmem:[#allocation36_spill] sm:$0xff] %v4858_v0  ;;  %7535 = vst [vmem:[#allocation37_spill] sm:$0xff] %v4862_v60  ;;  %v4877_v31 = vmax.f32 %v7540_v11, %v1860_v51  ;;  %vm7391_vm7 = vcmp.lt.s32.totalorder %v4858_v0, 16  ;;  %vm7390_vm8 = vcmp.lt.s32.totalorder %v4862_v60, 16  ;;  %v2071_v17 = vsel %vm7313_vm13, %v1859_v23, -inf }
  0x60   : > { %7537 = vst [vmem:[#allocation38_spill] sm:$0xff] %v4866_v16  ;;  %7539 = vst [vmem:[#allocation39_spill] sm:$0xff] %v4870_v62  ;;  %v4882_v10 = vmax.f32 %v7542_v13, %v1858_v1  ;;  %vm7356_vm11 = vcmp.lt.s32.totalorder %v4866_v16, 16  ;;  %vm7310_vm5 = vcmp.lt.s32.totalorder %v4870_v62, 16  ;;  %v2073_v48 = vsel %vm7391_vm7, %v1857_v3, -inf  ;;  %v7579_v16 = vld [vmem:[#allocation7_spill] sm:$0xff] }
  0x61   : > { %7541 = vst [vmem:[#allocation40_spill] sm:$0xff] %v4877_v31  ;;  %v2075_v49 = vsel %vm7390_vm8, %v1855_v22, -inf  ;;  %v2077_v53 = vsel %vm7356_vm11, %v1853_v32, -inf  ;;  %v2079_v47 = vsel %vm7310_vm5, %v1851_v24, -inf  ;;  %v7544_v1 = vmax.f32 %v4621_v63, %v4751_v25 }
  0x62   : > { %v7546_v23 = vmax.f32 %v4623_v12, %v4755_v61  ;;  %v7548_v3 = vmax.f32 %v4645_v40, %v4759_v19  ;;  %v7549_v32 = vmax.f32 %v4647_v8, %v4705_v50  ;;  %v7550_v63 = vmax.f32 %v4649_v58, %v4763_v46 }
  0x63   : > { %v4911_v51 = vmax.f32 %v7544_v1, %v2069_v15  ;;  %v7551_v12 = vmax.f32 %v4651_v57, %v4693_v34  ;;  %v7552_v40 = vmax.f32 %v4653_v35, %v4767_v28  ;;  %v7553_v8 = vmax.f32 %v4655_v41, %v4687_v21 }
  0x64   : > { %v4916_v2 = vmax.f32 %v7546_v23, %v2071_v17  ;;  %v4921_v22 = vmax.f32 %v7548_v3, %v2073_v48  ;;  %v4926_v5 = vmax.f32 %v7549_v32, %v1856_v26  ;;  %v4931_v25 = vmax.f32 %v7550_v63, %v2075_v49  ;;  %v256_v26 = vld [vmem:[%s4978_s25] sm:$0xff] }
  0x65   : > { %7545 = vst [vmem:[#allocation41_spill] sm:$0xff] %v4911_v51  ;;  %v4936_v61 = vmax.f32 %v7551_v12, %v1854_v7  ;;  %v4942_v19 = vmax.f32 %v7552_v40, %v2077_v53  ;;  %v4947_v50 = vmax.f32 %v7553_v8, %v1852_v29  ;;  %v7554_v58 = vmax.f32 %v4657_v55, %v4771_v54  ;;  %v7560_v63 = vld [vmem:[#allocation14_spill] sm:$0xff] }
  0x66   : > { %7547 = vst [vmem:[#allocation42_spill] sm:$0xff] %v4916_v2  ;;  %v7556_v57 = vmax.f32 %v4659_v43, %v4699_v42  ;;  %v2126_v35 = vpack.c.bf16 %v4916_v2, %v4877_v31  ;;  %v2391_v41 = vmax.f32 %v4911_v51, %v4916_v2  ;;  %v2392_v21 = vmax.f32 %v4877_v31, %v4882_v10 }
  0x67   : > { %v4952_v46 = vmax.f32 %v7554_v58, %v2079_v47  ;;  %v2393_v55 = vmax.f32 %v4916_v2, %v4921_v22  ;;  %v2394_v28 = vmax.f32 %v4882_v10, %v4926_v5  ;;  %v2127_v43 = vpack.c.bf16 %v4921_v22, %v4882_v10 }
  0x68   : > { %v4957_v34 = vmax.f32 %v7556_v57, %v1850_v36  ;;  %v2128_v42 = vpack.c.bf16 %v4931_v25, %v4926_v5  ;;  %v2129_v54 = vpack.c.bf16 %v4942_v19, %v4936_v61  ;;  %3809 = vmatprep.mubr.msk.bf16.mxu1 %vm7382_vm6, %v2126_v35  ;;  %v2415_v24 = vmax.f32 %v2391_v41, %v4921_v22 }
  0x69   : > { %7555 = vst [vmem:[#allocation43_spill] sm:$0xff] %v4952_v46  ;;  %v2416_v29 = vmax.f32 %v2392_v21, %v4926_v5  ;;  %v2417_v7 = vmax.f32 %v2393_v55, %v4931_v25  ;;  %v2130_v36 = vpack.c.bf16 %v4952_v46, %v4947_v50  ;;  %v2418_v9 = vmax.f32 %v2394_v28, %v4936_v61 }
  0x6a   : > { %3810 = vmatmul.mubr.msk.bf16.vlgmr.msra.gmra.mrb[0].mxu1 %vm7382_vm6, %v2127_v43  ;;  %v4989_v45 = vstv %s270_s24  ;;  %v305_v18 = vadd.s32 152, %v4159_v4  ;;  %v734_v11 = vmax.f32 %v4279_v44, %v4340_v52  ;;  %v2439_v13 = vmax.f32 %v2415_v24, %v4931_v25 }
  0x6b   : > { %7557 = vst [vmem:[#allocation44_spill] sm:$0xff] %v4989_v45  ;;  %v2440_v15 = vmax.f32 %v2416_v29, %v4936_v61  ;;  %v2441_v17 = vmax.f32 %v2417_v7, %v4942_v19  ;;  %3813 = vmatprep.mubr.msk.bf16.mxu1 %vm7382_vm6, %v2128_v42  ;;  %vm7381_vm5 = vcmp.eq.s32.totalorder %v4989_v45, 1  ;;  %v2442_v48 = vmax.f32 %v2418_v9, %v4947_v50 }
  0x6c   : > { %v5002_v49 = vsel %vm7381_vm5, %v256_v26, -inf  ;;  %v455_v53 = vand.u32 15, %v305_v18  ;;  %v766_v47 = vmax.f32 %v734_v11, %v4362_v56  ;;  %v5006_v44 = vmax.f32 %v2439_v13, %v4942_v19 }
  0x6d   : > { %7558 = vst [vmem:[#allocation45_spill] sm:$0xff] %v5002_v49  ;;  %v5009_v1 = vmax.f32 %v2440_v15, %v4947_v50  ;;  %v5012_v23 = vmax.f32 %v2441_v17, %v4952_v46  ;;  %v7324_v3 = vrot.slane %v4419_v39, 6  ;;  %v5016_v32 = vmax.f32 %v2442_v48, %v4957_v34 }
  0x6e   : > { %v798_v12 = vmax.f32 %v766_v47, %v7560_v63  ;;  %v7323_v40 = vrot.slane %v4419_v39, 7  ;;  %v5020_v8 = vadd.s32 1, %v455_v53  ;;  %v7319_v58 = vrot.slane %v5006_v44, 6 }
  0x6f   : > { %7559 = vst [vmem:[#allocation46_spill] sm:$0xff] %v5009_v1  ;;  %v2488_v57 = vrot.slane %v5009_v1, 6  ;;  %v7320_v35 = vrot.slane %v5012_v23, 6  ;;  %v7317_v41 = vrot.slane %v5006_v44, 7  ;;  %v2584_v21 = vrot.slane %v5009_v1, 7 }
  0x70   : > { %7561 = vst [vmem:[#allocation14_spill] sm:$0xff] %v5020_v8  ;;  %v7318_v55 = vrot.slane %v5012_v23, 7  ;;  %v7316_v28 = vrot.slane %v5009_v1, 1  ;;  %v2681_v43 = vrot.slane %v5012_v23, 1  ;;  %v7315_v29 = vrot.slane %v5016_v32, 1 }
  0x71   : > { %v2518_v42 = vsel %vm874_vm2, %v2488_v57, %v7320_v35  ;;  %v2519_v24 = vsel %vm874_vm2, %v7319_v58, %v2488_v57  ;;  %v7312_v7 = vrot.slane %v5012_v23, 2  ;;  %v2615_v13 = vsel %vm1195_vm9, %v7317_v41, %v2584_v21  ;;  %v258_v58 = vld [vmem:[%s4978_s25 + $0x10] sm:$0xff]  ;;  %v259_v35 = vld [vmem:[%s4978_s25 + $0x18] sm:$0xff] }
  0x72   : > { %v2536_v9 = vsel %vm7353_vm3, %v2519_v24, -inf  ;;  %v2561_v18 = vmax.f32 %v5012_v23, %v2518_v42  ;;  %v2614_v11 = vsel %vm1195_vm9, %v2584_v21, %v7318_v55  ;;  %3814 = vmatmul.mubr.msk.bf16.gmra.mrb[4].mxu1 %vm7382_vm6, %v2129_v54  ;;  %v2632_v17 = vsel %vm7352_vm10, %v2615_v13, -inf  ;;  %v257_v55 = vld [vmem:[%s4978_s25 + $0x8] sm:$0xff] }
  0x73   : > { %v2560_v15 = vmax.f32 %v5009_v1, %v2536_v9  ;;  %v2709_v48 = vsel %vm1516_vm15, %v2681_v43, %v7315_v29  ;;  %v5063_v47 = vsel %vm1516_vm15, %v7316_v28, %v2681_v43  ;;  %3817 = vmatprep.mubr.msk.bf16.mxu1 %vm7382_vm6, %v2130_v36  ;;  %v7314_v21 = vrot.slane %v5016_v32, 2 }
  0x74   : > { %7563 = vst [vmem:[#allocation47_spill] sm:$0xff] %v5063_v47  ;;  %v2657_v57 = vmax.f32 %v2561_v18, %v2614_v11  ;;  %v2729_v54 = vsel %vm7311_vm14, %v2709_v48, -inf  ;;  %v5070_v42 = vmax.f32 %v798_v12, %v5002_v49  ;;  %v7565_v9 = vrot.slane %v4416_v38, 6  ;;  %v7584_v47 = vld [vmem:[#allocation9_spill] sm:$0xff] }
  0x75   : > { %v5072_v24 = vmax.f32 %v2560_v15, %v2632_v17  ;;  %v7566_v36 = vrot.slane %v4416_v38, 7  ;;  %vm7355_vm14 = vcmp.lt.s32.totalorder %v5020_v8, 16  ;;  %v2805_v11 = vsel %vm1837_vm12, %v7312_v7, %v7314_v21  ;;  %v223_v7 = vld [vmem:[%s4259_s9 + $0x10] sm:$0xff]  ;;  %v226_v21 = vld [vmem:[%s4259_s9 + $0x28] sm:$0xff] }
  0x76   : > { %v887_v43 = vsel %vm874_vm2, %v7565_v9, %v7324_v3  ;;  %v2753_v12 = vmax.f32 %v2657_v57, %v2729_v54  ;;  %v7322_v15 = vrot.slane %v5070_v42, 1  ;;  %v2825_v17 = vsel %vm7313_vm13, %v2805_v11, -inf  ;;  %v222_v11 = vld [vmem:[%s4259_s9 + $0x8] sm:$0xff]  ;;  %v7578_v3 = vld [vmem:[#allocation6_spill] sm:$0xff] }
  0x77   : > { %7564 = vst [vmem:[#allocation48_spill] sm:$0xff] %v5072_v24  ;;  %v1208_v18 = vsel %vm1195_vm9, %v7566_v36, %v7323_v40  ;;  %v1150_v13 = vmax.f32 %v4419_v39, %v887_v43  ;;  %v7321_v48 = vrot.slane %v5070_v42, 2  ;;  %v5100_v57 = vadd.s32 2, %v455_v53  ;;  %v224_v53 = vld [vmem:[%s4259_s9 + $0x18] sm:$0xff] }
  0x78   : > { %v5102_v54 = vmax.f32 %v2753_v12, %v2825_v17  ;;  %v7569_v43 = vrot.slane %v4419_v39, 1  ;;  %v2395_v38 = vmax.f32 %v4921_v22, %v4931_v25  ;;  %v2397_v17 = vmax.f32 %v4931_v25, %v4942_v19 }
  0x79   : > { %7567 = vst [vmem:[#allocation49_spill] sm:$0xff] %v5100_v57  ;;  %v1471_v9 = vmax.f32 %v1150_v13, %v1208_v18  ;;  %v7570_v18 = vrot.slane %v4419_v39, 2  ;;  %vm7354_vm13 = vcmp.lt.s32.totalorder %v5100_v57, 16  ;;  %v5190_v40 = vadd.s32 40, %v4159_v4 }
  0x7a   : > { %7568 = vst [vmem:[#allocation50_spill] sm:$0xff] %v5102_v54  ;;  %v1528_v36 = vsel %vm1516_vm15, %v7569_v43, %v7322_v15  ;;  %v225_v43 = vld [vmem:[%s4259_s9 + $0x20] sm:$0xff]  ;;  %v2419_v41 = vmax.f32 %v2395_v38, %v4942_v19  ;;  %v238_v15 = vsel %vm4270_vm1, %v222_v11, -inf  ;;  %v5158_v11 = vsel %vm7381_vm5, %v257_v55, -inf }
  0x7b   : > { %v1760_v12 = vsel %vm7355_vm14, %v1528_v36, -inf  ;;  %v1849_v13 = vsel %vm1837_vm12, %v7570_v18, %v7321_v48  ;;  %v2399_v36 = vmax.f32 %v4942_v19, %v4952_v46  ;;  %v5137_v18 = vmax.f32 %v2397_v17, %v4952_v46  ;;  %7574 = vst [vmem:[#allocation53_spill] sm:$0xff] %v5158_v11 }
  0x7c   : > { %v1792_v29 = vmax.f32 %v1471_v9, %v1760_v12  ;;  %v2081_v28 = vsel %vm7354_vm13, %v1849_v13, -inf  ;;  %v5143_v9 = vsel %vm4270_vm1, %v223_v7, -inf  ;;  %v240_v12 = vsel %vm4270_vm1, %v224_v53, -inf }
  0x7d   : > { %7572 = vst [vmem:[#allocation51_spill] sm:$0xff] %v5143_v9  ;;  %v2443_v19 = vmax.f32 %v2419_v41, %v4952_v46  ;;  %v5152_v38 = vsel %vm4270_vm1, %v225_v43, -inf  ;;  %v242_v17 = vsel %vm4270_vm1, %v226_v21, -inf  ;;  %v5162_v7 = vsel %vm7381_vm5, %v258_v58, -inf }
  0x7e   : > { %v5147_v13 = vmax.f32 %v1792_v29, %v2081_v28  ;;  %7573 = vst [vmem:[#allocation52_spill] sm:$0xff] %v5152_v38  ;;  %7575 = vst [vmem:[#allocation54_spill] sm:$0xff] %v5162_v7  ;;  %v5166_v28 = vsel %vm7381_vm5, %v259_v35, -inf  ;;  %v5169_v41 = vadd.s32 16, %v4159_v4  ;;  %v5184_v35 = vadd.s32 24, %v4159_v4 }
  0x7f   : > { %7576 = vst [vmem:[#allocation55_spill] sm:$0xff] %v5166_v28  ;;  %v5187_v43 = vadd.s32 32, %v4159_v4  ;;  %v5197_v21 = vadd.s32 160, %v4159_v4  ;;  %v5203_v58 = vadd.s32 176, %v4159_v4  ;;  %v715_v8 = vmax.f32 %v238_v15, %v240_v12 }
  0x80   : > { %v2131_v29 = vpack.c.bf16 %v5147_v13, %v4957_v34  ;;  %v5176_v55 = vmax.f32 %v2399_v36, %v5147_v13  ;;  %v5181_v53 = vmax.f32 %v2443_v19, %v5147_v13  ;;  %v5194_v36 = vadd.s32 48, %v4159_v4 }
  0x81   : > { %v5200_v19 = vadd.s32 168, %v4159_v4  ;;  %v716_v62 = vmax.f32 %v5143_v9, %v5152_v38  ;;  %v717_v46 = vmax.f32 %v240_v12, %v242_v17  ;;  %v718_v37 = vmax.f32 %v5152_v38, %v7578_v3  ;;  %v7583_v12 = vld [vmem:[#allocation8_spill] sm:$0xff] }
  0x82   : > { %7577 = vst [vmem:[#allocation56_spill] sm:$0xff] %v5176_v55  ;;  %3818 = vmatmul.mubr.msk.bf16.gmra.mrb[8].mxu1 %vm7382_vm6, %v2131_v29  ;;  %v719_v14 = vmax.f32 %v242_v17, %v7579_v16  ;;  %v7580_v55 = vld [vmem:[#allocation12_spill] sm:$0xff]  ;;  %v736_v26 = vmax.f32 %v4340_v52, %v4362_v56  ;;  %v747_v57 = vmax.f32 %v715_v8, %v242_v17  ;;  %v7586_v17 = vld [vmem:[#allocation10_spill] sm:$0xff]  ;;  %v7605_v1 = vrot.slane %v4419_v39, 7 }
  0x83   : > { %v7581_v29 = vld [vmem:[#allocation4_spill] sm:$0xff]  ;;  %v737_v48 = vmax.f32 %v7580_v55, %v7582_v59  ;;  %v748_v15 = vmax.f32 %v716_v62, %v7578_v3  ;;  %v749_v9 = vmax.f32 %v717_v46, %v7579_v16  ;;  %v750_v54 = vmax.f32 %v718_v37, %v7583_v12 }
  0x84   : > { %v735_v45 = vmax.f32 %v7581_v29, %v7580_v55  ;;  %v751_v38 = vmax.f32 %v719_v14, %v7584_v47  ;;  %v768_v60 = vmax.f32 %v736_v26, %v7560_v63  ;;  %v7585_v29 = vld [vmem:[#allocation15_spill] sm:$0xff]  ;;  %v779_v52 = vmax.f32 %v747_v57, %v7579_v16  ;;  %v7588_v26 = vld [vmem:[#allocation2_spill] sm:$0xff] }
  0x85   : > { %v769_v0 = vmax.f32 %v737_v48, %v7585_v29  ;;  %v780_v56 = vmax.f32 %v748_v15, %v7583_v12  ;;  %v781_v8 = vmax.f32 %v749_v9, %v7584_v47  ;;  %v782_v62 = vmax.f32 %v750_v54, %v7586_v17  ;;  %v7587_v55 = vld [vmem:[#allocation11_spill] sm:$0xff] }
  0x86   : > { %v767_v24 = vmax.f32 %v735_v45, %v7582_v59  ;;  %v783_v46 = vmax.f32 %v751_v38, %v7587_v55  ;;  %v800_v14 = vmax.f32 %v768_v60, %v5002_v49  ;;  %v5240_v45 = vmax.f32 %v779_v52, %v7584_v47  ;;  %v7589_v57 = vld [vmem:[#allocation3_spill] sm:$0xff] }
  0x87   : > { %v801_v59 = vmax.f32 %v769_v0, %v5158_v11  ;;  %v5243_v63 = vmax.f32 %v780_v56, %v7586_v17  ;;  %v5246_v16 = vmax.f32 %v781_v8, %v7587_v55  ;;  %v5249_v48 = vmax.f32 %v782_v62, %v7588_v26 }
  0x88   : > { %v799_v37 = vmax.f32 %v767_v24, %v7585_v29  ;;  %v5252_v54 = vmax.f32 %v783_v46, %v7589_v57  ;;  %v5258_v60 = vmax.f32 %v800_v14, %v5162_v7  ;;  %v7346_v47 = vrot.slane %v5240_v45, 6 }
  0x89   : > { %v5261_v0 = vmax.f32 %v801_v59, %v5166_v28  ;;  %v844_v9 = vrot.slane %v5243_v63, 6  ;;  %v845_v38 = vrot.slane %v5246_v16, 6  ;;  %v846_v15 = vrot.slane %v5249_v48, 6 }
  0x8a   : > { %v5255_v24 = vmax.f32 %v799_v37, %v5158_v11  ;;  %v847_v29 = vrot.slane %v5252_v54, 6  ;;  %v862_v52 = vrot.slane %v5070_v42, 6  ;;  %v7348_v8 = vrot.slane %v5258_v60, 6 }
  0x8b   : > { %v902_v17 = vsel %vm874_vm2, %v845_v38, %v846_v15  ;;  %v903_v62 = vsel %vm874_vm2, %v844_v9, %v845_v38  ;;  %v904_v55 = vsel %vm874_vm2, %v7346_v47, %v844_v9  ;;  %v7590_v46 = vand.u32 15, %v5169_v41 }
  0x8c   : > { %v863_v56 = vrot.slane %v5255_v24, 6  ;;  %v7592_v26 = vrot.slane %v4419_v39, 6  ;;  %v7593_v38 = vrot.slane %v4374_v30, 6  ;;  %v7594_v47 = vand.u32 15, %v5187_v43 }
  0x8d   : > { %v5281_v37 = vadd.s32 4294967294, %v7590_v46  ;;  %v901_v46 = vsel %vm874_vm2, %v846_v15, %v847_v29  ;;  %v7598_v3 = vand.u32 15, %v5197_v21  ;;  %v1134_v15 = vmax.f32 %v5246_v16, %v903_v62 }
  0x8e   : > { %v884_v14 = vsel %vm874_vm2, %v863_v56, %v7348_v8  ;;  %v885_v59 = vsel %vm874_vm2, %v862_v52, %v863_v56  ;;  %v886_v57 = vsel %vm874_vm2, %v7592_v26, %v862_v52  ;;  %v900_v9 = vsel %vm874_vm2, %v847_v29, %v7593_v38 }
  0x8f   : > { %7591 = vst [vmem:[#allocation7_spill] sm:$0xff] %v5281_v37  ;;  %v5301_v12 = vadd.s32 4294967294, %v7594_v47  ;;  %v7596_v8 = vand.u32 15, %v5194_v36  ;;  %v5309_v28 = vadd.s32 4294967294, %v7598_v3  ;;  %v7600_v52 = vand.u32 15, %v5203_v58 }
  0x90   : > { %vm7379_vm10 = vcmp.ge.s32.totalorder %v5281_v37, 0  ;;  %v1136_v29 = vmax.f32 %v5252_v54, %v901_v46  ;;  %v1152_v7 = vmax.f32 %v5255_v24, %v885_v59  ;;  %v7602_v59 = vand.u32 15, %v5169_v41 }
  0x91   : > { %7595 = vst [vmem:[#allocation12_spill] sm:$0xff] %v5301_v12  ;;  %v5305_v56 = vadd.s32 4294967294, %v7596_v8  ;;  %7599 = vst [vmem:[#allocation13_spill] sm:$0xff] %v5309_v28  ;;  %v5313_v26 = vadd.s32 4294967294, %v7600_v52  ;;  %vm943_vm3 = vcmp.ge.s32.totalorder %v5301_v12, 0  ;;  %vm7380_vm14 = vcmp.ge.s32.totalorder %v5309_v28, 0 }
  0x92   : > { %v1101_v3 = vsel %vm7379_vm10, %v904_v55, -inf  ;;  %v1103_v47 = vsel %vm943_vm3, %v902_v17, -inf  ;;  %v1119_v62 = vsel %vm7380_vm14, %v886_v57, -inf  ;;  %v1165_v28 = vrot.slane %v5243_v63, 7 }
  0x93   : > { %7597 = vst [vmem:[#allocation4_spill] sm:$0xff] %v5305_v56  ;;  %7601 = vst [vmem:[#allocation9_spill] sm:$0xff] %v5313_v26  ;;  %vm7412_vm13 = vcmp.ge.s32.totalorder %v5305_v56, 0  ;;  %vm7378_vm11 = vcmp.ge.s32.totalorder %v5313_v26, 0  ;;  %v1133_v46 = vmax.f32 %v5243_v63, %v1101_v3  ;;  %v1135_v52 = vmax.f32 %v5249_v48, %v1103_v47 }
  0x94   : > { %v1105_v8 = vsel %vm7412_vm13, %v900_v9, -inf  ;;  %v1121_v38 = vsel %vm7378_vm11, %v884_v14, -inf  ;;  %v1151_v37 = vmax.f32 %v5070_v42, %v1119_v62  ;;  %v1166_v57 = vrot.slane %v5246_v16, 7 }
  0x95   : > { %v1137_v55 = vmax.f32 %v4374_v30, %v1105_v8  ;;  %v1153_v17 = vmax.f32 %v5258_v60, %v1121_v38  ;;  %v1167_v14 = vrot.slane %v5249_v48, 7  ;;  %v1168_v3 = vrot.slane %v5252_v54, 7 }
  0x96   : > { %v1183_v47 = vrot.slane %v5070_v42, 7  ;;  %v1184_v8 = vrot.slane %v5255_v24, 7  ;;  %v7375_v62 = vrot.slane %v5258_v60, 7  ;;  %v5348_v26 = vadd.s32 4294967295, %v7602_v59 }
  0x97   : > { %v7604_v38 = vrot.slane %v4374_v30, 7  ;;  %v1222_v11 = vsel %vm1195_vm9, %v1167_v14, %v1168_v3  ;;  %v1223_v49 = vsel %vm1195_vm9, %v1166_v57, %v1167_v14  ;;  %v1224_v20 = vsel %vm1195_vm9, %v1165_v28, %v1166_v57 }
  0x98   : > { %7603 = vst [vmem:[#allocation15_spill] sm:$0xff] %v5348_v26  ;;  %v1205_v41 = vsel %vm1195_vm9, %v1184_v8, %v7375_v62  ;;  %v1206_v59 = vsel %vm1195_vm9, %v1183_v47, %v1184_v8  ;;  %v7607_v57 = vand.u32 15, %v5187_v43  ;;  %v7609_v33 = vand.u32 15, %v5194_v36 }
  0x99   : > { %v1221_v9 = vsel %vm1195_vm9, %v1168_v3, %v7604_v38  ;;  %v1207_v38 = vsel %vm1195_vm9, %v7605_v1, %v1183_v47  ;;  %v7606_v3 = vrot.slane %v5240_v45, 7  ;;  %v7611_v8 = vand.u32 15, %v5197_v21 }
  0x9a   : > { %v5376_v6 = vadd.s32 4294967295, %v7607_v57  ;;  %v5380_v62 = vadd.s32 4294967295, %v7609_v33  ;;  %v7612_v39 = vand.u32 15, %v5203_v58  ;;  %vm7386_vm11 = vcmp.ge.s32.totalorder %v5348_v26, 0 }
  0x9b   : > { %v1225_v14 = vsel %vm1195_vm9, %v7606_v3, %v1165_v28  ;;  %v5384_v56 = vadd.s32 4294967295, %v7611_v8  ;;  %v5391_v47 = vmax.f32 %v1134_v15, %v1224_v20  ;;  %v5393_v28 = vmax.f32 %v1136_v29, %v1222_v11 }
  0x9c   : > { %7608 = vst [vmem:[#allocation10_spill] sm:$0xff] %v5376_v6  ;;  %7610 = vst [vmem:[#allocation11_spill] sm:$0xff] %v5380_v62  ;;  %v5388_v1 = vadd.s32 4294967295, %v7612_v39  ;;  %v5395_v43 = vmax.f32 %v1152_v7, %v1206_v59  ;;  %vm1264_vm10 = vcmp.ge.s32.totalorder %v5376_v6, 0  ;;  %vm7408_vm14 = vcmp.ge.s32.totalorder %v5380_v62, 0 }
  0x9d   : > { %vm7388_vm5 = vcmp.ge.s32.totalorder %v5384_v56, 0  ;;  %v1422_v33 = vsel %vm7386_vm11, %v1225_v14, -inf  ;;  %v1424_v21 = vsel %vm1264_vm10, %v1223_v49, -inf  ;;  %v1426_v20 = vsel %vm7408_vm14, %v1221_v9, -inf }
  0x9e   : > { %7613 = vst [vmem:[#allocation2_spill] sm:$0xff] %v5388_v1  ;;  %vm7384_vm6 = vcmp.ge.s32.totalorder %v5388_v1, 0  ;;  %v1440_v11 = vsel %vm7388_vm5, %v1207_v38, -inf  ;;  %v1454_v58 = vmax.f32 %v1133_v46, %v1422_v33  ;;  %v1456_v36 = vmax.f32 %v1135_v52, %v1424_v21 }
  0x9f   : > { %v1442_v7 = vsel %vm7384_vm6, %v1205_v41, -inf  ;;  %v1458_v15 = vmax.f32 %v1137_v55, %v1426_v20  ;;  %v1472_v29 = vmax.f32 %v1151_v37, %v1440_v11  ;;  %v7383_v3 = vrot.slane %v5243_v63, 1 }
  0xa0   : > { %v1474_v59 = vmax.f32 %v1153_v17, %v1442_v7  ;;  %v1487_v14 = vrot.slane %v5246_v16, 1  ;;  %v1488_v49 = vrot.slane %v5249_v48, 1  ;;  %v1489_v57 = vrot.slane %v5252_v54, 1 }
  0xa1   : > { %v1490_v9 = vrot.slane %v4374_v30, 1  ;;  %v1505_v38 = vrot.slane %v5255_v24, 1  ;;  %v1506_v8 = vrot.slane %v5258_v60, 1  ;;  %v7387_v46 = vrot.slane %v5261_v0, 1 }
  0xa2   : > { %v1545_v37 = vsel %vm1516_vm15, %v7383_v3, %v1487_v14  ;;  %v7614_v52 = vand.u32 15, %v5184_v35  ;;  %v7616_v17 = vrot.slane %v5070_v42, 1  ;;  %v7617_v39 = vrot.slane %v4377_v27, 1 }
  0xa3   : > { %v1542_v21 = vsel %vm1516_vm15, %v1489_v57, %v1490_v9  ;;  %v1543_v20 = vsel %vm1516_vm15, %v1488_v49, %v1489_v57  ;;  %v1525_v11 = vsel %vm1516_vm15, %v1506_v8, %v7387_v46  ;;  %v1526_v7 = vsel %vm1516_vm15, %v1505_v38, %v1506_v8 }
  0xa4   : > { %v5425_v55 = vadd.s32 1, %v7614_v52  ;;  %v1527_v41 = vsel %vm1516_vm15, %v7616_v17, %v1505_v38  ;;  %v1541_v33 = vsel %vm1516_vm15, %v1490_v9, %v7617_v39  ;;  %v1544_v52 = vsel %vm1516_vm15, %v1487_v14, %v1488_v49 }
  0xa5   : > { %v7618_v17 = vand.u32 15, %v5190_v40  ;;  %v7620_v9 = vand.u32 15, %v5200_v19  ;;  %v1775_v57 = vmax.f32 %v1454_v58, %v1545_v37  ;;  %v1777_v1 = vmax.f32 %v1456_v36, %v1543_v20 }
  0xa6   : > { %7615 = vst [vmem:[#allocation3_spill] sm:$0xff] %v5425_v55  ;;  %vm1616_vm6 = vcmp.lt.s32.totalorder %v5425_v55, 16  ;;  %v1779_v8 = vmax.f32 %v1458_v15, %v1541_v33  ;;  %v1793_v46 = vmax.f32 %v1472_v29, %v1527_v41  ;;  %v7393_v36 = vrot.slane %v5243_v63, 2 }
  0xa7   : > { %v5449_v39 = vadd.s32 1, %v7618_v17  ;;  %v5453_v3 = vadd.s32 1, %v7620_v9  ;;  %v1744_v38 = vsel %vm1616_vm6, %v1544_v52, -inf  ;;  %v1795_v17 = vmax.f32 %v1474_v59, %v1525_v11 }
  0xa8   : > { %v1776_v49 = vmax.f32 %v5391_v47, %v1744_v38  ;;  %v1808_v37 = vrot.slane %v5246_v16, 2  ;;  %v1809_v29 = vrot.slane %v5249_v48, 2  ;;  %v1810_v41 = vrot.slane %v5252_v54, 2 }
  0xa9   : > { %7619 = vst [vmem:[#allocation57_spill] sm:$0xff] %v5449_v39  ;;  %vm7445_vm11 = vcmp.lt.s32.totalorder %v5449_v39, 16  ;;  %vm7389_vm5 = vcmp.lt.s32.totalorder %v5453_v3, 16  ;;  %v1811_v33 = vrot.slane %v4374_v30, 2  ;;  %v1826_v47 = vrot.slane %v5255_v24, 2 }
  0xaa   : > { %v1746_v14 = vsel %vm7445_vm11, %v1542_v21, -inf  ;;  %v1762_v9 = vsel %vm7389_vm5, %v1526_v7, -inf  ;;  %v1827_v59 = vrot.slane %v5258_v60, 2  ;;  %v7394_v21 = vrot.slane %v5261_v0, 2 }
  0xab   : > { %v1778_v58 = vmax.f32 %v5393_v28, %v1746_v14  ;;  %v1794_v15 = vmax.f32 %v5395_v43, %v1762_v9  ;;  %v1866_v28 = vsel %vm1837_vm12, %v7393_v36, %v1808_v37  ;;  %v7621_v16 = vrot.slane %v4377_v27, 2 }
  0xac   : > { %v1863_v54 = vsel %vm1837_vm12, %v1810_v41, %v1811_v33  ;;  %v1864_v30 = vsel %vm1837_vm12, %v1809_v29, %v1810_v41  ;;  %v1865_v24 = vsel %vm1837_vm12, %v1808_v37, %v1809_v29  ;;  %v1846_v43 = vsel %vm1837_vm12, %v1827_v59, %v7394_v21 }
  0xad   : > { %v1862_v48 = vsel %vm1837_vm12, %v1811_v33, %v7621_v16  ;;  %v1847_v27 = vsel %vm1837_vm12, %v1826_v47, %v1827_v59  ;;  %v7622_v20 = vrot.slane %v5070_v42, 2  ;;  %v7623_v7 = vand.u32 15, %v5184_v35 }
  0xae   : > { %v7625_v38 = vand.u32 15, %v5190_v40  ;;  %v7627_v9 = vand.u32 15, %v5200_v19  ;;  %v5511_v29 = vmax.f32 %v1775_v57, %v1866_v28  ;;  %v5513_v41 = vmax.f32 %v1777_v1, %v1864_v30 }
  0xaf   : > { %v1848_v11 = vsel %vm1837_vm12, %v7622_v20, %v1826_v47  ;;  %v5501_v52 = vadd.s32 2, %v7623_v7  ;;  %v5516_v42 = vmax.f32 %v1779_v8, %v1862_v48  ;;  %v5520_v35 = vmax.f32 %v1795_v17, %v1846_v43 }
  0xb0   : > { %v5505_v14 = vadd.s32 2, %v7625_v38  ;;  %v5509_v37 = vadd.s32 2, %v7627_v9  ;;  %7628 = vst [vmem:[#allocation60_spill] sm:$0xff] %v5511_v29  ;;  %7629 = vst [vmem:[#allocation61_spill] sm:$0xff] %v5513_v41  ;;  %v5518_v33 = vmax.f32 %v1793_v46, %v1848_v11  ;;  %v2386_v19 = vmax.f32 %v5511_v29, %v5513_v41 }
  0xb1   : > { %7624 = vst [vmem:[#allocation58_spill] sm:$0xff] %v5501_v52  ;;  %vm1937_vm5 = vcmp.lt.s32.totalorder %v5501_v52, 16  ;;  %7630 = vst [vmem:[#allocation62_spill] sm:$0xff] %v5516_v42  ;;  %v2388_v8 = vmax.f32 %v5513_v41, %v5516_v42  ;;  %v2390_v59 = vmax.f32 %v5516_v42, %v4877_v31  ;;  %v2396_v28 = vmax.f32 %v4926_v5, %v4936_v61 }
  0xb2   : > { %7626 = vst [vmem:[#allocation59_spill] sm:$0xff] %v5505_v14  ;;  %vm7434_vm8 = vcmp.lt.s32.totalorder %v5505_v14, 16  ;;  %vm7392_vm7 = vcmp.lt.s32.totalorder %v5509_v37, 16  ;;  %v2065_v40 = vsel %vm1937_vm5, %v1865_v24, -inf  ;;  %v2398_v16 = vmax.f32 %v4936_v61, %v4947_v50  ;;  %v7689_v14 = vld [vmem:[#allocation55_spill] sm:$0xff] }
  0xb3   : > { %v2067_v1 = vsel %vm7434_vm8, %v1863_v54, -inf  ;;  %v2083_v57 = vsel %vm7392_vm7, %v1847_v27, -inf  ;;  %v5532_v46 = vmax.f32 %v1776_v49, %v2065_v40  ;;  %v2410_v48 = vmax.f32 %v2386_v19, %v5516_v42  ;;  %v7644_v42 = vld [vmem:[#allocation23_spill] sm:$0xff] }
  0xb4   : > { %v5536_v17 = vmax.f32 %v1778_v58, %v2067_v1  ;;  %v5538_v47 = vmax.f32 %v1794_v15, %v2083_v57  ;;  %v2412_v49 = vmax.f32 %v2388_v8, %v4877_v31  ;;  %v2490_v54 = vrot.slane %v5016_v32, 6 }
  0xb5   : > { %7631 = vst [vmem:[#allocation63_spill] sm:$0xff] %v5532_v46  ;;  %v2414_v30 = vmax.f32 %v2390_v59, %v4882_v10  ;;  %v2420_v24 = vmax.f32 %v2396_v28, %v4947_v50  ;;  %v2422_v43 = vmax.f32 %v2398_v16, %v4957_v34  ;;  %v2434_v27 = vmax.f32 %v2410_v48, %v4877_v31 }
  0xb6   : > { %7632 = vst [vmem:[#allocation64_spill] sm:$0xff] %v5536_v17  ;;  %v2387_v58 = vmax.f32 %v5532_v46, %v5536_v17  ;;  %v2389_v15 = vmax.f32 %v5536_v17, %v4911_v51  ;;  %v2436_v20 = vmax.f32 %v2412_v49, %v4882_v10  ;;  %v7633_v11 = vmax.f32 %v5137_v18, %v5147_v13 }
  0xb7   : > { %v2438_v40 = vmax.f32 %v2414_v30, %v4926_v5  ;;  %v2444_v19 = vmax.f32 %v2420_v24, %v4957_v34  ;;  %v2446_v1 = vmax.f32 %v2422_v43, %v5518_v33  ;;  %v5570_v57 = vmax.f32 %v2434_v27, %v4882_v10 }
  0xb8   : > { %v5562_v7 = vmax.f32 %v7633_v11, %v5538_v47  ;;  %v2411_v38 = vmax.f32 %v2387_v58, %v4911_v51  ;;  %v2413_v9 = vmax.f32 %v2389_v15, %v4916_v2  ;;  %v5573_v8 = vmax.f32 %v2436_v20, %v4926_v5 }
  0xb9   : > { %v2491_v18 = vrot.slane %v5181_v53, 6  ;;  %v5579_v16 = vmax.f32 %v2438_v40, %v4936_v61  ;;  %v5582_v48 = vmax.f32 %v2444_v19, %v5518_v33  ;;  %v5585_v49 = vmax.f32 %v2446_v1, %v5520_v35 }
  0xba   : > { %v2435_v59 = vmax.f32 %v2411_v38, %v4916_v2  ;;  %v2437_v28 = vmax.f32 %v2413_v9, %v4921_v22  ;;  %v7396_v10 = vrot.slane %v5570_v57, 6  ;;  %v2484_v5 = vrot.slane %v5573_v8, 6 }
  0xbb   : > { %v7395_v58 = vrot.slane %v5562_v7, 6  ;;  %v2486_v61 = vrot.slane %v5579_v16, 6  ;;  %v2492_v24 = vrot.slane %v5582_v48, 6  ;;  %v2516_v43 = vsel %vm874_vm2, %v2490_v54, %v2491_v18 }
  0xbc   : > { %v5591_v15 = vmax.f32 %v2435_v59, %v4921_v22  ;;  %v5594_v30 = vmax.f32 %v2437_v28, %v4931_v25  ;;  %v7634_v27 = vrot.slane %v5012_v23, 6  ;;  %v2580_v22 = vrot.slane %v5573_v8, 7  ;;  %v7637_v28 = vld [vmem:[#allocation18_spill] sm:$0xff] }
  0xbd   : > { %v2514_v9 = vsel %vm874_vm2, %v2492_v24, %v7395_v58  ;;  %v2515_v40 = vsel %vm874_vm2, %v2491_v18, %v2492_v24  ;;  %v7635_v19 = vrot.slane %v5006_v44, 6  ;;  %vm7638_vm7 = vcmp.ge.s32.totalorder %v7637_v28, 0 }
  0xbe   : > { %v2517_v20 = vsel %vm874_vm2, %v7634_v27, %v2490_v54  ;;  %v2483_v38 = vrot.slane %v5591_v15, 6  ;;  %v2485_v25 = vrot.slane %v5594_v30, 6  ;;  %v2540_v27 = vsel %vm7638_vm7, %v2515_v40, -inf }
  0xbf   : > { %v2520_v54 = vsel %vm874_vm2, %v2486_v61, %v7635_v19  ;;  %v2538_v59 = vsel %vm7404_vm4, %v2517_v20, -inf  ;;  %v2563_v36 = vmax.f32 %v5181_v53, %v2516_v43  ;;  %v7641_v31 = vrot.slane %v5012_v23, 7 }
  0xc0   : > { %v2521_v21 = vsel %vm874_vm2, %v2485_v25, %v2486_v61  ;;  %v2522_v58 = vsel %vm874_vm2, %v2484_v5, %v2485_v25  ;;  %v2523_v18 = vsel %vm874_vm2, %v2483_v38, %v2484_v5  ;;  %v2524_v24 = vsel %vm874_vm2, %v7396_v10, %v2483_v38 }
  0xc1   : > { %v2532_v20 = vsel %vm943_vm3, %v2523_v18, -inf  ;;  %v2534_v43 = vsel %vm7412_vm13, %v2521_v21, -inf  ;;  %v2555_v19 = vmax.f32 %v5591_v15, %v2524_v24  ;;  %v2557_v61 = vmax.f32 %v5594_v30, %v2522_v58 }
  0xc2   : > { %v2556_v25 = vmax.f32 %v5573_v8, %v2532_v20  ;;  %v2558_v11 = vmax.f32 %v5579_v16, %v2534_v43  ;;  %v2559_v5 = vmax.f32 %v5006_v44, %v2520_v54  ;;  %v2562_v28 = vmax.f32 %v5016_v32, %v2538_v59 }
  0xc3   : > { %v2564_v38 = vmax.f32 %v5582_v48, %v2540_v27  ;;  %v2565_v10 = vmax.f32 %v5562_v7, %v2514_v9  ;;  %v2579_v18 = vrot.slane %v5591_v15, 7  ;;  %v2581_v21 = vrot.slane %v5594_v30, 7 }
  0xc4   : > { %v2582_v24 = vrot.slane %v5579_v16, 7  ;;  %v2586_v58 = vrot.slane %v5016_v32, 7  ;;  %v2587_v20 = vrot.slane %v5181_v53, 7  ;;  %v2588_v43 = vrot.slane %v5582_v48, 7 }
  0xc5   : > { %v2618_v59 = vsel %vm1195_vm9, %v2580_v22, %v2581_v21  ;;  %v2619_v9 = vsel %vm1195_vm9, %v2579_v18, %v2580_v22  ;;  %v7640_v27 = vrot.slane %v5570_v57, 7  ;;  %v7642_v2 = vrot.slane %v5006_v44, 7 }
  0xc6   : > { %v2611_v40 = vsel %vm1195_vm9, %v2587_v20, %v2588_v43  ;;  %v2612_v26 = vsel %vm1195_vm9, %v2586_v58, %v2587_v20  ;;  %v2613_v54 = vsel %vm1195_vm9, %v7641_v31, %v2586_v58  ;;  %v7643_v12 = vrot.slane %v5562_v7, 7  ;;  %v7646_v58 = vld [vmem:[#allocation24_spill] sm:$0xff] }
  0xc7   : > { %v2620_v1 = vsel %vm1195_vm9, %v7640_v27, %v2579_v18  ;;  %v2616_v22 = vsel %vm1195_vm9, %v2582_v24, %v7642_v2  ;;  %v2617_v27 = vsel %vm1195_vm9, %v2581_v21, %v2582_v24  ;;  %v2628_v20 = vsel %vm1264_vm10, %v2619_v9, -inf }
  0xc8   : > { %v2610_v18 = vsel %vm1195_vm9, %v2588_v43, %v7643_v12  ;;  %vm7645_vm7 = vcmp.ge.s32.totalorder %v7644_v42, 0  ;;  %v2630_v31 = vsel %vm7408_vm14, %v2617_v27, -inf  ;;  %vm7647_vm4 = vcmp.ge.s32.totalorder %v7646_v58, 0  ;;  %v7655_v42 = vld [vmem:[#allocation31_spill] sm:$0xff] }
  0xc9   : > { %v2634_v51 = vsel %vm7645_vm7, %v2613_v54, -inf  ;;  %v2636_v2 = vsel %vm7647_vm4, %v2611_v40, -inf  ;;  %v5686_v41 = vmax.f32 %v2555_v19, %v2620_v1  ;;  %v5688_v17 = vmax.f32 %v2556_v25, %v2628_v20 }
  0xca   : > { %v5690_v12 = vmax.f32 %v2557_v61, %v2618_v59  ;;  %v5692_v43 = vmax.f32 %v2558_v11, %v2630_v31  ;;  %v5694_v21 = vmax.f32 %v2559_v5, %v2616_v22  ;;  %v5696_v24 = vmax.f32 %v2562_v28, %v2634_v51 }
  0xcb   : > { %v5698_v9 = vmax.f32 %v2563_v36, %v2612_v26  ;;  %v5700_v54 = vmax.f32 %v2564_v38, %v2636_v2  ;;  %v5702_v27 = vmax.f32 %v2565_v10, %v2610_v18  ;;  %v7410_v40 = vrot.slane %v5591_v15, 1  ;;  %v7648_v10 = vld [vmem:[#allocation46_spill] sm:$0xff] }
  0xcc   : > { %v2676_v1 = vrot.slane %v5573_v8, 1  ;;  %v2677_v19 = vrot.slane %v5594_v30, 1  ;;  %v2678_v61 = vrot.slane %v5579_v16, 1  ;;  %v2679_v11 = vrot.slane %v5006_v44, 1 }
  0xcd   : > { %v2683_v25 = vrot.slane %v5181_v53, 1  ;;  %v2684_v51 = vrot.slane %v5582_v48, 1  ;;  %v2685_v26 = vrot.slane %v5562_v7, 1  ;;  %v7407_v36 = vrot.slane %v5585_v49, 1 }
  0xce   : > { %v7649_v28 = vrot.slane %v7648_v10, 1  ;;  %v2712_v38 = vsel %vm1516_vm15, %v2678_v61, %v2679_v11  ;;  %v2713_v59 = vsel %vm1516_vm15, %v2677_v19, %v2678_v61  ;;  %v2714_v22 = vsel %vm1516_vm15, %v2676_v1, %v2677_v19 }
  0xcf   : > { %v2705_v18 = vsel %vm1516_vm15, %v2685_v26, %v7407_v36  ;;  %v2706_v20 = vsel %vm1516_vm15, %v2684_v51, %v2685_v26  ;;  %v2707_v31 = vsel %vm1516_vm15, %v2683_v25, %v2684_v51  ;;  %v7650_v2 = vrot.slane %v5016_v32, 1  ;;  %v7653_v26 = vld [vmem:[#allocation30_spill] sm:$0xff] }
  0xd0   : > { %v2711_v5 = vsel %vm1516_vm15, %v2679_v11, %v7649_v28  ;;  %v2715_v19 = vsel %vm1516_vm15, %v7410_v40, %v2676_v1  ;;  %v2725_v61 = vsel %vm7445_vm11, %v2713_v59, -inf  ;;  %v7651_v28 = vld [vmem:[#allocation28_spill] sm:$0xff]  ;;  %vm7654_vm7 = vcmp.lt.s32.totalorder %v7653_v26, 16 }
  0xd1   : > { %v2708_v11 = vsel %vm1516_vm15, %v7650_v2, %v2683_v25  ;;  %vm7652_vm4 = vcmp.lt.s32.totalorder %v7651_v28, 16  ;;  %v2731_v58 = vsel %vm7654_vm7, %v2707_v31, -inf  ;;  %v2723_v51 = vsel %vm1616_vm6, %v2715_v19, -inf }
  0xd2   : > { %v2727_v36 = vsel %vm7652_vm4, %v2711_v5, -inf  ;;  %vm7656_vm14 = vcmp.lt.s32.totalorder %v7655_v42, 16  ;;  %v2748_v2 = vmax.f32 %v5688_v17, %v2714_v22  ;;  %v2749_v62 = vmax.f32 %v5690_v12, %v2725_v61 }
  0xd3   : > { %v2733_v25 = vsel %vm7656_vm14, %v2705_v18, -inf  ;;  %v2747_v1 = vmax.f32 %v5686_v41, %v2723_v51  ;;  %v2750_v59 = vmax.f32 %v5692_v43, %v2712_v38  ;;  %v2751_v40 = vmax.f32 %v5694_v21, %v2727_v36  ;;  %v7660_v51 = vld [vmem:[#allocation36_spill] sm:$0xff] }
  0xd4   : > { %v2754_v5 = vmax.f32 %v5696_v24, %v2708_v11  ;;  %v2755_v31 = vmax.f32 %v5698_v9, %v2731_v58  ;;  %v2756_v26 = vmax.f32 %v5700_v54, %v2706_v20  ;;  %v2757_v19 = vmax.f32 %v5702_v27, %v2733_v25 }
  0xd5   : > { %v7413_v18 = vrot.slane %v5591_v15, 2  ;;  %v2772_v17 = vrot.slane %v5573_v8, 2  ;;  %v2773_v12 = vrot.slane %v5594_v30, 2  ;;  %v2774_v41 = vrot.slane %v5579_v16, 2 }
  0xd6   : > { %v2775_v43 = vrot.slane %v5006_v44, 2  ;;  %v2776_v21 = vrot.slane %v7648_v10, 2  ;;  %v2779_v24 = vrot.slane %v5181_v53, 2  ;;  %v2780_v58 = vrot.slane %v5582_v48, 2 }
  0xd7   : > { %v2781_v9 = vrot.slane %v5562_v7, 2  ;;  %v7414_v54 = vrot.slane %v5585_v49, 2  ;;  %v2809_v8 = vsel %vm1837_vm12, %v2773_v12, %v2774_v41  ;;  %v2810_v16 = vsel %vm1837_vm12, %v2772_v17, %v2773_v12  ;;  %v7662_v12 = vld [vmem:[#allocation37_spill] sm:$0xff] }
  0xd8   : > { %v2808_v27 = vsel %vm1837_vm12, %v2774_v41, %v2775_v43  ;;  %v2803_v53 = vsel %vm1837_vm12, %v2779_v24, %v2780_v58  ;;  %v7657_v48 = vrot.slane %v5016_v32, 2  ;;  %v7658_v36 = vrot.slane %v5012_v23, 2 }
  0xd9   : > { %v2802_v44 = vsel %vm1837_vm12, %v2780_v58, %v2781_v9  ;;  %v2801_v38 = vsel %vm1837_vm12, %v2781_v9, %v7414_v54  ;;  %v2807_v22 = vsel %vm1837_vm12, %v2775_v43, %v2776_v21  ;;  %v2811_v32 = vsel %vm1837_vm12, %v7413_v18, %v2772_v17  ;;  %v7669_v9 = vld [vmem:[#allocation48_spill] sm:$0xff] }
  0xda   : > { %v2804_v30 = vsel %vm1837_vm12, %v7657_v48, %v2779_v24  ;;  %v2806_v10 = vsel %vm1837_vm12, %v2776_v21, %v7658_v36  ;;  %v2821_v20 = vsel %vm7434_vm8, %v2809_v8, -inf  ;;  %v2819_v23 = vsel %vm1937_vm5, %v2811_v32, -inf  ;;  %v7670_v8 = vld [vmem:[#allocation47_spill] sm:$0xff] }
  0xdb   : > { %v2823_v61 = vsel %vm7411_vm0, %v2807_v22, -inf  ;;  %vm7661_vm14 = vcmp.lt.s32.totalorder %v7660_v51, 16  ;;  %vm7663_vm4 = vcmp.lt.s32.totalorder %v7662_v12, 16  ;;  %v5806_v43 = vmax.f32 %v2747_v1, %v2819_v23  ;;  %v7688_v12 = vld [vmem:[#allocation54_spill] sm:$0xff] }
  0xdc   : > { %v2827_v25 = vsel %vm7661_vm14, %v2803_v53, -inf  ;;  %v2829_v41 = vsel %vm7663_vm4, %v2801_v38, -inf  ;;  %v5808_v17 = vmax.f32 %v2748_v2, %v2810_v16  ;;  %v5810_v21 = vmax.f32 %v2749_v62, %v2821_v20  ;;  %v4036_v38 = vld [vmem:[%s7238_s1 + $0xc] sm:$0xf] }
  0xdd   : > { %7664 = vst [vmem:[#allocation46_spill] sm:$0xff] %v5806_v43  ;;  %v5812_v24 = vmax.f32 %v2750_v59, %v2808_v27  ;;  %v5814_v58 = vmax.f32 %v2751_v40, %v2823_v61  ;;  %v7671_v48 = vmax.f32 %v7669_v9, %v7670_v8  ;;  %v5821_v53 = vmax.f32 %v2754_v5, %v2804_v30  ;;  %v260_v59 = vld [vmem:[%s4978_s25 + $0x20] sm:$0xff]  ;;  %v261_v27 = vld [vmem:[%s4978_s25 + $0x28] sm:$0xff] }
  0xde   : > { %7665 = vst [vmem:[#allocation65_spill] sm:$0xff] %v5808_v17  ;;  %7666 = vst [vmem:[#allocation66_spill] sm:$0xff] %v5810_v21  ;;  %v5823_v22 = vmax.f32 %v2755_v31, %v2827_v25  ;;  %v5825_v1 = vmax.f32 %v2756_v26, %v2802_v44  ;;  %v5827_v2 = vmax.f32 %v2757_v19, %v2829_v41  ;;  %v4035_v31 = vld [vmem:[%s7238_s1] sm:$0xf]  ;;  %vm7673_vm7 = vcmask 1043456   ;;  %v262_v44 = vld [vmem:[%s4978_s25 + $0x30] sm:$0xff] }
  0xdf   : > { %7667 = vst [vmem:[#allocation67_spill] sm:$0xff] %v5812_v24  ;;  %7668 = vst [vmem:[#allocation68_spill] sm:$0xff] %v5814_v58  ;;  %v5819_v36 = vmax.f32 %v7671_v48, %v2806_v10  ;;  %v2864_v62 = vpack.c.bf16 %v5810_v21, %v5808_v17  ;;  %v3015_v40 = vmax.f32 %v5806_v43, %v5810_v21  ;;  %v2285_v19 = vsel %vm7673_vm7, %v4035_v31, 0  ;;  %v7676_v61 = vld [vmem:[#allocation50_spill] sm:$0xff]  ;;  %v7677_v41 = vld [vmem:[#allocation44_spill] sm:$0xff] }
  0xe0   : > { %v3016_v16 = vmax.f32 %v5808_v17, %v5812_v24  ;;  %v3017_v5 = vmax.f32 %v5810_v21, %v5814_v58  ;;  %vm7674_vm14 = vcmask 64512   ;;  %3826 = vmatpush3.bf16.msra.mxu1 %v2285_v19  ;;  %v2865_v10 = vpack.c.bf16 %v5814_v58, %v5812_v24  ;;  %vm7675_vm4 = vmmov %vm7673_vm7  ;;  %v5881_v31 = vld [vmem:[%s4203_s6 + $0x60] sm:$0xff]  ;;  %v5884_v19 = vld [vmem:[%s4203_s6 + $0x70] sm:$0xff] }
  0xe1   : > { %7672 = vst [vmem:[#allocation48_spill] sm:$0xff] %v5819_v36  ;;  %3845 = vmatprep.mubr.msk.bf16.mxu0 %vm7674_vm14, %v2864_v62  ;;  %v3031_v30 = vmax.f32 %v3015_v40, %v5814_v58  ;;  %v3365_v32 = vsel %vm7675_vm4, %v4036_v38, 0  ;;  %v2132_v20 = vpack.c.bf16 %v5538_v47, %v5518_v33  ;;  %vm7678_vm7 = vcmp.eq.s32.totalorder %v7677_v41, 1  ;;  %7683 = vst [vmem:[#allocation47_spill] sm:$0xff] %v5884_v19 }
  0xe2   : > { %v3032_v23 = vmax.f32 %v3016_v16, %v5819_v36  ;;  %v3033_v25 = vmax.f32 %v3017_v5, %v7676_v61  ;;  %v277_v9 = vsel %vm7678_vm7, %v260_v59, -inf  ;;  %vm7679_vm14 = vmmov %vm7678_vm7  ;;  %vm7680_vm0 = vcmask 64512  }
  0xe3   : > { %v5862_v8 = vsel %vm7679_vm14, %v261_v27, -inf  ;;  %v3047_v48 = vmax.f32 %v3031_v30, %v7676_v61  ;;  %3846 = vmatmul.mubr.msk.bf16.vlgmr.msra.gmra.mrb[0].mxu0 %vm7680_vm0, %v2865_v10  ;;  %vm7681_vm4 = vmmov %vm7680_vm0  ;;  %v5872_v40 = vadd.s32 184, %v4159_v4  ;;  %v310_v59 = vadd.s32 192, %v4159_v4  ;;  %v7687_v10 = vld [vmem:[#allocation53_spill] sm:$0xff] }
  0xe4   : > { %3821 = vmatprep.mubr.msk.bf16.mxu1 %vm7681_vm4, %v2132_v20  ;;  %vm7682_vm13 = vmmov %vm7678_vm7  ;;  %v3048_v27 = vmax.f32 %v3032_v23, %v5821_v53  ;;  %v3049_v16 = vmax.f32 %v3033_v25, %v5823_v22  ;;  %3862 = vmatpush3.bf16.msra.mxu0 %v3365_v32  ;;  %v5878_v5 = vadd.s32 200, %v4159_v4  ;;  %v5893_v20 = vld [vmem:[%s4203_s6 + $0x68] sm:$0xff]  ;;  %v5896_v23 = vld [vmem:[%s4203_s6 + $0x78] sm:$0xff]  ;;  %v744_v51 = vmax.f32 %v7688_v12, %v277_v9 }
  0xe5   : > { %v5869_v62 = vsel %vm7682_vm13, %v262_v44, -inf  ;;  %v738_v44 = vmax.f32 %v5881_v31, %v5884_v19  ;;  %v5889_v30 = vmax.f32 %v3047_v48, %v5823_v22  ;;  %v490_v38 = vand.u32 15, %v310_v59  ;;  %7684 = vst [vmem:[#allocation44_spill] sm:$0xff] %v5896_v23  ;;  %v7686_v48 = vld [vmem:[#allocation45_spill] sm:$0xff] }
  0xe6   : > { %v739_v32 = vmax.f32 %v5893_v20, %v5896_v23  ;;  %v5901_v25 = vmax.f32 %v3048_v27, %v5825_v1  ;;  %v5904_v26 = vmax.f32 %v3049_v16, %v5827_v2  ;;  %v740_v54 = vmax.f32 %v5884_v19, %v7686_v48 }
  0xe7   : > { %v741_v59 = vmax.f32 %v5896_v23, %v7687_v10  ;;  %v742_v42 = vmax.f32 %v7686_v48, %v7688_v12  ;;  %v770_v11 = vmax.f32 %v738_v44, %v7686_v48  ;;  %v865_v28 = vrot.slane %v5261_v0, 6 }
  0xe8   : > { %7685 = vst [vmem:[#allocation69_spill] sm:$0xff] %v5904_v26  ;;  %v771_v27 = vmax.f32 %v739_v32, %v7687_v10  ;;  %v772_v16 = vmax.f32 %v740_v54, %v7688_v12  ;;  %v931_v18 = vadd.s32 4294967294, %v490_v38  ;;  %v5924_v21 = vmax.f32 %v744_v51, %v5869_v62 }
  0xe9   : > { %v5919_v58 = vmax.f32 %v741_v59, %v7689_v14  ;;  %v5921_v39 = vmax.f32 %v742_v42, %v277_v9  ;;  %v802_v17 = vmax.f32 %v770_v11, %v7688_v12  ;;  %v7690_v32 = vrot.slane %v5258_v60, 6 }
  0xea   : > { %v803_v43 = vmax.f32 %v771_v27, %v7689_v14  ;;  %v804_v44 = vmax.f32 %v772_v16, %v277_v9  ;;  %vm963_vm0 = vcmp.ge.s32.totalorder %v931_v18, 0  ;;  %v1186_v27 = vrot.slane %v5261_v0, 7 }
  0xeb   : > { %v883_v54 = vsel %vm874_vm2, %v7690_v32, %v865_v28  ;;  %v834_v59 = vmax.f32 %v802_v17, %v277_v9  ;;  %v1252_v16 = vadd.s32 4294967295, %v490_v38  ;;  %v7691_v48 = vand.u32 15, %v5872_v40 }
  0xec   : > { %v1154_v51 = vmax.f32 %v5261_v0, %v883_v54  ;;  %v5938_v11 = vmax.f32 %v803_v43, %v5862_v8  ;;  %v5941_v12 = vmax.f32 %v804_v44, %v5869_v62  ;;  %v7693_v43 = vrot.slane %v5258_v60, 7 }
  0xed   : > { %v866_v32 = vrot.slane %v834_v59, 6  ;;  %v1187_v6 = vrot.slane %v834_v59, 7  ;;  %v1508_v26 = vrot.slane %v834_v59, 1  ;;  %v5946_v52 = vadd.s32 1, %v7691_v48 }
  0xee   : > { %v7431_v17 = vrot.slane %v5938_v11, 6  ;;  %v1204_v44 = vsel %vm1195_vm9, %v7693_v43, %v1186_v27  ;;  %vm1284_vm13 = vcmp.ge.s32.totalorder %v1252_v16, 0  ;;  %v1509_v48 = vrot.slane %v5938_v11, 1 }
  0xef   : > { %7692 = vst [vmem:[#allocation45_spill] sm:$0xff] %v5946_v52  ;;  %v882_v38 = vsel %vm874_vm2, %v865_v28, %v866_v32  ;;  %v1203_v54 = vsel %vm1195_vm9, %v1186_v27, %v1187_v6  ;;  %v1475_v42 = vmax.f32 %v1154_v51, %v1204_v44  ;;  %v7694_v29 = vrot.slane %v5938_v11, 7 }
  0xf0   : > { %v881_v9 = vsel %vm874_vm2, %v866_v32, %v7431_v17  ;;  %v1123_v60 = vsel %vm963_vm0, %v882_v38, -inf  ;;  %v1444_v43 = vsel %vm1284_vm13, %v1203_v54, -inf  ;;  %v7430_v51 = vrot.slane %v5941_v12, 1 }
  0xf1   : > { %v1202_v16 = vsel %vm1195_vm9, %v1187_v6, %v7694_v29  ;;  %v1155_v28 = vmax.f32 %v834_v59, %v1123_v60  ;;  %v1156_v24 = vmax.f32 %v5938_v11, %v881_v9  ;;  %v1523_v27 = vsel %vm1516_vm15, %v1508_v26, %v1509_v48 }
  0xf2   : > { %v7695_v44 = vrot.slane %v5261_v0, 1  ;;  %v7696_v32 = vand.u32 15, %v5878_v5  ;;  %vm1636_vm7 = vcmp.lt.s32.totalorder %v5946_v52, 16  ;;  %v1829_v6 = vrot.slane %v834_v59, 2  ;;  %v7711_v52 = vld [vmem:[#allocation25_spill] sm:$0xff] }
  0xf3   : > { %v1476_v29 = vmax.f32 %v1155_v28, %v1444_v43  ;;  %v5979_v54 = vmax.f32 %v1156_v24, %v1202_v16  ;;  %v1522_v9 = vsel %vm1516_vm15, %v1509_v48, %v7430_v51  ;;  %v7697_v16 = vrot.slane %v5261_v0, 2 }
  0xf4   : > { %v1524_v18 = vsel %vm1516_vm15, %v7695_v44, %v1508_v26  ;;  %v1574_v38 = vadd.s32 1, %v7696_v32  ;;  %v1830_v44 = vrot.slane %v5938_v11, 2  ;;  %v7429_v32 = vrot.slane %v5941_v12, 2 }
  0xf5   : > { %v1764_v60 = vsel %vm1636_vm7, %v1524_v18, -inf  ;;  %v1797_v24 = vmax.f32 %v1476_v29, %v1523_v27  ;;  %v1845_v48 = vsel %vm1837_vm12, %v7697_v16, %v1829_v6  ;;  %v7698_v43 = vand.u32 15, %v5872_v40 }
  0xf6   : > { %vm1638_vm14 = vcmp.lt.s32.totalorder %v1574_v38, 16  ;;  %v1796_v26 = vmax.f32 %v1475_v42, %v1764_v60  ;;  %v1843_v42 = vsel %vm1837_vm12, %v1830_v44, %v7429_v32  ;;  %v1844_v18 = vsel %vm1837_vm12, %v1829_v6, %v1830_v44  ;;  %v4042_v60 = vld [vmem:[%s4203_s6 + $0x8] sm:$0xff]  ;;  %v4043_v6 = vld [vmem:[%s4203_s6 + $0x10] sm:$0xff]  ;;  %v4044_v44 = vld [vmem:[%s4203_s6 + $0x18] sm:$0xff] }
  0xf7   : > { %v5989_v59 = vsel %vm1638_vm14, %v1522_v9, -inf  ;;  %v5997_v28 = vadd.s32 2, %v7698_v43  ;;  %v7700_v27 = vand.u32 15, %v5878_v5  ;;  %v2866_v38 = vpack.c.bf16 %v7676_v61, %v5819_v36  ;;  %v4041_v9 = vld [vmem:[%s4203_s6] sm:$0xff] }
  0xf8   : > { %v6010_v40 = vmax.f32 %v1797_v24, %v1844_v18  ;;  %v2867_v29 = vpack.c.bf16 %v5823_v22, %v5821_v53  ;;  %v706_v16 = vpack.c.bf16 %v4042_v60, %v4041_v9  ;;  %vm7701_vm13 = vcmask 64512   ;;  %v263_v9 = vld [vmem:[%s4978_s25 + $0x38] sm:$0xff] }
  0xf9   : > { %7699 = vst [vmem:[#allocation53_spill] sm:$0xff] %v5997_v28  ;;  %v1895_v0 = vadd.s32 2, %v7700_v27  ;;  %vm1957_vm4 = vcmp.lt.s32.totalorder %v5997_v28, 16  ;;  %3849 = vmatprep.mubr.msk.bf16.mxu0 %vm7701_vm13, %v2866_v38  ;;  %v707_v24 = vpack.c.bf16 %v4044_v44, %v4043_v6  ;;  %v2868_v43 = vpack.c.bf16 %v5827_v2, %v5825_v1  ;;  %vm7702_vm14 = vmmov %vm7701_vm13  ;;  %v4045_v44 = vld [vmem:[%s4203_s6 + $0x20] sm:$0xff]  ;;  %v7708_v28 = vld [vmem:[#allocation19_spill] sm:$0xff] }
  0xfa   : > { %v2085_v5 = vsel %vm1957_vm4, %v1845_v48, -inf  ;;  %3850 = vmatmul.mubr.msk.bf16.gmra.mrb[4].mxu0 %vm7702_vm14, %v2867_v29  ;;  %v2400_v48 = vmax.f32 %v4947_v50, %v4957_v34  ;;  %v2494_v60 = vrot.slane %v5585_v49, 6  ;;  %v2590_v6 = vrot.slane %v5585_v49, 7  ;;  %vm7707_vm14 = vmmov %vm7701_vm13 }
  0xfb   : > { %vm1959_vm0 = vcmp.lt.s32.totalorder %v1895_v0, 16  ;;  %v6025_v27 = vmax.f32 %v1796_v26, %v2085_v5  ;;  %v7703_v0 = vld [vmem:[#allocation56_spill] sm:$0xff]  ;;  %3853 = vmatprep.mubr.msk.bf16.mxu0 %vm7701_vm13, %v2868_v43  ;;  %v6042_v5 = vld [vmem:[%s4203_s6 + $0x38] sm:$0xff]  ;;  %v7705_v17 = vrot.slane %v5562_v7, 7  ;;  %v312_v43 = vadd.s32 208, %v4159_v4  ;;  %vm7710_vm8 = vmmov %vm7707_vm14 }
  0xfc   : > { %v6023_v18 = vsel %vm1959_vm0, %v1843_v42, -inf  ;;  %v2447_v38 = vmax.f32 %v7703_v0, %v5538_v47  ;;  %v4046_v42 = vld [vmem:[%s4203_s6 + $0x28] sm:$0xff]  ;;  %v6039_v26 = vld [vmem:[%s4203_s6 + $0x30] sm:$0xff]  ;;  %v2424_v0 = vmax.f32 %v2400_v48, %v5518_v33  ;;  %vm7706_vm0 = vcmp.eq.s32.totalorder %v7677_v41, 1 }
  0xfd   : > { %v708_v32 = vpack.c.bf16 %v4046_v42, %v4045_v44  ;;  %v2133_v29 = vpack.c.bf16 %v6025_v27, %v5520_v35  ;;  %v7704_v44 = vrot.slane %v5562_v7, 6  ;;  %v2609_v50 = vsel %vm1195_vm9, %v7705_v17, %v2590_v6 }
  0xfe   : > { %v6052_v51 = vmax.f32 %v2447_v38, %v6025_v27  ;;  %v6064_v61 = vsel %vm7706_vm0, %v263_v9, -inf  ;;  %v2448_v48 = vmax.f32 %v2424_v0, %v5520_v35  ;;  %vm7709_vm13 = vcmp.ge.s32.totalorder %v7708_v28, 0 }
  0xff   : > { %v2513_v42 = vsel %vm874_vm2, %v7704_v44, %v2494_v60  ;;  %3822 = vmatmul.mubr.msk.bf16.gmra.mrb[12].mxu1 %vm7707_vm14, %v2133_v29  ;;  %vm7712_vm0 = vcmp.ge.s32.totalorder %v7711_v52, 0  ;;  %v7723_v55 = vrot.slane %v5938_v11, 7 }
 0x100   : > { %v2495_v38 = vrot.slane %v6052_v51, 6  ;;  %v2542_v44 = vsel %vm7709_vm13, %v2513_v42, -inf  ;;  %v7441_v7 = vrot.slane %v6052_v51, 7  ;;  %3827 = vmatprep.mubr.msk.bf16.mxu1 %vm7710_vm8, %v706_v16  ;;  %v2638_v9 = vsel %vm7712_vm0, %v2609_v50, -inf }
 0x101   : > { %v2566_v17 = vmax.f32 %v5585_v49, %v2542_v44  ;;  %v2687_v36 = vrot.slane %v6052_v51, 1  ;;  %v2783_v29 = vrot.slane %v6052_v51, 2  ;;  %v6080_v0 = vmax.f32 %v2448_v48, %v6010_v40 }
 0x102   : > { %v2512_v28 = vsel %vm874_vm2, %v2494_v60, %v2495_v38  ;;  %v2608_v16 = vsel %vm1195_vm9, %v2590_v6, %v7441_v7  ;;  %v504_v42 = vand.u32 15, %v312_v43  ;;  %v7713_v50 = vrot.slane %v5585_v49, 1 }
 0x103   : > { %v2567_v44 = vmax.f32 %v6052_v51, %v2512_v28  ;;  %v2662_v52 = vmax.f32 %v2566_v17, %v2638_v9  ;;  %v7714_v48 = vrot.slane %v5585_v49, 2  ;;  %v7443_v60 = vrot.slane %v6080_v0, 1 }
 0x104   : > { %v2704_v46 = vsel %vm1516_vm15, %v7713_v50, %v2687_v36  ;;  %v7442_v19 = vrot.slane %v6080_v0, 2  ;;  %v7715_v6 = vmax.f32 %v5919_v58, %v5862_v8  ;;  %v7450_v43 = vrot.slane %v5941_v12, 6 }
 0x105   : > { %v2800_v23 = vsel %vm1837_vm12, %v7714_v48, %v2783_v29  ;;  %v2663_v17 = vmax.f32 %v2567_v44, %v2608_v16  ;;  %v2758_v9 = vmax.f32 %v2662_v52, %v2704_v46  ;;  %v933_v50 = vadd.s32 4294967294, %v504_v42  ;;  %v7717_v16 = vld [vmem:[#allocation32_spill] sm:$0xff] }
 0x106   : > { %v6103_v28 = vmax.f32 %v7715_v6, %v6064_v61  ;;  %v2703_v48 = vsel %vm1516_vm15, %v2687_v36, %v7443_v60  ;;  %v2799_v7 = vsel %vm1837_vm12, %v2783_v29, %v7442_v19  ;;  %v7716_v58 = vrot.slane %v5938_v11, 6  ;;  %v7719_v6 = vld [vmem:[#allocation38_spill] sm:$0xff] }
 0x107   : > { %v1254_v46 = vadd.s32 4294967295, %v504_v42  ;;  %vm7718_vm8 = vcmp.lt.s32.totalorder %v7717_v16, 16  ;;  %vm7720_vm14 = vcmp.lt.s32.totalorder %v7719_v6, 16  ;;  %v6125_v36 = vmax.f32 %v2758_v9, %v2800_v23 }
 0x108   : > { %v880_v52 = vsel %vm874_vm2, %v7716_v58, %v7450_v43  ;;  %v2735_v44 = vsel %vm7718_vm8, %v2703_v48, -inf  ;;  %v2831_v49 = vsel %vm7720_vm14, %v2799_v7, -inf  ;;  %vm965_vm13 = vcmp.ge.s32.totalorder %v933_v50, 0 }
 0x109   : > { %vm7721_vm0 = vcmask 64512   ;;  %v2759_v29 = vmax.f32 %v2663_v17, %v2735_v44  ;;  %v1125_v19 = vsel %vm965_vm13, %v880_v52, -inf  ;;  %v7722_v60 = vrot.slane %v5941_v12, 7 }
 0x10a   : > { %3828 = vmatmul.mubr.msk.bf16.vlgmr.msra.gmra.mrb[0].mxu1 %vm7721_vm0, %v707_v24  ;;  %vm1286_vm8 = vcmp.ge.s32.totalorder %v1254_v46, 0  ;;  %vm7724_vm11 = vmmov %vm7721_vm0  ;;  %v1157_v23 = vmax.f32 %v5941_v12, %v1125_v19  ;;  %v7449_v9 = vrot.slane %v6103_v28, 1  ;;  %v1798_v24 = vmax.f32 %v5979_v54, %v5989_v59  ;;  %v264_v19 = vld [vmem:[%s4978_s25 + $0x40] sm:$0xff] }
 0x10b   : > { %v1201_v42 = vsel %vm1195_vm9, %v7723_v55, %v7722_v60  ;;  %3831 = vmatprep.mubr.msk.bf16.mxu1 %vm7724_vm11, %v708_v32  ;;  %v6139_v17 = vmax.f32 %v2759_v29, %v2831_v49  ;;  %v7448_v11 = vrot.slane %v6103_v28, 2  ;;  %v2402_v55 = vmax.f32 %v4957_v34, %v5518_v33  ;;  %v7725_v60 = vld [vmem:[#allocation43_spill] sm:$0xff]  ;;  %vm7730_vm14 = vmmov %vm7721_vm0 }
 0x10c   : > { %v1446_v7 = vsel %vm1286_vm8, %v1201_v42, -inf  ;;  %v7726_v32 = vmax.f32 %v7725_v60, %v5147_v13  ;;  %v7727_v58 = vrot.slane %v5941_v12, 1  ;;  %v6156_v59 = vmax.f32 %v1798_v24, %v6023_v18  ;;  %v265_v49 = vld [vmem:[%s4978_s25 + $0x48] sm:$0xff]  ;;  %v266_v18 = vld [vmem:[%s4978_s25 + $0x50] sm:$0xff] }
 0x10d   : > { %v1478_v48 = vmax.f32 %v1157_v23, %v1446_v7  ;;  %v2496_v34 = vrot.slane %v6080_v0, 6  ;;  %v2869_v52 = vpack.c.bf16 %v6139_v17, %v6125_v36  ;;  %v7728_v46 = vrot.slane %v5941_v12, 2 }
 0x10e   : > { %v2425_v50 = vmax.f32 %v7726_v32, %v5538_v47  ;;  %v1521_v54 = vsel %vm1516_vm15, %v7727_v58, %v7449_v9  ;;  %v2426_v29 = vmax.f32 %v2402_v55, %v5520_v35  ;;  %v2592_v24 = vrot.slane %v6080_v0, 7  ;;  %v7731_v55 = vld [vmem:[#allocation20_spill] sm:$0xff] }
 0x10f   : > { %v1842_v44 = vsel %vm1837_vm12, %v7728_v46, %v7448_v11  ;;  %v1799_v23 = vmax.f32 %v1478_v48, %v1521_v54  ;;  %v2511_v7 = vsel %vm874_vm2, %v2495_v38, %v2496_v34  ;;  %vm7729_vm11 = vcmp.eq.s32.totalorder %v7677_v41, 1  ;;  %3854 = vmatmul.mubr.msk.bf16.gmra.mrb[8].mxu0 %vm7730_vm14, %v2869_v52  ;;  %v267_v46 = vld [vmem:[%s4978_s25 + $0x58] sm:$0xff]  ;;  %v7745_v11 = vld [vmem:[#allocation39_spill] sm:$0xff] }
 0x110   : > { %v2449_v42 = vmax.f32 %v2425_v50, %v6025_v27  ;;  %v281_v60 = vsel %vm7729_vm11, %v264_v19, -inf  ;;  %v2450_v32 = vmax.f32 %v2426_v29, %v6010_v40  ;;  %vm7732_vm13 = vcmp.ge.s32.totalorder %v7731_v55, 0  ;;  %vm7733_vm0 = vmmov %vm7729_vm11 }
 0x111   : > { %v2544_v50 = vsel %vm7732_vm13, %v2511_v7, -inf  ;;  %v6186_v48 = vsel %vm7733_vm0, %v265_v49, -inf  ;;  %v6188_v38 = vmax.f32 %v1799_v23, %v1842_v44  ;;  %v7734_v19 = vrot.slane %v6052_v51, 7  ;;  %vm7735_vm8 = vmmov %vm7733_vm0  ;;  %v7738_v23 = vld [vmem:[#allocation26_spill] sm:$0xff] }
 0x112   : > { %v6179_v58 = vmax.f32 %v2449_v42, %v6156_v59  ;;  %v2568_v54 = vmax.f32 %v6080_v0, %v2544_v50  ;;  %v283_v29 = vsel %vm7735_vm8, %v266_v18, -inf  ;;  %v7736_v42 = vpack.c.bf16 %v6042_v5, %v6039_v26  ;;  %vm7737_vm11 = vmmov %vm7730_vm14 }
 0x113   : > { %v2607_v52 = vsel %vm1195_vm9, %v7734_v19, %v2592_v24  ;;  %vm7739_vm14 = vcmp.ge.s32.totalorder %v7738_v23, 0  ;;  %v6207_v55 = vmax.f32 %v2450_v32, %v6188_v38  ;;  %vm7740_vm13 = vmmov %vm7733_vm0  ;;  %v7742_v23 = vrot.slane %v6080_v0, 2 }
 0x114   : > { %3832 = vmatmul.mubr.msk.bf16.gmra.mrb[4].mxu1 %vm7737_vm11, %v7736_v42  ;;  %v7447_v49 = vrot.slane %v6179_v58, 6  ;;  %v7446_v44 = vrot.slane %v6179_v58, 7  ;;  %v2640_v7 = vsel %vm7739_vm14, %v2607_v52, -inf  ;;  %v2689_v51 = vrot.slane %v6179_v58, 1 }
 0x115   : > { %v2664_v50 = vmax.f32 %v2568_v54, %v2640_v7  ;;  %v2785_v18 = vrot.slane %v6179_v58, 2  ;;  %v284_v26 = vsel %vm7740_vm13, %v267_v46, -inf  ;;  %v7741_v52 = vrot.slane %v6080_v0, 1 }
 0x116   : > { %v2510_v5 = vsel %vm874_vm2, %v2496_v34, %v7447_v49  ;;  %v2606_v19 = vsel %vm1195_vm9, %v2592_v24, %v7446_v44  ;;  %v6225_v54 = vadd.s32 216, %v4159_v4  ;;  %v7451_v46 = vrot.slane %v6207_v55, 1 }
 0x117   : > { %v2702_v32 = vsel %vm1516_vm15, %v7741_v52, %v2689_v51  ;;  %v2569_v41 = vmax.f32 %v6179_v58, %v2510_v5  ;;  %v2786_v34 = vrot.slane %v6207_v55, 2  ;;  %v2798_v24 = vsel %vm1837_vm12, %v7742_v23, %v2785_v18 }
 0x118   : > { %v2760_v42 = vmax.f32 %v2664_v50, %v2702_v32  ;;  %v314_v7 = vadd.s32 224, %v4159_v4  ;;  %v6236_v44 = vadd.s32 232, %v4159_v4  ;;  %v316_v52 = vadd.s32 240, %v4159_v4  ;;  %v7743_v32 = vld [vmem:[#allocation33_spill] sm:$0xff] }
 0x119   : > { %v2665_v49 = vmax.f32 %v2569_v41, %v2606_v19  ;;  %v2701_v50 = vsel %vm1516_vm15, %v2689_v51, %v7451_v46  ;;  %v2797_v0 = vsel %vm1837_vm12, %v2785_v18, %v2786_v34  ;;  %vm7744_vm0 = vcmp.lt.s32.totalorder %v7743_v32, 16 }
 0x11a   : > { %v6247_v5 = vmax.f32 %v2760_v42, %v2798_v24  ;;  %v2737_v23 = vsel %vm7744_vm0, %v2701_v50, -inf  ;;  %vm7746_vm8 = vcmp.lt.s32.totalorder %v7745_v11, 16  ;;  %v511_v19 = vand.u32 15, %v6225_v54 }
 0x11b   : > { %v2833_v9 = vsel %vm7746_vm8, %v2797_v0, -inf  ;;  %v518_v41 = vand.u32 15, %v314_v7  ;;  %v2761_v43 = vmax.f32 %v2665_v49, %v2737_v23  ;;  %v525_v6 = vand.u32 15, %v6236_v44 }
 0x11c   : > { %v532_v51 = vand.u32 15, %v316_v52  ;;  %v743_v46 = vmax.f32 %v7687_v10, %v7689_v14  ;;  %v745_v18 = vmax.f32 %v7689_v14, %v5862_v8  ;;  %v808_v42 = vmax.f32 %v5924_v21, %v281_v60 }
 0x11d   : > { %v7747_v24 = vmax.f32 %v5921_v39, %v5869_v62  ;;  %v869_v50 = vrot.slane %v6103_v28, 6  ;;  %v6266_v7 = vmax.f32 %v2761_v43, %v2833_v9  ;;  %v935_v52 = vadd.s32 4294967294, %v518_v41 }
 0x11e   : > { %v775_v49 = vmax.f32 %v743_v46, %v5862_v8  ;;  %v937_v0 = vadd.s32 4294967294, %v532_v51  ;;  %v777_v10 = vmax.f32 %v745_v18, %v6064_v61  ;;  %v6270_v32 = vmax.f32 %v808_v42, %v283_v29 }
 0x11f   : > { %v6263_v11 = vmax.f32 %v7747_v24, %v281_v60  ;;  %v7748_v21 = vrot.slane %v5941_v12, 6  ;;  %v2870_v62 = vpack.c.bf16 %v6266_v7, %v6247_v5  ;;  %vm967_vm11 = vcmp.ge.s32.totalorder %v935_v52, 0 }
 0x120   : > { %v807_v43 = vmax.f32 %v775_v49, %v6064_v61  ;;  %vm969_vm14 = vcmp.ge.s32.totalorder %v937_v0, 0  ;;  %v809_v8 = vmax.f32 %v777_v10, %v6186_v48  ;;  %v7452_v9 = vrot.slane %v6270_v32, 6 }
 0x121   : > { %v870_v14 = vrot.slane %v6263_v11, 6  ;;  %v879_v39 = vsel %vm874_vm2, %v7748_v21, %v869_v50  ;;  %vm7749_vm13 = vcmask 64512   ;;  %v1190_v18 = vrot.slane %v6103_v28, 7 }
 0x122   : > { %v1158_v29 = vmax.f32 %v6103_v28, %v879_v39  ;;  %3857 = vmatprep.mubr.msk.bf16.mxu0 %vm7749_vm13, %v2870_v62  ;;  %v839_v46 = vmax.f32 %v807_v43, %v6186_v48  ;;  %v1191_v61 = vrot.slane %v6263_v11, 7  ;;  %v6289_v42 = vmax.f32 %v809_v8, %v284_v26 }
 0x123   : > { %v878_v60 = vsel %vm874_vm2, %v869_v50, %v870_v14  ;;  %v7453_v49 = vrot.slane %v6270_v32, 7  ;;  %v1256_v52 = vadd.s32 4294967295, %v518_v41  ;;  %v7750_v39 = vrot.slane %v5941_v12, 7 }
 0x124   : > { %v1127_v23 = vsel %vm967_vm11, %v878_v60, -inf  ;;  %v871_v10 = vrot.slane %v839_v46, 6  ;;  %v1192_v50 = vrot.slane %v839_v46, 7  ;;  %v1199_v21 = vsel %vm1195_vm9, %v1190_v18, %v1191_v61 }
 0x125   : > { %v1159_v24 = vmax.f32 %v6263_v11, %v1127_v23  ;;  %v1200_v48 = vsel %vm1195_vm9, %v7750_v39, %v1190_v18  ;;  %v1258_v62 = vadd.s32 4294967295, %v532_v51  ;;  %vm1288_vm0 = vcmp.ge.s32.totalorder %v1256_v52, 0 }
 0x126   : > { %v1479_v43 = vmax.f32 %v1158_v29, %v1200_v48  ;;  %v1512_v26 = vrot.slane %v6263_v11, 1  ;;  %v876_v41 = vsel %vm874_vm2, %v871_v10, %v7452_v9  ;;  %v877_v8 = vsel %vm874_vm2, %v870_v14, %v871_v10 }
 0x127   : > { %v1197_v12 = vsel %vm1195_vm9, %v1192_v50, %v7453_v49  ;;  %v1198_v51 = vsel %vm1195_vm9, %v1191_v61, %v1192_v50  ;;  %v1129_v60 = vsel %vm969_vm14, %v876_v41, -inf  ;;  %v1160_v29 = vmax.f32 %v839_v46, %v877_v8 }
 0x128   : > { %vm1290_vm8 = vcmp.ge.s32.totalorder %v1258_v62, 0  ;;  %v1448_v23 = vsel %vm1288_vm0, %v1199_v21, -inf  ;;  %v1161_v18 = vmax.f32 %v6270_v32, %v1129_v60  ;;  %v1513_v48 = vrot.slane %v839_v46, 1 }
 0x129   : > { %v1450_v52 = vsel %vm1290_vm8, %v1197_v12, -inf  ;;  %v1480_v39 = vmax.f32 %v1159_v24, %v1448_v23  ;;  %v1481_v9 = vmax.f32 %v1160_v29, %v1198_v51  ;;  %v1514_v14 = vrot.slane %v6270_v32, 1 }
 0x12a   : > { %v7454_v10 = vrot.slane %v6289_v42, 1  ;;  %v7751_v49 = vrot.slane %v6103_v28, 1  ;;  %v1482_v0 = vmax.f32 %v1161_v18, %v1450_v52  ;;  %v1519_v50 = vsel %vm1516_vm15, %v1512_v26, %v1513_v48 }
 0x12b   : > { %v1576_v21 = vadd.s32 1, %v511_v19  ;;  %v1578_v24 = vadd.s32 1, %v525_v6  ;;  %v1518_v41 = vsel %vm1516_vm15, %v1513_v48, %v1514_v14  ;;  %v1801_v8 = vmax.f32 %v1480_v39, %v1519_v50 }
 0x12c   : > { %v1520_v61 = vsel %vm1516_vm15, %v7751_v49, %v1512_v26  ;;  %v1517_v62 = vsel %vm1516_vm15, %v1514_v14, %v7454_v10  ;;  %v1833_v49 = vrot.slane %v6263_v11, 2  ;;  %v1834_v12 = vrot.slane %v839_v46, 2 }
 0x12d   : > { %vm1640_vm11 = vcmp.lt.s32.totalorder %v1576_v21, 16  ;;  %vm1642_vm14 = vcmp.lt.s32.totalorder %v1578_v24, 16  ;;  %v1803_v26 = vmax.f32 %v1482_v0, %v1517_v62  ;;  %v1835_v29 = vrot.slane %v6270_v32, 2 }
 0x12e   : > { %v1768_v51 = vsel %vm1640_vm11, %v1520_v61, -inf  ;;  %v1770_v60 = vsel %vm1642_vm14, %v1518_v41, -inf  ;;  %v1836_v23 = vrot.slane %v6289_v42, 2  ;;  %v1840_v10 = vsel %vm1837_vm12, %v1833_v49, %v1834_v12 }
 0x12f   : > { %v1800_v18 = vmax.f32 %v1479_v43, %v1768_v51  ;;  %v1802_v52 = vmax.f32 %v1481_v9, %v1770_v60  ;;  %v7752_v48 = vrot.slane %v6103_v28, 2  ;;  %v1839_v39 = vsel %vm1837_vm12, %v1834_v12, %v1835_v29 }
 0x130   : > { %v1838_v46 = vsel %vm1837_vm12, %v1835_v29, %v1836_v23  ;;  %v1897_v43 = vadd.s32 2, %v511_v19  ;;  %v1899_v9 = vadd.s32 2, %v525_v6  ;;  %v2122_v14 = vmax.f32 %v1801_v8, %v1840_v10 }
 0x131   : > { %v1841_v11 = vsel %vm1837_vm12, %v7752_v48, %v1833_v49  ;;  %v2124_v61 = vmax.f32 %v1803_v26, %v1838_v46  ;;  %v2403_v28 = vmax.f32 %v5147_v13, %v5538_v47  ;;  %v2404_v0 = vmax.f32 %v5518_v33, %v5520_v35 }
 0x132   : > { %vm1961_vm13 = vcmp.lt.s32.totalorder %v1897_v43, 16  ;;  %vm1963_vm0 = vcmp.lt.s32.totalorder %v1899_v9, 16  ;;  %v2406_v50 = vmax.f32 %v5520_v35, %v6010_v40  ;;  %v7753_v54 = vmax.f32 %v5538_v47, %v6025_v27  ;;  %v7759_v43 = vld [vmem:[#allocation27_spill] sm:$0xff] }
 0x133   : > { %v2089_v44 = vsel %vm1961_vm13, %v1841_v11, -inf  ;;  %v2091_v6 = vsel %vm1963_vm0, %v1839_v39, -inf  ;;  %v2427_v10 = vmax.f32 %v2403_v28, %v6025_v27  ;;  %v2428_v21 = vmax.f32 %v2404_v0, %v6010_v40 }
 0x134   : > { %v2429_v19 = vmax.f32 %v7753_v54, %v6156_v59  ;;  %v6363_v13 = vmax.f32 %v1800_v18, %v2089_v44  ;;  %v6365_v24 = vmax.f32 %v1802_v52, %v2091_v6  ;;  %v2430_v33 = vmax.f32 %v2406_v50, %v6188_v38 }
 0x135   : > { %v2498_v62 = vrot.slane %v6207_v55, 6  ;;  %v2451_v35 = vmax.f32 %v2427_v10, %v6156_v59  ;;  %v2452_v41 = vmax.f32 %v2428_v21, %v6188_v38  ;;  %v2594_v47 = vrot.slane %v6207_v55, 7  ;;  %v7755_v38 = vld [vmem:[#allocation21_spill] sm:$0xff] }
 0x136   : > { %v3022_v8 = vmax.f32 %v5821_v53, %v5825_v1  ;;  %v2453_v49 = vmax.f32 %v2429_v19, %v6363_v13  ;;  %v2454_v40 = vmax.f32 %v2430_v33, %v2122_v14  ;;  %v7754_v26 = vrot.slane %v6179_v58, 6 }
 0x137   : > { %v3023_v51 = vmax.f32 %v5823_v22, %v5827_v2  ;;  %v2475_v60 = vmax.f32 %v2451_v35, %v6363_v13  ;;  %v2476_v29 = vmax.f32 %v2452_v41, %v2122_v14  ;;  %vm7756_vm8 = vcmp.ge.s32.totalorder %v7755_v38, 0  ;;  %v7761_v35 = vld [vmem:[#allocation13_spill] sm:$0xff] }
 0x138   : > { %v2509_v12 = vsel %vm874_vm2, %v7754_v26, %v2498_v62  ;;  %v7757_v52 = vrot.slane %v6179_v58, 7  ;;  %v6389_v11 = vmax.f32 %v2453_v49, %v6365_v24  ;;  %v6391_v46 = vmax.f32 %v2454_v40, %v2124_v61 }
 0x139   : > { %v2546_v18 = vsel %vm7756_vm8, %v2509_v12, -inf  ;;  %vm7760_vm11 = vcmp.ge.s32.totalorder %v7759_v43, 0  ;;  %v2499_v28 = vrot.slane %v2475_v60, 6  ;;  %v2500_v14 = vrot.slane %v2476_v29, 6 }
 0x13a   : > { %v2605_v48 = vsel %vm1195_vm9, %v7757_v52, %v2594_v47  ;;  %7758 = vst [vmem:[#allocation54_spill] sm:$0xff] %v6389_v11  ;;  %v2570_v39 = vmax.f32 %v6207_v55, %v2546_v18  ;;  %v2595_v0 = vrot.slane %v2475_v60, 7  ;;  %v2596_v50 = vrot.slane %v2476_v29, 7 }
 0x13b   : > { %v2642_v9 = vsel %vm7760_vm11, %v2605_v48, -inf  ;;  %v7458_v54 = vrot.slane %v6389_v11, 6  ;;  %v7457_v58 = vrot.slane %v6389_v11, 7  ;;  %v2691_v44 = vrot.slane %v2475_v60, 1 }
 0x13c   : > { %v2666_v19 = vmax.f32 %v2570_v39, %v2642_v9  ;;  %v2507_v6 = vsel %vm874_vm2, %v2499_v28, %v2500_v14  ;;  %v2508_v61 = vsel %vm874_vm2, %v2498_v62, %v2499_v28  ;;  %v2603_v10 = vsel %vm1195_vm9, %v2595_v0, %v2596_v50 }
 0x13d   : > { %v2604_v21 = vsel %vm1195_vm9, %v2594_v47, %v2595_v0  ;;  %v2506_v33 = vsel %vm874_vm2, %v2500_v14, %v7458_v54  ;;  %vm7762_vm14 = vcmp.ge.s32.totalorder %v7761_v35, 0  ;;  %v2571_v49 = vmax.f32 %v2475_v60, %v2508_v61 }
 0x13e   : > { %v2548_v41 = vsel %vm7762_vm14, %v2507_v6, -inf  ;;  %v2602_v62 = vsel %vm1195_vm9, %v2596_v50, %v7457_v58  ;;  %v2573_v26 = vmax.f32 %v6389_v11, %v2506_v33  ;;  %vm7763_vm13 = vcmp.ge.s32.totalorder %v5384_v56, 0  ;;  %v7765_v50 = vld [vmem:[#allocation14_spill] sm:$0xff]  ;;  %v7805_v58 = vld [vmem:[#allocation41_spill] sm:$0xff] }
 0x13f   : > { %v2572_v40 = vmax.f32 %v2476_v29, %v2548_v41  ;;  %v2644_v47 = vsel %vm7763_vm13, %v2603_v10, -inf  ;;  %v2692_v12 = vrot.slane %v2476_v29, 1  ;;  %v2667_v38 = vmax.f32 %v2571_v49, %v2604_v21 }
 0x140   : > { %v2693_v18 = vrot.slane %v6389_v11, 1  ;;  %v7456_v52 = vrot.slane %v6391_v46, 1  ;;  %v7764_v48 = vrot.slane %v6207_v55, 1  ;;  %v2669_v9 = vmax.f32 %v2573_v26, %v2602_v62 }
 0x141   : > { %v2668_v43 = vmax.f32 %v2572_v40, %v2644_v47  ;;  %v2699_v28 = vsel %vm1516_vm15, %v2691_v44, %v2692_v12  ;;  %vm7766_vm0 = vcmp.lt.s32.totalorder %v7765_v50, 16  ;;  %v2787_v61 = vrot.slane %v2475_v60, 2  ;;  %v221_v50 = vld [vmem:[%s4259_s9] sm:$0xff] }
 0x142   : > { %v2700_v39 = vsel %vm1516_vm15, %v7764_v48, %v2691_v44  ;;  %v2697_v56 = vsel %vm1516_vm15, %v2693_v18, %v7456_v52  ;;  %v2698_v0 = vsel %vm1516_vm15, %v2692_v12, %v2693_v18  ;;  %v2739_v6 = vsel %vm7766_vm0, %v2699_v28, -inf  ;;  %v7803_v52 = vld [vmem:[#allocation61_spill] sm:$0xff] }
 0x143   : > { %v2762_v14 = vmax.f32 %v2666_v19, %v2700_v39  ;;  %vm7767_vm8 = vcmp.lt.s32.totalorder %v5453_v3, 16  ;;  %v2763_v21 = vmax.f32 %v2667_v38, %v2739_v6  ;;  %v2764_v33 = vmax.f32 %v2668_v43, %v2698_v0 }
 0x144   : > { %v2741_v10 = vsel %vm7767_vm8, %v2697_v56, -inf  ;;  %v2788_v35 = vrot.slane %v2476_v29, 2  ;;  %v2789_v19 = vrot.slane %v6389_v11, 2  ;;  %v7455_v41 = vrot.slane %v6391_v46, 2 }
 0x145   : > { %v2765_v44 = vmax.f32 %v2669_v9, %v2741_v10  ;;  %v2796_v49 = vsel %vm1837_vm12, %v2786_v34, %v2787_v61  ;;  %v3024_v3 = vmax.f32 %v5825_v1, %v6125_v36  ;;  %v3025_v29 = vmax.f32 %v5827_v2, %v6139_v17  ;;  %v7768_v34 = vld [vmem:[#allocation49_spill] sm:$0xff]  ;;  %v4049_v10 = vld [vmem:[%s4203_s6 + $0x48] sm:$0xff] }
 0x146   : > { %v2795_v62 = vsel %vm1837_vm12, %v2787_v61, %v2788_v35  ;;  %v2858_v60 = vmax.f32 %v2762_v14, %v2796_v49  ;;  %v2793_v40 = vsel %vm1837_vm12, %v2789_v19, %v7455_v41  ;;  %v2794_v55 = vsel %vm1837_vm12, %v2788_v35, %v2789_v19  ;;  %v4051_v19 = vld [vmem:[%s4203_s6 + $0x50] sm:$0xff]  ;;  %v4052_v49 = vld [vmem:[%s4203_s6 + $0x58] sm:$0xff] }
 0x147   : > { %vm7769_vm11 = vcmp.lt.s32.totalorder %v7768_v34, 16  ;;  %v3026_v47 = vmax.f32 %v6125_v36, %v6247_v5  ;;  %vm7770_vm14 = vcmp.lt.s32.totalorder %v5509_v37, 16  ;;  %v6461_v18 = vmax.f32 %v2764_v33, %v2794_v55 }
 0x148   : > { %v2835_v26 = vsel %vm7769_vm11, %v2795_v62, -inf  ;;  %v2837_v12 = vsel %vm7770_vm14, %v2793_v40, -inf  ;;  %v3027_v48 = vmax.f32 %v6139_v17, %v6266_v7  ;;  %v3038_v43 = vmax.f32 %v3022_v8, %v6125_v36 }
 0x149   : > { %v2859_v38 = vmax.f32 %v2763_v21, %v2835_v26  ;;  %7771 = vst [vmem:[#allocation55_spill] sm:$0xff] %v6461_v18  ;;  %v6465_v39 = vmax.f32 %v2765_v44, %v2837_v12  ;;  %v3039_v37 = vmax.f32 %v3023_v51, %v6139_v17  ;;  %v3040_v9 = vmax.f32 %v3024_v3, %v6247_v5  ;;  %v4050_v21 = vld [vmem:[%s4203_s6 + $0x40] sm:$0xff]  ;;  %s3720_s6 = sshll.u32 %s7934_s13, 5 }
 0x14a   : > { %v3041_v14 = vmax.f32 %v3025_v29, %v6266_v7  ;;  %v6477_v56 = vmax.f32 %v3026_v47, %v2858_v60  ;;  %v3054_v6 = vmax.f32 %v3038_v43, %v6247_v5  ;;  %v710_v51 = vpack.c.bf16 %v4049_v10, %v4050_v21  ;;  %s192_s7 = sadd.s32 %s3720_s6, %s3719_s5 }
 0x14b   : > { %v2871_v28 = vpack.c.bf16 %v2859_v38, %v2858_v60  ;;  %v6479_v0 = vmax.f32 %v3027_v48, %v2859_v38  ;;  %v3055_v8 = vmax.f32 %v3039_v37, %v6266_v7  ;;  %v3056_v61 = vmax.f32 %v3040_v9, %v2858_v60  ;;  %s3721_s13 = sshll.u32 %s192_s7, 3 }
 0x14c   : > { %7772 = vst [vmem:[#allocation56_spill] sm:$0xff] %v6477_v56  ;;  %vm7773_vm13 = vcmask 64512   ;;  %v3057_v33 = vmax.f32 %v3041_v14, %v2859_v38  ;;  %v711_v62 = vpack.c.bf16 %v4052_v49, %v4051_v19  ;;  %v6493_v3 = vmax.f32 %v3054_v6, %v2858_v60  ;;  %s7167_s9 = scalar_lea.vmem %s7240_s3, %s3721_s13 }
 0x14d   : > { %3858 = vmatmul.mubr.msk.bf16.gmra.mrb[12].mxu0 %vm7773_vm13, %v2871_v28  ;;  %v6495_v29 = vmax.f32 %v3055_v8, %v2859_v38  ;;  %v6498_v40 = vmax.f32 %v3056_v61, %v6461_v18  ;;  %vm7774_vm0 = vmmov %vm7773_vm13  ;;  %v237_v34 = vsel %vm4270_vm1, %v221_v50, -inf  ;;  %v287_v47 = vadd.s32 8, %v4159_v4  ;;  %v7778_v38 = vld [vmem:[#allocation51_spill] sm:$0xff]  ;;  %v7779_v8 = vld [vmem:[#allocation52_spill] sm:$0xff] }
 0x14e   : > { %3835 = vmatprep.mubr.msk.bf16.mxu1 %vm7774_vm0, %v710_v51  ;;  %v6504_v26 = vmax.f32 %v3057_v33, %v6465_v39  ;;  %vm7777_vm8 = vmmov %vm7774_vm0  ;;  %v317_v60 = vadd.s32 248, %v4159_v4  ;;  %v322_v12 = vand.u32 15, %v4159_v4  ;;  %v714_v48 = vmax.f32 %v237_v34, %v7778_v38  ;;  %v7783_v34 = vld [vmem:[#allocation6_spill] sm:$0xff] }
 0x14f   : > { %3836 = vmatmul.mubr.msk.bf16.gmra.mrb[8].mxu1 %vm7777_vm8, %v711_v62  ;;  %v873_v43 = vrot.slane %v6289_v42, 6  ;;  %v1194_v37 = vrot.slane %v6289_v42, 7  ;;  %v1485_v9 = vrot.slane %v5240_v45, 1  ;;  %v329_v28 = vand.u32 15, %v287_v47 }
 0x150   : > { %7776 = vst [vmem:[#allocation43_spill] sm:$0xff] %v6504_v26  ;;  %v539_v14 = vand.u32 15, %v317_v60  ;;  %v6514_v50 = vadd.s32 4294967294, %v322_v12  ;;  %v6516_v6 = vadd.s32 4294967295, %v322_v12  ;;  %v746_v61 = vmax.f32 %v714_v48, %v7779_v8 }
 0x151   : > { %v7780_v10 = vrot.slane %v6270_v32, 6  ;;  %v7781_v51 = vrot.slane %v6270_v32, 7  ;;  %v7782_v19 = vrot.slane %v5243_v63, 1  ;;  %v6534_v55 = vadd.s32 1, %v329_v28 }
 0x152   : > { %vm939_vm1 = vcmp.ge.s32.totalorder %v6514_v50, 0  ;;  %vm1260_vm11 = vcmp.ge.s32.totalorder %v6516_v6, 0  ;;  %v778_v47 = vmax.f32 %v746_v61, %v7783_v34  ;;  %v1580_v60 = vadd.s32 1, %v539_v14 }
 0x153   : > { %v875_v21 = vsel %vm874_vm2, %v7780_v10, %v873_v43  ;;  %v1196_v33 = vsel %vm1195_vm9, %v7781_v51, %v1194_v37  ;;  %v1546_v49 = vsel %vm1516_vm15, %v1485_v9, %v7782_v19  ;;  %v1806_v32 = vrot.slane %v5240_v45, 2  ;;  %v7784_v10 = vld [vmem:[#allocation8_spill] sm:$0xff] }
 0x154   : > { %v1162_v62 = vmax.f32 %v6289_v42, %v875_v21  ;;  %v6538_v12 = vadd.s32 2, %v329_v28  ;;  %vm1614_vm14 = vcmp.lt.s32.totalorder %v6534_v55, 16  ;;  %v1901_v48 = vadd.s32 2, %v539_v14 }
 0x155   : > { %v2407_v8 = vmax.f32 %v6025_v27, %v6156_v59  ;;  %v810_v21 = vmax.f32 %v778_v47, %v7784_v10  ;;  %vm1644_vm13 = vcmp.lt.s32.totalorder %v1580_v60, 16  ;;  %v1742_v51 = vsel %vm1614_vm14, %v1546_v49, -inf }
 0x156   : > { %v1483_v38 = vmax.f32 %v1162_v62, %v1196_v33  ;;  %v7785_v61 = vrot.slane %v5243_v63, 2  ;;  %vm1935_vm0 = vcmp.lt.s32.totalorder %v6538_v12, 16  ;;  %vm1965_vm8 = vcmp.lt.s32.totalorder %v1901_v48, 16 }
 0x157   : > { %v2431_v28 = vmax.f32 %v2407_v8, %v6363_v13  ;;  %v7460_v14 = vrot.slane %v6391_v46, 6  ;;  %v842_v33 = vrot.slane %v810_v21, 6  ;;  %v1163_v27 = vrot.slane %v810_v21, 7 }
 0x158   : > { %v1867_v19 = vsel %vm1837_vm12, %v1806_v32, %v7785_v61  ;;  %v1484_v59 = vrot.slane %v810_v21, 1  ;;  %v1805_v62 = vrot.slane %v810_v21, 2  ;;  %v7459_v63 = vrot.slane %v6391_v46, 7 }
 0x159   : > { %v2063_v34 = vsel %vm1935_vm0, %v1867_v19, -inf  ;;  %v2455_v49 = vmax.f32 %v2431_v28, %v6365_v24  ;;  %v2674_v47 = vrot.slane %v5570_v57, 1  ;;  %v7786_v10 = vrot.slane %v5240_v45, 6 }
 0x15a   : > { %v906_v8 = vsel %vm874_vm2, %v873_v43, %v842_v33  ;;  %v7787_v61 = vrot.slane %v5240_v45, 7  ;;  %v1227_v24 = vsel %vm1195_vm9, %v1194_v37, %v1163_v27  ;;  %v1868_v37 = vsel %vm1837_vm12, %v1805_v62, %v1806_v32 }
 0x15b   : > { %v905_v13 = vsel %vm874_vm2, %v842_v33, %v7786_v10  ;;  %v1099_v19 = vsel %vm939_vm1, %v906_v8, -inf  ;;  %v1420_v41 = vsel %vm1260_vm11, %v1227_v24, -inf  ;;  %v1547_v10 = vsel %vm1516_vm15, %v1484_v59, %v1485_v9 }
 0x15c   : > { %v1226_v35 = vsel %vm1195_vm9, %v1163_v27, %v7787_v61  ;;  %v1132_v28 = vmax.f32 %v5240_v45, %v905_v13  ;;  %v1131_v43 = vmax.f32 %v810_v21, %v1099_v19  ;;  %v7788_v33 = vrot.slane %v6289_v42, 1 }
 0x15d   : > { %v1869_v45 = vsel %vm1837_vm12, %v1836_v23, %v1805_v62  ;;  %v7789_v9 = vrot.slane %v5591_v15, 1  ;;  %v2770_v42 = vrot.slane %v5570_v57, 2  ;;  %v7464_v24 = vrot.slane %v5889_v30, 6 }
 0x15e   : > { %v1548_v61 = vsel %vm1516_vm15, %v7788_v33, %v1484_v59  ;;  %v1453_v27 = vmax.f32 %v1132_v28, %v1226_v35  ;;  %v2093_v8 = vsel %vm1965_vm8, %v1869_v45, -inf  ;;  %v1452_v59 = vmax.f32 %v1131_v43, %v1420_v41  ;;  %v7801_v45 = vld [vmem:[#allocation64_spill] sm:$0xff] }
 0x15f   : > { %v1772_v13 = vsel %vm1644_vm13, %v1548_v61, -inf  ;;  %v6595_v21 = vsel %vm1516_vm15, %v2674_v47, %v7789_v9  ;;  %v7466_v35 = vrot.slane %v5889_v30, 7  ;;  %v7462_v60 = vrot.slane %v5889_v30, 1  ;;  %v7794_v9 = vld [vmem:[#allocation63_spill] sm:$0xff] }
 0x160   : > { %v1804_v32 = vmax.f32 %v1483_v38, %v1772_v13  ;;  %v1774_v23 = vmax.f32 %v1453_v27, %v1742_v51  ;;  %v7467_v48 = vrot.slane %v5901_v25, 1  ;;  %v1773_v62 = vmax.f32 %v1452_v59, %v1547_v10  ;;  %v7793_v13 = vld [vmem:[#allocation44_spill] sm:$0xff] }
 0x161   : > { %v7790_v28 = vrot.slane %v5591_v15, 2  ;;  %v7461_v38 = vrot.slane %v5889_v30, 2  ;;  %v7463_v10 = vrot.slane %v5901_v25, 2  ;;  %v712_v15 = vpack.c.bf16 %v5893_v20, %v5881_v31  ;;  %v7796_v31 = vld [vmem:[#allocation67_spill] sm:$0xff]  ;;  %v7797_v20 = vld [vmem:[#allocation48_spill] sm:$0xff] }
 0x162   : > { %v2125_v19 = vmax.f32 %v1804_v32, %v2093_v8  ;;  %v2095_v43 = vmax.f32 %v1774_v23, %v2063_v34  ;;  %v3231_v51 = vsel %vm1516_vm15, %v7462_v60, %v7467_v48  ;;  %v2094_v33 = vmax.f32 %v1773_v62, %v1868_v37  ;;  %v7792_v34 = vld [vmem:[#allocation47_spill] sm:$0xff]  ;;  %v7799_v62 = vld [vmem:[#allocation60_spill] sm:$0xff] }
 0x163   : > { %v6608_v41 = vsel %vm1837_vm12, %v2770_v42, %v7790_v28  ;;  %v6624_v27 = vsel %vm1616_vm6, %v3231_v51, -inf  ;;  %v713_v8 = vpack.c.bf16 %v7793_v13, %v7792_v34  ;;  %v3295_v32 = vsel %vm1837_vm12, %v7461_v38, %v7463_v10  ;;  %v7812_v51 = vld [vmem:[#allocation7_spill] sm:$0xff] }
 0x164   : > { %v6620_v61 = vmax.f32 %v2455_v49, %v2125_v19  ;;  %v2385_v59 = vmax.f32 %v2095_v43, %v7794_v9  ;;  %vm7795_vm13 = vcmask 64512   ;;  %v7798_v49 = vmax.f32 %v7796_v31, %v7797_v20 }
 0x165   : > { %3839 = vmatprep.mubr.msk.bf16.mxu1 %vm7795_vm13, %v712_v15  ;;  %v3080_v23 = vrot.slane %v5901_v25, 6  ;;  %v2384_v19 = vmax.f32 %v2094_v33, %v7799_v62  ;;  %vm7800_vm6 = vmmov %vm7795_vm13  ;;  %v6650_v9 = vsel %vm1937_vm5, %v3295_v32, -inf }
 0x166   : > { %v3034_v37 = vmax.f32 %v7798_v49, %v5821_v53  ;;  %v2503_v28 = vrot.slane %v6620_v61, 6  ;;  %v2599_v43 = vrot.slane %v6620_v61, 7  ;;  %3840 = vmatmul.mubr.msk.bf16.gmra.mrb[12].mxu1 %vm7800_vm6, %v713_v8  ;;  %v2409_v34 = vmax.f32 %v2385_v59, %v7801_v45  ;;  %v7804_v59 = vld [vmem:[#allocation69_spill] sm:$0xff] }
 0x167   : > { %v2408_v33 = vmax.f32 %v2384_v19, %v7803_v52  ;;  %v7465_v45 = vrot.slane %v7804_v59, 6  ;;  %v3103_v52 = vsel %vm874_vm2, %v7464_v24, %v3080_v23  ;;  %v7806_v19 = vld [vmem:[#allocation62_spill] sm:$0xff]  ;;  %v7809_v24 = vld [vmem:[#allocation40_spill] sm:$0xff] }
 0x168   : > { %v3050_v49 = vmax.f32 %v3034_v37, %v5825_v1  ;;  %v2504_v62 = vsel %vm874_vm2, %v7460_v14, %v2503_v28  ;;  %v2600_v8 = vsel %vm1195_vm9, %v7459_v63, %v2599_v43  ;;  %v2433_v13 = vmax.f32 %v2409_v34, %v7805_v58 }
 0x169   : > { %v2575_v32 = vmax.f32 %v6620_v61, %v2504_v62  ;;  %v2432_v54 = vmax.f32 %v2408_v33, %v7806_v19  ;;  %v3102_v63 = vsel %vm874_vm2, %v3080_v23, %v7465_v45  ;;  %v3112_v58 = vsel %vm943_vm3, %v3103_v52, -inf  ;;  %v7808_v62 = vld [vmem:[#allocation42_spill] sm:$0xff] }
 0x16a   : > { %v6666_v37 = vmax.f32 %v3050_v49, %v6125_v36  ;;  %v3144_v34 = vrot.slane %v5901_v25, 7  ;;  %v2457_v49 = vmax.f32 %v2433_v13, %v7808_v62  ;;  %v3128_v60 = vmax.f32 %v5901_v25, %v3112_v58 }
 0x16b   : > { %v2671_v38 = vmax.f32 %v2575_v32, %v2600_v8  ;;  %v3129_v10 = vmax.f32 %v7804_v59, %v3102_v63  ;;  %v2456_v44 = vmax.f32 %v2432_v54, %v7809_v24  ;;  %v3209_v14 = vrot.slane %v7804_v59, 1 }
 0x16c   : > { %v3167_v23 = vsel %vm1195_vm9, %v7466_v35, %v3144_v34  ;;  %v2481_v52 = vrot.slane %v2457_v49, 6  ;;  %v2577_v19 = vrot.slane %v2457_v49, 7  ;;  %v2673_v45 = vrot.slane %v2457_v49, 1 }
 0x16d   : > { %v2769_v13 = vrot.slane %v2457_v49, 2  ;;  %v2480_v8 = vrot.slane %v2456_v44, 6  ;;  %v2576_v32 = vrot.slane %v2456_v44, 7  ;;  %v2672_v58 = vrot.slane %v2456_v44, 1 }
 0x16e   : > { %v2768_v62 = vrot.slane %v2456_v44, 2  ;;  %v7810_v63 = vrot.slane %v5570_v57, 6  ;;  %v7811_v24 = vrot.slane %v5570_v57, 7  ;;  %v2717_v48 = vsel %vm1516_vm15, %v2673_v45, %v2674_v47 }
 0x16f   : > { %v2813_v33 = vsel %vm1837_vm12, %v2769_v13, %v2770_v42  ;;  %v2526_v15 = vsel %vm874_vm2, %v2480_v8, %v2481_v52  ;;  %vm7813_vm3 = vcmp.ge.s32.totalorder %v7812_v51, 0  ;;  %v2623_v42 = vsel %vm1195_vm9, %v2599_v43, %v2576_v32 }
 0x170   : > { %v2525_v54 = vsel %vm874_vm2, %v2481_v52, %v7810_v63  ;;  %v2621_v35 = vsel %vm1195_vm9, %v2577_v19, %v7811_v24  ;;  %v2527_v63 = vsel %vm874_vm2, %v2503_v28, %v2480_v8  ;;  %v2622_v24 = vsel %vm1195_vm9, %v2576_v32, %v2577_v19  ;;  %v7814_v28 = vld [vmem:[#allocation15_spill] sm:$0xff] }
 0x171   : > { %v2530_v16 = vsel %vm7813_vm3, %v2525_v54, -inf  ;;  %v2528_v47 = vsel %vm939_vm1, %v2527_v63, -inf  ;;  %v2553_v18 = vmax.f32 %v2457_v49, %v2526_v15  ;;  %v2624_v52 = vsel %vm1260_vm11, %v2623_v42, -inf }
 0x172   : > { %v2554_v56 = vmax.f32 %v5570_v57, %v2530_v16  ;;  %v2552_v26 = vmax.f32 %v2456_v44, %v2528_v47  ;;  %vm7815_vm5 = vcmp.ge.s32.totalorder %v7814_v28, 0  ;;  %v2718_v54 = vsel %vm1516_vm15, %v2672_v58, %v2673_v45 }
 0x173   : > { %v2626_v8 = vsel %vm7815_vm5, %v2621_v35, -inf  ;;  %v2649_v19 = vmax.f32 %v2553_v18, %v2622_v24  ;;  %v7816_v63 = vrot.slane %v6620_v61, 1  ;;  %v2721_v16 = vsel %vm1614_vm14, %v2717_v48, -inf }
 0x174   : > { %v2650_v11 = vmax.f32 %v2554_v56, %v2626_v8  ;;  %v2648_v44 = vmax.f32 %v2552_v26, %v2624_v52  ;;  %v2814_v35 = vsel %vm1837_vm12, %v2768_v62, %v2769_v13  ;;  %v7818_v49 = vrot.slane %v6620_v61, 2 }
 0x175   : > { %v2719_v57 = vsel %vm1516_vm15, %v7816_v63, %v2672_v58  ;;  %v2745_v56 = vmax.f32 %v2649_v19, %v2721_v16  ;;  %v2817_v58 = vsel %vm1935_vm0, %v2813_v33, -inf  ;;  %v7820_v47 = vrot.slane %v7804_v59, 7 }
 0x176   : > { %v2743_v15 = vsel %vm1636_vm7, %v2719_v57, -inf  ;;  %v2815_v18 = vsel %vm1837_vm12, %v7818_v49, %v2768_v62  ;;  %v2746_v45 = vmax.f32 %v2650_v11, %v6595_v21  ;;  %v2744_v48 = vmax.f32 %v2648_v44, %v2718_v54  ;;  %v7823_v57 = vld [vmem:[#allocation46_spill] sm:$0xff] }
 0x177   : > { %v2767_v32 = vmax.f32 %v2671_v38, %v2743_v15  ;;  %v2839_v24 = vsel %vm1957_vm4, %v2815_v18, -inf  ;;  %v3166_v13 = vsel %vm1195_vm9, %v3144_v34, %v7820_v47  ;;  %v3176_v52 = vsel %vm1264_vm10, %v3167_v23, -inf  ;;  %v7824_v34 = vld [vmem:[#allocation65_spill] sm:$0xff]  ;;  %v7826_v49 = vld [vmem:[#allocation66_spill] sm:$0xff]  ;;  %vm7835_vm4 = vmmov %vm7813_vm3 }
 0x178   : > { %v2841_v62 = vmax.f32 %v2745_v56, %v2817_v58  ;;  %v2842_v8 = vmax.f32 %v2746_v45, %v6608_v41  ;;  %v3192_v21 = vmax.f32 %v3128_v60, %v3176_v52  ;;  %v2840_v38 = vmax.f32 %v2744_v48, %v2814_v35  ;;  %v7831_v52 = vld [vmem:[#allocation59_spill] sm:$0xff] }
 0x179   : > { %v2863_v11 = vmax.f32 %v2767_v32, %v2839_v24  ;;  %v3193_v19 = vmax.f32 %v3129_v10, %v3166_v13  ;;  %v3210_v33 = vrot.slane %v6666_v37, 1  ;;  %v7822_v54 = vrot.slane %v5901_v25, 1  ;;  %v7827_v32 = vld [vmem:[#allocation57_spill] sm:$0xff]  ;;  %v7830_v24 = vld [vmem:[#allocation68_spill] sm:$0xff] }
 0x17a   : > { %v3013_v16 = vmax.f32 %v2841_v62, %v7823_v57  ;;  %v3014_v44 = vmax.f32 %v2842_v8, %v7824_v34  ;;  %v7825_v23 = vmax.f32 %v6479_v0, %v6465_v39  ;;  %v3012_v60 = vmax.f32 %v2840_v38, %v2842_v8 }
 0x17b   : > { %v3230_v63 = vsel %vm1516_vm15, %v7822_v54, %v3209_v14  ;;  %v3229_v10 = vsel %vm1516_vm15, %v3209_v14, %v3210_v33  ;;  %v3273_v15 = vrot.slane %v7804_v59, 2  ;;  %v3274_v35 = vrot.slane %v6666_v37, 2 }
 0x17c   : > { %v6761_v43 = vmax.f32 %v7825_v23, %v2863_v11  ;;  %v3256_v41 = vmax.f32 %v3192_v21, %v3230_v63  ;;  %v3029_v18 = vmax.f32 %v3013_v16, %v7826_v49  ;;  %v3030_v56 = vmax.f32 %v3014_v44, %v7796_v31  ;;  %v7833_v21 = vld [vmem:[#allocation50_spill] sm:$0xff] }
 0x17d   : > { %v3028_v0 = vmax.f32 %v3012_v60, %v7824_v34  ;;  %vm7828_vm10 = vcmp.lt.s32.totalorder %v7827_v32, 16  ;;  %v3293_v14 = vsel %vm1837_vm12, %v3273_v15, %v3274_v35  ;;  %v7829_v48 = vrot.slane %v5901_v25, 2 }
 0x17e   : > { %v3091_v45 = vrot.slane %v6761_v43, 6  ;;  %v3155_v39 = vrot.slane %v6761_v43, 7  ;;  %v3241_v58 = vsel %vm7828_vm10, %v3229_v10, -inf  ;;  %v3045_v47 = vmax.f32 %v3029_v18, %v7830_v24 }
 0x17f   : > { %v3294_v26 = vsel %vm1837_vm12, %v7829_v48, %v3273_v15  ;;  %v3046_v13 = vmax.f32 %v3030_v56, %v7797_v20  ;;  %v3257_v42 = vmax.f32 %v3193_v19, %v3241_v58  ;;  %vm7832_vm7 = vcmp.lt.s32.totalorder %v7831_v52, 16 }
 0x180   : > { %v3305_v62 = vsel %vm7832_vm7, %v3293_v14, -inf  ;;  %v3044_v8 = vmax.f32 %v3028_v0, %v7796_v31  ;;  %v6789_v11 = vmax.f32 %v3256_v41, %v3294_v26  ;;  %v3019_v38 = vmax.f32 %v7830_v24, %v7833_v21 }
 0x181   : > { %v3020_v25 = vmax.f32 %v7797_v20, %v5821_v53  ;;  %v3061_v54 = vmax.f32 %v3045_v47, %v7833_v21  ;;  %v3062_v63 = vmax.f32 %v3046_v13, %v5821_v53  ;;  %v6797_v57 = vmax.f32 %v3257_v42, %v3305_v62 }
 0x182   : > { %v3082_v19 = vrot.slane %v6666_v37, 6  ;;  %v6801_v16 = vmax.f32 %v3044_v8, %v7797_v20  ;;  %v3035_v31 = vmax.f32 %v3019_v38, %v5823_v22  ;;  %v3146_v44 = vrot.slane %v6666_v37, 7 }
 0x183   : > { %v3036_v34 = vmax.f32 %v3020_v25, %v5825_v1  ;;  %v3077_v23 = vrot.slane %v3061_v54, 6  ;;  %v3078_v41 = vrot.slane %v3062_v63, 6  ;;  %v3141_v60 = vrot.slane %v3061_v54, 7 }
 0x184   : > { %v3142_v10 = vrot.slane %v3062_v63, 7  ;;  %v3076_v15 = vrot.slane %v6801_v16, 6  ;;  %v3140_v53 = vrot.slane %v6801_v16, 7  ;;  %v3204_v49 = vrot.slane %v6801_v16, 1 }
 0x185   : > { %v3205_v18 = vrot.slane %v3061_v54, 1  ;;  %v3105_v20 = vsel %vm874_vm2, %v3077_v23, %v3078_v41  ;;  %v3206_v1 = vrot.slane %v3062_v63, 1  ;;  %v3268_v0 = vrot.slane %v6801_v16, 2 }
 0x186   : > { %v3169_v56 = vsel %vm1195_vm9, %v3141_v60, %v3142_v10  ;;  %v3106_v32 = vsel %vm874_vm2, %v3076_v15, %v3077_v23  ;;  %v3107_v58 = vsel %vm874_vm2, %v3091_v45, %v3076_v15  ;;  %v3170_v14 = vsel %vm1195_vm9, %v3140_v53, %v3141_v60 }
 0x187   : > { %v3171_v48 = vsel %vm1195_vm9, %v3155_v39, %v3140_v53  ;;  %v3108_v26 = vsel %vm939_vm1, %v3107_v58, -inf  ;;  %v3125_v24 = vmax.f32 %v3061_v54, %v3106_v32  ;;  %v3233_v13 = vsel %vm1516_vm15, %v3205_v18, %v3206_v1  ;;  %vm7837_vm1 = vmmov %vm7815_vm5 }
 0x188   : > { %v3172_v47 = vsel %vm1260_vm11, %v3171_v48, -inf  ;;  %v3124_v42 = vmax.f32 %v6801_v16, %v3108_v26  ;;  %v3234_v52 = vsel %vm1516_vm15, %v3204_v49, %v3205_v18  ;;  %v3237_v62 = vsel %vm1614_vm14, %v3233_v13, -inf }
 0x189   : > { %v3269_v8 = vrot.slane %v3061_v54, 2  ;;  %v3189_v50 = vmax.f32 %v3125_v24, %v3170_v14  ;;  %v3270_v38 = vrot.slane %v3062_v63, 2  ;;  %v7834_v25 = vrot.slane %v5889_v30, 6 }
 0x18a   : > { %v3110_v23 = vsel %vm7835_vm4, %v3105_v20, -inf  ;;  %v3188_v60 = vmax.f32 %v3124_v42, %v3172_v47  ;;  %v7836_v32 = vrot.slane %v5889_v30, 7  ;;  %v3174_v51 = vsel %vm7837_vm1, %v3169_v56, -inf }
 0x18b   : > { %v3104_v6 = vsel %vm874_vm2, %v3078_v41, %v7834_v25  ;;  %v3298_v15 = vsel %vm1837_vm12, %v3268_v0, %v3269_v8  ;;  %v3126_v53 = vmax.f32 %v3062_v63, %v3110_v23  ;;  %v3253_v54 = vmax.f32 %v3189_v50, %v3237_v62  ;;  %v7842_v50 = vld [vmem:[#allocation4_spill] sm:$0xff]  ;;  %v7844_v25 = vld [vmem:[#allocation11_spill] sm:$0xff] }
 0x18c   : > { %v3127_v55 = vmax.f32 %v5889_v30, %v3104_v6  ;;  %v3297_v18 = vsel %vm1837_vm12, %v3269_v8, %v3270_v38  ;;  %v3168_v41 = vsel %vm1195_vm9, %v3142_v10, %v7836_v32  ;;  %v3252_v20 = vmax.f32 %v3188_v60, %v3234_v52 }
 0x18d   : > { %v3301_v58 = vsel %vm1935_vm0, %v3297_v18, -inf  ;;  %v3190_v14 = vmax.f32 %v3126_v53, %v3174_v51  ;;  %v7838_v26 = vrot.slane %v5889_v30, 1  ;;  %v7839_v47 = vrot.slane %v5889_v30, 2  ;;  %vm7846_vm0 = vmmov %vm7800_vm6 }
 0x18e   : > { %v3191_v63 = vmax.f32 %v3127_v55, %v3168_v41  ;;  %v3317_v48 = vmax.f32 %v3253_v54, %v3301_v58  ;;  %v3334_v28 = vpack.c.bf16 %v6797_v57, %v6789_v11  ;;  %v3316_v56 = vmax.f32 %v3252_v20, %v3298_v15  ;;  %vm7847_vm8 = vmmov %vm7846_vm0  ;;  %v7849_v20 = vld [vmem:[#allocation28_spill] sm:$0xff] }
 0x18f   : > { %v3232_v24 = vsel %vm1516_vm15, %v3206_v1, %v7838_v26  ;;  %v3296_v10 = vsel %vm1837_vm12, %v3270_v38, %v7839_v47  ;;  %v3051_v42 = vmax.f32 %v3035_v31, %v5827_v2  ;;  %v3052_v52 = vmax.f32 %v3036_v34, %v6125_v36  ;;  %vm7848_vm13 = vmmov %vm7846_vm0 }
 0x190   : > { %v3254_v13 = vmax.f32 %v3190_v14, %v3232_v24  ;;  %v3255_v12 = vmax.f32 %v3191_v63, %v6624_v27  ;;  %v7840_v1 = vrot.slane %v7804_v59, 6  ;;  %v7841_v62 = vrot.slane %v7804_v59, 7  ;;  %v7851_v14 = vld [vmem:[#allocation34_spill] sm:$0xff]  ;;  %vm7861_vm1 = vmmov %vm7846_vm0 }
 0x191   : > { %v3021_v27 = vmax.f32 %v7833_v21, %v5823_v22  ;;  %v3332_v57 = vpack.c.bf16 %v3317_v48, %v3316_v56  ;;  %v3067_v34 = vmax.f32 %v3051_v42, %v6139_v17  ;;  %v3068_v8 = vmax.f32 %v3052_v52, %v6247_v5  ;;  %v7853_v42 = vld [vmem:[#allocation16_spill] sm:$0xff] }
 0x192   : > { %v3101_v30 = vsel %vm874_vm2, %v7840_v1, %v3082_v19  ;;  %v3165_v11 = vsel %vm1195_vm9, %v7841_v62, %v3146_v44  ;;  %v3318_v31 = vmax.f32 %v3254_v13, %v3296_v10  ;;  %v3319_v36 = vmax.f32 %v3255_v12, %v6650_v9 }
 0x193   : > { %vm7843_vm11 = vcmp.ge.s32.totalorder %v7842_v50, 0  ;;  %vm7845_vm14 = vcmp.ge.s32.totalorder %v7844_v25, 0  ;;  %v3037_v6 = vmax.f32 %v3021_v27, %v5827_v2  ;;  %3863 = vmatprep.mubr.msk.bf16.mxu0 %vm7846_vm0, %v3332_v57  ;;  %v3083_v22 = vrot.slane %v3067_v34, 6 }
 0x194   : > { %v3114_v38 = vsel %vm7843_vm11, %v3101_v30, -inf  ;;  %v3178_v59 = vsel %vm7845_vm14, %v3165_v11, -inf  ;;  %v3333_v23 = vpack.c.bf16 %v3319_v36, %v3318_v31  ;;  %v3147_v60 = vrot.slane %v3067_v34, 7  ;;  %v7855_v36 = vld [vmem:[#allocation22_spill] sm:$0xff] }
 0x195   : > { %v3130_v21 = vmax.f32 %v6666_v37, %v3114_v38  ;;  %v3211_v9 = vrot.slane %v3067_v34, 1  ;;  %v3212_v15 = vrot.slane %v3068_v8, 1  ;;  %v3275_v53 = vrot.slane %v3067_v34, 2 }
 0x196   : > { %v3276_v55 = vrot.slane %v3068_v8, 2  ;;  %3864 = vmatmul.mubr.msk.bf16.vlgmr.msra.gmra.mrb[0].mxu0 %vm7847_vm8, %v3333_v23  ;;  %v3100_v5 = vsel %vm874_vm2, %v3082_v19, %v3083_v22  ;;  %v3164_v2 = vsel %vm1195_vm9, %v3146_v44, %v3147_v60  ;;  %v3053_v18 = vmax.f32 %v3037_v6, %v6139_v17  ;;  %v7857_v6 = vld [vmem:[#allocation29_spill] sm:$0xff] }
 0x197   : > { %v3194_v54 = vmax.f32 %v3130_v21, %v3178_v59  ;;  %3867 = vmatprep.mubr.msk.bf16.mxu0 %vm7848_vm13, %v3334_v28  ;;  %v3131_v32 = vmax.f32 %v3067_v34, %v3100_v5  ;;  %v3227_v41 = vsel %vm1516_vm15, %v3211_v9, %v3212_v15  ;;  %v3228_v51 = vsel %vm1516_vm15, %v3210_v33, %v3211_v9  ;;  %vm7873_vm13 = vmmov %vm7861_vm1 }
 0x198   : > { %v3291_v19 = vsel %vm1837_vm12, %v3275_v53, %v3276_v55  ;;  %vm7850_vm6 = vcmp.lt.s32.totalorder %v7849_v20, 16  ;;  %v3292_v17 = vsel %vm1837_vm12, %v3274_v35, %v3275_v53  ;;  %vm7852_vm3 = vcmp.lt.s32.totalorder %v7851_v14, 16 }
 0x199   : > { %v3243_v44 = vsel %vm7850_vm6, %v3227_v41, -inf  ;;  %v3258_v58 = vmax.f32 %v3194_v54, %v3228_v51  ;;  %v3307_v63 = vsel %vm7852_vm3, %v3291_v19, -inf  ;;  %v3195_v48 = vmax.f32 %v3131_v32, %v3164_v2 }
 0x19a   : > { %v3069_v26 = vmax.f32 %v3053_v18, %v6266_v7  ;;  %v3084_v24 = vrot.slane %v3068_v8, 6  ;;  %v3148_v33 = vrot.slane %v3068_v8, 7  ;;  %v3214_v10 = vrot.slane %v6493_v3, 1 }
 0x19b   : > { %v3322_v47 = vmax.f32 %v3258_v58, %v3292_v17  ;;  %v3278_v28 = vrot.slane %v6493_v3, 2  ;;  %v3086_v56 = vrot.slane %v6493_v3, 6  ;;  %v3259_v13 = vmax.f32 %v3195_v48, %v3243_v44 }
 0x19c   : > { %v3085_v37 = vrot.slane %v3069_v26, 6  ;;  %v3099_v35 = vsel %vm874_vm2, %v3083_v22, %v3084_v24  ;;  %v3149_v12 = vrot.slane %v3069_v26, 7  ;;  %vm7854_vm5 = vcmp.ge.s32.totalorder %v7853_v42, 0 }
 0x19d   : > { %v3116_v52 = vsel %vm7854_vm5, %v3099_v35, -inf  ;;  %v3163_v7 = vsel %vm1195_vm9, %v3147_v60, %v3148_v33  ;;  %v3213_v1 = vrot.slane %v3069_v26, 1  ;;  %v3277_v30 = vrot.slane %v3069_v26, 2  ;;  %v7859_v60 = vld [vmem:[#allocation35_spill] sm:$0xff] }
 0x19e   : > { %v3323_v62 = vmax.f32 %v3259_v13, %v3307_v63  ;;  %v3098_v11 = vsel %vm874_vm2, %v3084_v24, %v3085_v37  ;;  %v3132_v27 = vmax.f32 %v3068_v8, %v3116_v52  ;;  %v3162_v57 = vsel %vm1195_vm9, %v3148_v33, %v3149_v12  ;;  %v7869_v52 = vld [vmem:[#allocation30_spill] sm:$0xff] }
 0x19f   : > { %v3133_v31 = vmax.f32 %v3069_v26, %v3098_v11  ;;  %vm7856_vm10 = vcmp.ge.s32.totalorder %v7855_v36, 0  ;;  %v3225_v50 = vsel %vm1516_vm15, %v3213_v1, %v3214_v10  ;;  %v3226_v38 = vsel %vm1516_vm15, %v3212_v15, %v3213_v1  ;;  %v7864_v26 = vld [vmem:[#allocation23_spill] sm:$0xff] }
 0x1a0   : > { %v3180_v34 = vsel %vm7856_vm10, %v3163_v7, -inf  ;;  %v3335_v25 = vpack.c.bf16 %v3323_v62, %v3322_v47  ;;  %vm7858_vm7 = vcmp.lt.s32.totalorder %v7857_v6, 16  ;;  %v3289_v8 = vsel %vm1837_vm12, %v3277_v30, %v3278_v28  ;;  %vm7887_vm10 = vmmov %vm7861_vm1 }
 0x1a1   : > { %v3196_v59 = vmax.f32 %v3132_v27, %v3180_v34  ;;  %v3245_v23 = vsel %vm7858_vm7, %v3225_v50, -inf  ;;  %v3197_v22 = vmax.f32 %v3133_v31, %v3162_v57  ;;  %v3290_v21 = vsel %vm1837_vm12, %v3276_v55, %v3277_v30  ;;  %v7862_v55 = vld [vmem:[#allocation17_spill] sm:$0xff]  ;;  %v7874_v57 = vld [vmem:[#allocation36_spill] sm:$0xff] }
 0x1a2   : > { %vm7860_vm4 = vcmp.lt.s32.totalorder %v7859_v60, 16  ;;  %v3087_v53 = vrot.slane %v6495_v29, 6  ;;  %3868 = vmatmul.mubr.msk.bf16.gmra.mrb[4].mxu0 %vm7861_vm1, %v3335_v25  ;;  %v3097_v5 = vsel %vm874_vm2, %v3085_v37, %v3086_v56  ;;  %v3150_v2 = vrot.slane %v6493_v3, 7  ;;  %v7871_v30 = vld [vmem:[#allocation9_spill] sm:$0xff] }
 0x1a3   : > { %v3309_v9 = vsel %vm7860_vm4, %v3289_v8, -inf  ;;  %v3260_v15 = vmax.f32 %v3196_v59, %v3226_v38  ;;  %v3151_v54 = vrot.slane %v6495_v29, 7  ;;  %v3261_v18 = vmax.f32 %v3197_v22, %v3245_v23 }
 0x1a4   : > { %v3096_v32 = vsel %vm874_vm2, %v3086_v56, %v3087_v53  ;;  %vm7863_vm11 = vcmp.ge.s32.totalorder %v7862_v55, 0  ;;  %v3215_v51 = vrot.slane %v6495_v29, 1  ;;  %v3161_v14 = vsel %vm1195_vm9, %v3149_v12, %v3150_v2  ;;  %v7867_v12 = vld [vmem:[#allocation54_spill] sm:$0xff] }
 0x1a5   : > { %v3118_v41 = vsel %vm7863_vm11, %v3097_v5, -inf  ;;  %v3324_v19 = vmax.f32 %v3260_v15, %v3290_v21  ;;  %v3135_v44 = vmax.f32 %v6495_v29, %v3096_v32  ;;  %v3160_v58 = vsel %vm1195_vm9, %v3150_v2, %v3151_v54  ;;  %v7884_v5 = vld [vmem:[#allocation43_spill] sm:$0xff] }
 0x1a6   : > { %v3134_v20 = vmax.f32 %v6493_v3, %v3118_v41  ;;  %v3325_v17 = vmax.f32 %v3261_v18, %v3309_v9  ;;  %v3216_v63 = vrot.slane %v6498_v40, 1  ;;  %v3224_v48 = vsel %vm1516_vm15, %v3214_v10, %v3215_v51  ;;  %v7882_v9 = vld [vmem:[#allocation2_spill] sm:$0xff] }
 0x1a7   : > { %vm7865_vm14 = vcmp.ge.s32.totalorder %v7864_v26, 0  ;;  %v3199_v33 = vmax.f32 %v3135_v44, %v3160_v58  ;;  %v3279_v3 = vrot.slane %v6495_v29, 2  ;;  %v3280_v47 = vrot.slane %v6498_v40, 2 }
 0x1a8   : > { %v3182_v24 = vsel %vm7865_vm14, %v3161_v14, -inf  ;;  %v3336_v56 = vpack.c.bf16 %v3325_v17, %v3324_v19  ;;  %v3223_v37 = vsel %vm1516_vm15, %v3215_v51, %v3216_v63  ;;  %v7866_v35 = vrot.slane %v6391_v46, 6  ;;  %v7885_v51 = vld [vmem:[#allocation18_spill] sm:$0xff] }
 0x1a9   : > { %v3198_v13 = vmax.f32 %v3134_v20, %v3182_v24  ;;  %v7868_v42 = vrot.slane %v7867_v12, 6  ;;  %vm7870_vm0 = vcmp.lt.s32.totalorder %v7869_v52, 16  ;;  %v3287_v29 = vsel %vm1837_vm12, %v3279_v3, %v3280_v47 }
 0x1aa   : > { %v3247_v7 = vsel %vm7870_vm0, %v3223_v37, -inf  ;;  %v3288_v1 = vsel %vm1837_vm12, %v3278_v28, %v3279_v3  ;;  %vm7872_vm8 = vcmp.ge.s32.totalorder %v7871_v30, 0  ;;  %3871 = vmatprep.mubr.msk.bf16.mxu0 %vm7873_vm13, %v3336_v56  ;;  %vm7875_vm6 = vcmp.lt.s32.totalorder %v7874_v57, 16  ;;  %v7888_v3 = vld [vmem:[#allocation24_spill] sm:$0xff] }
 0x1ab   : > { %v2505_v10 = vsel %vm874_vm2, %v7868_v42, %v7866_v35  ;;  %v3262_v11 = vmax.f32 %v3198_v13, %v3224_v48  ;;  %v3263_v27 = vmax.f32 %v3199_v33, %v3247_v7  ;;  %v3311_v31 = vsel %vm7875_vm6, %v3287_v29, -inf }
 0x1ac   : > { %v2550_v62 = vsel %vm7872_vm8, %v2505_v10, -inf  ;;  %v7876_v34 = vrot.slane %v6391_v46, 7  ;;  %v7877_v50 = vrot.slane %v7867_v12, 7  ;;  %v7878_v28 = vrot.slane %v6620_v61, 1  ;;  %v7891_v12 = vld [vmem:[#allocation55_spill] sm:$0xff] }
 0x1ad   : > { %v2574_v36 = vmax.f32 %v6391_v46, %v2550_v62  ;;  %v7879_v25 = vrot.slane %v6391_v46, 1  ;;  %v7880_v6 = vrot.slane %v6620_v61, 2  ;;  %v7881_v23 = vrot.slane %v6391_v46, 2 }
 0x1ae   : > { %v2601_v38 = vsel %vm1195_vm9, %v7877_v50, %v7876_v34  ;;  %v3088_v22 = vrot.slane %v6498_v40, 6  ;;  %v3326_v21 = vmax.f32 %v3262_v11, %v3288_v1  ;;  %v3327_v60 = vmax.f32 %v3263_v27, %v3311_v31  ;;  %v7893_v11 = vld [vmem:[#allocation32_spill] sm:$0xff]  ;;  %v7895_v31 = vld [vmem:[#allocation31_spill] sm:$0xff]  ;;  %v7897_v34 = vld [vmem:[#allocation37_spill] sm:$0xff] }
 0x1af   : > { %v2696_v59 = vsel %vm1516_vm15, %v7879_v25, %v7878_v28  ;;  %v2792_v8 = vsel %vm1837_vm12, %v7881_v23, %v7880_v6  ;;  %vm7883_vm3 = vcmp.ge.s32.totalorder %v7882_v9, 0  ;;  %v3089_v2 = vrot.slane %v7884_v5, 6 }
 0x1b0   : > { %v2646_v15 = vsel %vm7883_vm3, %v2601_v38, -inf  ;;  %v3095_v32 = vsel %vm874_vm2, %v3087_v53, %v3088_v22  ;;  %v3152_v61 = vrot.slane %v6498_v40, 7  ;;  %v3153_v46 = vrot.slane %v7884_v5, 7  ;;  %v7899_v38 = vld [vmem:[#allocation19_spill] sm:$0xff] }
 0x1b1   : > { %v2670_v18 = vmax.f32 %v2574_v36, %v2646_v15  ;;  %v3337_v55 = vpack.c.bf16 %v3327_v60, %v3326_v21  ;;  %v3094_v41 = vsel %vm874_vm2, %v3088_v22, %v3089_v2  ;;  %vm7886_vm5 = vcmp.ge.s32.totalorder %v7885_v51, 0 }
 0x1b2   : > { %v3120_v19 = vsel %vm7886_vm5, %v3095_v32, -inf  ;;  %v3217_v20 = vrot.slane %v7884_v5, 1  ;;  %v3137_v17 = vmax.f32 %v7884_v5, %v3094_v41  ;;  %v3158_v53 = vsel %vm1195_vm9, %v3152_v61, %v3153_v46 }
 0x1b3   : > { %v2766_v44 = vmax.f32 %v2670_v18, %v2696_v59  ;;  %v3136_v58 = vmax.f32 %v6498_v40, %v3120_v19  ;;  %3872 = vmatmul.mubr.msk.bf16.gmra.mrb[8].mxu0 %vm7887_vm10, %v3337_v55  ;;  %v3159_v14 = vsel %vm1195_vm9, %v3151_v54, %v3152_v61  ;;  %v3281_v26 = vrot.slane %v7884_v5, 2 }
 0x1b4   : > { %v3222_v48 = vsel %vm1516_vm15, %v3216_v63, %v3217_v20  ;;  %v3219_v24 = vrot.slane %v6761_v43, 1  ;;  %vm7889_vm7 = vcmp.ge.s32.totalorder %v7888_v3, 0  ;;  %v3201_v56 = vmax.f32 %v3137_v17, %v3158_v53  ;;  %v7890_v63 = vld [vmem:[#allocation56_spill] sm:$0xff] }
 0x1b5   : > { %v2862_v33 = vmax.f32 %v2766_v44, %v2792_v8  ;;  %v3184_v40 = vsel %vm7889_vm7, %v3159_v14, -inf  ;;  %v3283_v13 = vrot.slane %v6761_v43, 2  ;;  %v3286_v35 = vsel %vm1837_vm12, %v3280_v47, %v3281_v26  ;;  %v7901_v8 = vld [vmem:[#allocation25_spill] sm:$0xff] }
 0x1b6   : > { %v3200_v37 = vmax.f32 %v3136_v58, %v3184_v40  ;;  %v3235_v54 = vsel %vm1516_vm15, %v3219_v24, %v3204_v49  ;;  %v7892_v42 = vmax.f32 %v7890_v63, %v7891_v12  ;;  %vm7894_vm4 = vcmp.lt.s32.totalorder %v7893_v11, 16 }
 0x1b7   : > { %v3299_v52 = vsel %vm1837_vm12, %v3283_v13, %v3268_v0  ;;  %v3251_v27 = vsel %vm7894_vm4, %v3235_v54, -inf  ;;  %vm7896_vm1 = vcmp.lt.s32.totalorder %v7895_v31, 16  ;;  %vm7898_vm11 = vcmp.lt.s32.totalorder %v7897_v34, 16 }
 0x1b8   : > { %v3074_v10 = vmax.f32 %v7892_v42, %v2862_v33  ;;  %v3264_v7 = vmax.f32 %v3200_v37, %v3222_v48  ;;  %vm7900_vm14 = vcmp.ge.s32.totalorder %v7899_v38, 0 }
 0x1ba   : > { %v3218_v29 = vrot.slane %v3074_v10, 1  ;;  %v3282_v1 = vrot.slane %v3074_v10, 2  ;;  %v3090_v30 = vrot.slane %v3074_v10, 6  ;;  %v3154_v62 = vrot.slane %v3074_v10, 7 }
 0x1bb   : > { %v3328_v47 = vmax.f32 %v3264_v7, %v3286_v35 }
 0x1bc   : > { %v3221_v49 = vsel %vm1516_vm15, %v3217_v20, %v3218_v29  ;;  %v3285_v57 = vsel %vm1837_vm12, %v3281_v26, %v3282_v1  ;;  %v3092_v16 = vsel %vm874_vm2, %v3090_v30, %v3091_v45  ;;  %v3093_v0 = vsel %vm874_vm2, %v3089_v2, %v3090_v30  ;;  %v7903_v2 = vld [vmem:[#allocation38_spill] sm:$0xff] }
 0x1bd   : > { %v3249_v36 = vsel %vm7896_vm1, %v3221_v49, -inf  ;;  %v3313_v50 = vsel %vm7898_vm11, %v3285_v57, -inf  ;;  %v3122_v28 = vsel %vm7900_vm14, %v3093_v0, -inf  ;;  %v3139_v25 = vmax.f32 %v6761_v43, %v3092_v16 }
 0x1be   : > { %v3265_v59 = vmax.f32 %v3201_v56, %v3249_v36  ;;  %v3138_v6 = vmax.f32 %v3074_v10, %v3122_v28  ;;  %v3156_v45 = vsel %vm1195_vm9, %v3154_v62, %v3155_v39  ;;  %v3157_v23 = vsel %vm1195_vm9, %v3153_v46, %v3154_v62  ;;  %vm7905_vm9 = vmmov %vm7887_vm10 }
 0x1bf   : > { %vm7902_vm2 = vcmp.ge.s32.totalorder %v7901_v8, 0  ;;  %v3203_v21 = vmax.f32 %v3139_v25, %v3156_v45  ;;  %v3220_v60 = vsel %vm1516_vm15, %v3218_v29, %v3219_v24  ;;  %v3284_v9 = vsel %vm1837_vm12, %v3282_v1, %v3283_v13  ;;  %vm7906_vm8 = vmmov %vm7905_vm9  ;;  %v7108_v13 = vld [vmem:[%s7239_s2] ss:$0 sm:$0xff] }
 0x1c0   : > { %v3186_v22 = vsel %vm7902_vm2, %v3157_v23, -inf  ;;  %v3329_v15 = vmax.f32 %v3265_v59, %v3313_v50  ;;  %vm7904_vm0 = vcmp.lt.s32.totalorder %v7903_v2, 16  ;;  %vm7907_vm12 = vmmov %vm7906_vm8 }
 0x1c1   : > { %v3202_v5 = vmax.f32 %v3138_v6, %v3186_v22  ;;  %v3315_v43 = vsel %vm7904_vm0, %v3299_v52, -inf  ;;  %v3267_v18 = vmax.f32 %v3203_v21, %v3251_v27  ;;  %vm7908_vm15 = vmmov %vm7906_vm8 }
 0x1c2   : > { %v3338_v39 = vpack.c.bf16 %v3329_v15, %v3328_v47  ;;  %vm7909_vm13 = vmmov %vm7906_vm8 }
 0x1c3   : > { %v3266_v32 = vmax.f32 %v3202_v5, %v3220_v60  ;;  %v3331_v61 = vmax.f32 %v3267_v18, %v3315_v43  ;;  %vm7910_vm6 = vmmov %vm7906_vm8 }
 0x1c4   : > { %3875 = vmatprep.mubr.msk.bf16.mxu0 %vm7905_vm9, %v3338_v39  ;;  %vm7911_vm3 = vmmov %vm7910_vm6 }
 0x1c5   : > { %v3330_v46 = vmax.f32 %v3266_v32, %v3284_v9  ;;  %vm7912_vm5 = vmmov %vm7911_vm3 }
 0x1c6   : > { %vm7913_vm10 = vmmov %vm7911_vm3 }
 0x1c7   : > { %v3339_v55 = vpack.c.bf16 %v3331_v61, %v3330_v46  ;;  %vm7914_vm7 = vmmov %vm7911_vm3 }
 0x1c8   : > { %vm7915_vm4 = vmmov %vm7911_vm3 }
 0x1c9   : > { %3876 = vmatmul.mubr.msk.bf16.gmra.mrb[12].mxu0 %vm7906_vm8, %v3339_v55  ;;  %vm7916_vm1 = vmmov %vm7911_vm3 }
 0x1ca   : > { %vm7917_vm11 = vmmov %vm7916_vm1 }
 0x1cb   : > { %vm7918_vm14 = vmmov %vm7916_vm1 }
 0x1cc   : > { %vm7919_vm2 = vmmov %vm7916_vm1 }
 0x1cd   : > { %vm7920_vm0 = vmmov %vm7916_vm1 }
 0x1ce   : > { %vm7921_vm9 = vmmov %vm7920_vm0 }
 0x1cf   : > { %vm7922_vm8 = vmmov %vm7920_vm0 }
 0x1dd   : > { %v3829_v41 = vpop.f32.mrb[0].mxu1 }
 0x1de   : > { %v2321_v51 = vpop.f32.mrb[1].mxu1 }
 0x1df   : > { %v3830_v19 = vpop.f32.mrb[2].mxu1 }
 0x1e0   : > { %v2324_v4 = vpop.f32.mrb[3].mxu1 }
 0x1e7   : > { %v3833_v20 = vpop.f32.mrb[4].mxu1 }
 0x1e8   : > { %v2337_v44 = vpop.f32.mrb[5].mxu1 }
 0x1e9   : > { %v3834_v58 = vpop.f32.mrb[6].mxu1 }
 0x1ea   : > { %v2340_v17 = vpop.f32.mrb[7].mxu1 }
 0x222   : > { %v7089_v53 = vpop.f32.mrb[8].mxu1 }
 0x223   : > { %v7091_v14 = vpop.f32.mrb[9].mxu1 }
 0x224   : > { %v7093_v48 = vpop.f32.mrb[10].mxu1 }
 0x225   : > { %v7095_v26 = vpop.f32.mrb[11].mxu1 }
 0x239   : > { %v7097_v24 = vpop.f32.mrb[12].mxu1 }
 0x23a   : > { %v7099_v33 = vpop.f32.mrb[13].mxu1 }
 0x23b   : > { %v7101_v3 = vpop.f32.mrb[14].mxu1 }
 0x23c   : > { %v7103_v40 = vpop.f32.mrb[15].mxu1 }
 0x269   : > { %v3865_v56 = vpop.f32.mrb[0].mxu0 }
 0x26a   : > { %v3879_v37 = vadd.f32 %v3865_v56, %v3829_v41  ;;  %v3401_v35 = vpop.f32.mrb[1].mxu0 }
 0x26b   : > { %v3880_v54 = vadd.f32 %v3401_v35, %v2321_v51  ;;  %v3866_v63 = vpop.f32.mrb[2].mxu0 }
 0x26c   : > { %v7111_v12 = vadd.f32 %v3879_v37, %v7108_v13  ;;  %v3881_v42 = vadd.f32 %v3866_v63, %v3830_v19  ;;  %v3404_v10 = vpop.f32.mrb[3].mxu0 }
 0x26d   : > { %v7114_v52 = vadd.f32 %v3880_v54, %v7108_v13  ;;  %v3882_v7 = vadd.f32 %v3404_v10, %v2324_v4 }
 0x26e   : > { %v3505_v29 = vsub.f32 0.0, %v7111_v12  ;;  %v7118_v1 = vadd.f32 %v3881_v42, %v7108_v13 }
 0x26f   : > { %v3503_v30 = vsub.f32 0.0, %v7114_v52  ;;  %v7122_v62 = vadd.f32 %v3882_v7, %v7108_v13 }
 0x270   : > { %v3523_v47 = vmul.f32 1.442695, %v3505_v29  ;;  %v3506_v11 = vsub.f32 0.0, %v7118_v1 }
 0x271   : > { %v3519_v27 = vmul.f32 1.442695, %v3503_v30  ;;  %v3504_v49 = vsub.f32 0.0, %v7122_v62 }
 0x272   : > { %3971 = vpow2.f32 %v3523_v47  ;;  %v3525_v57 = vmul.f32 1.442695, %v3506_v11 }
 0x273   : > { %3973 = vpow2.f32 %v3519_v27  ;;  %v3521_v16 = vmul.f32 1.442695, %v3504_v49 }
 0x274   : > { %3975 = vpow2.f32 %v3525_v57 }
 0x275   : > { %v3869_v0 = vpop.f32.mrb[4].mxu0  ;;  %3977 = vpow2.f32 %v3521_v16 }
 0x276   : > { %v3883_v31 = vadd.f32 %v3869_v0, %v3833_v20  ;;  %v3417_v36 = vpop.f32.mrb[5].mxu0 }
 0x277   : > { %v3884_v34 = vadd.f32 %v3417_v36, %v2337_v44  ;;  %v3870_v50 = vpop.f32.mrb[6].mxu0 }
 0x278   : > { %v7127_v38 = vadd.f32 %v3883_v31, %v7108_v13  ;;  %v3885_v28 = vadd.f32 %v3870_v50, %v3834_v58  ;;  %v3420_v25 = vpop.f32.mrb[7].mxu0 }
 0x279   : > { %v7131_v59 = vadd.f32 %v3884_v34, %v7108_v13  ;;  %v3886_v6 = vadd.f32 %v3420_v25, %v2340_v17 }
 0x27a   : > { %v3509_v45 = vsub.f32 0.0, %v7127_v38  ;;  %v7135_v23 = vadd.f32 %v3885_v28, %v7108_v13 }
 0x27b   : > { %v3507_v8 = vsub.f32 0.0, %v7131_v59  ;;  %v7139_v22 = vadd.f32 %v3886_v6, %v7108_v13 }
 0x27c   : > { %v3531_v21 = vmul.f32 1.442695, %v3509_v45  ;;  %v3510_v60 = vsub.f32 0.0, %v7135_v23  ;;  %v3972_v9 = vpop.eup %3971 }
 0x27d   : > { %v3527_v15 = vmul.f32 1.442695, %v3507_v8  ;;  %v3508_v5 = vsub.f32 0.0, %v7139_v22  ;;  %v3974_v2 = vpop.eup %3973  ;;  %v3553_v43 = vadd.f32 1.0, %v3972_v9 }
 0x27e   : > { %3979 = vpow2.f32 %v3531_v21  ;;  %v3976_v18 = vpop.eup %3975  ;;  %v3551_v39 = vadd.f32 1.0, %v3974_v2  ;;  %v3533_v46 = vmul.f32 1.442695, %v3510_v60 }
 0x27f   : > { %3981 = vpow2.f32 %v3527_v15  ;;  %v3978_v32 = vpop.eup %3977  ;;  %v3554_v61 = vadd.f32 1.0, %v3976_v18  ;;  %v3529_v41 = vmul.f32 1.442695, %v3508_v5 }
 0x280   : > { %3983 = vrcp.f32 %v3553_v43  ;;  %v3552_v55 = vadd.f32 1.0, %v3978_v32 }
 0x281   : > { %3985 = vrcp.f32 %v3551_v39 }
 0x282   : > { %3987 = vrcp.f32 %v3554_v61 }
 0x283   : > { %3989 = vrcp.f32 %v3552_v55 }
 0x284   : > { %3991 = vpow2.f32 %v3533_v46 }
 0x285   : > { %3993 = vpow2.f32 %v3529_v41 }
 0x286   : > { %v3873_v51 = vpop.f32.mrb[8].mxu0 }
 0x287   : > { %v3887_v19 = vadd.f32 %v3873_v51, %v7089_v53  ;;  %v3433_v4 = vpop.f32.mrb[9].mxu0 }
 0x288   : > { %v3888_v20 = vadd.f32 %v3433_v4, %v7091_v14  ;;  %v3874_v44 = vpop.f32.mrb[10].mxu0  ;;  %v3980_v14 = vpop.eup %3979 }
 0x289   : > { %v7148_v58 = vadd.f32 %v3887_v19, %v7108_v13  ;;  %v3889_v17 = vadd.f32 %v3874_v44, %v7093_v48  ;;  %v3436_v56 = vpop.f32.mrb[11].mxu0  ;;  %v3982_v10 = vpop.eup %3981  ;;  %v3557_v48 = vadd.f32 1.0, %v3980_v14 }
 0x28a   : > { %v7152_v37 = vadd.f32 %v3888_v20, %v7108_v13  ;;  %v3890_v35 = vadd.f32 %v3436_v56, %v7095_v26  ;;  %v3984_v30 = vpop.eup %3983  ;;  %v3555_v26 = vadd.f32 1.0, %v3982_v10 }
 0x28b   : > { %v3513_v53 = vsub.f32 0.0, %v7148_v58  ;;  %v7157_v54 = vadd.f32 %v3889_v17, %v7108_v13  ;;  %v3986_v27 = vpop.eup %3985  ;;  %v3585_v49 = vmul.f32 %v3984_v30, %v7111_v12  ;;  %3995 = vrcp.f32 %v3557_v48 }
 0x28c   : > { %v3511_v63 = vsub.f32 0.0, %v7152_v37  ;;  %v7161_v42 = vadd.f32 %v3890_v35, %v7108_v13  ;;  %v3988_v16 = vpop.eup %3987  ;;  %v3583_v0 = vmul.f32 %v3986_v27, %v7114_v52  ;;  %3997 = vrcp.f32 %v3555_v26 }
 0x28d   : > { %v3539_v7 = vmul.f32 1.442695, %v3513_v53  ;;  %v3514_v29 = vsub.f32 0.0, %v7157_v54  ;;  %v3990_v36 = vpop.eup %3989  ;;  %3601 = vst.msk [vmem:[%s7167_s9 + $0x10] sm:$0xff] %vm7907_vm12, %v3585_v49  ;;  %v3586_v34 = vmul.f32 %v3988_v16, %v7118_v1 }
 0x28e   : > { %v3535_v47 = vmul.f32 1.442695, %v3511_v63  ;;  %v3512_v11 = vsub.f32 0.0, %v7161_v42  ;;  %v3992_v50 = vpop.eup %3991  ;;  %3599 = vst.msk [vmem:[%s7167_s9] sm:$0xff] %vm7908_vm15, %v3583_v0  ;;  %v3584_v12 = vmul.f32 %v3990_v36, %v7122_v62 }
 0x28f   : > { %v3541_v57 = vmul.f32 1.442695, %v3514_v29  ;;  %3999 = vpow2.f32 %v3539_v7  ;;  %v3994_v28 = vpop.eup %3993  ;;  %3602 = vst.msk [vmem:[%s7167_s9 + $0x18] sm:$0xff] %vm7909_vm13, %v3586_v34  ;;  %v3558_v25 = vadd.f32 1.0, %v3992_v50 }
 0x290   : > { %v3537_v31 = vmul.f32 1.442695, %v3512_v11  ;;  %4001 = vpow2.f32 %v3535_v47  ;;  %3600 = vst.msk [vmem:[%s7167_s9 + $0x8] sm:$0xff] %vm7910_vm6, %v3584_v12  ;;  %v3556_v52 = vadd.f32 1.0, %v3994_v28 }
 0x291   : > { %4003 = vpow2.f32 %v3541_v57 }
 0x292   : > { %4005 = vpow2.f32 %v3537_v31 }
 0x293   : > { %4007 = vrcp.f32 %v3558_v25 }
 0x294   : > { %4009 = vrcp.f32 %v3556_v52 }
 0x295   : > { %v3996_v1 = vpop.eup %3995 }
 0x296   : > { %v3998_v45 = vpop.eup %3997  ;;  %v3589_v8 = vmul.f32 %v3996_v1, %v7127_v38 }
 0x297   : > { %v3587_v9 = vmul.f32 %v3998_v45, %v7131_v59 }
 0x298   : > { %3605 = vst.msk [vmem:[%s7167_s9 + $0x30] sm:$0xff] %vm7911_vm3, %v3589_v8 }
 0x299   : > { %v4000_v60 = vpop.eup %3999  ;;  %3603 = vst.msk [vmem:[%s7167_s9 + $0x20] sm:$0xff] %vm7912_vm5, %v3587_v9 }
 0x29a   : > { %v4002_v2 = vpop.eup %4001  ;;  %v3561_v43 = vadd.f32 1.0, %v4000_v60 }
 0x29b   : > { %v4004_v61 = vpop.eup %4003 }
 0x29c   : > { %v3877_v6 = vpop.f32.mrb[12].mxu0  ;;  %v4006_v46 = vpop.eup %4005  ;;  %4011 = vrcp.f32 %v3561_v43 }
 0x29d   : > { %v3891_v62 = vadd.f32 %v3877_v6, %v7097_v24  ;;  %v3449_v21 = vpop.f32.mrb[13].mxu0  ;;  %v3559_v24 = vadd.f32 1.0, %v4002_v2  ;;  %v4008_v51 = vpop.eup %4007 }
 0x29e   : > { %v3892_v15 = vadd.f32 %v3449_v21, %v7099_v33  ;;  %v3878_v5 = vpop.f32.mrb[14].mxu0  ;;  %v3562_v33 = vadd.f32 1.0, %v4004_v61  ;;  %v4010_v20 = vpop.eup %4009  ;;  %v3590_v44 = vmul.f32 %v4008_v51, %v7135_v23 }
 0x29f   : > { %v3501_v18 = vadd.f32 %v3891_v62, %v7108_v13  ;;  %v3893_v39 = vadd.f32 %v3878_v5, %v7101_v3  ;;  %v3452_v32 = vpop.f32.mrb[15].mxu0  ;;  %4013 = vrcp.f32 %v3559_v24  ;;  %v3560_v3 = vadd.f32 1.0, %v4006_v46 }
 0x2a0   : > { %v3499_v38 = vadd.f32 %v3892_v15, %v7108_v13  ;;  %v3894_v59 = vadd.f32 %v3452_v32, %v7103_v40  ;;  %4015 = vrcp.f32 %v3562_v33  ;;  %v3588_v56 = vmul.f32 %v4010_v20, %v7139_v22  ;;  %3606 = vst.msk [vmem:[%s7167_s9 + $0x38] sm:$0xff] %vm7913_vm10, %v3590_v44 }
 0x2a1   : > { %v3517_v55 = vsub.f32 0.0, %v3501_v18  ;;  %v3502_v41 = vadd.f32 %v3893_v39, %v7108_v13  ;;  %4017 = vrcp.f32 %v3560_v3 }
 0x2a2   : > { %v3515_v19 = vsub.f32 0.0, %v3499_v38  ;;  %v3500_v4 = vadd.f32 %v3894_v59, %v7108_v13  ;;  %3604 = vst.msk [vmem:[%s7167_s9 + $0x28] sm:$0xff] %vm7914_vm7, %v3588_v56 }
 0x2a3   : > { %v3547_v17 = vmul.f32 1.442695, %v3517_v55  ;;  %v3518_v40 = vsub.f32 0.0, %v3502_v41 }
 0x2a4   : > { %v3543_v35 = vmul.f32 1.442695, %v3515_v19  ;;  %v3516_v53 = vsub.f32 0.0, %v3500_v4 }
 0x2a5   : > { %4019 = vpow2.f32 %v3547_v17  ;;  %v3549_v14 = vmul.f32 1.442695, %v3518_v40 }
 0x2a6   : > { %4021 = vpow2.f32 %v3543_v35  ;;  %v3545_v13 = vmul.f32 1.442695, %v3516_v53  ;;  %v4012_v23 = vpop.eup %4011 }
 0x2a7   : > { %4023 = vpow2.f32 %v3549_v14  ;;  %v3593_v22 = vmul.f32 %v4012_v23, %v7148_v58 }
 0x2a8   : > { %4025 = vpow2.f32 %v3545_v13 }
 0x2a9   : > { %v4014_v63 = vpop.eup %4013  ;;  %3609 = vst.msk [vmem:[%s7167_s9 + $0x50] sm:$0xff] %vm7915_vm4, %v3593_v22 }
 0x2aa   : > { %v4016_v10 = vpop.eup %4015  ;;  %v3591_v48 = vmul.f32 %v4014_v63, %v7152_v37 }
 0x2ab   : > { %v4018_v7 = vpop.eup %4017  ;;  %v3594_v29 = vmul.f32 %v4016_v10, %v7157_v54 }
 0x2ac   : > { %3607 = vst.msk [vmem:[%s7167_s9 + $0x40] sm:$0xff] %vm7916_vm1, %v3591_v48  ;;  %v3592_v26 = vmul.f32 %v4018_v7, %v7161_v42 }
 0x2ad   : > { %3610 = vst.msk [vmem:[%s7167_s9 + $0x58] sm:$0xff] %vm7917_vm11, %v3594_v29 }
 0x2ae   : > { %3608 = vst.msk [vmem:[%s7167_s9 + $0x48] sm:$0xff] %vm7918_vm14, %v3592_v26 }
 0x2af   : > { %v4020_v30 = vpop.eup %4019 }
 0x2b0   : > { %v4022_v47 = vpop.eup %4021  ;;  %v3565_v11 = vadd.f32 1.0, %v4020_v30 }
 0x2b1   : > { %v4024_v27 = vpop.eup %4023  ;;  %v3563_v58 = vadd.f32 1.0, %v4022_v47 }
 0x2b2   : > { %v4026_v37 = vpop.eup %4025  ;;  %4027 = vrcp.f32 %v3565_v11  ;;  %v3566_v49 = vadd.f32 1.0, %v4024_v27 }
 0x2b3   : > { %4029 = vrcp.f32 %v3563_v58  ;;  %v3564_v54 = vadd.f32 1.0, %v4026_v37 }
 0x2b4   : > { %4031 = vrcp.f32 %v3566_v49 }
 0x2b5   : > { %4033 = vrcp.f32 %v3564_v54 }
 0x2bc   : > { %v4028_v42 = vpop.eup %4027 }
 0x2bd   : > { %v4030_v57 = vpop.eup %4029  ;;  %v3597_v16 = vmul.f32 %v4028_v42, %v3501_v18 }
 0x2be   : > { %v4032_v0 = vpop.eup %4031  ;;  %v3595_v31 = vmul.f32 %v4030_v57, %v3499_v38 }
 0x2bf   : > { %v4034_v36 = vpop.eup %4033  ;;  %3613 = vst.msk [vmem:[%s7167_s9 + $0x70] sm:$0xff] %vm7919_vm2, %v3597_v16  ;;  %v3598_v34 = vmul.f32 %v4032_v0, %v3502_v41 }
 0x2c0   : > { %3611 = vst.msk [vmem:[%s7167_s9 + $0x60] sm:$0xff] %vm7920_vm0, %v3595_v31  ;;  %v3596_v50 = vmul.f32 %v4034_v36, %v3500_v4 }
 0x2c1   : > { %3614 = vst.msk [vmem:[%s7167_s9 + $0x78] sm:$0xff] %vm7921_vm9, %v3598_v34 }
 0x2c2   : > { %3612 = vst.msk [vmem:[%s7167_s9 + $0x68] sm:$0xff] %vm7922_vm8, %v3596_v50 }
 0x2c3 PF: > { %s13_s16 = sadd.s32 1, %s4091_s16   ;;  %s7923_s12 = smov %s4083_s14 }
 0x2c4   : > { %p10_p12 = scmp.ge.s32.totalorder %s13_s16, 6   ;;  %s7924_s13 = smov %s4087_s15 }
 0x2c5   : > { %s7925_s14 = smov %s7928_s17  ;;  %s7926_s15 = smov %s7932_s18 }
 0x2c6   :  { %12 = sbr.rel (!%p10_p12) target bundleno = 3 (0x3), region = 65 }

// kernel: _lambda_.11
= control target key start
LH: loop header
LB: loop body
LE: loop exit
PB: predicated region body
PF: predicated region fallthrough
CT: control target
= control target key end

     0   :  { %vm309_vm0 = vcmask 1043456   ;;  %vm212_vm1 = vcmask 64512   ;;  %s3164_s2 = inlined_call_operand.vmem [shape: bf16[16,8], index: 2, kind: input, shape index: {}]   ;;  %s3165_s1 = inlined_call_operand.vmem [shape: f32[512,8], index: 1, kind: input, shape index: {}]   ;;  %s3166_s0 = inlined_call_operand.vmem [shape: f32[512,8], index: 0, kind: input, shape index: {}]   ;;  %s3167_s3 = inlined_call_operand.vmem [shape: f32[1,8], index: 3, kind: input, shape index: {}]   ;;  %s3168_s4 = inlined_call_operand.vmem [shape: f32[512,8], index: 4, kind: output, shape index: {}]  }
   0x1   :  { %v19_v0 = vld [vmem:[%s3164_s2 + $0x4] sm:$0xf]  ;;  %v18_v1 = vld [vmem:[%s3164_s2] sm:$0xf]  ;;  %v117_v5 = vld [vmem:[%s3165_s1 + $0x8] sm:$0xff] }
   0x2   :  { %v116_v2 = vld [vmem:[%s3165_s1] sm:$0xff]  ;;  %1840 = vmatprep.subr.msk.bf16.mxu1 %vm309_vm0, %v19_v0  ;;  %1841 = vmatprep.subr.msk.bf16.mxu0 %vm309_vm0, %v18_v1  ;;  %v311_v3 = vsel %vm309_vm0, %v19_v0, 0  ;;  %v699_v4 = vsel %vm309_vm0, %v18_v1, 0  ;;  %v21_v7 = vld [vmem:[%s3166_s0 + $0x8] sm:$0xff]  ;;  %v118_v10 = vld [vmem:[%s3165_s1 + $0x10] sm:$0xff] }
   0x3   :  { %v20_v6 = vld [vmem:[%s3166_s0] sm:$0xff]  ;;  %1645 = vmatpush3.bf16.msra.mxu1 %v311_v3  ;;  %1711 = vmatpush3.bf16.msra.mxu0 %v699_v4  ;;  %v180_v8 = vpack.c.bf16 %v117_v5, %v116_v2  ;;  %v119_v11 = vld [vmem:[%s3165_s1 + $0x18] sm:$0xff]  ;;  %v22_v12 = vld [vmem:[%s3166_s0 + $0x10] sm:$0xff] }
   0x4   :  { %v84_v9 = vpack.c.bf16 %v21_v7, %v20_v6  ;;  %v181_v13 = vpack.c.bf16 %v119_v11, %v118_v10  ;;  %v23_v14 = vld [vmem:[%s3166_s0 + $0x18] sm:$0xff]  ;;  %v120_v15 = vld [vmem:[%s3165_s1 + $0x20] sm:$0xff]  ;;  %v121_v16 = vld [vmem:[%s3165_s1 + $0x28] sm:$0xff] }
   0x5   :  { %1646 = vmatprep.mubr.msk.bf16.mxu1 %vm212_vm1, %v180_v8  ;;  %v85_v17 = vpack.c.bf16 %v23_v14, %v22_v12  ;;  %v182_v18 = vpack.c.bf16 %v121_v16, %v120_v15  ;;  %v24_v19 = vld [vmem:[%s3166_s0 + $0x20] sm:$0xff]  ;;  %v25_v20 = vld [vmem:[%s3166_s0 + $0x28] sm:$0xff]  ;;  %v122_v22 = vld [vmem:[%s3165_s1 + $0x30] sm:$0xff] }
   0x6   :  { %1712 = vmatprep.mubr.msk.bf16.mxu0 %vm212_vm1, %v84_v9  ;;  %1647 = vmatmul.mubr.msk.bf16.vlgmr.msra.gmra.mrb[0].mxu1 %vm212_vm1, %v181_v13  ;;  %v86_v21 = vpack.c.bf16 %v25_v20, %v24_v19  ;;  %v123_v23 = vld [vmem:[%s3165_s1 + $0x38] sm:$0xff]  ;;  %v26_v24 = vld [vmem:[%s3166_s0 + $0x30] sm:$0xff]  ;;  %v124_v26 = vld [vmem:[%s3165_s1 + $0x40] sm:$0xff] }
   0x7   :  { %1713 = vmatmul.mubr.msk.bf16.vlgmr.msra.gmra.mrb[0].mxu0 %vm212_vm1, %v85_v17  ;;  %1650 = vmatprep.mubr.msk.bf16.mxu1 %vm212_vm1, %v182_v18  ;;  %v27_v25 = vld [vmem:[%s3166_s0 + $0x38] sm:$0xff]  ;;  %v125_v27 = vld [vmem:[%s3165_s1 + $0x48] sm:$0xff]  ;;  %v28_v28 = vld [vmem:[%s3166_s0 + $0x40] sm:$0xff]  ;;  %v183_v30 = vpack.c.bf16 %v123_v23, %v122_v22 }
   0x8   :  { %1716 = vmatprep.mubr.msk.bf16.mxu0 %vm212_vm1, %v86_v21  ;;  %v29_v29 = vld [vmem:[%s3166_s0 + $0x48] sm:$0xff]  ;;  %v87_v31 = vpack.c.bf16 %v27_v25, %v26_v24  ;;  %v184_v32 = vpack.c.bf16 %v125_v27, %v124_v26  ;;  %v126_v34 = vld [vmem:[%s3165_s1 + $0x50] sm:$0xff]  ;;  %v127_v35 = vld [vmem:[%s3165_s1 + $0x58] sm:$0xff] }
   0x9   :  { %v88_v33 = vpack.c.bf16 %v29_v29, %v28_v28  ;;  %v30_v36 = vld [vmem:[%s3166_s0 + $0x50] sm:$0xff]  ;;  %v31_v37 = vld [vmem:[%s3166_s0 + $0x58] sm:$0xff]  ;;  %v128_v38 = vld [vmem:[%s3165_s1 + $0x60] sm:$0xff]  ;;  %v185_v42 = vpack.c.bf16 %v127_v35, %v126_v34 }
   0xa   :  { %v129_v39 = vld [vmem:[%s3165_s1 + $0x68] sm:$0xff]  ;;  %v32_v40 = vld [vmem:[%s3166_s0 + $0x60] sm:$0xff]  ;;  %v89_v43 = vpack.c.bf16 %v31_v37, %v30_v36  ;;  %v130_v46 = vld [vmem:[%s3165_s1 + $0x70] sm:$0xff] }
   0xb   :  { %v33_v41 = vld [vmem:[%s3166_s0 + $0x68] sm:$0xff]  ;;  %v186_v44 = vpack.c.bf16 %v129_v39, %v128_v38  ;;  %v131_v47 = vld [vmem:[%s3165_s1 + $0x78] sm:$0xff]  ;;  %v34_v48 = vld [vmem:[%s3166_s0 + $0x70] sm:$0xff] }
   0xc   :  { %v90_v45 = vpack.c.bf16 %v33_v41, %v32_v40  ;;  %v35_v49 = vld [vmem:[%s3166_s0 + $0x78] sm:$0xff]  ;;  %v132_v50 = vld [vmem:[%s3165_s1 + $0x80] sm:$0xff]  ;;  %v133_v51 = vld [vmem:[%s3165_s1 + $0x88] sm:$0xff]  ;;  %v187_v54 = vpack.c.bf16 %v131_v47, %v130_v46 }
   0xd   :  { %v36_v52 = vld [vmem:[%s3166_s0 + $0x80] sm:$0xff]  ;;  %v37_v53 = vld [vmem:[%s3166_s0 + $0x88] sm:$0xff]  ;;  %v91_v55 = vpack.c.bf16 %v35_v49, %v34_v48  ;;  %v188_v56 = vpack.c.bf16 %v133_v51, %v132_v50  ;;  %v134_v58 = vld [vmem:[%s3165_s1 + $0x90] sm:$0xff] }
   0xe   :  { %1651 = vmatmul.mubr.msk.bf16.gmra.mrb[4].mxu1 %vm212_vm1, %v183_v30  ;;  %v92_v57 = vpack.c.bf16 %v37_v53, %v36_v52  ;;  %v135_v59 = vld [vmem:[%s3165_s1 + $0x98] sm:$0xff]  ;;  %v38_v60 = vld [vmem:[%s3166_s0 + $0x90] sm:$0xff]  ;;  %v136_v62 = vld [vmem:[%s3165_s1 + $0xa0] sm:$0xff] }
   0xf   :  { %1717 = vmatmul.mubr.msk.bf16.gmra.mrb[4].mxu0 %vm212_vm1, %v87_v31  ;;  %1654 = vmatprep.mubr.msk.bf16.mxu1 %vm212_vm1, %v184_v32  ;;  %v39_v61 = vld [vmem:[%s3166_s0 + $0x98] sm:$0xff]  ;;  %v137_v63 = vld [vmem:[%s3165_s1 + $0xa8] sm:$0xff]  ;;  %v40_v0 = vld [vmem:[%s3166_s0 + $0xa0] sm:$0xff]  ;;  %v189_v2 = vpack.c.bf16 %v135_v59, %v134_v58 }
  0x10   :  { %1720 = vmatprep.mubr.msk.bf16.mxu0 %vm212_vm1, %v88_v33  ;;  %v41_v1 = vld [vmem:[%s3166_s0 + $0xa8] sm:$0xff]  ;;  %v93_v3 = vpack.c.bf16 %v39_v61, %v38_v60  ;;  %v190_v4 = vpack.c.bf16 %v137_v63, %v136_v62  ;;  %v138_v6 = vld [vmem:[%s3165_s1 + $0xb0] sm:$0xff]  ;;  %v139_v7 = vld [vmem:[%s3165_s1 + $0xb8] sm:$0xff] }
  0x11   :  { %v94_v5 = vpack.c.bf16 %v41_v1, %v40_v0  ;;  %v42_v8 = vld [vmem:[%s3166_s0 + $0xb0] sm:$0xff]  ;;  %v43_v9 = vld [vmem:[%s3166_s0 + $0xb8] sm:$0xff]  ;;  %v140_v10 = vld [vmem:[%s3165_s1 + $0xc0] sm:$0xff]  ;;  %v191_v14 = vpack.c.bf16 %v139_v7, %v138_v6 }
  0x12   :  { %v141_v11 = vld [vmem:[%s3165_s1 + $0xc8] sm:$0xff]  ;;  %v44_v12 = vld [vmem:[%s3166_s0 + $0xc0] sm:$0xff]  ;;  %v95_v15 = vpack.c.bf16 %v43_v9, %v42_v8  ;;  %v142_v18 = vld [vmem:[%s3165_s1 + $0xd0] sm:$0xff] }
  0x13   :  { %v45_v13 = vld [vmem:[%s3166_s0 + $0xc8] sm:$0xff]  ;;  %v192_v16 = vpack.c.bf16 %v141_v11, %v140_v10  ;;  %v143_v19 = vld [vmem:[%s3165_s1 + $0xd8] sm:$0xff]  ;;  %v46_v20 = vld [vmem:[%s3166_s0 + $0xd0] sm:$0xff] }
  0x14   :  { %v96_v17 = vpack.c.bf16 %v45_v13, %v44_v12  ;;  %v47_v21 = vld [vmem:[%s3166_s0 + $0xd8] sm:$0xff]  ;;  %v144_v22 = vld [vmem:[%s3165_s1 + $0xe0] sm:$0xff]  ;;  %v145_v23 = vld [vmem:[%s3165_s1 + $0xe8] sm:$0xff]  ;;  %v193_v26 = vpack.c.bf16 %v143_v19, %v142_v18 }
  0x15   :  { %v48_v24 = vld [vmem:[%s3166_s0 + $0xe0] sm:$0xff]  ;;  %v49_v25 = vld [vmem:[%s3166_s0 + $0xe8] sm:$0xff]  ;;  %v97_v27 = vpack.c.bf16 %v47_v21, %v46_v20  ;;  %v194_v28 = vpack.c.bf16 %v145_v23, %v144_v22  ;;  %v146_v30 = vld [vmem:[%s3165_s1 + $0xf0] sm:$0xff] }
  0x16   :  { %1655 = vmatmul.mubr.msk.bf16.gmra.mrb[8].mxu1 %vm212_vm1, %v185_v42  ;;  %v98_v29 = vpack.c.bf16 %v49_v25, %v48_v24  ;;  %v147_v31 = vld [vmem:[%s3165_s1 + $0xf8] sm:$0xff]  ;;  %v50_v32 = vld [vmem:[%s3166_s0 + $0xf0] sm:$0xff]  ;;  %v148_v34 = vld [vmem:[%s3165_s1 + $0x100] sm:$0xff] }
  0x17   :  { %1721 = vmatmul.mubr.msk.bf16.gmra.mrb[8].mxu0 %vm212_vm1, %v89_v43  ;;  %1658 = vmatprep.mubr.msk.bf16.mxu1 %vm212_vm1, %v186_v44  ;;  %v51_v33 = vld [vmem:[%s3166_s0 + $0xf8] sm:$0xff]  ;;  %v149_v35 = vld [vmem:[%s3165_s1 + $0x108] sm:$0xff]  ;;  %v52_v36 = vld [vmem:[%s3166_s0 + $0x100] sm:$0xff]  ;;  %v195_v38 = vpack.c.bf16 %v147_v31, %v146_v30 }
  0x18   :  { %1724 = vmatprep.mubr.msk.bf16.mxu0 %vm212_vm1, %v90_v45  ;;  %v53_v37 = vld [vmem:[%s3166_s0 + $0x108] sm:$0xff]  ;;  %v99_v39 = vpack.c.bf16 %v51_v33, %v50_v32  ;;  %v196_v40 = vpack.c.bf16 %v149_v35, %v148_v34  ;;  %v150_v42 = vld [vmem:[%s3165_s1 + $0x110] sm:$0xff]  ;;  %v151_v43 = vld [vmem:[%s3165_s1 + $0x118] sm:$0xff] }
  0x19   :  { %v100_v41 = vpack.c.bf16 %v53_v37, %v52_v36  ;;  %v54_v44 = vld [vmem:[%s3166_s0 + $0x110] sm:$0xff]  ;;  %v55_v45 = vld [vmem:[%s3166_s0 + $0x118] sm:$0xff]  ;;  %v152_v46 = vld [vmem:[%s3165_s1 + $0x120] sm:$0xff]  ;;  %v197_v50 = vpack.c.bf16 %v151_v43, %v150_v42 }
  0x1a   :  { %v153_v47 = vld [vmem:[%s3165_s1 + $0x128] sm:$0xff]  ;;  %v56_v48 = vld [vmem:[%s3166_s0 + $0x120] sm:$0xff]  ;;  %v101_v51 = vpack.c.bf16 %v55_v45, %v54_v44 }
  0x1b   :  { %v57_v49 = vld [vmem:[%s3166_s0 + $0x128] sm:$0xff]  ;;  %v198_v52 = vpack.c.bf16 %v153_v47, %v152_v46  ;;  %v156_v58 = vld [vmem:[%s3165_s1 + $0x140] sm:$0xff] }
  0x1c   :  { %v102_v53 = vpack.c.bf16 %v57_v49, %v56_v48  ;;  %v157_v59 = vld [vmem:[%s3165_s1 + $0x148] sm:$0xff]  ;;  %v60_v60 = vld [vmem:[%s3166_s0 + $0x140] sm:$0xff] }
  0x1d   :  { %v61_v61 = vld [vmem:[%s3166_s0 + $0x148] sm:$0xff]  ;;  %v200_v0 = vpack.c.bf16 %v157_v59, %v156_v58  ;;  %v160_v6 = vld [vmem:[%s3165_s1 + $0x160] sm:$0xff] }
  0x1e   :  { %1659 = vmatmul.mubr.msk.bf16.gmra.mrb[12].mxu1 %vm212_vm1, %v187_v54  ;;  %v154_v54 = vld [vmem:[%s3165_s1 + $0x130] sm:$0xff]  ;;  %v104_v1 = vpack.c.bf16 %v61_v61, %v60_v60  ;;  %v161_v7 = vld [vmem:[%s3165_s1 + $0x168] sm:$0xff]  ;;  %v64_v8 = vld [vmem:[%s3166_s0 + $0x160] sm:$0xff] }
  0x1f   :  { %1725 = vmatmul.mubr.msk.bf16.gmra.mrb[12].mxu0 %vm212_vm1, %v91_v55  ;;  %1662 = vmatprep.mubr.msk.bf16.mxu1 %vm212_vm1, %v188_v56  ;;  %v155_v55 = vld [vmem:[%s3165_s1 + $0x138] sm:$0xff]  ;;  %v58_v56 = vld [vmem:[%s3166_s0 + $0x130] sm:$0xff]  ;;  %v65_v9 = vld [vmem:[%s3166_s0 + $0x168] sm:$0xff]  ;;  %v202_v12 = vpack.c.bf16 %v161_v7, %v160_v6 }
  0x20   :  { %1728 = vmatprep.mubr.msk.bf16.mxu0 %vm212_vm1, %v92_v57  ;;  %v59_v57 = vld [vmem:[%s3166_s0 + $0x138] sm:$0xff]  ;;  %v199_v62 = vpack.c.bf16 %v155_v55, %v154_v54  ;;  %v106_v13 = vpack.c.bf16 %v65_v9, %v64_v8  ;;  %v164_v18 = vld [vmem:[%s3165_s1 + $0x180] sm:$0xff]  ;;  %v165_v19 = vld [vmem:[%s3165_s1 + $0x188] sm:$0xff] }
  0x21   :  { %v103_v63 = vpack.c.bf16 %v59_v57, %v58_v56  ;;  %v68_v20 = vld [vmem:[%s3166_s0 + $0x180] sm:$0xff]  ;;  %v69_v21 = vld [vmem:[%s3166_s0 + $0x188] sm:$0xff]  ;;  %v204_v24 = vpack.c.bf16 %v165_v19, %v164_v18 }
  0x22   :  { %v108_v25 = vpack.c.bf16 %v69_v21, %v68_v20  ;;  %v168_v30 = vld [vmem:[%s3165_s1 + $0x1a0] sm:$0xff]  ;;  %v169_v31 = vld [vmem:[%s3165_s1 + $0x1a8] sm:$0xff] }
  0x23   :  { %v72_v32 = vld [vmem:[%s3166_s0 + $0x1a0] sm:$0xff]  ;;  %v73_v33 = vld [vmem:[%s3166_s0 + $0x1a8] sm:$0xff]  ;;  %v206_v36 = vpack.c.bf16 %v169_v31, %v168_v30 }
  0x24   :  { %v110_v37 = vpack.c.bf16 %v73_v33, %v72_v32  ;;  %v172_v42 = vld [vmem:[%s3165_s1 + $0x1c0] sm:$0xff]  ;;  %v173_v43 = vld [vmem:[%s3165_s1 + $0x1c8] sm:$0xff] }
  0x25   :  { %v76_v44 = vld [vmem:[%s3166_s0 + $0x1c0] sm:$0xff]  ;;  %v77_v45 = vld [vmem:[%s3166_s0 + $0x1c8] sm:$0xff]  ;;  %v208_v48 = vpack.c.bf16 %v173_v43, %v172_v42 }
  0x26   :  { %1663 = vmatmul.mubr.msk.bf16.gmra.mrb[16].mxu1 %vm212_vm1, %v189_v2  ;;  %v158_v2 = vld [vmem:[%s3165_s1 + $0x150] sm:$0xff]  ;;  %v112_v49 = vpack.c.bf16 %v77_v45, %v76_v44  ;;  %v176_v54 = vld [vmem:[%s3165_s1 + $0x1e0] sm:$0xff]  ;;  %v177_v55 = vld [vmem:[%s3165_s1 + $0x1e8] sm:$0xff] }
  0x27   :  { %1729 = vmatmul.mubr.msk.bf16.gmra.mrb[16].mxu0 %vm212_vm1, %v93_v3  ;;  %1666 = vmatprep.mubr.msk.bf16.mxu1 %vm212_vm1, %v190_v4  ;;  %v159_v3 = vld [vmem:[%s3165_s1 + $0x158] sm:$0xff]  ;;  %v62_v4 = vld [vmem:[%s3166_s0 + $0x150] sm:$0xff]  ;;  %v80_v56 = vld [vmem:[%s3166_s0 + $0x1e0] sm:$0xff]  ;;  %v210_v60 = vpack.c.bf16 %v177_v55, %v176_v54 }
  0x28   :  { %1732 = vmatprep.mubr.msk.bf16.mxu0 %vm212_vm1, %v94_v5  ;;  %v63_v5 = vld [vmem:[%s3166_s0 + $0x158] sm:$0xff]  ;;  %v201_v10 = vpack.c.bf16 %v159_v3, %v158_v2  ;;  %v81_v57 = vld [vmem:[%s3166_s0 + $0x1e8] sm:$0xff]  ;;  %v2581_v6 = vld [vmem:[%s3167_s3] ss:$0 sm:$0xff] }
  0x29   :  { %v105_v11 = vpack.c.bf16 %v63_v5, %v62_v4  ;;  %v114_v61 = vpack.c.bf16 %v81_v57, %v80_v56 }
  0x2e   :  { %1667 = vmatmul.mubr.msk.bf16.gmra.mrb[20].mxu1 %vm212_vm1, %v191_v14  ;;  %v162_v14 = vld [vmem:[%s3165_s1 + $0x170] sm:$0xff] }
  0x2f   :  { %1733 = vmatmul.mubr.msk.bf16.gmra.mrb[20].mxu0 %vm212_vm1, %v95_v15  ;;  %1670 = vmatprep.mubr.msk.bf16.mxu1 %vm212_vm1, %v192_v16  ;;  %v163_v15 = vld [vmem:[%s3165_s1 + $0x178] sm:$0xff]  ;;  %v66_v16 = vld [vmem:[%s3166_s0 + $0x170] sm:$0xff] }
  0x30   :  { %1736 = vmatprep.mubr.msk.bf16.mxu0 %vm212_vm1, %v96_v17  ;;  %v67_v17 = vld [vmem:[%s3166_s0 + $0x178] sm:$0xff]  ;;  %v203_v22 = vpack.c.bf16 %v163_v15, %v162_v14 }
  0x31   :  { %v107_v23 = vpack.c.bf16 %v67_v17, %v66_v16 }
  0x36   :  { %1671 = vmatmul.mubr.msk.bf16.gmra.mrb[24].mxu1 %vm212_vm1, %v193_v26  ;;  %v166_v26 = vld [vmem:[%s3165_s1 + $0x190] sm:$0xff] }
  0x37   :  { %1737 = vmatmul.mubr.msk.bf16.gmra.mrb[24].mxu0 %vm212_vm1, %v97_v27  ;;  %1674 = vmatprep.mubr.msk.bf16.mxu1 %vm212_vm1, %v194_v28  ;;  %v167_v27 = vld [vmem:[%s3165_s1 + $0x198] sm:$0xff]  ;;  %v70_v28 = vld [vmem:[%s3166_s0 + $0x190] sm:$0xff] }
  0x38   :  { %1740 = vmatprep.mubr.msk.bf16.mxu0 %vm212_vm1, %v98_v29  ;;  %v71_v29 = vld [vmem:[%s3166_s0 + $0x198] sm:$0xff]  ;;  %v205_v34 = vpack.c.bf16 %v167_v27, %v166_v26 }
  0x39   :  { %v109_v35 = vpack.c.bf16 %v71_v29, %v70_v28 }
  0x3e   :  { %1675 = vmatmul.mubr.msk.bf16.gmra.mrb[28].mxu1 %vm212_vm1, %v195_v38  ;;  %v170_v38 = vld [vmem:[%s3165_s1 + $0x1b0] sm:$0xff] }
  0x3f   :  { %1741 = vmatmul.mubr.msk.bf16.gmra.mrb[28].mxu0 %vm212_vm1, %v99_v39  ;;  %1678 = vmatprep.mubr.msk.bf16.mxu1 %vm212_vm1, %v196_v40  ;;  %v171_v39 = vld [vmem:[%s3165_s1 + $0x1b8] sm:$0xff]  ;;  %v74_v40 = vld [vmem:[%s3166_s0 + $0x1b0] sm:$0xff] }
  0x40   :  { %1744 = vmatprep.mubr.msk.bf16.mxu0 %vm212_vm1, %v100_v41  ;;  %v75_v41 = vld [vmem:[%s3166_s0 + $0x1b8] sm:$0xff]  ;;  %v207_v46 = vpack.c.bf16 %v171_v39, %v170_v38 }
  0x41   :  { %v111_v47 = vpack.c.bf16 %v75_v41, %v74_v40 }
  0x46   :  { %1679 = vmatmul.mubr.msk.bf16.gmra.mrb[32].mxu1 %vm212_vm1, %v197_v50  ;;  %v174_v50 = vld [vmem:[%s3165_s1 + $0x1d0] sm:$0xff] }
  0x47   :  { %1745 = vmatmul.mubr.msk.bf16.gmra.mrb[32].mxu0 %vm212_vm1, %v101_v51  ;;  %1682 = vmatprep.mubr.msk.bf16.mxu1 %vm212_vm1, %v198_v52  ;;  %v175_v51 = vld [vmem:[%s3165_s1 + $0x1d8] sm:$0xff]  ;;  %v78_v52 = vld [vmem:[%s3166_s0 + $0x1d0] sm:$0xff] }
  0x48   :  { %1748 = vmatprep.mubr.msk.bf16.mxu0 %vm212_vm1, %v102_v53  ;;  %v79_v53 = vld [vmem:[%s3166_s0 + $0x1d8] sm:$0xff]  ;;  %v209_v58 = vpack.c.bf16 %v175_v51, %v174_v50 }
  0x49   :  { %v113_v59 = vpack.c.bf16 %v79_v53, %v78_v52 }
  0x4e   :  { %1683 = vmatmul.mubr.msk.bf16.gmra.mrb[36].mxu1 %vm212_vm1, %v199_v62  ;;  %v178_v62 = vld [vmem:[%s3165_s1 + $0x1f0] sm:$0xff] }
  0x4f   :  { %1749 = vmatmul.mubr.msk.bf16.gmra.mrb[36].mxu0 %vm212_vm1, %v103_v63  ;;  %1686 = vmatprep.mubr.msk.bf16.mxu1 %vm212_vm1, %v200_v0  ;;  %v179_v63 = vld [vmem:[%s3165_s1 + $0x1f8] sm:$0xff]  ;;  %v82_v0 = vld [vmem:[%s3166_s0 + $0x1f0] sm:$0xff] }
  0x50   :  { %1752 = vmatprep.mubr.msk.bf16.mxu0 %vm212_vm1, %v104_v1  ;;  %v83_v1 = vld [vmem:[%s3166_s0 + $0x1f8] sm:$0xff]  ;;  %v211_v2 = vpack.c.bf16 %v179_v63, %v178_v62 }
  0x51   :  { %v115_v3 = vpack.c.bf16 %v83_v1, %v82_v0 }
  0x56   :  { %1687 = vmatmul.mubr.msk.bf16.gmra.mrb[40].mxu1 %vm212_vm1, %v201_v10 }
  0x57   :  { %1753 = vmatmul.mubr.msk.bf16.gmra.mrb[40].mxu0 %vm212_vm1, %v105_v11  ;;  %1690 = vmatprep.mubr.msk.bf16.mxu1 %vm212_vm1, %v202_v12 }
  0x58   :  { %1756 = vmatprep.mubr.msk.bf16.mxu0 %vm212_vm1, %v106_v13 }
  0x5e   :  { %1691 = vmatmul.mubr.msk.bf16.gmra.mrb[44].mxu1 %vm212_vm1, %v203_v22 }
  0x5f   :  { %1757 = vmatmul.mubr.msk.bf16.gmra.mrb[44].mxu0 %vm212_vm1, %v107_v23  ;;  %1694 = vmatprep.mubr.msk.bf16.mxu1 %vm212_vm1, %v204_v24 }
  0x60   :  { %1760 = vmatprep.mubr.msk.bf16.mxu0 %vm212_vm1, %v108_v25 }
  0x66   :  { %1695 = vmatmul.mubr.msk.bf16.gmra.mrb[48].mxu1 %vm212_vm1, %v205_v34 }
  0x67   :  { %1761 = vmatmul.mubr.msk.bf16.gmra.mrb[48].mxu0 %vm212_vm1, %v109_v35  ;;  %1698 = vmatprep.mubr.msk.bf16.mxu1 %vm212_vm1, %v206_v36 }
  0x68   :  { %1764 = vmatprep.mubr.msk.bf16.mxu0 %vm212_vm1, %v110_v37 }
  0x6e   :  { %1699 = vmatmul.mubr.msk.bf16.gmra.mrb[52].mxu1 %vm212_vm1, %v207_v46 }
  0x6f   :  { %1765 = vmatmul.mubr.msk.bf16.gmra.mrb[52].mxu0 %vm212_vm1, %v111_v47  ;;  %1702 = vmatprep.mubr.msk.bf16.mxu1 %vm212_vm1, %v208_v48 }
  0x70   :  { %1768 = vmatprep.mubr.msk.bf16.mxu0 %vm212_vm1, %v112_v49 }
  0x76   :  { %1703 = vmatmul.mubr.msk.bf16.gmra.mrb[56].mxu1 %vm212_vm1, %v209_v58 }
  0x77   :  { %1769 = vmatmul.mubr.msk.bf16.gmra.mrb[56].mxu0 %vm212_vm1, %v113_v59  ;;  %1706 = vmatprep.mubr.msk.bf16.mxu1 %vm212_vm1, %v210_v60 }
  0x78   :  { %1772 = vmatprep.mubr.msk.bf16.mxu0 %vm212_vm1, %v114_v61 }
  0x7e   :  { %1707 = vmatmul.mubr.msk.bf16.gmra.mrb[60].mxu1 %vm212_vm1, %v211_v2 }
  0x7f   :  { %1773 = vmatmul.mubr.msk.bf16.gmra.mrb[60].mxu0 %vm212_vm1, %v115_v3 }
  0xd9   :  { %v1648_v4 = vpop.f32.mrb[0].mxu1 }
  0xda   :  { %v1714_v5 = vpop.f32.mrb[0].mxu0  ;;  %v347_v7 = vpop.f32.mrb[1].mxu1 }
  0xdb   :  { %v744_v8 = vadd.f32 %v1714_v5, %v1648_v4  ;;  %v735_v9 = vpop.f32.mrb[1].mxu0  ;;  %v1649_v10 = vpop.f32.mrb[2].mxu1 }
  0xdc   :  { %v736_v11 = vadd.f32 %v735_v9, %v347_v7  ;;  %v1715_v12 = vpop.f32.mrb[2].mxu0  ;;  %v350_v13 = vpop.f32.mrb[3].mxu1 }
  0xdd   :  { %v2584_v14 = vadd.f32 %v2581_v6, %v744_v8  ;;  %v747_v15 = vadd.f32 %v1715_v12, %v1649_v10  ;;  %v738_v16 = vpop.f32.mrb[3].mxu0 }
  0xde   :  { %v2587_v17 = vadd.f32 %v2581_v6, %v736_v11  ;;  %v739_v18 = vadd.f32 %v738_v16, %v350_v13 }
  0xdf   :  { %v1063_v19 = vsub.f32 0.0, %v2584_v14  ;;  %v2591_v20 = vadd.f32 %v2581_v6, %v747_v15 }
  0xe0   :  { %v1061_v21 = vsub.f32 0.0, %v2587_v17  ;;  %v2595_v22 = vadd.f32 %v2581_v6, %v739_v18 }
  0xe1   :  { %v1129_v23 = vmul.f32 1.442695, %v1063_v19  ;;  %v1064_v24 = vsub.f32 0.0, %v2591_v20  ;;  %v1652_v25 = vpop.f32.mrb[4].mxu1 }
  0xe2   :  { %v1125_v26 = vmul.f32 1.442695, %v1061_v21  ;;  %v1062_v27 = vsub.f32 0.0, %v2595_v22  ;;  %v1718_v28 = vpop.f32.mrb[4].mxu0  ;;  %v363_v29 = vpop.f32.mrb[5].mxu1 }
  0xe3   :  { %1842 = vpow2.f32 %v1129_v23  ;;  %v1131_v30 = vmul.f32 1.442695, %v1064_v24  ;;  %v760_v31 = vadd.f32 %v1718_v28, %v1652_v25  ;;  %v751_v32 = vpop.f32.mrb[5].mxu0  ;;  %v1653_v33 = vpop.f32.mrb[6].mxu1 }
  0xe4   :  { %1844 = vpow2.f32 %v1125_v26  ;;  %v1127_v34 = vmul.f32 1.442695, %v1062_v27  ;;  %v752_v35 = vadd.f32 %v751_v32, %v363_v29  ;;  %v1719_v36 = vpop.f32.mrb[6].mxu0  ;;  %v366_v37 = vpop.f32.mrb[7].mxu1 }
  0xe5   :  { %1846 = vpow2.f32 %v1131_v30  ;;  %v2600_v38 = vadd.f32 %v2581_v6, %v760_v31  ;;  %v763_v39 = vadd.f32 %v1719_v36, %v1653_v33  ;;  %v754_v40 = vpop.f32.mrb[7].mxu0 }
  0xe6   :  { %1848 = vpow2.f32 %v1127_v34  ;;  %v2603_v41 = vadd.f32 %v2581_v6, %v752_v35  ;;  %v755_v42 = vadd.f32 %v754_v40, %v366_v37 }
  0xe7   :  { %v1067_v43 = vsub.f32 0.0, %v2600_v38  ;;  %v2607_v44 = vadd.f32 %v2581_v6, %v763_v39 }
  0xe8   :  { %v1065_v45 = vsub.f32 0.0, %v2603_v41  ;;  %v2611_v46 = vadd.f32 %v2581_v6, %v755_v42 }
  0xe9   :  { %v1137_v47 = vmul.f32 1.442695, %v1067_v43  ;;  %v1068_v48 = vsub.f32 0.0, %v2607_v44  ;;  %v1656_v49 = vpop.f32.mrb[8].mxu1 }
  0xea   :  { %v1133_v50 = vmul.f32 1.442695, %v1065_v45  ;;  %v1066_v51 = vsub.f32 0.0, %v2611_v46  ;;  %v1722_v52 = vpop.f32.mrb[8].mxu0  ;;  %v379_v53 = vpop.f32.mrb[9].mxu1 }
  0xeb   :  { %1850 = vpow2.f32 %v1137_v47  ;;  %v1139_v54 = vmul.f32 1.442695, %v1068_v48  ;;  %v776_v55 = vadd.f32 %v1722_v52, %v1656_v49  ;;  %v767_v56 = vpop.f32.mrb[9].mxu0  ;;  %v1657_v57 = vpop.f32.mrb[10].mxu1 }
  0xec   :  { %1852 = vpow2.f32 %v1133_v50  ;;  %v1135_v58 = vmul.f32 1.442695, %v1066_v51  ;;  %v768_v59 = vadd.f32 %v767_v56, %v379_v53  ;;  %v1723_v60 = vpop.f32.mrb[10].mxu0  ;;  %v382_v61 = vpop.f32.mrb[11].mxu1 }
  0xed   :  { %v1843_v62 = vpop.eup %1842  ;;  %1854 = vpow2.f32 %v1139_v54  ;;  %v2616_v63 = vadd.f32 %v2581_v6, %v776_v55  ;;  %v779_v0 = vadd.f32 %v1723_v60, %v1657_v57  ;;  %v770_v1 = vpop.f32.mrb[11].mxu0 }
  0xee   :  { %v1845_v2 = vpop.eup %1844  ;;  %v1255_v3 = vadd.f32 1.0, %v1843_v62  ;;  %1856 = vpow2.f32 %v1135_v58  ;;  %v2619_v4 = vadd.f32 %v2581_v6, %v768_v59  ;;  %v771_v5 = vadd.f32 %v770_v1, %v382_v61 }
  0xef   :  { %v1847_v7 = vpop.eup %1846  ;;  %v1253_v8 = vadd.f32 1.0, %v1845_v2  ;;  %v1071_v9 = vsub.f32 0.0, %v2616_v63  ;;  %v2623_v10 = vadd.f32 %v2581_v6, %v779_v0 }
  0xf0   :  { %v1849_v11 = vpop.eup %1848  ;;  %1858 = vrcp.f32 %v1255_v3  ;;  %v1256_v12 = vadd.f32 1.0, %v1847_v7  ;;  %v1069_v13 = vsub.f32 0.0, %v2619_v4  ;;  %v2627_v15 = vadd.f32 %v2581_v6, %v771_v5 }
  0xf1   :  { %1860 = vrcp.f32 %v1253_v8  ;;  %v1254_v16 = vadd.f32 1.0, %v1849_v11  ;;  %v1145_v18 = vmul.f32 1.442695, %v1071_v9  ;;  %v1072_v19 = vsub.f32 0.0, %v2623_v10  ;;  %v1660_v21 = vpop.f32.mrb[12].mxu1 }
  0xf2   :  { %1862 = vrcp.f32 %v1256_v12  ;;  %v1141_v23 = vmul.f32 1.442695, %v1069_v13  ;;  %v1070_v24 = vsub.f32 0.0, %v2627_v15  ;;  %v1726_v25 = vpop.f32.mrb[12].mxu0  ;;  %v395_v26 = vpop.f32.mrb[13].mxu1 }
  0xf3   :  { %1864 = vrcp.f32 %v1254_v16  ;;  %v1147_v27 = vmul.f32 1.442695, %v1072_v19  ;;  %v792_v28 = vadd.f32 %v1726_v25, %v1660_v21  ;;  %v783_v29 = vpop.f32.mrb[13].mxu0  ;;  %v1661_v30 = vpop.f32.mrb[14].mxu1 }
  0xf4   :  { %1866 = vpow2.f32 %v1145_v18  ;;  %v1143_v31 = vmul.f32 1.442695, %v1070_v24  ;;  %v784_v32 = vadd.f32 %v783_v29, %v395_v26  ;;  %v1727_v33 = vpop.f32.mrb[14].mxu0  ;;  %v398_v34 = vpop.f32.mrb[15].mxu1 }
  0xf5   :  { %v1851_v35 = vpop.eup %1850  ;;  %1868 = vpow2.f32 %v1141_v23  ;;  %v2632_v36 = vadd.f32 %v2581_v6, %v792_v28  ;;  %v795_v37 = vadd.f32 %v1727_v33, %v1661_v30  ;;  %v786_v39 = vpop.f32.mrb[15].mxu0 }
  0xf6   :  { %v1853_v40 = vpop.eup %1852  ;;  %v1259_v42 = vadd.f32 1.0, %v1851_v35  ;;  %1870 = vpow2.f32 %v1147_v27  ;;  %v2635_v43 = vadd.f32 %v2581_v6, %v784_v32  ;;  %v787_v45 = vadd.f32 %v786_v39, %v398_v34 }
  0xf7   :  { %v1855_v47 = vpop.eup %1854  ;;  %v1257_v48 = vadd.f32 1.0, %v1853_v40  ;;  %1872 = vpow2.f32 %v1143_v31  ;;  %v1075_v49 = vsub.f32 0.0, %v2632_v36  ;;  %v2639_v50 = vadd.f32 %v2581_v6, %v795_v37 }
  0xf8   :  { %v1857_v51 = vpop.eup %1856  ;;  %1874 = vrcp.f32 %v1259_v42  ;;  %v1260_v52 = vadd.f32 1.0, %v1855_v47  ;;  %v1073_v53 = vsub.f32 0.0, %v2635_v43  ;;  %v2643_v54 = vadd.f32 %v2581_v6, %v787_v45 }
  0xf9   :  { %1876 = vrcp.f32 %v1257_v48  ;;  %v1258_v55 = vadd.f32 1.0, %v1857_v51  ;;  %v1153_v56 = vmul.f32 1.442695, %v1075_v49  ;;  %v1076_v57 = vsub.f32 0.0, %v2639_v50  ;;  %v1664_v58 = vpop.f32.mrb[16].mxu1 }
  0xfa   :  { %v1859_v59 = vpop.eup %1858  ;;  %1878 = vrcp.f32 %v1260_v52  ;;  %v1149_v60 = vmul.f32 1.442695, %v1073_v53  ;;  %v1074_v61 = vsub.f32 0.0, %v2643_v54  ;;  %v1730_v62 = vpop.f32.mrb[16].mxu0 }
  0xfb   :  { %v411_v0 = vpop.f32.mrb[17].mxu1  ;;  %v1861_v1 = vpop.eup %1860  ;;  %v1383_v2 = vmul.f32 %v1859_v59, %v2584_v14  ;;  %1880 = vrcp.f32 %v1258_v55  ;;  %v1155_v3 = vmul.f32 1.442695, %v1076_v57  ;;  %v808_v5 = vadd.f32 %v1730_v62, %v1664_v58 }
  0xfc   :  { %v799_v7 = vpop.f32.mrb[17].mxu0  ;;  %v1665_v8 = vpop.f32.mrb[18].mxu1  ;;  %v1381_v11 = vmul.f32 %v1861_v1, %v2587_v17  ;;  %1882 = vpow2.f32 %v1153_v56  ;;  %v1151_v12 = vmul.f32 1.442695, %v1074_v61 }
  0xfd   :  { %v1863_v9 = vpop.eup %1862  ;;  %v800_v13 = vadd.f32 %v799_v7, %v411_v0  ;;  %v1731_v16 = vpop.f32.mrb[18].mxu0  ;;  %1447 = vst.msk [vmem:[%s3168_s4 + $0x10] sm:$0xff] %vm212_vm1, %v1383_v2  ;;  %1884 = vpow2.f32 %v1149_v60  ;;  %v2655_v21 = vadd.f32 %v2581_v6, %v808_v5 }
  0xfe   :  { %v414_v18 = vpop.f32.mrb[19].mxu1  ;;  %v1865_v19 = vpop.eup %1864  ;;  %v1384_v14 = vmul.f32 %v1863_v9, %v2591_v20  ;;  %v811_v23 = vadd.f32 %v1731_v16, %v1665_v8  ;;  %1445 = vst.msk [vmem:[%s3168_s4] sm:$0xff] %vm212_vm1, %v1381_v11  ;;  %1886 = vpow2.f32 %v1155_v3 }
  0xff   :  { %v802_v24 = vpop.f32.mrb[19].mxu0  ;;  %v1867_v17 = vpop.eup %1866  ;;  %v1382_v25 = vmul.f32 %v1865_v19, %v2595_v22  ;;  %v2663_v26 = vadd.f32 %v2581_v6, %v800_v13  ;;  %1888 = vpow2.f32 %v1151_v12  ;;  %v1079_v29 = vsub.f32 0.0, %v2655_v21 }
 0x100   :  { %v803_v27 = vadd.f32 %v802_v24, %v414_v18  ;;  %v1869_v20 = vpop.eup %1868  ;;  %1448 = vst.msk [vmem:[%s3168_s4 + $0x18] sm:$0xff] %vm212_vm1, %v1384_v14  ;;  %v1263_v28 = vadd.f32 1.0, %v1867_v17  ;;  %v2671_v30 = vadd.f32 %v2581_v6, %v811_v23 }
 0x101   :  { %v1871_v31 = vpop.eup %1870  ;;  %1446 = vst.msk [vmem:[%s3168_s4 + $0x8] sm:$0xff] %vm212_vm1, %v1382_v25  ;;  %v1261_v22 = vadd.f32 1.0, %v1869_v20  ;;  %v1077_v32 = vsub.f32 0.0, %v2663_v26  ;;  %v1161_v37 = vmul.f32 1.442695, %v1079_v29  ;;  %v1668_v40 = vpop.f32.mrb[20].mxu1 }
 0x102   :  { %v2679_v33 = vadd.f32 %v2581_v6, %v803_v27  ;;  %v1873_v34 = vpop.eup %1872  ;;  %1890 = vrcp.f32 %v1263_v28  ;;  %v1264_v35 = vadd.f32 1.0, %v1871_v31  ;;  %v1080_v39 = vsub.f32 0.0, %v2671_v30  ;;  %v1734_v49 = vpop.f32.mrb[20].mxu0 }
 0x103   :  { %v1875_v42 = vpop.eup %1874  ;;  %1892 = vrcp.f32 %v1261_v22  ;;  %v1262_v45 = vadd.f32 1.0, %v1873_v34  ;;  %v1157_v47 = vmul.f32 1.442695, %v1077_v32  ;;  %v427_v51 = vpop.f32.mrb[21].mxu1  ;;  %v824_v56 = vadd.f32 %v1734_v49, %v1668_v40 }
 0x104   :  { %v1078_v48 = vsub.f32 0.0, %v2679_v33  ;;  %v1877_v52 = vpop.eup %1876  ;;  %v1387_v53 = vmul.f32 %v1875_v42, %v2600_v38  ;;  %1894 = vrcp.f32 %v1264_v35  ;;  %v1163_v55 = vmul.f32 1.442695, %v1080_v39  ;;  %v815_v57 = vpop.f32.mrb[21].mxu0 }
 0x105   :  { %v1669_v58 = vpop.f32.mrb[22].mxu1  ;;  %v1879_v59 = vpop.eup %1878  ;;  %v1385_v60 = vmul.f32 %v1877_v52, %v2603_v41  ;;  %1896 = vrcp.f32 %v1262_v45  ;;  %v816_v62 = vadd.f32 %v815_v57, %v427_v51  ;;  %v2691_v3 = vadd.f32 %v2581_v6, %v824_v56 }
 0x106   :  { %v1159_v61 = vmul.f32 1.442695, %v1078_v48  ;;  %v1735_v0 = vpop.f32.mrb[22].mxu0  ;;  %v430_v1 = vpop.f32.mrb[23].mxu1  ;;  %1451 = vst.msk [vmem:[%s3168_s4 + $0x30] sm:$0xff] %vm212_vm1, %v1387_v53  ;;  %v1388_v38 = vmul.f32 %v1879_v59, %v2607_v44  ;;  %1898 = vpow2.f32 %v1161_v37 }
 0x107   :  { %v1881_v2 = vpop.eup %1880  ;;  %v827_v5 = vadd.f32 %v1735_v0, %v1669_v58  ;;  %v818_v7 = vpop.f32.mrb[23].mxu0  ;;  %1449 = vst.msk [vmem:[%s3168_s4 + $0x20] sm:$0xff] %vm212_vm1, %v1385_v60  ;;  %1900 = vpow2.f32 %v1157_v47  ;;  %v2699_v9 = vadd.f32 %v2581_v6, %v816_v62  ;;  %v1083_v13 = vsub.f32 0.0, %v2691_v3 }
 0x108   :  { %v1883_v41 = vpop.eup %1882  ;;  %v1386_v8 = vmul.f32 %v1881_v2, %v2611_v46  ;;  %v819_v11 = vadd.f32 %v818_v7, %v430_v1  ;;  %1452 = vst.msk [vmem:[%s3168_s4 + $0x38] sm:$0xff] %vm212_vm1, %v1388_v38  ;;  %1902 = vpow2.f32 %v1163_v55 }
 0x109   :  { %v1885_v44 = vpop.eup %1884  ;;  %v1267_v12 = vadd.f32 1.0, %v1883_v41  ;;  %v2707_v16 = vadd.f32 %v2581_v6, %v827_v5  ;;  %1904 = vpow2.f32 %v1159_v61  ;;  %v1081_v19 = vsub.f32 0.0, %v2699_v9  ;;  %v1672_v27 = vpop.f32.mrb[24].mxu1 }
 0x10a   :  { %v1887_v18 = vpop.eup %1886  ;;  %1450 = vst.msk [vmem:[%s3168_s4 + $0x28] sm:$0xff] %vm212_vm1, %v1386_v8  ;;  %v1265_v46 = vadd.f32 1.0, %v1885_v44  ;;  %v2715_v14 = vadd.f32 %v2581_v6, %v819_v11  ;;  %v1169_v17 = vmul.f32 1.442695, %v1083_v13  ;;  %v1738_v31 = vpop.f32.mrb[24].mxu0 }
 0x10b   :  { %v1889_v23 = vpop.eup %1888  ;;  %1906 = vrcp.f32 %v1267_v12  ;;  %v1268_v24 = vadd.f32 1.0, %v1887_v18  ;;  %v1084_v25 = vsub.f32 0.0, %v2707_v16  ;;  %v1165_v28 = vmul.f32 1.442695, %v1081_v19  ;;  %v443_v22 = vpop.f32.mrb[25].mxu1 }
 0x10c   :  { %1908 = vrcp.f32 %v1265_v46  ;;  %v1266_v20 = vadd.f32 1.0, %v1889_v23  ;;  %v1082_v29 = vsub.f32 0.0, %v2715_v14  ;;  %v1891_v32 = vpop.eup %1890  ;;  %v840_v35 = vadd.f32 %v1738_v31, %v1672_v27  ;;  %v831_v37 = vpop.f32.mrb[25].mxu0 }
 0x10d   :  { %1910 = vrcp.f32 %v1268_v24  ;;  %v1171_v34 = vmul.f32 1.442695, %v1084_v25  ;;  %v1673_v39 = vpop.f32.mrb[26].mxu1  ;;  %v1893_v40 = vpop.eup %1892  ;;  %v1391_v42 = vmul.f32 %v1891_v32, %v2616_v63  ;;  %v832_v47 = vadd.f32 %v831_v37, %v443_v22 }
 0x10e   :  { %1912 = vrcp.f32 %v1266_v20  ;;  %v1167_v45 = vmul.f32 1.442695, %v1082_v29  ;;  %v1739_v48 = vpop.f32.mrb[26].mxu0  ;;  %v446_v49 = vpop.f32.mrb[27].mxu1  ;;  %v1389_v52 = vmul.f32 %v1893_v40, %v2619_v4  ;;  %v2722_v53 = vadd.f32 %v2581_v6, %v840_v35 }
 0x10f   :  { %v1895_v51 = vpop.eup %1894  ;;  %1914 = vpow2.f32 %v1169_v17  ;;  %v843_v55 = vadd.f32 %v1739_v48, %v1673_v39  ;;  %v834_v56 = vpop.f32.mrb[27].mxu0  ;;  %1455 = vst.msk [vmem:[%s3168_s4 + $0x50] sm:$0xff] %vm212_vm1, %v1391_v42  ;;  %v2730_v58 = vadd.f32 %v2581_v6, %v832_v47 }
 0x110   :  { %v1897_v57 = vpop.eup %1896  ;;  %v1392_v63 = vmul.f32 %v1895_v51, %v2623_v10  ;;  %1916 = vpow2.f32 %v1165_v28  ;;  %v835_v59 = vadd.f32 %v834_v56, %v446_v49  ;;  %1453 = vst.msk [vmem:[%s3168_s4 + $0x40] sm:$0xff] %vm212_vm1, %v1389_v52  ;;  %v1087_v61 = vsub.f32 0.0, %v2722_v53 }
 0x111   :  { %v1899_v4 = vpop.eup %1898  ;;  %v1390_v60 = vmul.f32 %v1897_v57, %v2627_v15  ;;  %1918 = vpow2.f32 %v1171_v34  ;;  %v2739_v62 = vadd.f32 %v2581_v6, %v843_v55  ;;  %v1085_v1 = vsub.f32 0.0, %v2730_v58  ;;  %v1676_v41 = vpop.f32.mrb[28].mxu1 }
 0x112   :  { %v1901_v10 = vpop.eup %1900  ;;  %1456 = vst.msk [vmem:[%s3168_s4 + $0x58] sm:$0xff] %vm212_vm1, %v1392_v63  ;;  %v1271_v0 = vadd.f32 1.0, %v1899_v4  ;;  %1920 = vpow2.f32 %v1167_v45  ;;  %v2747_v2 = vadd.f32 %v2581_v6, %v835_v59  ;;  %v1177_v5 = vmul.f32 1.442695, %v1087_v61  ;;  %v1742_v13 = vpop.f32.mrb[28].mxu0 }
 0x113   :  { %v1903_v15 = vpop.eup %1902  ;;  %1454 = vst.msk [vmem:[%s3168_s4 + $0x48] sm:$0xff] %vm212_vm1, %v1390_v60  ;;  %v1269_v38 = vadd.f32 1.0, %v1901_v10  ;;  %v1088_v7 = vsub.f32 0.0, %v2739_v62  ;;  %v1173_v44 = vmul.f32 1.442695, %v1085_v1  ;;  %v459_v18 = vpop.f32.mrb[29].mxu1  ;;  %v856_v24 = vadd.f32 %v1742_v13, %v1676_v41 }
 0x114   :  { %v1905_v8 = vpop.eup %1904  ;;  %1922 = vrcp.f32 %v1271_v0  ;;  %v1272_v11 = vadd.f32 1.0, %v1903_v15  ;;  %v1086_v12 = vsub.f32 0.0, %v2747_v2  ;;  %v847_v17 = vpop.f32.mrb[29].mxu0 }
 0x115   :  { %v1907_v46 = vpop.eup %1906  ;;  %1924 = vrcp.f32 %v1269_v38  ;;  %v1270_v19 = vadd.f32 1.0, %v1905_v8  ;;  %v1179_v23 = vmul.f32 1.442695, %v1088_v7  ;;  %v1677_v25 = vpop.f32.mrb[30].mxu1  ;;  %v848_v29 = vadd.f32 %v847_v17, %v459_v18 }
 0x116   :  { %v1909_v27 = vpop.eup %1908  ;;  %v1395_v20 = vmul.f32 %v1907_v46, %v2632_v36  ;;  %1926 = vrcp.f32 %v1272_v11  ;;  %v1175_v28 = vmul.f32 1.442695, %v1086_v12  ;;  %v1743_v31 = vpop.f32.mrb[30].mxu0  ;;  %v2758_v35 = vadd.f32 %v2581_v6, %v856_v24 }
 0x117   :  { %v462_v22 = vpop.f32.mrb[31].mxu1  ;;  %v1911_v32 = vpop.eup %1910  ;;  %v1393_v34 = vmul.f32 %v1909_v27, %v2635_v43  ;;  %1928 = vrcp.f32 %v1270_v19  ;;  %v859_v37 = vadd.f32 %v1743_v31, %v1677_v25  ;;  %v2766_v42 = vadd.f32 %v2581_v6, %v848_v29 }
 0x118   :  { %v850_v39 = vpop.f32.mrb[31].mxu0  ;;  %v1913_v40 = vpop.eup %1912  ;;  %1459 = vst.msk [vmem:[%s3168_s4 + $0x70] sm:$0xff] %vm212_vm1, %v1395_v20  ;;  %v1396_v36 = vmul.f32 %v1911_v32, %v2639_v50  ;;  %1930 = vpow2.f32 %v1177_v5  ;;  %v1091_v48 = vsub.f32 0.0, %v2758_v35 }
 0x119   :  { %v851_v45 = vadd.f32 %v850_v39, %v462_v22  ;;  %v1915_v43 = vpop.eup %1914  ;;  %1457 = vst.msk [vmem:[%s3168_s4 + $0x60] sm:$0xff] %vm212_vm1, %v1393_v34  ;;  %v1394_v47 = vmul.f32 %v1913_v40, %v2643_v54  ;;  %1932 = vpow2.f32 %v1173_v44  ;;  %v2775_v49 = vadd.f32 %v2581_v6, %v859_v37  ;;  %v1680_v63 = vpop.f32.mrb[32].mxu1 }
 0x11a   :  { %v1917_v50 = vpop.eup %1916  ;;  %1460 = vst.msk [vmem:[%s3168_s4 + $0x78] sm:$0xff] %vm212_vm1, %v1396_v36  ;;  %v1275_v51 = vadd.f32 1.0, %v1915_v43  ;;  %1934 = vpow2.f32 %v1179_v23  ;;  %v1089_v52 = vsub.f32 0.0, %v2766_v42  ;;  %v1185_v60 = vmul.f32 1.442695, %v1091_v48  ;;  %v1746_v10 = vpop.f32.mrb[32].mxu0 }
 0x11b   :  { %v2783_v55 = vadd.f32 %v2581_v6, %v851_v45  ;;  %v1919_v54 = vpop.eup %1918  ;;  %1458 = vst.msk [vmem:[%s3168_s4 + $0x68] sm:$0xff] %vm212_vm1, %v1394_v47  ;;  %v1273_v56 = vadd.f32 1.0, %v1917_v50  ;;  %1936 = vpow2.f32 %v1175_v28  ;;  %v1092_v57 = vsub.f32 0.0, %v2775_v49  ;;  %v475_v0 = vpop.f32.mrb[33].mxu1 }
 0x11c   :  { %v1921_v59 = vpop.eup %1920  ;;  %1938 = vrcp.f32 %v1275_v51  ;;  %v1276_v4 = vadd.f32 1.0, %v1919_v54  ;;  %v1181_v15 = vmul.f32 1.442695, %v1089_v52  ;;  %v872_v38 = vadd.f32 %v1746_v10, %v1680_v63  ;;  %v863_v5 = vpop.f32.mrb[33].mxu0 }
 0x11d   :  { %v1090_v61 = vsub.f32 0.0, %v2783_v55  ;;  %1940 = vrcp.f32 %v1273_v56  ;;  %v1274_v1 = vadd.f32 1.0, %v1921_v59  ;;  %v1681_v7 = vpop.f32.mrb[34].mxu1  ;;  %v1187_v8 = vmul.f32 1.442695, %v1092_v57  ;;  %v1747_v12 = vpop.f32.mrb[34].mxu0 }
 0x11e   :  { %v1923_v41 = vpop.eup %1922  ;;  %1942 = vrcp.f32 %v1276_v4  ;;  %v864_v44 = vadd.f32 %v863_v5, %v475_v0  ;;  %v478_v13 = vpop.f32.mrb[35].mxu1  ;;  %v2793_v19 = vadd.f32 %v2581_v6, %v872_v38  ;;  %v875_v23 = vadd.f32 %v1747_v12, %v1681_v7 }
 0x11f   :  { %v1183_v11 = vmul.f32 1.442695, %v1090_v61  ;;  %v1925_v18 = vpop.eup %1924  ;;  %v1399_v46 = vmul.f32 %v1923_v41, %v2655_v21  ;;  %1944 = vrcp.f32 %v1274_v1  ;;  %v866_v24 = vpop.f32.mrb[35].mxu0 }
 0x120   :  { %v1927_v17 = vpop.eup %1926  ;;  %v1397_v25 = vmul.f32 %v1925_v18, %v2663_v26  ;;  %1946 = vpow2.f32 %v1185_v60  ;;  %v2797_v27 = vadd.f32 %v2581_v6, %v864_v44  ;;  %v867_v20 = vadd.f32 %v866_v24, %v478_v13 }
 0x121   :  { %v1929_v28 = vpop.eup %1928  ;;  %1463 = vst.msk [vmem:[%s3168_s4 + $0x90] sm:$0xff] %vm212_vm1, %v1399_v46  ;;  %v1400_v21 = vmul.f32 %v1927_v17, %v2671_v30  ;;  %1948 = vpow2.f32 %v1181_v15  ;;  %v1095_v29 = vsub.f32 0.0, %v2793_v19  ;;  %v2806_v31 = vadd.f32 %v2581_v6, %v875_v23  ;;  %v1684_v36 = vpop.f32.mrb[36].mxu1 }
 0x122   :  { %v1931_v26 = vpop.eup %1930  ;;  %1461 = vst.msk [vmem:[%s3168_s4 + $0x80] sm:$0xff] %vm212_vm1, %v1397_v25  ;;  %v1398_v22 = vmul.f32 %v1929_v28, %v2679_v33  ;;  %1950 = vpow2.f32 %v1187_v8  ;;  %v1093_v32 = vsub.f32 0.0, %v2797_v27  ;;  %v2815_v34 = vadd.f32 %v2581_v6, %v867_v20  ;;  %v1750_v48 = vpop.f32.mrb[36].mxu0 }
 0x123   :  { %v1933_v30 = vpop.eup %1932  ;;  %1464 = vst.msk [vmem:[%s3168_s4 + $0x98] sm:$0xff] %vm212_vm1, %v1400_v21  ;;  %v1279_v37 = vadd.f32 1.0, %v1931_v26  ;;  %1952 = vpow2.f32 %v1183_v11  ;;  %v1193_v39 = vmul.f32 1.442695, %v1095_v29  ;;  %v1096_v40 = vsub.f32 0.0, %v2806_v31  ;;  %v491_v50 = vpop.f32.mrb[37].mxu1 }
 0x124   :  { %v1935_v45 = vpop.eup %1934  ;;  %1462 = vst.msk [vmem:[%s3168_s4 + $0x88] sm:$0xff] %vm212_vm1, %v1398_v22  ;;  %v1277_v33 = vadd.f32 1.0, %v1933_v30  ;;  %v1189_v43 = vmul.f32 1.442695, %v1093_v32  ;;  %v1094_v47 = vsub.f32 0.0, %v2815_v34  ;;  %v888_v56 = vadd.f32 %v1750_v48, %v1684_v36  ;;  %v879_v57 = vpop.f32.mrb[37].mxu0 }
 0x125   :  { %v1937_v51 = vpop.eup %1936  ;;  %1954 = vrcp.f32 %v1279_v37  ;;  %v1280_v52 = vadd.f32 1.0, %v1935_v45  ;;  %v1195_v54 = vmul.f32 1.442695, %v1096_v40  ;;  %v1685_v63 = vpop.f32.mrb[38].mxu1  ;;  %v880_v61 = vadd.f32 %v879_v57, %v491_v50 }
 0x126   :  { %v1939_v59 = vpop.eup %1938  ;;  %1956 = vrcp.f32 %v1277_v33  ;;  %v1278_v4 = vadd.f32 1.0, %v1937_v51  ;;  %v1191_v60 = vmul.f32 1.442695, %v1094_v47  ;;  %v1751_v10 = vpop.f32.mrb[38].mxu0  ;;  %v2829_v38 = vadd.f32 %v2581_v6, %v888_v56 }
 0x127   :  { %v494_v0 = vpop.f32.mrb[39].mxu1  ;;  %v1941_v1 = vpop.eup %1940  ;;  %v1403_v15 = vmul.f32 %v1939_v59, %v2691_v3  ;;  %1958 = vrcp.f32 %v1280_v52  ;;  %v891_v5 = vadd.f32 %v1751_v10, %v1685_v63  ;;  %v2833_v11 = vadd.f32 %v2581_v6, %v880_v61 }
 0x128   :  { %v882_v7 = vpop.f32.mrb[39].mxu0  ;;  %v1943_v41 = vpop.eup %1942  ;;  %v1401_v8 = vmul.f32 %v1941_v1, %v2699_v9  ;;  %1960 = vrcp.f32 %v1278_v4  ;;  %v1099_v13 = vsub.f32 0.0, %v2829_v38 }
 0x129   :  { %v883_v44 = vadd.f32 %v882_v7, %v494_v0  ;;  %v1945_v12 = vpop.eup %1944  ;;  %1467 = vst.msk [vmem:[%s3168_s4 + $0xb0] sm:$0xff] %vm212_vm1, %v1403_v15  ;;  %v1404_v3 = vmul.f32 %v1943_v41, %v2707_v16  ;;  %1962 = vpow2.f32 %v1193_v39  ;;  %v2842_v18 = vadd.f32 %v2581_v6, %v891_v5  ;;  %v1688_v20 = vpop.f32.mrb[40].mxu1 }
 0x12a   :  { %v1947_v9 = vpop.eup %1946  ;;  %1465 = vst.msk [vmem:[%s3168_s4 + $0xa0] sm:$0xff] %vm212_vm1, %v1401_v8  ;;  %v1402_v46 = vmul.f32 %v1945_v12, %v2715_v14  ;;  %1964 = vpow2.f32 %v1189_v43  ;;  %v1097_v23 = vsub.f32 0.0, %v2833_v11  ;;  %v1201_v21 = vmul.f32 1.442695, %v1099_v13  ;;  %v1754_v26 = vpop.f32.mrb[40].mxu0 }
 0x12b   :  { %v2851_v24 = vadd.f32 %v2581_v6, %v883_v44  ;;  %v1949_v16 = vpop.eup %1948  ;;  %1468 = vst.msk [vmem:[%s3168_s4 + $0xb8] sm:$0xff] %vm212_vm1, %v1404_v3  ;;  %v1283_v17 = vadd.f32 1.0, %v1947_v9  ;;  %1966 = vpow2.f32 %v1195_v54  ;;  %v1100_v25 = vsub.f32 0.0, %v2842_v18  ;;  %v507_v22 = vpop.f32.mrb[41].mxu1 }
 0x12c   :  { %v1951_v28 = vpop.eup %1950  ;;  %1466 = vst.msk [vmem:[%s3168_s4 + $0xa8] sm:$0xff] %vm212_vm1, %v1402_v46  ;;  %v1281_v14 = vadd.f32 1.0, %v1949_v16  ;;  %1968 = vpow2.f32 %v1191_v60  ;;  %v1197_v37 = vmul.f32 1.442695, %v1097_v23  ;;  %v904_v39 = vadd.f32 %v1754_v26, %v1688_v20  ;;  %v895_v40 = vpop.f32.mrb[41].mxu0 }
 0x12d   :  { %v1098_v29 = vsub.f32 0.0, %v2851_v24  ;;  %v1953_v32 = vpop.eup %1952  ;;  %1970 = vrcp.f32 %v1283_v17  ;;  %v1284_v30 = vadd.f32 1.0, %v1951_v28  ;;  %v1689_v36 = vpop.f32.mrb[42].mxu1  ;;  %v1203_v33 = vmul.f32 1.442695, %v1100_v25 }
 0x12e   :  { %1972 = vrcp.f32 %v1281_v14  ;;  %v1282_v45 = vadd.f32 1.0, %v1953_v32  ;;  %v896_v43 = vadd.f32 %v895_v40, %v507_v22  ;;  %v1755_v47 = vpop.f32.mrb[42].mxu0  ;;  %v510_v48 = vpop.f32.mrb[43].mxu1  ;;  %v2864_v52 = vadd.f32 %v2581_v6, %v904_v39 }
 0x12f   :  { %v1955_v50 = vpop.eup %1954  ;;  %1974 = vrcp.f32 %v1284_v30  ;;  %v1199_v51 = vmul.f32 1.442695, %v1098_v29  ;;  %v907_v54 = vadd.f32 %v1755_v47, %v1689_v36  ;;  %v898_v56 = vpop.f32.mrb[43].mxu0 }
 0x130   :  { %v1957_v57 = vpop.eup %1956  ;;  %v1407_v63 = vmul.f32 %v1955_v50, %v2722_v53  ;;  %1976 = vrcp.f32 %v1282_v45  ;;  %v2868_v59 = vadd.f32 %v2581_v6, %v896_v43  ;;  %v899_v4 = vadd.f32 %v898_v56, %v510_v48 }
 0x131   :  { %v1959_v60 = vpop.eup %1958  ;;  %v1405_v61 = vmul.f32 %v1957_v57, %v2730_v58  ;;  %1978 = vpow2.f32 %v1201_v21  ;;  %v1103_v10 = vsub.f32 0.0, %v2864_v52  ;;  %v2873_v0 = vadd.f32 %v2581_v6, %v907_v54  ;;  %v1692_v44 = vpop.f32.mrb[44].mxu1 }
 0x132   :  { %v1961_v1 = vpop.eup %1960  ;;  %1471 = vst.msk [vmem:[%s3168_s4 + $0xd0] sm:$0xff] %vm212_vm1, %v1407_v63  ;;  %v1408_v53 = vmul.f32 %v1959_v60, %v2739_v62  ;;  %1980 = vpow2.f32 %v1197_v37  ;;  %v1101_v15 = vsub.f32 0.0, %v2868_v59  ;;  %v2882_v5 = vadd.f32 %v2581_v6, %v899_v4  ;;  %v1758_v9 = vpop.f32.mrb[44].mxu0 }
 0x133   :  { %v1963_v58 = vpop.eup %1962  ;;  %1469 = vst.msk [vmem:[%s3168_s4 + $0xc0] sm:$0xff] %vm212_vm1, %v1405_v61  ;;  %v1406_v7 = vmul.f32 %v1961_v1, %v2747_v2  ;;  %1982 = vpow2.f32 %v1203_v33  ;;  %v1209_v41 = vmul.f32 1.442695, %v1103_v10  ;;  %v1104_v8 = vsub.f32 0.0, %v2873_v0  ;;  %v523_v46 = vpop.f32.mrb[45].mxu1 }
 0x134   :  { %v1965_v62 = vpop.eup %1964  ;;  %1472 = vst.msk [vmem:[%s3168_s4 + $0xd8] sm:$0xff] %vm212_vm1, %v1408_v53  ;;  %v1287_v12 = vadd.f32 1.0, %v1963_v58  ;;  %1984 = vpow2.f32 %v1199_v51  ;;  %v1205_v3 = vmul.f32 1.442695, %v1101_v15  ;;  %v1102_v13 = vsub.f32 0.0, %v2882_v5  ;;  %v911_v25 = vpop.f32.mrb[45].mxu0 }
 0x135   :  { %v1967_v23 = vpop.eup %1966  ;;  %1470 = vst.msk [vmem:[%s3168_s4 + $0xc8] sm:$0xff] %vm212_vm1, %v1406_v7  ;;  %v1285_v2 = vadd.f32 1.0, %v1965_v62  ;;  %1986 = vpow2.f32 %v1209_v41  ;;  %v1211_v16 = vmul.f32 1.442695, %v1104_v8  ;;  %v920_v17 = vadd.f32 %v1758_v9, %v1692_v44  ;;  %v1693_v20 = vpop.f32.mrb[46].mxu1 }
 0x136   :  { %v1969_v28 = vpop.eup %1968  ;;  %1988 = vrcp.f32 %v1287_v12  ;;  %v1288_v14 = vadd.f32 1.0, %v1967_v23  ;;  %v1207_v21 = vmul.f32 1.442695, %v1102_v13  ;;  %v912_v29 = vadd.f32 %v911_v25, %v523_v46  ;;  %v1759_v26 = vpop.f32.mrb[46].mxu0  ;;  %v2911_v51 = vld [vmem:[%s3167_s3] ss:$0 sm:$0xff] }
 0x137   :  { %v526_v22 = vpop.f32.mrb[47].mxu1  ;;  %v1971_v32 = vpop.eup %1970  ;;  %1990 = vrcp.f32 %v1285_v2  ;;  %v1286_v30 = vadd.f32 1.0, %v1969_v28  ;;  %v2900_v37 = vadd.f32 %v2581_v6, %v920_v17  ;;  %v923_v39 = vadd.f32 %v1759_v26, %v1693_v20 }
 0x138   :  { %v914_v40 = vpop.f32.mrb[47].mxu0  ;;  %v1973_v36 = vpop.eup %1972  ;;  %v1411_v45 = vmul.f32 %v1971_v32, %v2758_v35  ;;  %1992 = vrcp.f32 %v1288_v14  ;;  %v2904_v33 = vadd.f32 %v2581_v6, %v912_v29 }
 0x139   :  { %v915_v43 = vadd.f32 %v914_v40, %v526_v22  ;;  %v1975_v47 = vpop.eup %1974  ;;  %v1409_v48 = vmul.f32 %v1973_v36, %v2766_v42  ;;  %1994 = vrcp.f32 %v1286_v30  ;;  %v1107_v50 = vsub.f32 0.0, %v2900_v37  ;;  %v1696_v61 = vpop.f32.mrb[48].mxu1 }
 0x13a   :  { %v2914_v54 = vadd.f32 %v2911_v51, %v923_v39  ;;  %v1977_v35 = vpop.eup %1976  ;;  %1475 = vst.msk [vmem:[%s3168_s4 + $0xf0] sm:$0xff] %vm212_vm1, %v1411_v45  ;;  %v1412_v6 = vmul.f32 %v1975_v47, %v2775_v49  ;;  %1996 = vpow2.f32 %v1205_v3  ;;  %v1105_v42 = vsub.f32 0.0, %v2904_v33  ;;  %v1762_v15 = vpop.f32.mrb[48].mxu0 }
 0x13b   :  { %v2923_v56 = vadd.f32 %v2911_v51, %v915_v43  ;;  %v1979_v57 = vpop.eup %1978  ;;  %1473 = vst.msk [vmem:[%s3168_s4 + $0xe0] sm:$0xff] %vm212_vm1, %v1409_v48  ;;  %v1410_v63 = vmul.f32 %v1977_v35, %v2783_v55  ;;  %1998 = vpow2.f32 %v1211_v16  ;;  %v1217_v4 = vmul.f32 1.442695, %v1107_v50  ;;  %v539_v58 = vpop.f32.mrb[49].mxu1 }
 0x13c   :  { %v1108_v60 = vsub.f32 0.0, %v2914_v54  ;;  %v1981_v49 = vpop.eup %1980  ;;  %1476 = vst.msk [vmem:[%s3168_s4 + $0xf8] sm:$0xff] %vm212_vm1, %v1412_v6  ;;  %v1291_v10 = vadd.f32 1.0, %v1979_v57  ;;  %2000 = vpow2.f32 %v1207_v21  ;;  %v1213_v1 = vmul.f32 1.442695, %v1105_v42  ;;  %v927_v44 = vpop.f32.mrb[49].mxu0 }
 0x13d   :  { %v1106_v53 = vsub.f32 0.0, %v2923_v56  ;;  %v1983_v7 = vpop.eup %1982  ;;  %1474 = vst.msk [vmem:[%s3168_s4 + $0xe8] sm:$0xff] %vm212_vm1, %v1410_v63  ;;  %v1289_v55 = vadd.f32 1.0, %v1981_v49  ;;  %2002 = vpow2.f32 %v1217_v4  ;;  %v936_v8 = vadd.f32 %v1762_v15, %v1696_v61  ;;  %v1697_v62 = vpop.f32.mrb[50].mxu1 }
 0x13e   :  { %v1219_v41 = vmul.f32 1.442695, %v1108_v60  ;;  %v1985_v12 = vpop.eup %1984  ;;  %2004 = vrcp.f32 %v1291_v10  ;;  %v1292_v3 = vadd.f32 1.0, %v1983_v7  ;;  %v928_v9 = vadd.f32 %v927_v44, %v539_v58  ;;  %v1763_v46 = vpop.f32.mrb[50].mxu0 }
 0x13f   :  { %v1215_v13 = vmul.f32 1.442695, %v1106_v53  ;;  %v542_v23 = vpop.f32.mrb[51].mxu1  ;;  %v1987_v2 = vpop.eup %1986  ;;  %2006 = vrcp.f32 %v1289_v55  ;;  %v1290_v16 = vadd.f32 1.0, %v1985_v12  ;;  %v2941_v17 = vadd.f32 %v2911_v51, %v936_v8 }
 0x140   :  { %v939_v25 = vadd.f32 %v1763_v46, %v1697_v62  ;;  %v930_v20 = vpop.f32.mrb[51].mxu0  ;;  %v1989_v28 = vpop.eup %1988  ;;  %2008 = vrcp.f32 %v1292_v3  ;;  %v1295_v14 = vadd.f32 1.0, %v1987_v2  ;;  %v2944_v21 = vadd.f32 %v2911_v51, %v928_v9 }
 0x141   :  { %v931_v29 = vadd.f32 %v930_v20, %v542_v23  ;;  %v1991_v26 = vpop.eup %1990  ;;  %v1415_v22 = vmul.f32 %v1989_v28, %v2793_v19  ;;  %2010 = vrcp.f32 %v1290_v16  ;;  %v1111_v32 = vsub.f32 0.0, %v2941_v17  ;;  %v1700_v50 = vpop.f32.mrb[52].mxu1 }
 0x142   :  { %v2949_v30 = vadd.f32 %v2911_v51, %v939_v25  ;;  %v1993_v39 = vpop.eup %1992  ;;  %v1413_v40 = vmul.f32 %v1991_v26, %v2797_v27  ;;  %2012 = vrcp.f32 %v1295_v14  ;;  %v1109_v36 = vsub.f32 0.0, %v2944_v21  ;;  %v1766_v57 = vpop.f32.mrb[52].mxu0 }
 0x143   :  { %v2954_v45 = vadd.f32 %v2911_v51, %v931_v29  ;;  %v1995_v43 = vpop.eup %1994  ;;  %1479 = vst.msk [vmem:[%s3168_s4 + $0x110] sm:$0xff] %vm212_vm1, %v1415_v22  ;;  %v1416_v19 = vmul.f32 %v1993_v39, %v2806_v31  ;;  %2014 = vpow2.f32 %v1213_v1  ;;  %v1225_v47 = vmul.f32 1.442695, %v1111_v32  ;;  %v555_v63 = vpop.f32.mrb[53].mxu1 }
 0x144   :  { %v1112_v48 = vsub.f32 0.0, %v2949_v30  ;;  %v1997_v27 = vpop.eup %1996  ;;  %1477 = vst.msk [vmem:[%s3168_s4 + $0x100] sm:$0xff] %vm212_vm1, %v1413_v40  ;;  %v1414_v35 = vmul.f32 %v1995_v43, %v2815_v34  ;;  %2016 = vpow2.f32 %v1219_v41  ;;  %v1221_v6 = vmul.f32 1.442695, %v1109_v36  ;;  %v943_v49 = vpop.f32.mrb[53].mxu0 }
 0x145   :  { %v1110_v42 = vsub.f32 0.0, %v2954_v45  ;;  %v1999_v31 = vpop.eup %1998  ;;  %1480 = vst.msk [vmem:[%s3168_s4 + $0x118] sm:$0xff] %vm212_vm1, %v1416_v19  ;;  %v1293_v4 = vadd.f32 1.0, %v1997_v27  ;;  %2018 = vpow2.f32 %v1215_v13  ;;  %v952_v61 = vadd.f32 %v1766_v57, %v1700_v50  ;;  %v1701_v10 = vpop.f32.mrb[54].mxu1 }
 0x146   :  { %v1227_v60 = vmul.f32 1.442695, %v1112_v48  ;;  %v2001_v1 = vpop.eup %2000  ;;  %1478 = vst.msk [vmem:[%s3168_s4 + $0x108] sm:$0xff] %vm212_vm1, %v1414_v35  ;;  %v1296_v34 = vadd.f32 1.0, %v1999_v31  ;;  %2020 = vpow2.f32 %v1225_v47  ;;  %v944_v15 = vadd.f32 %v943_v49, %v555_v63  ;;  %v1767_v58 = vpop.f32.mrb[54].mxu0 }
 0x147   :  { %v1223_v53 = vmul.f32 1.442695, %v1110_v42  ;;  %v558_v7 = vpop.f32.mrb[55].mxu1  ;;  %v2003_v55 = vpop.eup %2002  ;;  %2022 = vrcp.f32 %v1293_v4  ;;  %v1294_v41 = vadd.f32 1.0, %v2001_v1  ;;  %v2977_v8 = vadd.f32 %v2911_v51, %v952_v61 }
 0x148   :  { %v955_v44 = vadd.f32 %v1767_v58, %v1701_v10  ;;  %v946_v62 = vpop.f32.mrb[55].mxu0  ;;  %v2005_v12 = vpop.eup %2004  ;;  %2024 = vrcp.f32 %v1296_v34  ;;  %v1299_v3 = vadd.f32 1.0, %v2003_v55  ;;  %v2980_v13 = vadd.f32 %v2911_v51, %v944_v15 }
 0x149   :  { %v947_v9 = vadd.f32 %v946_v62, %v558_v7  ;;  %v2007_v46 = vpop.eup %2006  ;;  %v1419_v23 = vmul.f32 %v2005_v12, %v2829_v38  ;;  %2026 = vrcp.f32 %v1294_v41  ;;  %v1115_v2 = vsub.f32 0.0, %v2977_v8  ;;  %v1704_v32 = vpop.f32.mrb[56].mxu1 }
 0x14a   :  { %v2985_v16 = vadd.f32 %v2911_v51, %v955_v44  ;;  %v2009_v25 = vpop.eup %2008  ;;  %v1417_v20 = vmul.f32 %v2007_v46, %v2833_v11  ;;  %2028 = vrcp.f32 %v1299_v3  ;;  %v1113_v28 = vsub.f32 0.0, %v2980_v13  ;;  %v1770_v43 = vpop.f32.mrb[56].mxu0 }
 0x14b   :  { %v2990_v14 = vadd.f32 %v2911_v51, %v947_v9  ;;  %v2011_v29 = vpop.eup %2010  ;;  %1483 = vst.msk [vmem:[%s3168_s4 + $0x130] sm:$0xff] %vm212_vm1, %v1419_v23  ;;  %v1420_v38 = vmul.f32 %v2009_v25, %v2842_v18  ;;  %2030 = vpow2.f32 %v1221_v6  ;;  %v1233_v26 = vmul.f32 1.442695, %v1115_v2  ;;  %v571_v19 = vpop.f32.mrb[57].mxu1 }
 0x14c   :  { %v1116_v22 = vsub.f32 0.0, %v2985_v16  ;;  %v2013_v11 = vpop.eup %2012  ;;  %1481 = vst.msk [vmem:[%s3168_s4 + $0x120] sm:$0xff] %vm212_vm1, %v1417_v20  ;;  %v1418_v39 = vmul.f32 %v2011_v29, %v2851_v24  ;;  %2032 = vpow2.f32 %v1227_v60  ;;  %v1229_v40 = vmul.f32 1.442695, %v1113_v28  ;;  %v959_v27 = vpop.f32.mrb[57].mxu0 }
 0x14d   :  { %v1114_v36 = vsub.f32 0.0, %v2990_v14  ;;  %v2015_v18 = vpop.eup %2014  ;;  %1484 = vst.msk [vmem:[%s3168_s4 + $0x138] sm:$0xff] %vm212_vm1, %v1420_v38  ;;  %v1423_v47 = vmul.f32 %v2013_v11, %v2864_v52  ;;  %2034 = vpow2.f32 %v1223_v53  ;;  %v968_v50 = vadd.f32 %v1770_v43, %v1704_v32  ;;  %v1705_v35 = vpop.f32.mrb[58].mxu1 }
 0x14e   :  { %v1235_v48 = vmul.f32 1.442695, %v1116_v22  ;;  %v2017_v24 = vpop.eup %2016  ;;  %1482 = vst.msk [vmem:[%s3168_s4 + $0x128] sm:$0xff] %vm212_vm1, %v1418_v39  ;;  %v1297_v6 = vadd.f32 1.0, %v2015_v18  ;;  %2036 = vpow2.f32 %v1233_v26  ;;  %v960_v57 = vadd.f32 %v959_v27, %v571_v19  ;;  %v1771_v63 = vpop.f32.mrb[58].mxu0 }
 0x14f   :  { %v1231_v42 = vmul.f32 1.442695, %v1114_v36  ;;  %v574_v31 = vpop.f32.mrb[59].mxu1  ;;  %v2019_v4 = vpop.eup %2018  ;;  %1487 = vst.msk [vmem:[%s3168_s4 + $0x150] sm:$0xff] %vm212_vm1, %v1423_v47  ;;  %v1300_v52 = vadd.f32 1.0, %v2017_v24  ;;  %2038 = vpow2.f32 %v1229_v40  ;;  %v3018_v60 = vadd.f32 %v2911_v51, %v968_v50 }
 0x150   :  { %v971_v61 = vadd.f32 %v1771_v63, %v1705_v35  ;;  %v962_v49 = vpop.f32.mrb[59].mxu0  ;;  %v2021_v10 = vpop.eup %2020  ;;  %2040 = vrcp.f32 %v1297_v6  ;;  %v1298_v1 = vadd.f32 1.0, %v2019_v4  ;;  %v3021_v34 = vadd.f32 %v2911_v51, %v960_v57 }
 0x151   :  { %v963_v53 = vadd.f32 %v962_v49, %v574_v31  ;;  %v2023_v15 = vpop.eup %2022  ;;  %2042 = vrcp.f32 %v1300_v52  ;;  %v1303_v58 = vadd.f32 1.0, %v2021_v10  ;;  %v1119_v7 = vsub.f32 0.0, %v3018_v60  ;;  %v1708_v2 = vpop.f32.mrb[60].mxu1 }
 0x152   :  { %v3025_v55 = vadd.f32 %v2911_v51, %v971_v61  ;;  %v2025_v41 = vpop.eup %2024  ;;  %v1421_v44 = vmul.f32 %v2023_v15, %v2868_v59  ;;  %2044 = vrcp.f32 %v1298_v1  ;;  %v1117_v62 = vsub.f32 0.0, %v3021_v34  ;;  %v1774_v29 = vpop.f32.mrb[60].mxu0 }
 0x153   :  { %v3030_v12 = vadd.f32 %v2911_v51, %v963_v53  ;;  %v2027_v3 = vpop.eup %2026  ;;  %v1424_v9 = vmul.f32 %v2025_v41, %v2873_v0  ;;  %2046 = vrcp.f32 %v1303_v58  ;;  %v1241_v46 = vmul.f32 1.442695, %v1119_v7  ;;  %v587_v38 = vpop.f32.mrb[61].mxu1 }
 0x154   :  { %v1120_v23 = vsub.f32 0.0, %v3025_v55  ;;  %v2029_v25 = vpop.eup %2028  ;;  %1485 = vst.msk [vmem:[%s3168_s4 + $0x140] sm:$0xff] %vm212_vm1, %v1421_v44  ;;  %v1422_v59 = vmul.f32 %v2027_v3, %v2882_v5  ;;  %2048 = vpow2.f32 %v1235_v48  ;;  %v1237_v20 = vmul.f32 1.442695, %v1117_v62  ;;  %v975_v11 = vpop.f32.mrb[61].mxu0 }
 0x155   :  { %v1118_v28 = vsub.f32 0.0, %v3030_v12  ;;  %v2031_v0 = vpop.eup %2030  ;;  %1488 = vst.msk [vmem:[%s3168_s4 + $0x158] sm:$0xff] %vm212_vm1, %v1424_v9  ;;  %v1427_v26 = vmul.f32 %v2029_v25, %v2900_v37  ;;  %2050 = vpow2.f32 %v1231_v42  ;;  %v984_v32 = vadd.f32 %v1774_v29, %v1708_v2  ;;  %v1709_v39 = vpop.f32.mrb[62].mxu1 }
 0x156   :  { %v1243_v22 = vmul.f32 1.442695, %v1120_v23  ;;  %v2033_v5 = vpop.eup %2032  ;;  %1486 = vst.msk [vmem:[%s3168_s4 + $0x148] sm:$0xff] %vm212_vm1, %v1422_v59  ;;  %v1301_v40 = vadd.f32 1.0, %v2031_v0  ;;  %2052 = vpow2.f32 %v1241_v46  ;;  %v976_v43 = vadd.f32 %v975_v11, %v587_v38  ;;  %v1775_v19 = vpop.f32.mrb[62].mxu0 }
 0x157   :  { %v1239_v36 = vmul.f32 1.442695, %v1118_v28  ;;  %v590_v18 = vpop.f32.mrb[63].mxu1  ;;  %v2035_v47 = vpop.eup %2034  ;;  %1491 = vst.msk [vmem:[%s3168_s4 + $0x170] sm:$0xff] %vm212_vm1, %v1427_v26  ;;  %v1304_v37 = vadd.f32 1.0, %v2033_v5  ;;  %2054 = vpow2.f32 %v1237_v20  ;;  %v3054_v48 = vadd.f32 %v2911_v51, %v984_v32 }
 0x158   :  { %v987_v50 = vadd.f32 %v1775_v19, %v1709_v39  ;;  %v978_v27 = vpop.f32.mrb[63].mxu0  ;;  %v2037_v35 = vpop.eup %2036  ;;  %2056 = vrcp.f32 %v1301_v40  ;;  %v1302_v24 = vadd.f32 1.0, %v2035_v47  ;;  %v3057_v6 = vadd.f32 %v2911_v51, %v976_v43 }
 0x159   :  { %v979_v42 = vadd.f32 %v978_v27, %v590_v18  ;;  %v2039_v57 = vpop.eup %2038  ;;  %2058 = vrcp.f32 %v1304_v37  ;;  %v1307_v63 = vadd.f32 1.0, %v2037_v35  ;;  %v1123_v31 = vsub.f32 0.0, %v3054_v48 }
 0x15a   :  { %v3061_v4 = vadd.f32 %v2911_v51, %v987_v50  ;;  %v2041_v52 = vpop.eup %2040  ;;  %2060 = vrcp.f32 %v1302_v24  ;;  %v1305_v61 = vadd.f32 1.0, %v2039_v57  ;;  %v1121_v49 = vsub.f32 0.0, %v3057_v6 }
 0x15b   :  { %v3065_v10 = vadd.f32 %v2911_v51, %v979_v42  ;;  %v2043_v1 = vpop.eup %2042  ;;  %v1425_v53 = vmul.f32 %v2041_v52, %v2904_v33  ;;  %2062 = vrcp.f32 %v1307_v63  ;;  %v1249_v15 = vmul.f32 1.442695, %v1123_v31 }
 0x15c   :  { %v2045_v58 = vpop.eup %2044  ;;  %v1428_v7 = vmul.f32 %v2043_v1, %v2914_v54  ;;  %2064 = vrcp.f32 %v1305_v61  ;;  %v1245_v41 = vmul.f32 1.442695, %v1121_v49  ;;  %v1124_v51 = vsub.f32 0.0, %v3061_v4 }
 0x15d   :  { %v2047_v44 = vpop.eup %2046  ;;  %1489 = vst.msk [vmem:[%s3168_s4 + $0x160] sm:$0xff] %vm212_vm1, %v1425_v53  ;;  %v1426_v62 = vmul.f32 %v2045_v58, %v2923_v56  ;;  %2066 = vpow2.f32 %v1243_v22  ;;  %v1122_v54 = vsub.f32 0.0, %v3065_v10 }
 0x15e   :  { %v2049_v3 = vpop.eup %2048  ;;  %1492 = vst.msk [vmem:[%s3168_s4 + $0x178] sm:$0xff] %vm212_vm1, %v1428_v7  ;;  %v1431_v33 = vmul.f32 %v2047_v44, %v2941_v17  ;;  %2068 = vpow2.f32 %v1239_v36  ;;  %v1251_v25 = vmul.f32 1.442695, %v1124_v51 }
 0x15f   :  { %v2051_v9 = vpop.eup %2050  ;;  %1490 = vst.msk [vmem:[%s3168_s4 + $0x168] sm:$0xff] %vm212_vm1, %v1426_v62  ;;  %v1308_v56 = vadd.f32 1.0, %v2049_v3  ;;  %2070 = vpow2.f32 %v1249_v15  ;;  %v1247_v28 = vmul.f32 1.442695, %v1122_v54 }
 0x160   :  { %v2053_v46 = vpop.eup %2052  ;;  %1495 = vst.msk [vmem:[%s3168_s4 + $0x190] sm:$0xff] %vm212_vm1, %v1431_v33  ;;  %v1306_v23 = vadd.f32 1.0, %v2051_v9  ;;  %2072 = vpow2.f32 %v1245_v41 }
 0x161   :  { %v2055_v17 = vpop.eup %2054  ;;  %2074 = vrcp.f32 %v1308_v56  ;;  %v1311_v2 = vadd.f32 1.0, %v2053_v46 }
 0x162   :  { %v2057_v59 = vpop.eup %2056  ;;  %2076 = vrcp.f32 %v1306_v23  ;;  %v1309_v20 = vadd.f32 1.0, %v2055_v17 }
 0x163   :  { %v2059_v29 = vpop.eup %2058  ;;  %v1429_v38 = vmul.f32 %v2057_v59, %v2944_v21  ;;  %2078 = vrcp.f32 %v1311_v2 }
 0x164   :  { %v2061_v0 = vpop.eup %2060  ;;  %v1432_v26 = vmul.f32 %v2059_v29, %v2949_v30  ;;  %2080 = vrcp.f32 %v1309_v20 }
 0x165   :  { %v2063_v22 = vpop.eup %2062  ;;  %1493 = vst.msk [vmem:[%s3168_s4 + $0x180] sm:$0xff] %vm212_vm1, %v1429_v38  ;;  %v1430_v32 = vmul.f32 %v2061_v0, %v2954_v45  ;;  %2082 = vpow2.f32 %v1251_v25 }
 0x166   :  { %v2065_v11 = vpop.eup %2064  ;;  %1496 = vst.msk [vmem:[%s3168_s4 + $0x198] sm:$0xff] %vm212_vm1, %v1432_v26  ;;  %v1435_v21 = vmul.f32 %v2063_v22, %v2977_v8  ;;  %2084 = vpow2.f32 %v1247_v28 }
 0x167   :  { %v2067_v30 = vpop.eup %2066  ;;  %1494 = vst.msk [vmem:[%s3168_s4 + $0x188] sm:$0xff] %vm212_vm1, %v1430_v32  ;;  %v1433_v39 = vmul.f32 %v2065_v11, %v2980_v13 }
 0x168   :  { %v2069_v5 = vpop.eup %2068  ;;  %1499 = vst.msk [vmem:[%s3168_s4 + $0x1b0] sm:$0xff] %vm212_vm1, %v1435_v21  ;;  %v1312_v45 = vadd.f32 1.0, %v2067_v30 }
 0x169   :  { %v2071_v40 = vpop.eup %2070  ;;  %1497 = vst.msk [vmem:[%s3168_s4 + $0x1a0] sm:$0xff] %vm212_vm1, %v1433_v39  ;;  %v1310_v8 = vadd.f32 1.0, %v2069_v5 }
 0x16a   :  { %v2073_v36 = vpop.eup %2072  ;;  %2086 = vrcp.f32 %v1312_v45  ;;  %v1315_v43 = vadd.f32 1.0, %v2071_v40 }
 0x16b   :  { %v2075_v19 = vpop.eup %2074  ;;  %2088 = vrcp.f32 %v1310_v8  ;;  %v1313_v13 = vadd.f32 1.0, %v2073_v36 }
 0x16c   :  { %v2077_v18 = vpop.eup %2076  ;;  %v1436_v47 = vmul.f32 %v2075_v19, %v2985_v16  ;;  %2090 = vrcp.f32 %v1315_v43 }
 0x16d   :  { %v2079_v37 = vpop.eup %2078  ;;  %v1434_v50 = vmul.f32 %v2077_v18, %v2990_v14  ;;  %2092 = vrcp.f32 %v1313_v13 }
 0x16e   :  { %v2081_v27 = vpop.eup %2080  ;;  %1500 = vst.msk [vmem:[%s3168_s4 + $0x1b8] sm:$0xff] %vm212_vm1, %v1436_v47  ;;  %v1439_v35 = vmul.f32 %v2079_v37, %v3018_v60 }
 0x16f   :  { %v2083_v24 = vpop.eup %2082  ;;  %1498 = vst.msk [vmem:[%s3168_s4 + $0x1a8] sm:$0xff] %vm212_vm1, %v1434_v50  ;;  %v1437_v16 = vmul.f32 %v2081_v27, %v3021_v34 }
 0x170   :  { %v2085_v42 = vpop.eup %2084  ;;  %1503 = vst.msk [vmem:[%s3168_s4 + $0x1d0] sm:$0xff] %vm212_vm1, %v1439_v35  ;;  %v1316_v14 = vadd.f32 1.0, %v2083_v24 }
 0x171   :  { %1501 = vst.msk [vmem:[%s3168_s4 + $0x1c0] sm:$0xff] %vm212_vm1, %v1437_v16  ;;  %v1314_v60 = vadd.f32 1.0, %v2085_v42 }
 0x172   :  { %2094 = vrcp.f32 %v1316_v14 }
 0x173   :  { %2096 = vrcp.f32 %v1314_v60 }
 0x174   :  { %v2087_v57 = vpop.eup %2086 }
 0x175   :  { %v2089_v63 = vpop.eup %2088  ;;  %v1440_v31 = vmul.f32 %v2087_v57, %v3025_v55 }
 0x176   :  { %v2091_v34 = vpop.eup %2090  ;;  %v1438_v52 = vmul.f32 %v2089_v63, %v3030_v12 }
 0x177   :  { %v2093_v61 = vpop.eup %2092  ;;  %1504 = vst.msk [vmem:[%s3168_s4 + $0x1d8] sm:$0xff] %vm212_vm1, %v1440_v31  ;;  %v1443_v49 = vmul.f32 %v2091_v34, %v3054_v48 }
 0x178   :  { %1502 = vst.msk [vmem:[%s3168_s4 + $0x1c8] sm:$0xff] %vm212_vm1, %v1438_v52  ;;  %v1441_v1 = vmul.f32 %v2093_v61, %v3057_v6 }
 0x179   :  { %1507 = vst.msk [vmem:[%s3168_s4 + $0x1f0] sm:$0xff] %vm212_vm1, %v1443_v49 }
 0x17a   :  { %1505 = vst.msk [vmem:[%s3168_s4 + $0x1e0] sm:$0xff] %vm212_vm1, %v1441_v1 }
 0x17c   :  { %v2095_v55 = vpop.eup %2094 }
 0x17d   :  { %v2097_v12 = vpop.eup %2096  ;;  %v1444_v48 = vmul.f32 %v2095_v55, %v3061_v4 }
 0x17e   :  { %v1442_v53 = vmul.f32 %v2097_v12, %v3065_v10 }
 0x17f   :  { %1508 = vst.msk [vmem:[%s3168_s4 + $0x1f8] sm:$0xff] %vm212_vm1, %v1444_v48 }
 0x180   :  { %1506 = vst.msk [vmem:[%s3168_s4 + $0x1e8] sm:$0xff] %vm212_vm1, %v1442_v53 }

</bundles_post_ra>
